<compile_context>
chip_gen: v6e
topology: v6e:2x2x1
jax: 0.10.0
libtpu: 0.0.40
codegen_flags: <defaults>
</compile_context>

<pallas_src>
import math

import numpy as np
import jax
import jax.numpy as jnp
from jax.experimental import pallas as pl
from jax.experimental.pallas import tpu as pltpu


def _make_freq_bands(max_freq_log2, n_freqs, log_sampling=True):
    """Matches torch.linspace semantics (endpoints inclusive)."""
    if n_freqs == 1:
        ts = [0.0]
    else:
        ts = [i / (n_freqs - 1) for i in range(n_freqs)]
    if log_sampling:
        return [2.0 ** (t * max_freq_log2) for t in ts]
    lo, hi = 2.0 ** 0.0, 2.0 ** max_freq_log2
    return [lo + t * (hi - lo) for t in ts]


def _round_up(v, m):
    return ((v + m - 1) // m) * m


def _build_tables(input_dim, freq_bands, include_input, R):
    """Constant lane-packing tables for R packed 'super-rows'.

    Returns:
      Gb:    (R*input_dim, R*out_dim) block-diagonal one-hot frequency matrix
             (identity block for the raw-input passthrough columns).
      phb:   (1, R*out_dim) phase row: 0 for sin columns, pi/2 for cos.
      maskb: (1, R*out_dim) 1.0 where the column is a raw-input passthrough.
    """
    base = input_dim if include_input else 0
    out_dim = base + 2 * len(freq_bands) * input_dim
    G = np.zeros((input_dim, out_dim), np.float32)
    phase = np.zeros((1, out_dim), np.float32)
    mask = np.zeros((1, out_dim), np.float32)
    if include_input:
        for c in range(input_dim):
            G[c, c] = 1.0          # passthrough: arg == x, selected pre-sin
            mask[0, c] = 1.0
    for fi, f in enumerate(freq_bands):
        for k, ph in enumerate((0.0, math.pi / 2.0)):   # 0 -> sin, 1 -> cos
            col0 = base + (2 * fi + k) * input_dim
            for c in range(input_dim):
                G[c, col0 + c] = np.float32(f)
                phase[0, col0 + c] = ph
    Gb = np.zeros((R * input_dim, R * out_dim), np.float32)
    for r in range(R):
        Gb[r * input_dim:(r + 1) * input_dim,
           r * out_dim:(r + 1) * out_dim] = G
    phb = np.tile(phase, (1, R))
    maskb = np.tile(mask, (1, R))
    return Gb, phb, maskb


def _make_embedder_kernel(include_input, compute_dtype, precision):
    def kernel(x_ref, g_ref, ph_ref, mask_ref, o_ref):
        x = x_ref[...].astype(compute_dtype)          # (rt, R*input_dim)
        # One MXU matmul builds every sin/cos argument for the whole
        # lane-dense (rt, R*out_dim) slab.  f32 inputs use HIGHEST so the
        # argument keeps full f32 accuracy even for large freq*|x|.
        arg = jnp.dot(x, g_ref[...],
                      preferred_element_type=jnp.float32,
                      precision=precision) + ph_ref[...]
        emb = jnp.sin(arg)                            # single transcendental pass
        if include_input:
            # Raw-input passthrough: G holds identity there (coef 1, phase 0),
            # so `arg` already equals x; one VPU select keeps the store path
            # single-pass and unmasked.
            emb = jnp.where(mask_ref[...] > 0.5, arg, emb)
        o_ref[...] = emb.astype(o_ref.dtype)
    return kernel


def embedder_forward(x, *, max_freq_log2, n_freqs, log_sampling=True,
                     include_input=True, step_bytes_target=6 << 20):
    """Positional-encoding forward pass.

    x: [..., input_dim]  ->  [..., out_dim]
    out_dim = input_dim * (include_input + 2 * n_freqs)
    """
    input_dim = x.shape[-1]
    freq_bands = _make_freq_bands(max_freq_log2, n_freqs, log_sampling)
    base = input_dim if include_input else 0
    out_dim = base + 2 * n_freqs * input_dim

    # Super-row packing factor: R original rows per packed row so the packed
    # output width R*out_dim is a multiple of 128 lanes.  Fall back to no
    # packing if the projection table would get unreasonably wide.
    R = 128 // math.gcd(128, out_dim)
    if R * out_dim > 8192:
        R = 1
    pin, pout = R * input_dim, R * out_dim

    Gb_np, phb_np, maskb_np = _build_tables(input_dim, freq_bands,
                                            include_input, R)

    lead_shape = x.shape[:-1]
    n_rows = int(math.prod(lead_shape)) if lead_shape else 1
    x2d = x.reshape(n_rows, input_dim)                 # free, contiguous

    # Pad rows to a multiple of R so the packing reshape stays a free
    # contiguous view (<= R-1 zero rows; tail is sliced off afterwards).
    pad = (-n_rows) % R
    if pad:
        x2d = jnp.pad(x2d, ((0, pad), (0, 0)))
    padded_rows = n_rows + pad
    packed_rows = padded_rows // R
    xp = x2d.reshape(packed_rows, pin)                 # free, contiguous

    # Precision / dtype gating.
    bands_bf16_exact = all(
        float(np.asarray(f, dtype=jnp.bfloat16).astype(np.float32))
        == float(np.float32(f))
        for f in freq_bands)
    if x.dtype == jnp.bfloat16 and bands_bf16_exact:
        # bf16 x against bf16 G (entries are 0 / 1 / powers of two, exact),
        # accumulated in f32 -> exact argument for the given bf16 inputs.
        g_dtype, compute_dtype, precision = jnp.bfloat16, jnp.bfloat16, None
    else:
        g_dtype, compute_dtype, precision = (jnp.float32, jnp.float32,
                                             jax.lax.Precision.HIGHEST)

    # Row-tile selection: ~step_bytes_target of HBM traffic per grid step,
    # multiple of 8 sublanes; keep >= 2 grid steps when there is enough work
    # so the "parallel" axis actually shards across both v7x TensorCores.
    itemsize = jnp.dtype(x.dtype).itemsize
    row_bytes = (pin + pout) * itemsize
    rt_target = max(8, _round_up(max(1, step_bytes_target // row_bytes), 8))
    if packed_rows > rt_target:
        rt = rt_target
    elif packed_rows >= 64:
        rt = _round_up((packed_rows + 1) // 2, 8)
    else:
        rt = packed_rows                               # single full-dim block
    grid = pl.cdiv(packed_rows, rt)

    # Explicit VMEM limit from lane-padded tile bytes (v5e default scoped
    # limit is only 16 MiB; v7x physical VMEM is 64 MiB).
    g_item = jnp.dtype(g_dtype).itemsize
    est_vmem = (2 * rt * pin * itemsize                # input double buffer
                + 2 * rt * pout * itemsize             # output double buffer
                + 2 * rt * pout * 4                    # f32 arg/sin intermediates
                + 2 * pin * pout * g_item              # projection table G
                + 4 * pout * 4)                        # phase + mask rows
    vmem_limit = max(32 << 20, min(int(est_vmem * 1.3) + (2 << 20), 64 << 20))

    kernel = _make_embedder_kernel(include_input, compute_dtype, precision)

    out_p = pl.pallas_call(
        kernel,
        out_shape=jax.ShapeDtypeStruct((packed_rows, pout), x.dtype),
        grid_spec=pltpu.PrefetchScalarGridSpec(
            num_scalar_prefetch=0,
            grid=(grid,),
            in_specs=[
                pl.BlockSpec((rt, pin), lambda i: (i, 0)),
                # Constants: same block every step -> DMA'd once and held.
                pl.BlockSpec((pin, pout), lambda i: (0, 0)),
                pl.BlockSpec((1, pout), lambda i: (0, 0)),
                pl.BlockSpec((1, pout), lambda i: (0, 0)),
            ],
            out_specs=pl.BlockSpec((rt, pout), lambda i: (i, 0)),
        ),
        compiler_params=pltpu.CompilerParams(
            dimension_semantics=("parallel",),
            vmem_limit_bytes=vmem_limit),
        cost_estimate=pl.CostEstimate(
            flops=2 * packed_rows * pin * pout,
            transcendentals=packed_rows * pout,
            bytes_accessed=packed_rows * (pin + pout) * itemsize),
    )(xp, jnp.asarray(Gb_np, dtype=g_dtype), jnp.asarray(phb_np),
      jnp.asarray(maskb_np))

    out2d = out_p.reshape(padded_rows, out_dim)        # free, contiguous
    if pad:
        out2d = out2d[:n_rows]
    return out2d.reshape(*lead_shape, out_dim)


def embedder_reference(x, *, max_freq_log2, n_freqs, log_sampling=True,
                       include_input=True):
    """Pure-JAX reference mirroring the PyTorch forward."""
    freq_bands = _make_freq_bands(max_freq_log2, n_freqs, log_sampling)
    parts = []
    if include_input:
        parts.append(x)
    for f in freq_bands:
        parts.append(jnp.sin(x * f))
        parts.append(jnp.cos(x * f))
    return jnp.concatenate(parts, axis=-1)


if __name__ == "__main__":
    key = jax.random.PRNGKey(0)
    k1, k2 = jax.random.split(key)
    kwargs = dict(max_freq_log2=5.0, n_freqs=6,
                  log_sampling=True, include_input=True)

    # Case 1: aligned rows (2*64 = 128 rows, exact multiple of R=32).
    x1 = jax.random.normal(k1, (2, 64, 4), dtype=jnp.float32)
    out1 = jax.block_until_ready(embedder_forward(x1, **kwargs))
    ref1 = embedder_reference(x1, **kwargs)
    assert out1.shape == (2, 64, 4 * (1 + 2 * 6)), out1.shape
    err1 = float(jnp.max(jnp.abs(out1 - ref1)))
    assert jnp.allclose(out1, ref1, atol=5e-5, rtol=5e-5), \
        f"case1 mismatch, max abs err={err1}"

    # Case 2: ragged row count (7*37 = 259 rows -> wrapper pad + tail slice).
    x2 = jax.random.normal(k2, (7, 37, 4), dtype=jnp.float32)
    out2 = jax.block_until_ready(embedder_forward(x2, **kwargs))
    ref2 = embedder_reference(x2, **kwargs)
    assert out2.shape == (7, 37, 52), out2.shape
    err2 = float(jnp.max(jnp.abs(out2 - ref2)))
    assert jnp.allclose(out2, ref2, atol=5e-5, rtol=5e-5), \
        f"case2 mismatch, max abs err={err2}"

    # Case 3: include_input=False (out_dim=48 -> R=8 packing path).
    kwargs3 = dict(max_freq_log2=5.0, n_freqs=6,
                   log_sampling=True, include_input=False)
    out3 = jax.block_until_ready(embedder_forward(x1, **kwargs3))
    ref3 = embedder_reference(x1, **kwargs3)
    assert out3.shape == (2, 64, 48), out3.shape
    err3 = float(jnp.max(jnp.abs(out3 - ref3)))
    assert jnp.allclose(out3, ref3, atol=5e-5, rtol=5e-5), \
        f"case3 mismatch, max abs err={err3}"

    print("KERNEL_OK")
</pallas_src>

<mosaic_0001>
module attributes {stable_mosaic.version = 11 : i64} {
  func.func @kernel(%arg0: i32, %arg1: memref<4x128xf32, #tpu.memory_space<vmem>>, %arg2: memref<128x1664xf32, #tpu.memory_space<vmem>>, %arg3: memref<1x1664xf32, #tpu.memory_space<vmem>>, %arg4: memref<1x1664xf32, #tpu.memory_space<vmem>>, %arg5: memref<4x1664xf32, #tpu.memory_space<vmem>>) attributes {dimension_semantics = [#tpu.dimension_semantics<parallel>], iteration_bounds = array<i64: 1>, scalar_prefetch = 0 : i64, scratch_operands = 0 : i64, tpu.core_type = #tpu.core_type<tc>, window_params = [{transform_indices = @transform_0, window_bounds = array<i64: 4, 128>}, {pipeline_mode = #tpu.pipeline_mode<synchronous>, transform_indices = @transform_1, window_bounds = array<i64: 128, 1664>}, {pipeline_mode = #tpu.pipeline_mode<synchronous>, transform_indices = @transform_2, window_bounds = array<i64: 1, 1664>}, {pipeline_mode = #tpu.pipeline_mode<synchronous>, transform_indices = @transform_3, window_bounds = array<i64: 1, 1664>}, {transform_indices = @transform_4, window_bounds = array<i64: 4, 1664>}]} {
    %c0 = arith.constant 0 : index
    %c0_0 = arith.constant 0 : index
    %0 = vector.load %arg1[%c0, %c0_0] : memref<4x128xf32, #tpu.memory_space<vmem>>, vector<4x128xf32>
    %c0_1 = arith.constant 0 : index
    %c0_2 = arith.constant 0 : index
    %1 = vector.load %arg2[%c0_1, %c0_2] : memref<128x1664xf32, #tpu.memory_space<vmem>>, vector<128x1664xf32>
    %cst = arith.constant dense<0.000000e+00> : vector<4x1664xf32>
    %2 = tpu.matmul %0, %1, %cst {dimension_numbers = #tpu.dot_dimension_numbers<[1], [0], [0], [1], [0, 0, 1, 1], [], []>, precision = #tpu.contract_precision<fp32>} : vector<4x128xf32>, vector<128x1664xf32>, vector<4x1664xf32> -> vector<4x1664xf32>
    %c0_3 = arith.constant 0 : index
    %c0_4 = arith.constant 0 : index
    %3 = vector.load %arg3[%c0_3, %c0_4] : memref<1x1664xf32, #tpu.memory_space<vmem>>, vector<1x1664xf32>
    %4 = vector.broadcast %3 : vector<1x1664xf32> to vector<4x1664xf32>
    %5 = arith.addf %2, %4 : vector<4x1664xf32>
    %6 = math.sin %5 : vector<4x1664xf32>
    %c0_5 = arith.constant 0 : index
    %c0_6 = arith.constant 0 : index
    %7 = vector.load %arg4[%c0_5, %c0_6] : memref<1x1664xf32, #tpu.memory_space<vmem>>, vector<1x1664xf32>
    %cst_7 = arith.constant 5.000000e-01 : f32
    %8 = vector.broadcast %cst_7 : f32 to vector<1x1664xf32>
    %9 = arith.cmpf ogt, %7, %8 : vector<1x1664xf32>
    %10 = vector.shape_cast %9 : vector<1x1664xi1> to vector<1x1664xi1>
    %11 = vector.broadcast %10 : vector<1x1664xi1> to vector<4x1664xi1>
    %12 = arith.select %11, %5, %6 : vector<4x1664xi1>, vector<4x1664xf32>
    %c0_8 = arith.constant 0 : index
    %c0_9 = arith.constant 0 : index
    %13 = vector.load %arg5[%c0_8, %c0_9] : memref<4x1664xf32, #tpu.memory_space<vmem>>, vector<4x1664xf32>
    tpu.vector_store %arg5[%c0_8, %c0_9], %12 {strides = array<i32>} : memref<4x1664xf32, #tpu.memory_space<vmem>>, vector<4x1664xf32>,
    return
  }
  func.func @transform_0(%arg0: i32) -> (i32, i32) {
    %c0_i32 = arith.constant 0 : i32
    %c0_i32_0 = arith.constant 0 : i32
    return %arg0, %c0_i32 : i32, i32
  }
  func.func @transform_1(%arg0: i32) -> (i32, i32) {
    %c0_i32 = arith.constant 0 : i32
    %c0_i32_0 = arith.constant 0 : i32
    %c0_i32_1 = arith.constant 0 : i32
    return %c0_i32, %c0_i32_0 : i32, i32
  }
  func.func @transform_2(%arg0: i32) -> (i32, i32) {
    %c0_i32 = arith.constant 0 : i32
    %c0_i32_0 = arith.constant 0 : i32
    %c0_i32_1 = arith.constant 0 : i32
    return %c0_i32, %c0_i32_0 : i32, i32
  }
  func.func @transform_3(%arg0: i32) -> (i32, i32) {
    %c0_i32 = arith.constant 0 : i32
    %c0_i32_0 = arith.constant 0 : i32
    %c0_i32_1 = arith.constant 0 : i32
    return %c0_i32, %c0_i32_0 : i32, i32
  }
  func.func @transform_4(%arg0: i32) -> (i32, i32) {
    %c0_i32 = arith.constant 0 : i32
    %c0_i32_0 = arith.constant 0 : i32
    return %arg0, %c0_i32 : i32, i32
  }
}

</mosaic_0001>

<bundles_post_ra>
// kernel: tpu_custom_call.1
= control target key start
LH: loop header
LB: loop body
LE: loop exit
PB: predicated region body
PF: predicated region fallthrough
CT: control target
= control target key end

     0   :  { %9 = vsyncpa [#allocation3], 0  ;;  %s13401_s0 = inlined_call_operand.hbm [shape: f32[4,128], index: 0, kind: input, shape index: {}]   ;;  %s13402_s1 = inlined_call_operand.hbm [shape: f32[128,1664], index: 1, kind: input, shape index: {}]   ;;  %s13403_s2 = inlined_call_operand.hbm [shape: f32[1,1664], index: 2, kind: input, shape index: {}]   ;;  %s13404_s3 = inlined_call_operand.hbm [shape: f32[1,1664], index: 3, kind: input, shape index: {}]   ;;  %s13405_s4 = inlined_call_operand.hbm [shape: f32[4,1664], index: 4, kind: output, shape index: {}]  }
   0x1   :  { %10 = vsyncpa [#allocation6], 0 }
   0x2   :  { %11 = vsyncpa [#allocation9], 0 }
   0x3   :  { %12 = vsyncpa [#allocation4], 0  ;;  %s8196_s15 = smov [#allocation5]  }
   0x4   :  { %s28_s16 = sshll.u32 %s8196_s15, 4  ;;  %s29_s16 = int_to_ptr.vmem [resolvable:$true] %s28_s16 }
   0x5   :  { %s8096_s17 = scalar_lea.vmem %s29_s16, 26624  ;;  %p8101_p1 = scmp.lt.s32.totalorder %s29_s16, %s29_s16 }
   0x6   :  { %p8097_p0 = scmp.ne.s32.totalorder %s29_s16, %s8096_s17  ;;  %p8102_p2 = scmp.lt.s32.totalorder %s8096_s17, %s8096_s17 }
   0x8   :  { %p8103_p3 = por %p8102_p2, %p8101_p1 }
   0xa   :  { %p8104_p4 = pnand %p8103_p3, %p8097_p0 }
   0xc   :  { %8107 = shalt.err (!%p8104_p4)
}
   0xd   :  { %s8197_s18 = smov 1664   ;;  %s8198_s19 = smov 104  }
   0xe   :  { %34 = dma.hbm_to_vmem [thread:$0]  %s13402_s1, 26624, %s29_s16, [#allocation6], %s8197_s18, %s8197_s18, %s8198_s19  }
   0xf   :  { %s8199_s22 = smov [#allocation2]   ;;  %s8200_s24 = smov [#allocation7]  }
  0x10   :  { %s19_s23 = sshll.u32 %s8199_s22, 4  ;;  %s41_s25 = sshll.u32 %s8200_s24, 4  ;;  %s20_s23 = int_to_ptr.vmem [resolvable:$true] %s19_s23  ;;  %s42_s25 = int_to_ptr.vmem [resolvable:$true] %s41_s25 }
  0x11   :  { %s8116_s26 = scalar_lea.vmem %s20_s23, 64  ;;  %p8121_p6 = scmp.lt.s32.totalorder %s20_s23, %s20_s23 }
  0x12   :  { %p8117_p5 = scmp.ne.s32.totalorder %s20_s23, %s8116_s26  ;;  %p8122_p7 = scmp.lt.s32.totalorder %s8116_s26, %s8116_s26 }
  0x14   :  { %p8123_p8 = por %p8122_p7, %p8121_p6 }
  0x16   :  { %p8124_p9 = pnand %p8123_p8, %p8117_p5 }
  0x18   :  { %8127 = shalt.err (!%p8124_p9)
}
  0x19   :  { %22 = dma.hbm_to_vmem [thread:$0]  %s13401_s0, 64, %s20_s23, [#allocation3]  }
  0x1a   :  { %s8136_s29 = scalar_lea.vmem %s42_s25, 208  ;;  %s8140_s1 = scalar_lea.vmem %s42_s25, 224 }
  0x1b   :  { %p8137_p10 = scmp.ne.s32.totalorder %s42_s25, %s8136_s29  ;;  %p8141_p11 = scmp.lt.s32.totalorder %s42_s25, %s42_s25 }
  0x1c   :  { %p8142_p12 = scmp.lt.s32.totalorder %s8140_s1, %s8136_s29 }
  0x1e   :  { %p8143_p13 = por %p8142_p12, %p8141_p11 }
  0x20   :  { %p8144_p0 = pnand %p8143_p13, %p8137_p10 }
  0x22   :  { %8147 = shalt.err (!%p8144_p0)
}
  0x23   :  { %44 = dma.hbm_to_vmem [thread:$0]  %s13403_s2, 208, %s42_s25, [#allocation6]  }
  0x24   :  { %s8201_s6 = smov [#allocation8]  }
  0x25   :  { %s51_s7 = sshll.u32 %s8201_s6, 4  ;;  %s52_s7 = int_to_ptr.vmem [resolvable:$true] %s51_s7 }
  0x26   :  { %s8156_s8 = scalar_lea.vmem %s52_s7, 208  ;;  %s8160_s9 = scalar_lea.vmem %s52_s7, 224 }
  0x27   :  { %p8157_p1 = scmp.ne.s32.totalorder %s52_s7, %s8156_s8  ;;  %p8161_p2 = scmp.lt.s32.totalorder %s52_s7, %s52_s7 }
  0x28   :  { %p8162_p3 = scmp.lt.s32.totalorder %s8160_s9, %s8156_s8 }
  0x2a   :  { %p8163_p4 = por %p8162_p3, %p8161_p2 }
  0x2c   :  { %p8164_p5 = pnand %p8163_p4, %p8157_p1 }
  0x2e   :  { %8167 = shalt.err (!%p8164_p5)
}
  0x2f   :  { %54 = dma.hbm_to_vmem [thread:$0]  %s13404_s3, 208, %s52_s7, [#allocation9]  }
  0x30   :  { %8188 = dma.done.wait [#allocation3], 64  }
  0x31   :  { %8189 = vsyncadd [#allocation3], 4294967232 }
  0x32   :  { %8190 = dma.done.wait [#allocation6], 26832  }
  0x33   :  { %8191 = vsyncadd [#allocation6], 4294940464 }
  0x34   :  { %8192 = dma.done.wait [#allocation9], 208  }
  0x35   :  { %8193 = vsyncadd [#allocation9], 4294967088  ;;  %v13420_v0 = vmov 0.0   ;;  %v264_v1 = vld [vmem:[#allocation5 + $0x620] sm:$0xff]  ;;  %v263_v2 = vld [vmem:[#allocation5 + $0x618] sm:$0xff]  ;;  %s8211_s2 = smov [#allocation10]  }
  0x36   :  { %441 = vmatprep.mubr.f32.mxu0 %v13420_v0  ;;  %677 = vmatprep.mubr.f32.mxu1 %v13420_v0  ;;  %v251_v3 = vld [vmem:[#allocation5 + $0x5b8] sm:$0xff]  ;;  %v8251_v4 = vand.u32 4294901760, %v264_v1  ;;  %v8253_v5 = vand.u32 4294901760, %v263_v2  ;;  %v250_v7 = vld [vmem:[#allocation5 + $0x5b0] sm:$0xff]  ;;  %v237_v9 = vld [vmem:[#allocation5 + $0x548] sm:$0xff]  ;;  %s7589_s3 = sshll.u32 %s8211_s2, 4  ;;  %s7590_s3 = int_to_ptr.vmem [resolvable:$true] %s7589_s3 }
  0x37   :  { %v8255_v6 = vand.u32 4294901760, %v251_v3  ;;  %v238_v8 = vld [vmem:[#allocation5 + $0x550] sm:$0xff]  ;;  %v8257_v10 = vand.u32 4294901760, %v250_v7  ;;  %v8261_v12 = vand.u32 4294901760, %v237_v9  ;;  %v225_v13 = vld [vmem:[#allocation5 + $0x4e8] sm:$0xff]  ;;  %v224_v14 = vld [vmem:[#allocation5 + $0x4e0] sm:$0xff]  ;;  %p8173_p7 = scmp.lt.s32.totalorder %s7590_s3, %s7590_s3 }
  0x38   :  { %v8259_v11 = vand.u32 4294901760, %v238_v8  ;;  %v212_v15 = vld [vmem:[#allocation5 + $0x480] sm:$0xff]  ;;  %346 = vmatprep.subr.mxu0 %v8251_v4  ;;  %v8264_v16 = vand.u32 4294901760, %v225_v13  ;;  %v8266_v17 = vand.u32 4294901760, %v224_v14  ;;  %v8271_v19 = vsub.f32 %v264_v1, %v8251_v4  ;;  %v8273_v20 = vld [vmem:[#allocation5 + $0x478] sm:$0xff]  ;;  %v8277_v22 = vld [vmem:[#allocation5 + $0x410] sm:$0xff] }
  0x39   :  { %v8268_v18 = vand.u32 4294901760, %v212_v15  ;;  %v8275_v21 = vld [vmem:[#allocation5 + $0x418] sm:$0xff]  ;;  %348 = vmatpush1.msra.mxu0 %v8253_v5  ;;  %v8281_v23 = vand.u32 4294901760, %v8273_v20  ;;  %v8284_v24 = vsub.f32 %v263_v2, %v8253_v5  ;;  %v8290_v26 = vsub.f32 %v251_v3, %v8255_v6  ;;  %v8292_v27 = vld [vmem:[#allocation5 + $0x3b0] sm:$0xff]  ;;  %v8294_v28 = vld [vmem:[#allocation5 + $0x3a8] sm:$0xff]  ;;  %s8168_s11 = scalar_lea.vmem %s7590_s3, 832 }
  0x3a   :  { %v8287_v25 = vand.u32 4294901760, %v8275_v21  ;;  %v8296_v29 = vld [vmem:[#allocation5 + $0x348] sm:$0xff]  ;;  %350 = vmatprep.subr.mxu0 %v8255_v6  ;;  %v13418_v30 = vand.u32 4294901760, %v8271_v19  ;;  %v8301_v31 = vand.u32 4294901760, %v8277_v22  ;;  %v8304_v32 = vsub.f32 %v250_v7, %v8257_v10  ;;  %v8318_v38 = vld [vmem:[#allocation5 + $0x340] sm:$0xff]  ;;  %v8352_v52 = vld [vmem:[#allocation5 + $0x2d8] sm:$0xff]  ;;  %p8169_p6 = scmp.ne.s32.totalorder %s7590_s3, %s8168_s11  ;;  %p8174_p8 = scmp.lt.s32.totalorder %s8168_s11, %s8168_s11 }
  0x3b   :  { %v8307_v33 = vand.u32 4294901760, %v8292_v27  ;;  %352 = vmatpush1.msra.mxu0 %v8257_v10  ;;  %v13417_v34 = vand.u32 4294901760, %v8284_v24  ;;  %v13415_v35 = vand.u32 4294901760, %v8290_v26  ;;  %v8313_v36 = vsub.f32 %v238_v8, %v8259_v11  ;;  %v8342_v47 = vld [vmem:[#allocation5 + $0x2e0] sm:$0xff]  ;;  %v8359_v57 = vld [vmem:[#allocation5 + $0x278] sm:$0xff]  ;;  %v8371_v62 = vld [vmem:[#allocation5 + $0x270] sm:$0xff] }
  0x3c   :  { %14075 = vst [vmem:[#allocation15_spill] sm:$0xff] %v8301_v31  ;;  %v8316_v37 = vand.u32 4294901760, %v8294_v28  ;;  %354 = vmatprep.subr.mxu0 %v8259_v11  ;;  %v456_v39 = vsub.f32 %v8271_v19, %v13418_v30  ;;  %v13413_v40 = vand.u32 4294901760, %v8304_v32  ;;  %v8326_v41 = vsub.f32 %v237_v9, %v8261_v12  ;;  %v8383_v7 = vld [vmem:[#allocation5 + $0x210] sm:$0xff]  ;;  %p8175_p9 = por %p8174_p8, %p8173_p7 }
  0x3d   :  { %14076 = vst [vmem:[#allocation16_spill] sm:$0xff] %v8307_v33  ;;  %v8329_v42 = vand.u32 4294901760, %v8296_v29  ;;  %356 = vmatpush1.msra.mxu0 %v8261_v12  ;;  %v462_v43 = vsub.f32 %v8284_v24, %v13417_v34  ;;  %v468_v44 = vsub.f32 %v8290_v26, %v13415_v35  ;;  %v13412_v45 = vand.u32 4294901760, %v8313_v36  ;;  %v8474_v35 = vld [vmem:[#allocation5 + $0xd8] sm:$0xff]  ;;  %v8484_v34 = vld [vmem:[#allocation5 + $0xd0] sm:$0xff] }
  0x3e   :  { %14077 = vst [vmem:[#allocation17_spill] sm:$0xff] %v8316_v37  ;;  %v8340_v46 = vsub.f32 %v225_v13, %v8264_v16  ;;  %358 = vmatprep.subr.mxu0 %v8264_v16  ;;  %v457_v48 = vand.u32 4294901760, %v456_v39  ;;  %v474_v49 = vsub.f32 %v8304_v32, %v13413_v40  ;;  %v13410_v50 = vand.u32 4294901760, %v8326_v41  ;;  %p8176_p10 = pnand %p8175_p9, %p8169_p6 }
  0x3f   :  { %14078 = vst [vmem:[#allocation18_spill] sm:$0xff] %v8329_v42  ;;  %v8350_v51 = vand.u32 4294901760, %v8318_v38  ;;  %360 = vmatpush1.msra.mxu0 %v8266_v17  ;;  %v463_v53 = vand.u32 4294901760, %v462_v43  ;;  %v469_v54 = vand.u32 4294901760, %v468_v44  ;;  %v480_v55 = vsub.f32 %v8313_v36, %v13412_v45  ;;  %v8461_v45 = vld [vmem:[#allocation5 + $0x138] sm:$0xff] }
  0x40   :  { %v13408_v56 = vand.u32 4294901760, %v8340_v46  ;;  %362 = vmatprep.subr.mxu0 %v8268_v18  ;;  %458 = vmatprep.subr.mxu1 %v457_v48  ;;  %v475_v58 = vand.u32 4294901760, %v474_v49  ;;  %v486_v59 = vsub.f32 %v8326_v41, %v13410_v50  ;;  %v8366_v60 = vsub.f32 %v224_v14, %v8266_v17 }
  0x41   :  { %14079 = vst [vmem:[#allocation19_spill] sm:$0xff] %v8350_v51  ;;  %v8369_v61 = vand.u32 4294901760, %v8342_v47  ;;  %364 = vmatpush1.msra.mxu0 %v8281_v23  ;;  %464 = vmatpush1.msra.mxu1 %v463_v53  ;;  %v481_v63 = vand.u32 4294901760, %v480_v55  ;;  %v8378_v2 = vsub.f32 %v212_v15, %v8268_v18  ;;  %v8381_v3 = vand.u32 4294901760, %v8352_v52  ;;  %v8394_v15 = vld [vmem:[#allocation5 + $0x208] sm:$0xff] }
  0x42   :  { %v492_v1 = vsub.f32 %v8340_v46, %v13408_v56  ;;  %366 = vmatprep.subr.mxu0 %v8287_v25  ;;  %470 = vmatprep.subr.mxu1 %v469_v54  ;;  %v487_v8 = vand.u32 4294901760, %v486_v59  ;;  %v13407_v9 = vand.u32 4294901760, %v8366_v60  ;;  %v8389_v13 = vsub.f32 %v8273_v20, %v8281_v23 }
  0x43   :  { %14080 = vst [vmem:[#allocation20_spill] sm:$0xff] %v8369_v61  ;;  %14081 = vst [vmem:[#allocation21_spill] sm:$0xff] %v8381_v3  ;;  %v8392_v14 = vand.u32 4294901760, %v8359_v57  ;;  %368 = vmatpush1.msra.mxu0 %v8301_v31  ;;  %476 = vmatpush1.msra.mxu1 %v475_v58  ;;  %v13406_v43 = vand.u32 4294901760, %v8378_v2  ;;  %v8400_v44 = vsub.f32 %v8275_v21, %v8287_v25  ;;  %v8403_v48 = vand.u32 4294901760, %v8371_v62  ;;  %v8417_v21 = vld [vmem:[#allocation5 + $0x1a8] sm:$0xff] }
  0x44   :  { %v493_v39 = vand.u32 4294901760, %v492_v1  ;;  %370 = vmatprep.subr.mxu0 %v8307_v33  ;;  %482 = vmatprep.subr.mxu1 %v481_v63  ;;  %v498_v20 = vsub.f32 %v8366_v60, %v13407_v9  ;;  %v13409_v49 = vand.u32 4294901760, %v8389_v13  ;;  %v8412_v53 = vsub.f32 %v8277_v22, %v8301_v31  ;;  %v8440_v9 = vld [vmem:[#allocation5 + $0x1a0] sm:$0xff] }
  0x45   :  { %14082 = vst [vmem:[#allocation22_spill] sm:$0xff] %v8392_v14  ;;  %14083 = vst [vmem:[#allocation23_spill] sm:$0xff] %v8403_v48  ;;  %v8415_v54 = vand.u32 4294901760, %v8383_v7  ;;  %372 = vmatpush1.msra.mxu0 %v8316_v37  ;;  %488 = vmatpush1.msra.mxu1 %v487_v8  ;;  %v504_v55 = vsub.f32 %v8378_v2, %v13406_v43  ;;  %v13411_v58 = vand.u32 4294901760, %v8400_v44  ;;  %v8429_v22 = vand.u32 4294901760, %v8394_v15 }
  0x46   :  { %v8426_v59 = vsub.f32 %v8292_v27, %v8307_v33  ;;  %374 = vmatprep.subr.mxu0 %v8329_v42  ;;  %494 = vmatprep.subr.mxu1 %v493_v39  ;;  %v499_v63 = vand.u32 4294901760, %v498_v20  ;;  %v510_v1 = vsub.f32 %v8389_v13, %v13409_v49  ;;  %v13414_v8 = vand.u32 4294901760, %v8412_v53  ;;  %v8450_v49 = vld [vmem:[#allocation5 + $0x140] sm:$0xff]  ;;  %v67_v33 = vld [vmem:[#allocation2] sm:$0xf] }
  0x47   :  { %14084 = vst [vmem:[#allocation24_spill] sm:$0xff] %v8415_v54  ;;  %14085 = vst [vmem:[#allocation25_spill] sm:$0xff] %v8429_v22  ;;  %v8438_v43 = vsub.f32 %v8294_v28, %v8316_v37  ;;  %376 = vmatpush1.msra.mxu0 %v8350_v51  ;;  %v505_v27 = vand.u32 4294901760, %v504_v55  ;;  %v516_v39 = vsub.f32 %v8400_v44, %v13411_v58  ;;  %v8448_v56 = vand.u32 4294901760, %v8417_v21 }
  0x48   :  { %v13416_v20 = vand.u32 4294901760, %v8426_v59  ;;  %500 = vmatpush1.msra.mxu1 %v499_v63  ;;  %378 = vmatprep.subr.mxu0 %v8369_v61  ;;  %v511_v28 = vand.u32 4294901760, %v510_v1  ;;  %v522_v50 = vsub.f32 %v8412_v53, %v13414_v8  ;;  %v8459_v58 = vsub.f32 %v8296_v29, %v8329_v42 }
  0x49   :  { %14086 = vst [vmem:[#allocation26_spill] sm:$0xff] %v8448_v56  ;;  %v13419_v55 = vand.u32 4294901760, %v8438_v43  ;;  %506 = vmatprep.subr.mxu1 %v505_v27  ;;  %380 = vmatpush1.msra.mxu0 %v8381_v3  ;;  %v517_v40 = vand.u32 4294901760, %v516_v39  ;;  %v8468_v1 = vand.u32 4294901760, %v8440_v9  ;;  %v8472_v8 = vsub.f32 %v8318_v38, %v8350_v51 }
  0x4a   :  { %v528_v63 = vsub.f32 %v8426_v59, %v13416_v20  ;;  %512 = vmatpush1.msra.mxu1 %v511_v28  ;;  %382 = vmatprep.subr.mxu0 %v8392_v14  ;;  %v523_v29 = vand.u32 4294901760, %v522_v50  ;;  %v13424_v39 = vand.u32 4294901760, %v8459_v58  ;;  %v8482_v20 = vand.u32 4294901760, %v8450_v49 }
  0x4b   :  { %14087 = vst [vmem:[#allocation27_spill] sm:$0xff] %v8468_v1  ;;  %v534_v27 = vsub.f32 %v8438_v43, %v13419_v55  ;;  %518 = vmatprep.subr.mxu1 %v517_v40  ;;  %384 = vmatpush1.msra.mxu0 %v8403_v48  ;;  %v13427_v28 = vand.u32 4294901760, %v8472_v8  ;;  %v8490_v50 = vsub.f32 %v8342_v47, %v8369_v61  ;;  %v8493_v30 = vand.u32 4294901760, %v8461_v45  ;;  %v8495_v55 = vld [vmem:[#allocation5 + $0x70] sm:$0xff] }
  0x4c   :  { %14088 = vst [vmem:[#allocation28_spill] sm:$0xff] %v8482_v20  ;;  %v529_v38 = vand.u32 4294901760, %v528_v63  ;;  %524 = vmatpush1.msra.mxu1 %v523_v29  ;;  %386 = vmatprep.subr.mxu0 %v8415_v54  ;;  %v540_v40 = vsub.f32 %v8459_v58, %v13424_v39  ;;  %v8503_v63 = vsub.f32 %v8352_v52, %v8381_v3  ;;  %v8506_v47 = vand.u32 4294901760, %v8474_v35  ;;  %v8520_v52 = vld [vmem:[#allocation5 + $0x68] sm:$0xff] }
  0x4d   :  { %14089 = vst [vmem:[#allocation29_spill] sm:$0xff] %v8493_v30  ;;  %v535_v0 = vand.u32 4294901760, %v534_v27  ;;  %388 = vmatpush1.msra.mxu0 %v8429_v22  ;;  %v546_v29 = vsub.f32 %v8472_v8, %v13427_v28  ;;  %v8515_v61 = vsub.f32 %v8359_v57, %v8392_v14  ;;  %v8518_v39 = vand.u32 4294901760, %v8484_v34  ;;  %v8531_v57 = vld [vmem:[#allocation5 + $0x8] sm:$0xff] }
  0x4e   :  { %14090 = vst [vmem:[#allocation30_spill] sm:$0xff] %v8506_v47  ;;  %530 = vmatprep.subr.mxu1 %v529_v38  ;;  %390 = vmatprep.subr.mxu0 %v8448_v56  ;;  %v541_v38 = vand.u32 4294901760, %v540_v40  ;;  %v8526_v28 = vsub.f32 %v8371_v62, %v8403_v48  ;;  %v8529_v27 = vand.u32 4294901760, %v8495_v55  ;;  %v14093_v51 = vand.u32 4294901760, %v8490_v50  ;;  %v8554_v40 = vld [vmem:[#allocation5] sm:$0xff] }
  0x4f   :  { %14091 = vst [vmem:[#allocation31_spill] sm:$0xff] %v8518_v39  ;;  %536 = vmatpush1.msra.mxu1 %v535_v0  ;;  %392 = vmatpush1.msra.mxu0 %v8468_v1  ;;  %v547_v14 = vand.u32 4294901760, %v546_v29  ;;  %v8540_v3 = vsub.f32 %v8383_v7, %v8415_v54  ;;  %v14094_v62 = vand.u32 4294901760, %v8503_v63  ;;  %v8548_v29 = vand.u32 4294901760, %v8520_v52 }
  0x50   :  { %14092 = vst [vmem:[#allocation32_spill] sm:$0xff] %v8529_v27  ;;  %v552_v0 = vsub.f32 %v8490_v50, %v14093_v51  ;;  %542 = vmatprep.subr.mxu1 %v541_v38  ;;  %394 = vmatprep.subr.mxu0 %v8482_v20  ;;  %v8552_v51 = vsub.f32 %v8394_v15, %v8429_v22  ;;  %v14095_v38 = vand.u32 4294901760, %v8515_v61  ;;  %v8562_v42 = vand.u32 4294901760, %v8531_v57 }
  0x51   :  { %v558_v48 = vsub.f32 %v8503_v63, %v14094_v62  ;;  %548 = vmatpush1.msra.mxu1 %v547_v14  ;;  %396 = vmatpush1.msra.mxu0 %v8493_v30  ;;  %v13446_v62 = vand.u32 4294901760, %v8540_v3  ;;  %v14096_v15 = vand.u32 4294901760, %v8526_v28  ;;  %v8578_v31 = vand.u32 4294901760, %v8554_v40 }
  0x52   :  { %v553_v7 = vand.u32 4294901760, %v552_v0  ;;  %v564_v54 = vsub.f32 %v8515_v61, %v14095_v38  ;;  %398 = vmatprep.subr.mxu0 %v8506_v47  ;;  %v8571_v0 = vsub.f32 %v8417_v21, %v8448_v56  ;;  %v14097_v21 = vand.u32 4294901760, %v8552_v51 }
  0x53   :  { %v559_v37 = vand.u32 4294901760, %v558_v48  ;;  %v570_v22 = vsub.f32 %v8526_v28, %v14096_v15  ;;  %400 = vmatpush1.msra.mxu0 %v8518_v39  ;;  %v576_v48 = vsub.f32 %v8540_v3, %v13446_v62  ;;  %v8582_v15 = vsub.f32 %v8440_v9, %v8468_v1 }
  0x54   :  { %554 = vmatprep.subr.mxu1 %v553_v7  ;;  %v565_v38 = vand.u32 4294901760, %v564_v54  ;;  %402 = vmatprep.subr.mxu0 %v8529_v27  ;;  %v582_v54 = vsub.f32 %v8552_v51, %v14097_v21  ;;  %v13449_v7 = vand.u32 4294901760, %v8571_v0  ;;  %v8591_v62 = vsub.f32 %v8450_v49, %v8482_v20 }
  0x55   :  { %560 = vmatpush1.msra.mxu1 %v559_v37  ;;  %v571_v14 = vand.u32 4294901760, %v570_v22  ;;  %v577_v56 = vand.u32 4294901760, %v576_v48  ;;  %404 = vmatpush1.msra.mxu0 %v8548_v29  ;;  %v13452_v9 = vand.u32 4294901760, %v8582_v15  ;;  %v8595_v37 = vand.u32 4294901760, %v67_v33 }
  0x56   :  { %566 = vmatprep.subr.mxu1 %v565_v38  ;;  %v8599_v22 = vsub.f32 %v8461_v45, %v8493_v30  ;;  %v583_v21 = vand.u32 4294901760, %v582_v54  ;;  %406 = vmatprep.subr.mxu0 %v8562_v42  ;;  %v588_v49 = vsub.f32 %v8571_v0, %v13449_v7  ;;  %v8608_v48 = vsub.f32 %v8474_v35, %v8506_v47 }
  0x57   :  { %14098 = vst [vmem:[#allocation33_spill] sm:$0xff] %v8595_v37  ;;  %572 = vmatpush1.msra.mxu1 %v571_v14  ;;  %408 = vmatpush1.msra.mxu0 %v8578_v31  ;;  %v594_v45 = vsub.f32 %v8582_v15, %v13452_v9  ;;  %v8615_v14 = vsub.f32 %v67_v33, %v8595_v37  ;;  %v14100_v35 = vand.u32 4294901760, %v8591_v62 }
  0x58   :  { %578 = vmatprep.subr.mxu1 %v577_v56  ;;  %v8620_v7 = vsub.f32 %v8484_v34, %v8518_v39  ;;  %v589_v38 = vand.u32 4294901760, %v588_v49  ;;  %687 = vmatprep.subr.mxu0 %v8271_v19  ;;  %v13459_v47 = vand.u32 4294901760, %v8608_v48  ;;  %v8629_v33 = vsub.f32 %v8495_v55, %v8529_v27 }
  0x59   :  { %14099 = vst [vmem:[#allocation34_spill] sm:$0xff] %v8615_v14  ;;  %584 = vmatpush1.msra.mxu1 %v583_v21  ;;  %v600_v56 = vsub.f32 %v8591_v62, %v14100_v35  ;;  %v595_v9 = vand.u32 4294901760, %v594_v45  ;;  %v8632_v54 = vand.u32 4294901760, %v8615_v14  ;;  %v14102_v34 = vand.u32 4294901760, %v8599_v22 }
  0x5a   :  { %v13460_v49 = vand.u32 4294901760, %v8620_v7  ;;  %590 = vmatprep.subr.mxu1 %v589_v38  ;;  %v612_v39 = vsub.f32 %v8608_v48, %v13459_v47  ;;  %v13466_v30 = vand.u32 4294901760, %v8629_v33  ;;  %v8644_v55 = vsub.f32 %v8520_v52, %v8548_v29 }
  0x5b   :  { %14101 = vst [vmem:[#allocation35_spill] sm:$0xff] %v8632_v54  ;;  %v606_v21 = vsub.f32 %v8599_v22, %v14102_v34  ;;  %v601_v35 = vand.u32 4294901760, %v600_v56  ;;  %596 = vmatpush1.msra.mxu1 %v595_v9  ;;  %v445_v45 = vsub.f32 %v8615_v14, %v8632_v54  ;;  %v8653_v56 = vsub.f32 %v8531_v57, %v8562_v42 }
  0x5c   :  { %14103 = vst [vmem:[#allocation36_spill] sm:$0xff] %v8644_v55  ;;  %v618_v38 = vsub.f32 %v8620_v7, %v13460_v49  ;;  %v613_v34 = vand.u32 4294901760, %v612_v39  ;;  %v624_v52 = vsub.f32 %v8629_v33, %v13466_v30  ;;  %v13465_v9 = vand.u32 4294901760, %v8644_v55  ;;  %v14118_v30 = vld [vmem:[#allocation26_spill] sm:$0xff] }
  0x5d   :  { %v607_v27 = vand.u32 4294901760, %v606_v21  ;;  %602 = vmatprep.subr.mxu1 %v601_v35  ;;  %v8661_v47 = vsub.f32 %v8554_v40, %v8578_v31  ;;  %v8663_v21 = vand.u32 4294901760, %v445_v45  ;;  %v13464_v54 = vand.u32 4294901760, %v8653_v56 }
  0x5e   :  { %v619_v49 = vand.u32 4294901760, %v618_v38  ;;  %v625_v57 = vand.u32 4294901760, %v624_v52  ;;  %v630_v39 = vsub.f32 %v8644_v55, %v13465_v9  ;;  %v14107_v52 = vld [vmem:[#allocation15_spill] sm:$0xff]  ;;  %v14117_v9 = vld [vmem:[#allocation25_spill] sm:$0xff] }
  0x5f   :  { %14104 = vst [vmem:[#allocation37_spill] sm:$0xff] %v8661_v47  ;;  %14105 = vst [vmem:[#allocation38_spill] sm:$0xff] %v8663_v21  ;;  %608 = vmatpush1.msra.mxu1 %v607_v27  ;;  %v13463_v35 = vand.u32 4294901760, %v8661_v47  ;;  %447 = vmatmul.mubr.f32.vlgmr.msra.gmra.mxu0 %v8663_v21  ;;  %v636_v40 = vsub.f32 %v8653_v56, %v13464_v54  ;;  %v14116_v54 = vld [vmem:[#allocation24_spill] sm:$0xff]  ;;  %v14119_v21 = vand.u32 4294901760, %v8271_v19  ;;  %v14127_v19 = vand.u32 4294901760, %v8313_v36 }
  0x60   :  { %614 = vmatprep.subr.mxu1 %v613_v34  ;;  %690 = vmatpush1.msra.mxu0 %v8284_v24  ;;  %v631_v27 = vand.u32 4294901760, %v630_v39  ;;  %v14106_v34 = vmov 0.0   ;;  %v14109_v39 = vld [vmem:[#allocation17_spill] sm:$0xff] }
  0x61   :  { %620 = vmatpush1.msra.mxu1 %v619_v49  ;;  %v642_v45 = vsub.f32 %v8661_v47, %v13463_v35  ;;  %693 = vmatprep.subr.mxu0 %v8290_v26  ;;  %v637_v38 = vand.u32 4294901760, %v636_v40  ;;  %v14110_v40 = vld [vmem:[#allocation18_spill] sm:$0xff]  ;;  %v14115_v35 = vld [vmem:[#allocation23_spill] sm:$0xff] }
  0x62   :  { %626 = vmatprep.subr.mxu1 %v625_v57  ;;  %813 = vmatprep.mubr.f32.mxu0 %v14106_v34  ;;  %v14108_v57 = vld [vmem:[#allocation16_spill] sm:$0xff] }
  0x63   :  { %696 = vmatpush1.msra.mxu0 %v8304_v32  ;;  %632 = vmatpush1.msra.mxu1 %v631_v27  ;;  %v643_v49 = vand.u32 4294901760, %v642_v45  ;;  %v14111_v27 = vld [vmem:[#allocation19_spill] sm:$0xff]  ;;  %v14112_v45 = vld [vmem:[#allocation20_spill] sm:$0xff] }
  0x64   :  { %699 = vmatprep.subr.mxu0 %v8313_v36  ;;  %638 = vmatprep.subr.mxu1 %v637_v38  ;;  %v14113_v38 = vld [vmem:[#allocation21_spill] sm:$0xff]  ;;  %v14132_v36 = vand.u32 4294901760, %v8378_v2 }
  0x65   :  { %702 = vmatpush1.msra.mxu0 %v8326_v41  ;;  %644 = vmatpush1.msra.mxu1 %v643_v49  ;;  %v14114_v49 = vld [vmem:[#allocation22_spill] sm:$0xff] }
  0x66   :  { %705 = vmatprep.subr.mxu0 %v8340_v46  ;;  %679 = vmatmul.mubr.f32.vlgmr.msra.gmra.mxu1 %v8595_v37  ;;  %v14120_v37 = vld [vmem:[#allocation29_spill] sm:$0xff] }
  0x67   :  { %708 = vmatpush1.msra.mxu0 %v8366_v60  ;;  %823 = vmatprep.subr.mxu1 %v8251_v4 }
  0x68   :  { %711 = vmatprep.subr.mxu0 %v8378_v2  ;;  %825 = vmatpush1.msra.mxu1 %v8253_v5  ;;  %v14136_v2 = vand.u32 4294901760, %v8426_v59 }
  0x69   :  { %714 = vmatpush1.msra.mxu0 %v8389_v13  ;;  %827 = vmatprep.subr.mxu1 %v8255_v6 }
  0x6a   :  { %717 = vmatprep.subr.mxu0 %v8400_v44  ;;  %829 = vmatpush1.msra.mxu1 %v8257_v10 }
  0x6b   :  { %720 = vmatpush1.msra.mxu0 %v8412_v53  ;;  %831 = vmatprep.subr.mxu1 %v8259_v11 }
  0x6c   :  { %723 = vmatprep.subr.mxu0 %v8426_v59  ;;  %833 = vmatpush1.msra.mxu1 %v8261_v12  ;;  %v14143_v59 = vand.u32 4294901760, %v8526_v28 }
  0x6d   :  { %726 = vmatpush1.msra.mxu0 %v8438_v43  ;;  %835 = vmatprep.subr.mxu1 %v8264_v16 }
  0x6e   :  { %729 = vmatprep.subr.mxu0 %v8459_v58  ;;  %837 = vmatpush1.msra.mxu1 %v8266_v17 }
  0x6f   :  { %732 = vmatpush1.msra.mxu0 %v8472_v8  ;;  %839 = vmatprep.subr.mxu1 %v8268_v18 }
  0x70   :  { %735 = vmatprep.subr.mxu0 %v8490_v50  ;;  %841 = vmatpush1.msra.mxu1 %v8281_v23 }
  0x71   :  { %738 = vmatpush1.msra.mxu0 %v8503_v63  ;;  %843 = vmatprep.subr.mxu1 %v8287_v25 }
  0x72   :  { %741 = vmatprep.subr.mxu0 %v8515_v61  ;;  %845 = vmatpush1.msra.mxu1 %v14107_v52 }
  0x73   :  { %744 = vmatpush1.msra.mxu0 %v8526_v28  ;;  %847 = vmatprep.subr.mxu1 %v14108_v57  ;;  %v226_v28 = vld [vmem:[#allocation5 + $0x4f0] sm:$0xff] }
  0x74   :  { %747 = vmatprep.subr.mxu0 %v8540_v3  ;;  %849 = vmatpush1.msra.mxu1 %v14109_v39 }
  0x75   :  { %750 = vmatpush1.msra.mxu0 %v8552_v51  ;;  %851 = vmatprep.subr.mxu1 %v14110_v40 }
  0x76   :  { %753 = vmatprep.subr.mxu0 %v8571_v0  ;;  %853 = vmatpush1.msra.mxu1 %v14111_v27 }
  0x77   :  { %756 = vmatpush1.msra.mxu0 %v8582_v15  ;;  %855 = vmatprep.subr.mxu1 %v14112_v45 }
  0x78   :  { %759 = vmatprep.subr.mxu0 %v8591_v62  ;;  %857 = vmatpush1.msra.mxu1 %v14113_v38 }
  0x79   :  { %762 = vmatpush1.msra.mxu0 %v8599_v22  ;;  %859 = vmatprep.subr.mxu1 %v14114_v49 }
  0x7a   :  { %765 = vmatprep.subr.mxu0 %v8608_v48  ;;  %861 = vmatpush1.msra.mxu1 %v14115_v35 }
  0x7b   :  { %768 = vmatpush1.msra.mxu0 %v8620_v7  ;;  %863 = vmatprep.subr.mxu1 %v14116_v54 }
  0x7c   :  { %771 = vmatprep.subr.mxu0 %v8629_v33  ;;  %865 = vmatpush1.msra.mxu1 %v14117_v9  ;;  %v14121_v9 = vand.u32 4294901760, %v8284_v24  ;;  %v14128_v24 = vand.u32 4294901760, %v8326_v41  ;;  %v14133_v41 = vand.u32 4294901760, %v8389_v13  ;;  %v265_v13 = vld [vmem:[#allocation5 + $0x628] sm:$0xff] }
  0x7d   :  { %774 = vmatpush1.msra.mxu0 %v8644_v55  ;;  %867 = vmatprep.subr.mxu1 %v14118_v30  ;;  %v14122_v55 = vld [vmem:[#allocation30_spill] sm:$0xff]  ;;  %v14123_v30 = vand.u32 4294901760, %v8290_v26  ;;  %v14129_v26 = vand.u32 4294901760, %v8340_v46  ;;  %v14134_v46 = vand.u32 4294901760, %v8400_v44  ;;  %v14139_v44 = vand.u32 4294901760, %v8472_v8  ;;  %v239_v8 = vld [vmem:[#allocation5 + $0x558] sm:$0xff] }
  0x7e   :  { %777 = vmatprep.subr.mxu0 %v8653_v56  ;;  %869 = vmatpush1.msra.mxu1 %v8468_v1  ;;  %v14124_v1 = vld [vmem:[#allocation31_spill] sm:$0xff] }
  0x7f   :  { %780 = vmatpush1.msra.mxu0 %v8661_v47  ;;  %871 = vmatprep.subr.mxu1 %v8482_v20  ;;  %v14125_v47 = vand.u32 4294901760, %v8304_v32  ;;  %v14126_v20 = vld [vmem:[#allocation32_spill] sm:$0xff]  ;;  %v14131_v32 = vld [vmem:[#allocation35_spill] sm:$0xff] }
  0x80   :  { %816 = vmatmul.mubr.f32.vlgmr.msra.gmra.mxu0 %v8615_v14  ;;  %931 = vmatprep.subr.mxu0 %v14119_v21  ;;  %v8828_v21 = vand.u32 4294901760, %v239_v8 }
  0x81   :  { %873 = vmatpush1.msra.mxu1 %v14120_v37  ;;  %935 = vmatpush1.msra.mxu0 %v14121_v9  ;;  %v14147_v9 = vand.u32 4294901760, %v8582_v15  ;;  %v214_v15 = vld [vmem:[#allocation5 + $0x490] sm:$0xff] }
  0x82   :  { %875 = vmatprep.subr.mxu1 %v14122_v55  ;;  %939 = vmatprep.subr.mxu0 %v14123_v30  ;;  %v14130_v30 = vand.u32 4294901760, %v8366_v60  ;;  %v14135_v60 = vand.u32 4294901760, %v8412_v53  ;;  %v14142_v53 = vand.u32 4294901760, %v8515_v61  ;;  %v14145_v61 = vand.u32 4294901760, %v8552_v51  ;;  %14148 = vst [vmem:[#allocation15_spill] sm:$0xff] %v8828_v21 }
  0x83   :  { %877 = vmatpush1.msra.mxu1 %v14124_v1  ;;  %943 = vmatpush1.msra.mxu0 %v14125_v47 }
  0x84   :  { %879 = vmatprep.subr.mxu1 %v14126_v20  ;;  %947 = vmatprep.subr.mxu0 %v14127_v19 }
  0x85   :  { %881 = vmatpush1.msra.mxu1 %v8548_v29  ;;  %951 = vmatpush1.msra.mxu0 %v14128_v24 }
  0x86   :  { %883 = vmatprep.subr.mxu1 %v8562_v42  ;;  %955 = vmatprep.subr.mxu0 %v14129_v26  ;;  %v14152_v26 = vand.u32 4294901760, %v8608_v48 }
  0x87   :  { %885 = vmatpush1.msra.mxu1 %v8578_v31  ;;  %918 = vmatprep.mubr.f32.mxu1 %v14106_v34 }
  0x88   :  { %959 = vmatpush1.msra.mxu0 %v14130_v30  ;;  %922 = vmatmul.mubr.f32.vlgmr.msra.gmra.mxu1 %v14131_v32 }
  0x89   :  { %963 = vmatprep.subr.mxu0 %v14132_v36  ;;  %1097 = vmatprep.subr.mxu1 %v8251_v4  ;;  %v14137_v4 = vand.u32 4294901760, %v8438_v43  ;;  %v14154_v36 = vand.u32 4294901760, %v8620_v7  ;;  %v187_v7 = vld [vmem:[#allocation5 + $0x3b8] sm:$0xff] }
  0x8a   :  { %967 = vmatpush1.msra.mxu0 %v14133_v41  ;;  %1099 = vmatpush1.msra.mxu1 %v8253_v5  ;;  %v14138_v5 = vand.u32 4294901760, %v8459_v58  ;;  %v8856_v41 = vsub.f32 %v239_v8, %v8828_v21 }
  0x8b   :  { %971 = vmatprep.subr.mxu0 %v14134_v46  ;;  %1101 = vmatprep.subr.mxu1 %v8255_v6  ;;  %v266_v6 = vld [vmem:[#allocation5 + $0x630] sm:$0xff] }
  0x8c   :  { %975 = vmatpush1.msra.mxu0 %v14135_v60  ;;  %1103 = vmatpush1.msra.mxu1 %v8257_v10  ;;  %v252_v10 = vld [vmem:[#allocation5 + $0x5c0] sm:$0xff]  ;;  %v8791_v43 = vand.u32 4294901760, %v266_v6  ;;  %v8866_v60 = vand.u32 4294901760, %v214_v15  ;;  %v13475_v8 = vand.u32 4294901760, %v8856_v41 }
  0x8d   :  { %979 = vmatprep.subr.mxu0 %v14136_v2  ;;  %1105 = vmatprep.subr.mxu1 %v8259_v11  ;;  %v14140_v11 = vand.u32 4294901760, %v8490_v50  ;;  %v8798_v58 = vand.u32 4294901760, %v252_v10 }
  0x8e   :  { %983 = vmatpush1.msra.mxu0 %v14137_v4  ;;  %1107 = vmatpush1.msra.mxu1 %v8261_v12  ;;  %v14141_v12 = vand.u32 4294901760, %v8503_v63  ;;  %v8815_v63 = vsub.f32 %v266_v6, %v8791_v43  ;;  %14157 = vst [vmem:[#allocation19_spill] sm:$0xff] %v8866_v60  ;;  %v14159_v4 = vld [vmem:[#allocation36_spill] sm:$0xff] }
  0x8f   :  { %987 = vmatprep.subr.mxu0 %v14138_v5  ;;  %1109 = vmatprep.subr.mxu1 %v8264_v16  ;;  %v8793_v16 = vand.u32 4294901760, %v265_v13  ;;  %v8821_v47 = vsub.f32 %v252_v10, %v8798_v58  ;;  %v14161_v5 = vld [vmem:[#allocation25_spill] sm:$0xff]  ;;  %v14163_v10 = vand.u32 4294901760, %v8653_v56 }
  0x90   :  { %991 = vmatpush1.msra.mxu0 %v14139_v44  ;;  %1111 = vmatpush1.msra.mxu1 %v8266_v17  ;;  %v253_v17 = vld [vmem:[#allocation5 + $0x5c8] sm:$0xff]  ;;  %v13481_v19 = vand.u32 4294901760, %v8815_v63  ;;  %v188_v44 = vld [vmem:[#allocation5 + $0x3c0] sm:$0xff] }
  0x91   :  { %995 = vmatprep.subr.mxu0 %v14140_v11  ;;  %1113 = vmatprep.subr.mxu1 %v8268_v18  ;;  %v240_v18 = vld [vmem:[#allocation5 + $0x560] sm:$0xff]  ;;  %v8812_v50 = vand.u32 4294901760, %v253_v17  ;;  %v13477_v30 = vand.u32 4294901760, %v8821_v47  ;;  %v14164_v11 = vld [vmem:[#allocation26_spill] sm:$0xff] }
  0x92   :  { %999 = vmatpush1.msra.mxu0 %v14141_v12  ;;  %1115 = vmatpush1.msra.mxu1 %v8281_v23  ;;  %v14144_v23 = vand.u32 4294901760, %v8540_v3  ;;  %v14146_v3 = vand.u32 4294901760, %v8571_v0  ;;  %v8823_v51 = vand.u32 4294901760, %v240_v18  ;;  %v8833_v0 = vand.u32 4294901760, %v226_v28 }
  0x93   :  { %1003 = vmatprep.subr.mxu0 %v14142_v53  ;;  %1117 = vmatprep.subr.mxu1 %v8287_v25  ;;  %v8810_v25 = vsub.f32 %v265_v13, %v8793_v16  ;;  %v8841_v24 = vsub.f32 %v253_v17, %v8812_v50  ;;  %v8892_v12 = vsub.f32 %v8821_v47, %v13477_v30 }
  0x94   :  { %1007 = vmatpush1.msra.mxu0 %v14143_v59  ;;  %1119 = vmatpush1.msra.mxu1 %v14107_v52  ;;  %v227_v52 = vld [vmem:[#allocation5 + $0x4f8] sm:$0xff]  ;;  %14150 = vst [vmem:[#allocation16_spill] sm:$0xff] %v8833_v0  ;;  %v8864_v46 = vsub.f32 %v226_v28, %v8833_v0  ;;  %v14165_v59 = vld [vmem:[#allocation37_spill] sm:$0xff]  ;;  %v14168_v28 = vld [vmem:[#allocation27_spill] sm:$0xff] }
  0x95   :  { %1011 = vmatprep.subr.mxu0 %v14144_v23  ;;  %1121 = vmatprep.subr.mxu1 %v14108_v57  ;;  %v14149_v57 = vand.u32 4294901760, %v8591_v62  ;;  %v200_v62 = vld [vmem:[#allocation5 + $0x420] sm:$0xff]  ;;  %v13478_v13 = vand.u32 4294901760, %v8841_v24  ;;  %v8904_v23 = vand.u32 4294901760, %v187_v7 }
  0x96   :  { %1015 = vmatpush1.msra.mxu0 %v14145_v61  ;;  %1123 = vmatpush1.msra.mxu1 %v14109_v39  ;;  %v213_v39 = vld [vmem:[#allocation5 + $0x488] sm:$0xff]  ;;  %v8868_v2 = vand.u32 4294901760, %v200_v62  ;;  %v175_v61 = vld [vmem:[#allocation5 + $0x358] sm:$0xff] }
  0x97   :  { %1019 = vmatprep.subr.mxu0 %v14146_v3  ;;  %1125 = vmatprep.subr.mxu1 %v14110_v40  ;;  %v14151_v40 = vand.u32 4294901760, %v8599_v22  ;;  %v201_v22 = vld [vmem:[#allocation5 + $0x428] sm:$0xff]  ;;  %v8858_v48 = vand.u32 4294901760, %v213_v39  ;;  %14167 = vst [vmem:[#allocation22_spill] sm:$0xff] %v8904_v23  ;;  %v14169_v3 = vld [vmem:[#allocation33_spill] sm:$0xff] }
  0x98   :  { %1023 = vmatpush1.msra.mxu0 %v14147_v9  ;;  %1127 = vmatpush1.msra.mxu1 %v14111_v27  ;;  %v13480_v27 = vand.u32 4294901760, %v8810_v25  ;;  %14158 = vst [vmem:[#allocation20_spill] sm:$0xff] %v8868_v2  ;;  %v8883_v6 = vand.u32 4294901760, %v201_v22  ;;  %v8910_v9 = vsub.f32 %v200_v62, %v8868_v2  ;;  %v8925_v62 = vsub.f32 %v8841_v24, %v13478_v13 }
  0x99   :  { %1027 = vmatprep.subr.mxu0 %v14149_v57  ;;  %1129 = vmatprep.subr.mxu1 %v14112_v45  ;;  %v8846_v45 = vand.u32 4294901760, %v227_v52  ;;  %14155 = vst [vmem:[#allocation18_spill] sm:$0xff] %v8858_v48  ;;  %v8902_v56 = vsub.f32 %v213_v39, %v8858_v48  ;;  %v174_v57 = vld [vmem:[#allocation5 + $0x350] sm:$0xff]  ;;  %v8916_v39 = vsub.f32 %v214_v15, %v8866_v60  ;;  %v136_v15 = vld [vmem:[#allocation5 + $0x220] sm:$0xff] }
  0x9a   :  { %1031 = vmatpush1.msra.mxu0 %v14151_v40  ;;  %1131 = vmatpush1.msra.mxu1 %v14113_v38  ;;  %v8850_v38 = vsub.f32 %v240_v18, %v8823_v51  ;;  %14162 = vst [vmem:[#allocation21_spill] sm:$0xff] %v8883_v6  ;;  %v14166_v18 = vand.u32 4294901760, %v14165_v59  ;;  %v13479_v40 = vand.u32 4294901760, %v8864_v46  ;;  %v8951_v59 = vand.u32 4294901760, %v174_v57 }
  0x9b   :  { %1035 = vmatprep.subr.mxu0 %v14152_v26  ;;  %1133 = vmatprep.subr.mxu1 %v14114_v49  ;;  %14153 = vst [vmem:[#allocation17_spill] sm:$0xff] %v8846_v45  ;;  %v14156_v49 = vand.u32 4294901760, %v8629_v33  ;;  %v8876_v33 = vsub.f32 %v8815_v63, %v13481_v19  ;;  %v8896_v17 = vsub.f32 %v227_v52, %v8846_v45  ;;  %v8912_v52 = vand.u32 4294901760, %v188_v44  ;;  %v14171_v26 = vld [vmem:[#allocation28_spill] sm:$0xff] }
  0x9c   :  { %1039 = vmatpush1.msra.mxu0 %v14154_v36  ;;  %1135 = vmatpush1.msra.mxu1 %v14115_v35  ;;  %v14160_v35 = vand.u32 4294901760, %v14159_v4  ;;  %v13476_v53 = vand.u32 4294901760, %v8850_v38  ;;  %v161_v4 = vld [vmem:[#allocation5 + $0x2e8] sm:$0xff]  ;;  %14173 = vst [vmem:[#allocation29_spill] sm:$0xff] %v8951_v59  ;;  %v8991_v19 = vsub.f32 %v174_v57, %v8951_v59  ;;  %v9030_v14 = vand.u32 4294901760, %v136_v15 }
  0x9d   :  { %1043 = vmatprep.subr.mxu0 %v14156_v49  ;;  %1137 = vmatprep.subr.mxu1 %v14116_v54  ;;  %v8881_v54 = vsub.f32 %v8810_v25, %v13480_v27  ;;  %14170 = vst [vmem:[#allocation23_spill] sm:$0xff] %v8912_v52  ;;  %v1312_v36 = vand.u32 4294901760, %v8876_v33  ;;  %v8938_v33 = vand.u32 4294901760, %v175_v61  ;;  %v122_v49 = vld [vmem:[#allocation5 + $0x1b0] sm:$0xff] }
  0x9e   :  { %1047 = vmatpush1.msra.mxu0 %v14160_v35  ;;  %1139 = vmatpush1.msra.mxu1 %v14161_v5  ;;  %v8928_v35 = vsub.f32 %v201_v22, %v8883_v6  ;;  %v8936_v5 = vsub.f32 %v8850_v38, %v13476_v53  ;;  %v8949_v22 = vsub.f32 %v8856_v41, %v13475_v8  ;;  %v149_v8 = vld [vmem:[#allocation5 + $0x288] sm:$0xff] }
  0x9f   :  { %1051 = vmatprep.subr.mxu0 %v14163_v10  ;;  %1141 = vmatprep.subr.mxu1 %v14164_v11  ;;  %14172 = vst [vmem:[#allocation24_spill] sm:$0xff] %v8938_v33  ;;  %v13482_v10 = vand.u32 4294901760, %v8896_v17  ;;  %v148_v11 = vld [vmem:[#allocation5 + $0x280] sm:$0xff]  ;;  %v8965_v53 = vsub.f32 %v188_v44, %v8912_v52  ;;  %14178 = vst [vmem:[#allocation25_spill] sm:$0xff] %v8991_v19 }
  0xa0   :  { %1055 = vmatpush1.msra.mxu0 %v14166_v18  ;;  %1088 = vmatprep.mubr.f32.mxu0 %v14106_v34  ;;  %v162_v18 = vld [vmem:[#allocation5 + $0x2f0] sm:$0xff]  ;;  %v13487_v30 = vand.u32 4294901760, %v8928_v35  ;;  %v8971_v13 = vand.u32 4294901760, %v148_v11  ;;  %v1336_v27 = vand.u32 4294901760, %v8936_v5  ;;  %14180 = vst [vmem:[#allocation37_spill] sm:$0xff] %v9030_v14 }
  0xa1   :  { %1143 = vmatpush1.msra.mxu1 %v14168_v28  ;;  %1090 = vmatmul.mubr.f32.vlgmr.msra.gmra.mxu0 %v14169_v3  ;;  %v13483_v28 = vand.u32 4294901760, %v8902_v56  ;;  %v8982_v44 = vand.u32 4294901760, %v162_v18 }
  0xa2   :  { %1145 = vmatprep.subr.mxu1 %v14171_v26  ;;  %1201 = vmatprep.subr.mxu0 %v8791_v43  ;;  %v8962_v26 = vand.u32 4294901760, %v161_v4  ;;  %14175 = vst [vmem:[#allocation31_spill] sm:$0xff] %v8971_v13 }
  0xa3   :  { %1147 = vmatpush1.msra.mxu1 %v14120_v37  ;;  %1203 = vmatpush1.msra.mxu0 %v8793_v16  ;;  %v8944_v37 = vsub.f32 %v187_v7, %v8904_v23  ;;  %v13484_v7 = vand.u32 4294901760, %v8916_v39  ;;  %14176 = vst [vmem:[#allocation32_spill] sm:$0xff] %v8982_v44  ;;  %v8996_v5 = vsub.f32 %v8902_v56, %v13483_v28  ;;  %v135_v28 = vld [vmem:[#allocation5 + $0x218] sm:$0xff] }
  0xa4   :  { %1149 = vmatprep.subr.mxu1 %v14122_v55  ;;  %1205 = vmatprep.subr.mxu0 %v8812_v50  ;;  %v8959_v55 = vsub.f32 %v8864_v46, %v13479_v40  ;;  %14174 = vst [vmem:[#allocation30_spill] sm:$0xff] %v8962_v26  ;;  %v13490_v40 = vand.u32 4294901760, %v8910_v9  ;;  %v9009_v57 = vsub.f32 %v161_v4, %v8962_v26 }
  0xa5   :  { %1151 = vmatpush1.msra.mxu1 %v14124_v1  ;;  %1207 = vmatpush1.msra.mxu0 %v8798_v58  ;;  %v1324_v1 = vand.u32 4294901760, %v8925_v62  ;;  %v8985_v62 = vsub.f32 %v175_v61, %v8938_v33  ;;  %v9006_v61 = vsub.f32 %v8916_v39, %v13484_v7  ;;  %v1366_v7 = vand.u32 4294901760, %v8996_v5 }
  0xa6   :  { %1153 = vmatprep.subr.mxu1 %v14126_v20  ;;  %1209 = vmatprep.subr.mxu0 %v8823_v51  ;;  %v8980_v20 = vsub.f32 %v8896_v17, %v13482_v10  ;;  %v8998_v10 = vand.u32 4294901760, %v149_v8  ;;  %v9025_v4 = vsub.f32 %v8910_v9, %v13490_v40  ;;  %v14181_v40 = vand.u32 4294901760, %v8881_v54 }
  0xa7   :  { %1155 = vmatpush1.msra.mxu1 %v8548_v29  ;;  %1211 = vmatpush1.msra.mxu0 %v8828_v21  ;;  %14177 = vst [vmem:[#allocation36_spill] sm:$0xff] %v8985_v62  ;;  %v1342_v29 = vand.u32 4294901760, %v8949_v22  ;;  %v123_v22 = vld [vmem:[#allocation5 + $0x1b8] sm:$0xff]  ;;  %v14185_v5 = vand.u32 4294901760, %v8892_v12  ;;  %v96_v21 = vld [vmem:[#allocation5 + $0xe0] sm:$0xff] }
  0xa8   :  { %1157 = vmatprep.subr.mxu1 %v8562_v42  ;;  %1213 = vmatprep.subr.mxu0 %v8846_v45  ;;  %14179 = vst [vmem:[#allocation26_spill] sm:$0xff] %v8998_v10  ;;  %v1354_v42 = vand.u32 4294901760, %v8959_v55  ;;  %v9020_v55 = vsub.f32 %v148_v11, %v8971_v13  ;;  %v1348_v32 = vand.u32 4294901760, %v8980_v20  ;;  %v9034_v11 = vsub.f32 %v162_v18, %v8982_v44 }
  0xa9   :  { %1159 = vmatpush1.msra.mxu1 %v8578_v31  ;;  %1192 = vmatprep.mubr.f32.mxu1 %v14106_v34  ;;  %v9017_v31 = vsub.f32 %v8928_v35, %v13487_v30  ;;  %v9040_v45 = vand.u32 4294901760, %v135_v28  ;;  %v1360_v18 = vand.u32 4294901760, %v9006_v61  ;;  %v14184_v30 = vand.u32 4294901760, %v8965_v53 }
  0xaa   :  { %1215 = vmatpush1.msra.mxu0 %v8833_v0  ;;  %1194 = vmatmul.mubr.f32.vlgmr.msra.gmra.mxu1 %v14169_v3  ;;  %v109_v0 = vld [vmem:[#allocation5 + $0x148] sm:$0xff]  ;;  %v9052_v54 = vand.u32 4294901760, %v123_v22  ;;  %v14186_v61 = vand.u32 4294901760, %v8944_v37 }
  0xab   :  { %1217 = vmatprep.subr.mxu0 %v8866_v60  ;;  %1313 = vmatprep.subr.mxu1 %v1312_v36  ;;  %14182 = vst [vmem:[#allocation27_spill] sm:$0xff] %v9040_v45  ;;  %v9042_v36 = vand.u32 4294901760, %v122_v49  ;;  %v110_v60 = vld [vmem:[#allocation5 + $0x150] sm:$0xff]  ;;  %v1372_v20 = vand.u32 4294901760, %v9017_v31 }
  0xac   :  { %1219 = vmatpush1.msra.mxu0 %v8858_v48  ;;  %1319 = vmatpush1.msra.mxu1 %v14181_v40  ;;  %v9050_v48 = vsub.f32 %v8965_v53, %v14184_v30  ;;  %v9055_v40 = vsub.f32 %v149_v8, %v8998_v10  ;;  %v9067_v30 = vand.u32 4294901760, %v109_v0  ;;  %v14187_v8 = vand.u32 4294901760, %v8985_v62 }
  0xad   :  { %14183 = vst [vmem:[#allocation28_spill] sm:$0xff] %v9042_v36  ;;  %1221 = vmatprep.subr.mxu0 %v8883_v6  ;;  %1325 = vmatprep.subr.mxu1 %v1324_v1  ;;  %v1378_v1 = vand.u32 4294901760, %v9025_v4  ;;  %v9065_v6 = vsub.f32 %v8944_v37, %v14186_v61  ;;  %v97_v4 = vld [vmem:[#allocation5 + $0xe8] sm:$0xff]  ;;  %v9083_v61 = vsub.f32 %v135_v28, %v9040_v45  ;;  %v84_v28 = vld [vmem:[#allocation5 + $0x80] sm:$0xff] }
  0xae   :  { %1223 = vmatpush1.msra.mxu0 %v8868_v2  ;;  %1331 = vmatpush1.msra.mxu1 %v14185_v5  ;;  %v9073_v12 = vsub.f32 %v8985_v62, %v14187_v8  ;;  %v9075_v5 = vand.u32 4294901760, %v110_v60  ;;  %v9079_v2 = vsub.f32 %v136_v15, %v9030_v14  ;;  %v14189_v8 = vand.u32 4294901760, %v8991_v19 }
  0xaf   :  { %1225 = vmatprep.subr.mxu0 %v8912_v52  ;;  %1337 = vmatprep.subr.mxu1 %v1336_v27  ;;  %v9086_v27 = vsub.f32 %v122_v49, %v9042_v36  ;;  %v1384_v15 = vand.u32 4294901760, %v9050_v48  ;;  %v1390_v49 = vand.u32 4294901760, %v9065_v6  ;;  %v9105_v62 = vand.u32 4294901760, %v97_v4  ;;  %v83_v48 = vld [vmem:[#allocation5 + $0x78] sm:$0xff] }
  0xb0   :  { %1227 = vmatpush1.msra.mxu0 %v8904_v23  ;;  %1343 = vmatpush1.msra.mxu1 %v1342_v29  ;;  %v1401_v52 = vsub.f32 %v8991_v19, %v14189_v8  ;;  %v9095_v29 = vand.u32 4294901760, %v96_v21  ;;  %v9098_v23 = vsub.f32 %v123_v22, %v9052_v54  ;;  %v9103_v8 = vsub.f32 %v109_v0, %v9067_v30  ;;  %v71_v6 = vld [vmem:[#allocation5 + $0x18] sm:$0xff]  ;;  %v70_v19 = vld [vmem:[#allocation5 + $0x10] sm:$0xff] }
  0xb1   :  { %14188 = vst [vmem:[#allocation39_spill] sm:$0xff] %v9086_v27  ;;  %1229 = vmatprep.subr.mxu0 %v8938_v33  ;;  %1349 = vmatprep.subr.mxu1 %v1348_v32  ;;  %v1396_v31 = vand.u32 4294901760, %v9073_v12  ;;  %v14190_v22 = vand.u32 4294901760, %v9034_v11  ;;  %v9115_v0 = vsub.f32 %v110_v60, %v9075_v5  ;;  %v14191_v33 = vand.u32 4294901760, %v9009_v57 }
  0xb2   :  { %1231 = vmatpush1.msra.mxu0 %v8951_v59  ;;  %1355 = vmatpush1.msra.mxu1 %v1354_v42  ;;  %v1402_v32 = vand.u32 4294901760, %v1401_v52  ;;  %v9129_v42 = vsub.f32 %v96_v21, %v9095_v29  ;;  %v9131_v52 = vand.u32 4294901760, %v83_v48 }
  0xb3   :  { %1233 = vmatprep.subr.mxu0 %v8982_v44  ;;  %1361 = vmatprep.subr.mxu1 %v1360_v18  ;;  %v1407_v59 = vsub.f32 %v9034_v11, %v14190_v22  ;;  %v1413_v18 = vsub.f32 %v9009_v57, %v14191_v33  ;;  %v9121_v44 = vand.u32 4294901760, %v84_v28  ;;  %v14192_v22 = vand.u32 4294901760, %v9055_v40 }
  0xb4   :  { %1235 = vmatpush1.msra.mxu0 %v8962_v26  ;;  %1367 = vmatpush1.msra.mxu1 %v1366_v7  ;;  %14193 = vst [vmem:[#allocation40_spill] sm:$0xff] %v9129_v42  ;;  %v14194_v33 = vand.u32 4294901760, %v9020_v55  ;;  %v14195_v7 = vand.u32 4294901760, %v9079_v2 }
  0xb5   :  { %1237 = vmatprep.subr.mxu0 %v8998_v10  ;;  %1373 = vmatprep.subr.mxu1 %v1372_v20  ;;  %v1419_v60 = vsub.f32 %v9055_v40, %v14192_v22  ;;  %v9138_v10 = vand.u32 4294901760, %v71_v6  ;;  %v9142_v22 = vsub.f32 %v97_v4, %v9105_v62  ;;  %v1408_v21 = vand.u32 4294901760, %v1407_v59 }
  0xb6   :  { %1239 = vmatpush1.msra.mxu0 %v8971_v13  ;;  %1379 = vmatpush1.msra.mxu1 %v1378_v1  ;;  %v1425_v12 = vsub.f32 %v9020_v55, %v14194_v33  ;;  %v1431_v13 = vsub.f32 %v9079_v2, %v14195_v7  ;;  %v9148_v1 = vand.u32 4294901760, %v70_v19  ;;  %v1414_v33 = vand.u32 4294901760, %v1413_v18 }
  0xb7   :  { %1241 = vmatprep.subr.mxu0 %v9030_v14  ;;  %1385 = vmatprep.subr.mxu1 %v1384_v15  ;;  %v14196_v20 = vand.u32 4294901760, %v9083_v61  ;;  %v9156_v14 = vsub.f32 %v84_v28, %v9121_v44  ;;  %v1420_v59 = vand.u32 4294901760, %v1419_v60  ;;  %v9160_v15 = vsub.f32 %v83_v48, %v9131_v52 }
  0xb8   :  { %1243 = vmatpush1.msra.mxu0 %v9040_v45  ;;  %1391 = vmatpush1.msra.mxu1 %v1390_v49  ;;  %v14197_v7 = vand.u32 4294901760, %v9098_v23  ;;  %v1426_v18 = vand.u32 4294901760, %v1425_v12  ;;  %v14198_v28 = vand.u32 4294901760, %v9086_v27  ;;  %v9172_v60 = vsub.f32 %v71_v6, %v9138_v10 }
  0xb9   :  { %v1437_v4 = vsub.f32 %v9083_v61, %v14196_v20  ;;  %1245 = vmatprep.subr.mxu0 %v9052_v54  ;;  %1397 = vmatprep.subr.mxu1 %v1396_v31  ;;  %v1432_v48 = vand.u32 4294901760, %v1431_v13  ;;  %v14200_v49 = vand.u32 4294901760, %v9115_v0  ;;  %v13527_v6 = vand.u32 4294901760, %v9156_v14 }
  0xba   :  { %v1443_v26 = vsub.f32 %v9098_v23, %v14197_v7  ;;  %1247 = vmatpush1.msra.mxu0 %v9042_v36  ;;  %1403 = vmatpush1.msra.mxu1 %v1402_v32  ;;  %v1449_v20 = vsub.f32 %v9086_v27, %v14198_v28  ;;  %v9176_v7 = vsub.f32 %v70_v19, %v9148_v1  ;;  %v14201_v13 = vand.u32 4294901760, %v9103_v8 }
  0xbb   :  { %1249 = vmatprep.subr.mxu0 %v9075_v5  ;;  %1409 = vmatprep.subr.mxu1 %v1408_v21  ;;  %v1455_v32 = vsub.f32 %v9115_v0, %v14200_v49  ;;  %v1438_v28 = vand.u32 4294901760, %v1437_v4  ;;  %v14202_v12 = vand.u32 4294901760, %v9142_v22  ;;  %v13526_v4 = vand.u32 4294901760, %v9172_v60 }
  0xbc   :  { %14199 = vst [vmem:[#allocation41_spill] sm:$0xff] %v9176_v7  ;;  %1251 = vmatpush1.msra.mxu0 %v9067_v30  ;;  %1415 = vmatpush1.msra.mxu1 %v1414_v33  ;;  %v1444_v21 = vand.u32 4294901760, %v1443_v26  ;;  %v1461_v19 = vsub.f32 %v9103_v8, %v14201_v13  ;;  %v1450_v49 = vand.u32 4294901760, %v1449_v20  ;;  %v13525_v31 = vand.u32 4294901760, %v9176_v7 }
  0xbd   :  { %1253 = vmatprep.subr.mxu0 %v9105_v62  ;;  %1421 = vmatprep.subr.mxu1 %v1420_v59  ;;  %v1467_v33 = vsub.f32 %v9142_v22, %v14202_v12  ;;  %v1456_v26 = vand.u32 4294901760, %v1455_v32  ;;  %v14203_v59 = vand.u32 4294901760, %v9129_v42 }
  0xbe   :  { %1255 = vmatpush1.msra.mxu0 %v9095_v29  ;;  %1427 = vmatpush1.msra.mxu1 %v1426_v18  ;;  %v1479_v18 = vsub.f32 %v9156_v14, %v13527_v6  ;;  %v1462_v20 = vand.u32 4294901760, %v1461_v19  ;;  %v14205_v19 = vld [vmem:[#allocation38_spill] sm:$0xff] }
  0xbf   :  { %1257 = vmatprep.subr.mxu0 %v9121_v44  ;;  %1433 = vmatprep.subr.mxu1 %v1432_v48  ;;  %v1473_v13 = vsub.f32 %v9129_v42, %v14203_v59  ;;  %v14204_v48 = vand.u32 4294901760, %v9160_v15  ;;  %v1468_v12 = vand.u32 4294901760, %v1467_v33  ;;  %v14220_v6 = vld [vmem:[#allocation30_spill] sm:$0xff] }
  0xc0   :  { %1259 = vmatpush1.msra.mxu0 %v9131_v52  ;;  %1439 = vmatpush1.msra.mxu1 %v1438_v28  ;;  %v1491_v28 = vsub.f32 %v9172_v60, %v13526_v4  ;;  %v14219_v4 = vld [vmem:[#allocation32_spill] sm:$0xff] }
  0xc1   :  { %1261 = vmatprep.subr.mxu0 %v9138_v10  ;;  %1445 = vmatprep.subr.mxu1 %v1444_v21  ;;  %v1485_v32 = vsub.f32 %v9160_v15, %v14204_v48  ;;  %v1474_v59 = vand.u32 4294901760, %v1473_v13  ;;  %v1497_v21 = vsub.f32 %v9176_v7, %v13525_v31  ;;  %v1480_v48 = vand.u32 4294901760, %v1479_v18  ;;  %v14206_v13 = vld [vmem:[#allocation15_spill] sm:$0xff]  ;;  %v14207_v18 = vld [vmem:[#allocation36_spill] sm:$0xff]  ;;  %v14218_v31 = vld [vmem:[#allocation29_spill] sm:$0xff] }
  0xc2   :  { %1263 = vmatpush1.msra.mxu0 %v9148_v1  ;;  %1451 = vmatpush1.msra.mxu1 %v1450_v49  ;;  %v1492_v33 = vand.u32 4294901760, %v1491_v28  ;;  %v14211_v28 = vld [vmem:[#allocation19_spill] sm:$0xff] }
  0xc3   :  { %1296 = vmatprep.mubr.f32.mxu0 %v14106_v34  ;;  %1457 = vmatprep.subr.mxu1 %v1456_v26  ;;  %v1486_v49 = vand.u32 4294901760, %v1485_v32  ;;  %v1498_v26 = vand.u32 4294901760, %v1497_v21  ;;  %v14209_v32 = vld [vmem:[#allocation25_spill] sm:$0xff] }
  0xc4   :  { %1542 = vmatprep.subr.mxu0 %v8815_v63  ;;  %1302 = vmatmul.mubr.f32.vlgmr.msra.gmra.mxu0 %v14205_v19  ;;  %v14213_v21 = vld [vmem:[#allocation21_spill] sm:$0xff]  ;;  %v14221_v19 = vld [vmem:[#allocation26_spill] sm:$0xff] }
  0xc5   :  { %1463 = vmatpush1.msra.mxu1 %v1462_v20  ;;  %1545 = vmatpush1.msra.mxu0 %v8810_v25  ;;  %v14208_v20 = vld [vmem:[#allocation17_spill] sm:$0xff] }
  0xc6   :  { %1469 = vmatprep.subr.mxu1 %v1468_v12  ;;  %1548 = vmatprep.subr.mxu0 %v8841_v24  ;;  %v14210_v12 = vld [vmem:[#allocation16_spill] sm:$0xff] }
  0xc7   :  { %1475 = vmatpush1.msra.mxu1 %v1474_v59  ;;  %1551 = vmatpush1.msra.mxu0 %v8821_v47  ;;  %v14212_v59 = vld [vmem:[#allocation18_spill] sm:$0xff] }
  0xc8   :  { %1481 = vmatprep.subr.mxu1 %v1480_v48  ;;  %1554 = vmatprep.subr.mxu0 %v8850_v38  ;;  %v14214_v48 = vld [vmem:[#allocation20_spill] sm:$0xff] }
  0xc9   :  { %1487 = vmatpush1.msra.mxu1 %v1486_v49  ;;  %1557 = vmatpush1.msra.mxu0 %v8856_v41  ;;  %v14215_v49 = vld [vmem:[#allocation23_spill] sm:$0xff] }
  0xca   :  { %1493 = vmatprep.subr.mxu1 %v1492_v33  ;;  %1560 = vmatprep.subr.mxu0 %v8896_v17  ;;  %v14216_v33 = vld [vmem:[#allocation22_spill] sm:$0xff] }
  0xcb   :  { %1499 = vmatpush1.msra.mxu1 %v1498_v26  ;;  %1532 = vmatprep.mubr.f32.mxu1 %v14106_v34  ;;  %v14217_v26 = vld [vmem:[#allocation24_spill] sm:$0xff] }
  0xcc   :  { %1563 = vmatpush1.msra.mxu0 %v8864_v46  ;;  %1534 = vmatmul.mubr.f32.vlgmr.msra.gmra.mxu1 %v14169_v3  ;;  %v14222_v3 = vld [vmem:[#allocation31_spill] sm:$0xff] }
  0xcd   :  { %1566 = vmatprep.subr.mxu0 %v8916_v39  ;;  %1678 = vmatprep.subr.mxu1 %v8791_v43 }
  0xce   :  { %1569 = vmatpush1.msra.mxu0 %v8902_v56  ;;  %1680 = vmatpush1.msra.mxu1 %v8793_v16 }
  0xcf   :  { %1572 = vmatprep.subr.mxu0 %v8928_v35  ;;  %1682 = vmatprep.subr.mxu1 %v8812_v50 }
  0xd0   :  { %1575 = vmatpush1.msra.mxu0 %v8910_v9  ;;  %1684 = vmatpush1.msra.mxu1 %v8798_v58 }
  0xd1   :  { %1578 = vmatprep.subr.mxu0 %v8965_v53  ;;  %1686 = vmatprep.subr.mxu1 %v8823_v51 }
  0xd2   :  { %1581 = vmatpush1.msra.mxu0 %v8944_v37  ;;  %1688 = vmatpush1.msra.mxu1 %v14206_v13 }
  0xd3   :  { %1584 = vmatprep.subr.mxu0 %v14207_v18  ;;  %1690 = vmatprep.subr.mxu1 %v14208_v20 }
  0xd4   :  { %1587 = vmatpush1.msra.mxu0 %v14209_v32  ;;  %1692 = vmatpush1.msra.mxu1 %v14210_v12 }
  0xd5   :  { %1590 = vmatprep.subr.mxu0 %v9034_v11  ;;  %1694 = vmatprep.subr.mxu1 %v14211_v28 }
  0xd6   :  { %1593 = vmatpush1.msra.mxu0 %v9009_v57  ;;  %1696 = vmatpush1.msra.mxu1 %v14212_v59 }
  0xd7   :  { %1596 = vmatprep.subr.mxu0 %v9055_v40  ;;  %1698 = vmatprep.subr.mxu1 %v14213_v21 }
  0xd8   :  { %1599 = vmatpush1.msra.mxu0 %v9020_v55  ;;  %1700 = vmatpush1.msra.mxu1 %v14214_v48 }
  0xd9   :  { %1602 = vmatprep.subr.mxu0 %v9079_v2  ;;  %1702 = vmatprep.subr.mxu1 %v14215_v49 }
  0xda   :  { %1605 = vmatpush1.msra.mxu0 %v9083_v61  ;;  %1704 = vmatpush1.msra.mxu1 %v14216_v33 }
  0xdb   :  { %1608 = vmatprep.subr.mxu0 %v9098_v23  ;;  %1706 = vmatprep.subr.mxu1 %v14217_v26 }
  0xdc   :  { %1611 = vmatpush1.msra.mxu0 %v9086_v27  ;;  %1708 = vmatpush1.msra.mxu1 %v14218_v31  ;;  %v14223_v27 = vld [vmem:[#allocation37_spill] sm:$0xff] }
  0xdd   :  { %1614 = vmatprep.subr.mxu0 %v9115_v0  ;;  %1710 = vmatprep.subr.mxu1 %v14219_v4 }
  0xde   :  { %1617 = vmatpush1.msra.mxu0 %v9103_v8  ;;  %1712 = vmatpush1.msra.mxu1 %v14220_v6 }
  0xdf   :  { %1620 = vmatprep.subr.mxu0 %v9142_v22  ;;  %1714 = vmatprep.subr.mxu1 %v14221_v19 }
  0xe0   :  { %1623 = vmatpush1.msra.mxu0 %v9129_v42  ;;  %1716 = vmatpush1.msra.mxu1 %v14222_v3  ;;  %v14224_v42 = vld [vmem:[#allocation34_spill] sm:$0xff] }
  0xe1   :  { %1626 = vmatprep.subr.mxu0 %v9156_v14  ;;  %1718 = vmatprep.subr.mxu1 %v14223_v27  ;;  %v14225_v27 = vand.u32 4294901760, %v8815_v63  ;;  %v14229_v63 = vand.u32 4294901760, %v8850_v38  ;;  %v14234_v38 = vand.u32 4294901760, %v8916_v39  ;;  %v14238_v39 = vand.u32 4294901760, %v8965_v53  ;;  %v267_v53 = vld [vmem:[#allocation5 + $0x638] sm:$0xff] }
  0xe2   :  { %1629 = vmatpush1.msra.mxu0 %v9160_v15  ;;  %1720 = vmatpush1.msra.mxu1 %v9040_v45  ;;  %v14226_v45 = vand.u32 4294901760, %v8810_v25  ;;  %v14230_v25 = vand.u32 4294901760, %v8856_v41  ;;  %v14235_v41 = vand.u32 4294901760, %v8902_v56  ;;  %v14242_v56 = vand.u32 4294901760, %v9034_v11 }
  0xe3   :  { %1632 = vmatprep.subr.mxu0 %v9172_v60  ;;  %1722 = vmatprep.subr.mxu1 %v9052_v54  ;;  %v14245_v11 = vand.u32 4294901760, %v9020_v55  ;;  %v229_v55 = vld [vmem:[#allocation5 + $0x508] sm:$0xff] }
  0xe4   :  { %1635 = vmatpush1.msra.mxu0 %v9176_v7  ;;  %1668 = vmatprep.mubr.f32.mxu0 %v14106_v34  ;;  %v14227_v7 = vand.u32 4294901760, %v8841_v24  ;;  %v14231_v24 = vand.u32 4294901760, %v8896_v17  ;;  %v14236_v17 = vand.u32 4294901760, %v8928_v35  ;;  %v254_v35 = vld [vmem:[#allocation5 + $0x5d0] sm:$0xff] }
  0xe5   :  { %1724 = vmatpush1.msra.mxu1 %v9042_v36  ;;  %1671 = vmatmul.mubr.f32.vlgmr.msra.gmra.mxu0 %v14224_v42  ;;  %v14228_v36 = vand.u32 4294901760, %v8821_v47  ;;  %v14232_v47 = vand.u32 4294901760, %v8864_v46  ;;  %v14237_v46 = vand.u32 4294901760, %v8910_v9  ;;  %v255_v9 = vld [vmem:[#allocation5 + $0x5d8] sm:$0xff] }
  0xe6   :  { %1726 = vmatprep.subr.mxu1 %v9075_v5  ;;  %1786 = vmatprep.subr.mxu0 %v14225_v27  ;;  %v9337_v27 = vand.u32 4294901760, %v267_v53 }
  0xe7   :  { %1728 = vmatpush1.msra.mxu1 %v9067_v30  ;;  %1790 = vmatpush1.msra.mxu0 %v14226_v45  ;;  %v14233_v45 = vld [vmem:[#allocation35_spill] sm:$0xff] }
  0xe8   :  { %1730 = vmatprep.subr.mxu1 %v9105_v62  ;;  %1794 = vmatprep.subr.mxu0 %v14227_v7  ;;  %v14246_v7 = vand.u32 4294901760, %v9079_v2  ;;  %v9356_v2 = vsub.f32 %v267_v53, %v9337_v27 }
  0xe9   :  { %1732 = vmatpush1.msra.mxu1 %v9095_v29  ;;  %1798 = vmatpush1.msra.mxu0 %v14228_v36 }
  0xea   :  { %1734 = vmatprep.subr.mxu1 %v9121_v44  ;;  %1802 = vmatprep.subr.mxu0 %v14229_v63  ;;  %v216_v63 = vld [vmem:[#allocation5 + $0x4a0] sm:$0xff] }
  0xeb   :  { %1736 = vmatpush1.msra.mxu1 %v9131_v52  ;;  %1806 = vmatpush1.msra.mxu0 %v14230_v25 }
  0xec   :  { %1738 = vmatprep.subr.mxu1 %v9138_v10  ;;  %1810 = vmatprep.subr.mxu0 %v14231_v24  ;;  %v14254_v24 = vand.u32 4294901760, %v9103_v8 }
  0xed   :  { %1740 = vmatpush1.msra.mxu1 %v9148_v1  ;;  %1773 = vmatprep.mubr.f32.mxu1 %v14106_v34 }
  0xee   :  { %1814 = vmatpush1.msra.mxu0 %v14232_v47  ;;  %1777 = vmatmul.mubr.f32.vlgmr.msra.gmra.mxu1 %v14233_v45 }
  0xef   :  { %1818 = vmatprep.subr.mxu0 %v14234_v38  ;;  %1952 = vmatprep.subr.mxu1 %v8791_v43  ;;  %v14239_v43 = vand.u32 4294901760, %v8944_v37  ;;  %v14244_v37 = vand.u32 4294901760, %v9055_v40  ;;  %v9347_v40 = vand.u32 4294901760, %v254_v35  ;;  %v13541_v38 = vand.u32 4294901760, %v9356_v2 }
  0xf0   :  { %1822 = vmatpush1.msra.mxu0 %v14235_v41  ;;  %1954 = vmatpush1.msra.mxu1 %v8793_v16  ;;  %v14240_v16 = vand.u32 4294901760, %v14207_v18  ;;  %v241_v18 = vld [vmem:[#allocation5 + $0x568] sm:$0xff]  ;;  %v203_v41 = vld [vmem:[#allocation5 + $0x438] sm:$0xff] }
  0xf1   :  { %1826 = vmatprep.subr.mxu0 %v14236_v17  ;;  %1956 = vmatprep.subr.mxu1 %v8812_v50  ;;  %v14241_v50 = vand.u32 4294901760, %v14209_v32  ;;  %v14248_v32 = vand.u32 4294901760, %v9098_v23  ;;  %v215_v23 = vld [vmem:[#allocation5 + $0x498] sm:$0xff]  ;;  %v202_v17 = vld [vmem:[#allocation5 + $0x430] sm:$0xff] }
  0xf2   :  { %1830 = vmatpush1.msra.mxu0 %v14237_v46  ;;  %1958 = vmatpush1.msra.mxu1 %v8798_v58  ;;  %v268_v58 = vld [vmem:[#allocation5 + $0x640] sm:$0xff]  ;;  %v9388_v47 = vand.u32 4294901760, %v215_v23  ;;  %v14258_v46 = vld [vmem:[#allocation40_spill] sm:$0xff] }
  0xf3   :  { %1834 = vmatprep.subr.mxu0 %v14238_v39  ;;  %1960 = vmatprep.subr.mxu1 %v8823_v51  ;;  %v14243_v51 = vand.u32 4294901760, %v9009_v57  ;;  %v9335_v36 = vand.u32 4294901760, %v268_v58  ;;  %v242_v57 = vld [vmem:[#allocation5 + $0x570] sm:$0xff]  ;;  %v14261_v39 = vand.u32 4294901760, %v9156_v14  ;;  %v9416_v14 = vand.u32 4294901760, %v203_v41 }
  0xf4   :  { %1838 = vmatpush1.msra.mxu0 %v14239_v43  ;;  %1962 = vmatpush1.msra.mxu1 %v14206_v13  ;;  %v9345_v13 = vand.u32 4294901760, %v255_v9  ;;  %14257 = vst [vmem:[#allocation25_spill] sm:$0xff] %v9388_v47  ;;  %v14262_v43 = vld [vmem:[#allocation37_spill] sm:$0xff] }
  0xf5   :  { %1842 = vmatprep.subr.mxu0 %v14240_v16  ;;  %1964 = vmatprep.subr.mxu1 %v14208_v20  ;;  %v14247_v20 = vand.u32 4294901760, %v9083_v61  ;;  %14265 = vst [vmem:[#allocation19_spill] sm:$0xff] %v9416_v14 }
  0xf6   :  { %1846 = vmatpush1.msra.mxu0 %v14241_v50  ;;  %1966 = vmatpush1.msra.mxu1 %v14210_v12  ;;  %v9358_v12 = vand.u32 4294901760, %v242_v57  ;;  %v9377_v25 = vsub.f32 %v255_v9, %v9345_v13  ;;  %v9418_v9 = vand.u32 4294901760, %v202_v17 }
  0xf7   :  { %1850 = vmatprep.subr.mxu0 %v14242_v56  ;;  %1968 = vmatprep.subr.mxu1 %v14211_v28  ;;  %v228_v28 = vld [vmem:[#allocation5 + $0x500] sm:$0xff]  ;;  %v14264_v56 = vld [vmem:[#allocation27_spill] sm:$0xff] }
  0xf8   :  { %1854 = vmatpush1.msra.mxu0 %v14243_v51  ;;  %1970 = vmatpush1.msra.mxu1 %v14212_v59  ;;  %v9361_v59 = vsub.f32 %v268_v58, %v9335_v36  ;;  %v9392_v8 = vsub.f32 %v242_v57, %v9358_v12  ;;  %v13539_v16 = vand.u32 4294901760, %v9377_v25  ;;  %v189_v58 = vld [vmem:[#allocation5 + $0x3c8] sm:$0xff]  ;;  %14266 = vst [vmem:[#allocation18_spill] sm:$0xff] %v9418_v9 }
  0xf9   :  { %1858 = vmatprep.subr.mxu0 %v14244_v37  ;;  %1972 = vmatprep.subr.mxu1 %v14213_v21  ;;  %v14249_v21 = vld [vmem:[#allocation39_spill] sm:$0xff]  ;;  %v14267_v37 = vand.u32 4294901760, %v9172_v60  ;;  %v9434_v57 = vsub.f32 %v9356_v2, %v13541_v38  ;;  %v14268_v60 = vld [vmem:[#allocation41_spill] sm:$0xff] }
  0xfa   :  { %1862 = vmatpush1.msra.mxu0 %v14245_v11  ;;  %1974 = vmatpush1.msra.mxu1 %v14214_v48  ;;  %v14250_v61 = vand.u32 4294901760, %v14249_v21  ;;  %v9366_v48 = vand.u32 4294901760, %v241_v18  ;;  %v9429_v11 = vsub.f32 %v215_v23, %v9388_v47  ;;  %v14272_v21 = vld [vmem:[#allocation33_spill] sm:$0xff] }
  0xfb   :  { %1866 = vmatprep.subr.mxu0 %v14246_v7  ;;  %1976 = vmatprep.subr.mxu1 %v14215_v49  ;;  %v14252_v49 = vand.u32 4294901760, %v9115_v0  ;;  %v14256_v0 = vand.u32 4294901760, %v9142_v22  ;;  %v13537_v7 = vand.u32 4294901760, %v9392_v8 }
  0xfc   :  { %1870 = vmatpush1.msra.mxu0 %v14247_v20  ;;  %1978 = vmatpush1.msra.mxu1 %v14216_v33  ;;  %14251 = vst [vmem:[#allocation15_spill] sm:$0xff] %v9366_v48  ;;  %v9372_v33 = vsub.f32 %v254_v35, %v9347_v40  ;;  %v9398_v22 = vsub.f32 %v241_v18, %v9366_v48  ;;  %v190_v35 = vld [vmem:[#allocation5 + $0x3d0] sm:$0xff]  ;;  %v176_v18 = vld [vmem:[#allocation5 + $0x360] sm:$0xff]  ;;  %v14269_v20 = vand.u32 4294901760, %v14268_v60 }
  0xfd   :  { %1874 = vmatprep.subr.mxu0 %v14248_v32  ;;  %1980 = vmatprep.subr.mxu1 %v14217_v26  ;;  %v9374_v26 = vand.u32 4294901760, %v229_v55 }
  0xfe   :  { %1878 = vmatpush1.msra.mxu0 %v14250_v61  ;;  %1982 = vmatpush1.msra.mxu1 %v14218_v31  ;;  %v9382_v31 = vand.u32 4294901760, %v228_v28  ;;  %v13538_v50 = vand.u32 4294901760, %v9372_v33  ;;  %v9451_v61 = vsub.f32 %v9377_v25, %v13539_v16 }
  0xff   :  { %1882 = vmatprep.subr.mxu0 %v14252_v49  ;;  %1984 = vmatprep.subr.mxu1 %v14219_v4  ;;  %14253 = vst [vmem:[#allocation36_spill] sm:$0xff] %v9374_v26  ;;  %v13543_v4 = vand.u32 4294901760, %v9361_v59  ;;  %v9408_v53 = vsub.f32 %v229_v55, %v9374_v26  ;;  %v13535_v55 = vand.u32 4294901760, %v9398_v22  ;;  %v9458_v49 = vand.u32 4294901760, %v190_v35 }
 0x100   :  { %1886 = vmatpush1.msra.mxu0 %v14254_v24  ;;  %1986 = vmatpush1.msra.mxu1 %v14220_v6  ;;  %14255 = vst [vmem:[#allocation17_spill] sm:$0xff] %v9382_v31  ;;  %v14259_v6 = vand.u32 4294901760, %v14258_v46  ;;  %v9414_v51 = vsub.f32 %v228_v28, %v9382_v31  ;;  %v14271_v28 = vld [vmem:[#allocation28_spill] sm:$0xff]  ;;  %v9456_v23 = vsub.f32 %v9372_v33, %v13538_v50  ;;  %v177_v24 = vld [vmem:[#allocation5 + $0x368] sm:$0xff]  ;;  %v9466_v46 = vand.u32 4294901760, %v176_v18 }
 0x101   :  { %1890 = vmatprep.subr.mxu0 %v14256_v0  ;;  %1988 = vmatprep.subr.mxu1 %v14221_v19  ;;  %v9400_v19 = vand.u32 4294901760, %v216_v63  ;;  %14273 = vst [vmem:[#allocation20_spill] sm:$0xff] %v9458_v49  ;;  %v9464_v0 = vsub.f32 %v202_v17, %v9418_v9  ;;  %v9479_v17 = vsub.f32 %v9392_v8, %v13537_v7 }
 0x102   :  { %1894 = vmatpush1.msra.mxu0 %v14259_v6  ;;  %1990 = vmatpush1.msra.mxu1 %v14222_v3  ;;  %v14263_v3 = vand.u32 4294901760, %v9160_v15  ;;  %v9426_v15 = vsub.f32 %v9361_v59, %v13543_v4  ;;  %14274 = vst [vmem:[#allocation23_spill] sm:$0xff] %v9466_v46  ;;  %v13536_v6 = vand.u32 4294901760, %v9414_v51  ;;  %v125_v4 = vld [vmem:[#allocation5 + $0x1c8] sm:$0xff] }
 0x103   :  { %14260 = vst [vmem:[#allocation16_spill] sm:$0xff] %v9400_v19  ;;  %1898 = vmatprep.subr.mxu0 %v14261_v39  ;;  %1992 = vmatprep.subr.mxu1 %v14262_v43  ;;  %v9444_v32 = vsub.f32 %v216_v63, %v9400_v19  ;;  %v13534_v63 = vand.u32 4294901760, %v9408_v53  ;;  %v9470_v39 = vsub.f32 %v203_v41, %v9416_v14 }
 0x104   :  { %1902 = vmatpush1.msra.mxu0 %v14263_v3  ;;  %1994 = vmatpush1.msra.mxu1 %v14264_v56  ;;  %v2167_v43 = vand.u32 4294901760, %v9426_v15  ;;  %v13540_v3 = vand.u32 4294901760, %v9429_v11  ;;  %v9492_v56 = vand.u32 4294901760, %v177_v24 }
 0x105   :  { %1906 = vmatprep.subr.mxu0 %v14267_v37  ;;  %1996 = vmatprep.subr.mxu1 %v9052_v54  ;;  %v9440_v54 = vand.u32 4294901760, %v189_v58  ;;  %v164_v37 = vld [vmem:[#allocation5 + $0x300] sm:$0xff]  ;;  %v13542_v15 = vand.u32 4294901760, %v9444_v32  ;;  %v9502_v60 = vsub.f32 %v9408_v53, %v13534_v63  ;;  %v150_v63 = vld [vmem:[#allocation5 + $0x290] sm:$0xff] }
 0x106   :  { %1910 = vmatpush1.msra.mxu0 %v14269_v20  ;;  %1943 = vmatprep.mubr.f32.mxu0 %v14106_v34  ;;  %14275 = vst [vmem:[#allocation22_spill] sm:$0xff] %v9492_v56  ;;  %v9505_v20 = vsub.f32 %v190_v35, %v9458_v49  ;;  %v9522_v35 = vand.u32 4294901760, %v164_v37  ;;  %v9541_v16 = vsub.f32 %v177_v24, %v9492_v56 }
 0x107   :  { %14270 = vst [vmem:[#allocation21_spill] sm:$0xff] %v9440_v54  ;;  %1998 = vmatpush1.msra.mxu1 %v14271_v28  ;;  %1945 = vmatmul.mubr.f32.vlgmr.msra.gmra.mxu0 %v14272_v21  ;;  %v9485_v41 = vsub.f32 %v189_v58, %v9440_v54  ;;  %v2185_v58 = vand.u32 4294901760, %v9456_v23  ;;  %v9515_v28 = vsub.f32 %v9414_v51, %v13536_v6  ;;  %v13544_v23 = vand.u32 4294901760, %v9470_v39 }
 0x108   :  { %2000 = vmatprep.subr.mxu1 %v9075_v5  ;;  %2056 = vmatprep.subr.mxu0 %v9335_v36  ;;  %v2173_v5 = vand.u32 4294901760, %v9434_v57  ;;  %v163_v57 = vld [vmem:[#allocation5 + $0x2f8] sm:$0xff]  ;;  %14277 = vst [vmem:[#allocation29_spill] sm:$0xff] %v9522_v35  ;;  %v9529_v6 = vsub.f32 %v9429_v11, %v13540_v3  ;;  %v9573_v42 = vsub.f32 %v164_v37, %v9522_v35 }
 0x109   :  { %2002 = vmatpush1.msra.mxu1 %v9067_v30  ;;  %2058 = vmatpush1.msra.mxu0 %v9337_v27  ;;  %v9490_v30 = vsub.f32 %v9398_v22, %v13535_v55  ;;  %v13545_v55 = vand.u32 4294901760, %v9464_v0  ;;  %v2209_v24 = vand.u32 4294901760, %v9515_v28 }
 0x10a   :  { %2004 = vmatprep.subr.mxu1 %v9105_v62  ;;  %2060 = vmatprep.subr.mxu0 %v9345_v13  ;;  %v2179_v62 = vand.u32 4294901760, %v9451_v61  ;;  %v151_v61 = vld [vmem:[#allocation5 + $0x298] sm:$0xff]  ;;  %v2221_v28 = vand.u32 4294901760, %v9529_v6 }
 0x10b   :  { %2006 = vmatpush1.msra.mxu1 %v9095_v29  ;;  %2062 = vmatpush1.msra.mxu0 %v9347_v40  ;;  %v9510_v29 = vsub.f32 %v176_v18, %v9466_v46  ;;  %v9524_v18 = vand.u32 4294901760, %v163_v57  ;;  %v2197_v7 = vand.u32 4294901760, %v9490_v30  ;;  %v9546_v3 = vand.u32 4294901760, %v151_v61 }
 0x10c   :  { %2008 = vmatprep.subr.mxu1 %v9121_v44  ;;  %2064 = vmatprep.subr.mxu0 %v9358_v12  ;;  %v2191_v44 = vand.u32 4294901760, %v9479_v17  ;;  %v138_v17 = vld [vmem:[#allocation5 + $0x230] sm:$0xff]  ;;  %v9548_v30 = vand.u32 4294901760, %v150_v63 }
 0x10d   :  { %14276 = vst [vmem:[#allocation24_spill] sm:$0xff] %v9510_v29  ;;  %2010 = vmatpush1.msra.mxu1 %v9131_v52  ;;  %2066 = vmatpush1.msra.mxu0 %v9366_v48  ;;  %14278 = vst [vmem:[#allocation32_spill] sm:$0xff] %v9524_v18  ;;  %v9537_v52 = vsub.f32 %v9444_v32, %v13542_v15  ;;  %v137_v15 = vld [vmem:[#allocation5 + $0x228] sm:$0xff]  ;;  %v9567_v50 = vsub.f32 %v163_v57, %v9524_v18  ;;  %v9570_v45 = vand.u32 4294901760, %v138_v17 }
 0x10e   :  { %2012 = vmatprep.subr.mxu1 %v9138_v10  ;;  %2068 = vmatprep.subr.mxu0 %v9374_v26  ;;  %v2203_v10 = vand.u32 4294901760, %v9502_v60  ;;  %14279 = vst [vmem:[#allocation30_spill] sm:$0xff] %v9546_v3  ;;  %14280 = vst [vmem:[#allocation26_spill] sm:$0xff] %v9548_v30  ;;  %v9562_v60 = vsub.f32 %v9464_v0, %v13545_v55  ;;  %v9577_v38 = vand.u32 4294901760, %v137_v15  ;;  %v14296_v48 = vand.u32 4294901760, %v9573_v42 }
 0x10f   :  { %2014 = vmatpush1.msra.mxu1 %v9148_v1  ;;  %2047 = vmatprep.mubr.f32.mxu1 %v14106_v34  ;;  %v9557_v1 = vsub.f32 %v9470_v39, %v13544_v23  ;;  %14281 = vst [vmem:[#allocation31_spill] sm:$0xff] %v9570_v45  ;;  %v124_v23 = vld [vmem:[#allocation5 + $0x1c0] sm:$0xff]  ;;  %v2215_v55 = vand.u32 4294901760, %v9537_v52  ;;  %v9587_v37 = vsub.f32 %v150_v63, %v9548_v30  ;;  %v14287_v63 = vand.u32 4294901760, %v9510_v29 }
 0x110   :  { %2070 = vmatpush1.msra.mxu0 %v9382_v31  ;;  %2049 = vmatmul.mubr.f32.vlgmr.msra.gmra.mxu1 %v14272_v21  ;;  %14282 = vst [vmem:[#allocation39_spill] sm:$0xff] %v9577_v38  ;;  %v111_v31 = vld [vmem:[#allocation5 + $0x158] sm:$0xff] }
 0x111   :  { %2072 = vmatprep.subr.mxu0 %v9400_v19  ;;  %2168 = vmatprep.subr.mxu1 %v2167_v43  ;;  %v14283_v43 = vand.u32 4294901760, %v9485_v41  ;;  %v112_v19 = vld [vmem:[#allocation5 + $0x160] sm:$0xff]  ;;  %14284 = vst [vmem:[#allocation40_spill] sm:$0xff] %v9587_v37  ;;  %v2227_v6 = vand.u32 4294901760, %v9557_v1  ;;  %v9607_v26 = vsub.f32 %v9510_v29, %v14287_v63  ;;  %v99_v1 = vld [vmem:[#allocation5 + $0xf8] sm:$0xff]  ;;  %v9620_v63 = vsub.f32 %v137_v15, %v9577_v38 }
 0x112   :  { %2074 = vmatpush1.msra.mxu0 %v9388_v47  ;;  %2174 = vmatpush1.msra.mxu1 %v2173_v5  ;;  %v14285_v5 = vand.u32 4294901760, %v9505_v20  ;;  %v9594_v47 = vand.u32 4294901760, %v125_v4 }
 0x113   :  { %v9582_v57 = vsub.f32 %v9485_v41, %v14283_v43  ;;  %2076 = vmatprep.subr.mxu0 %v9416_v14  ;;  %2180 = vmatprep.subr.mxu1 %v2179_v62  ;;  %v9597_v43 = vsub.f32 %v151_v61, %v9546_v3  ;;  %v2233_v62 = vand.u32 4294901760, %v9562_v60  ;;  %v9602_v14 = vand.u32 4294901760, %v124_v23  ;;  %14291 = vst [vmem:[#allocation42_spill] sm:$0xff] %v9620_v63 }
 0x114   :  { %v9592_v52 = vsub.f32 %v9505_v20, %v14285_v5  ;;  %2078 = vmatpush1.msra.mxu0 %v9418_v9  ;;  %2186 = vmatpush1.msra.mxu1 %v2185_v58  ;;  %v98_v5 = vld [vmem:[#allocation5 + $0xf0] sm:$0xff]  ;;  %v9610_v61 = vand.u32 4294901760, %v112_v19  ;;  %v9613_v58 = vand.u32 4294901760, %v111_v31  ;;  %v9616_v60 = vsub.f32 %v138_v17, %v9570_v45 }
 0x115   :  { %14286 = vst [vmem:[#allocation37_spill] sm:$0xff] %v9597_v43  ;;  %2080 = vmatprep.subr.mxu0 %v9458_v49  ;;  %2192 = vmatprep.subr.mxu1 %v2191_v44  ;;  %v2245_v29 = vand.u32 4294901760, %v9582_v57  ;;  %v14292_v44 = vand.u32 4294901760, %v9541_v16  ;;  %v9633_v15 = vsub.f32 %v125_v4, %v9594_v47  ;;  %v9637_v57 = vsub.f32 %v124_v23, %v9602_v14 }
 0x116   :  { %14288 = vst [vmem:[#allocation27_spill] sm:$0xff] %v9610_v61  ;;  %14289 = vst [vmem:[#allocation41_spill] sm:$0xff] %v9613_v58  ;;  %2082 = vmatpush1.msra.mxu0 %v9440_v54  ;;  %2198 = vmatpush1.msra.mxu1 %v2197_v7  ;;  %v2239_v17 = vand.u32 4294901760, %v9592_v52  ;;  %v9630_v54 = vand.u32 4294901760, %v98_v5  ;;  %v86_v7 = vld [vmem:[#allocation5 + $0x90] sm:$0xff]  ;;  %v9640_v9 = vand.u32 4294901760, %v99_v1  ;;  %v2262_v4 = vsub.f32 %v9573_v42, %v14296_v48 }
 0x117   :  { %14290 = vst [vmem:[#allocation28_spill] sm:$0xff] %v9616_v60  ;;  %v2250_v49 = vsub.f32 %v9541_v16, %v14292_v44  ;;  %2084 = vmatprep.subr.mxu0 %v9492_v56  ;;  %2204 = vmatprep.subr.mxu1 %v2203_v10  ;;  %14293 = vst [vmem:[#allocation43_spill] sm:$0xff] %v9633_v15  ;;  %v2257_v44 = vand.u32 4294901760, %v9607_v26  ;;  %v85_v52 = vld [vmem:[#allocation5 + $0x88] sm:$0xff]  ;;  %v9652_v26 = vsub.f32 %v112_v19, %v9610_v61 }
 0x118   :  { %2086 = vmatpush1.msra.mxu0 %v9466_v46  ;;  %2210 = vmatpush1.msra.mxu1 %v2209_v24  ;;  %14294 = vst [vmem:[#allocation44_spill] sm:$0xff] %v9637_v57  ;;  %14295 = vst [vmem:[#allocation45_spill] sm:$0xff] %v9640_v9  ;;  %v9648_v46 = vsub.f32 %v111_v31, %v9613_v58  ;;  %v73_v24 = vld [vmem:[#allocation5 + $0x28] sm:$0xff]  ;;  %v9658_v56 = vand.u32 4294901760, %v86_v7  ;;  %v72_v31 = vld [vmem:[#allocation5 + $0x20] sm:$0xff]  ;;  %v14301_v23 = vand.u32 4294901760, %v9597_v43 }
 0x119   :  { %2088 = vmatprep.subr.mxu0 %v9522_v35  ;;  %2216 = vmatprep.subr.mxu1 %v2215_v55  ;;  %14298 = vst [vmem:[#allocation47_spill] sm:$0xff] %v9652_v26  ;;  %v2251_v10 = vand.u32 4294901760, %v2250_v49  ;;  %v14299_v35 = vand.u32 4294901760, %v9567_v50  ;;  %v9668_v49 = vand.u32 4294901760, %v85_v52 }
 0x11a   :  { %14297 = vst [vmem:[#allocation46_spill] sm:$0xff] %v9648_v46  ;;  %2090 = vmatpush1.msra.mxu0 %v9524_v18  ;;  %2222 = vmatpush1.msra.mxu1 %v2221_v28  ;;  %14300 = vst [vmem:[#allocation48_spill] sm:$0xff] %v9658_v56  ;;  %v2274_v19 = vsub.f32 %v9597_v43, %v14301_v23  ;;  %v9666_v18 = vsub.f32 %v98_v5, %v9630_v54  ;;  %v2263_v5 = vand.u32 4294901760, %v2262_v4 }
 0x11b   :  { %v2268_v55 = vsub.f32 %v9567_v50, %v14299_v35  ;;  %2092 = vmatprep.subr.mxu0 %v9546_v3  ;;  %2228 = vmatprep.subr.mxu1 %v2227_v6  ;;  %v14303_v35 = vand.u32 4294901760, %v9587_v37  ;;  %v9675_v3 = vand.u32 4294901760, %v73_v24  ;;  %v9679_v23 = vsub.f32 %v99_v1, %v9640_v9 }
 0x11c   :  { %14302 = vst [vmem:[#allocation49_spill] sm:$0xff] %v9666_v18  ;;  %2094 = vmatpush1.msra.mxu0 %v9548_v30  ;;  %2234 = vmatpush1.msra.mxu1 %v2233_v62  ;;  %v14305_v28 = vand.u32 4294901760, %v9616_v60  ;;  %v9685_v62 = vand.u32 4294901760, %v72_v31  ;;  %v14307_v6 = vand.u32 4294901760, %v9620_v63  ;;  %v9697_v4 = vsub.f32 %v85_v52, %v9668_v49 }
 0x11d   :  { %v2280_v48 = vsub.f32 %v9587_v37, %v14303_v35  ;;  %14304 = vst [vmem:[#allocation50_spill] sm:$0xff] %v9679_v23  ;;  %2096 = vmatprep.subr.mxu0 %v9570_v45  ;;  %2240 = vmatprep.subr.mxu1 %v2239_v17  ;;  %v2269_v35 = vand.u32 4294901760, %v2268_v55  ;;  %v9693_v45 = vsub.f32 %v86_v7, %v9658_v56  ;;  %v2275_v17 = vand.u32 4294901760, %v2274_v19 }
 0x11e   :  { %v2286_v30 = vsub.f32 %v9616_v60, %v14305_v28  ;;  %14306 = vst [vmem:[#allocation51_spill] sm:$0xff] %v9685_v62  ;;  %2098 = vmatpush1.msra.mxu0 %v9577_v38  ;;  %2246 = vmatpush1.msra.mxu1 %v2245_v29  ;;  %v2292_v1 = vsub.f32 %v9620_v63, %v14307_v6  ;;  %14308 = vst [vmem:[#allocation52_spill] sm:$0xff] %v9697_v4  ;;  %v14309_v28 = vand.u32 4294901760, %v9633_v15 }
 0x11f   :  { %2100 = vmatprep.subr.mxu0 %v9594_v47  ;;  %2252 = vmatprep.subr.mxu1 %v2251_v10  ;;  %v2281_v55 = vand.u32 4294901760, %v2280_v48  ;;  %v14310_v7 = vand.u32 4294901760, %v9637_v57  ;;  %v9709_v19 = vsub.f32 %v73_v24, %v9675_v3  ;;  %v14312_v29 = vand.u32 4294901760, %v9652_v26 }
 0x120   :  { %v2298_v43 = vsub.f32 %v9633_v15, %v14309_v28  ;;  %2102 = vmatpush1.msra.mxu0 %v9602_v14  ;;  %2258 = vmatpush1.msra.mxu1 %v2257_v44  ;;  %v2287_v52 = vand.u32 4294901760, %v2286_v30  ;;  %v9713_v28 = vsub.f32 %v72_v31, %v9685_v62  ;;  %v13584_v24 = vand.u32 4294901760, %v9693_v45 }
 0x121   :  { %v2304_v6 = vsub.f32 %v9637_v57, %v14310_v7  ;;  %2104 = vmatprep.subr.mxu0 %v9610_v61  ;;  %2264 = vmatprep.subr.mxu1 %v2263_v5  ;;  %v2310_v44 = vsub.f32 %v9652_v26, %v14312_v29  ;;  %v2293_v7 = vand.u32 4294901760, %v2292_v1  ;;  %v14313_v30 = vand.u32 4294901760, %v9648_v46 }
 0x122   :  { %14311 = vst [vmem:[#allocation53_spill] sm:$0xff] %v9713_v28  ;;  %2106 = vmatpush1.msra.mxu0 %v9613_v58  ;;  %2270 = vmatpush1.msra.mxu1 %v2269_v35  ;;  %v2299_v5 = vand.u32 4294901760, %v2298_v43  ;;  %v14314_v48 = vand.u32 4294901760, %v9679_v23  ;;  %v13583_v1 = vand.u32 4294901760, %v9709_v19  ;;  %v13582_v10 = vand.u32 4294901760, %v9713_v28 }
 0x123   :  { %2108 = vmatprep.subr.mxu0 %v9640_v9  ;;  %2276 = vmatprep.subr.mxu1 %v2275_v17  ;;  %v2316_v31 = vsub.f32 %v9648_v46, %v14313_v30  ;;  %v2305_v29 = vand.u32 4294901760, %v2304_v6  ;;  %v2311_v43 = vand.u32 4294901760, %v2310_v44  ;;  %v14315_v17 = vand.u32 4294901760, %v9666_v18 }
 0x124   :  { %2110 = vmatpush1.msra.mxu0 %v9630_v54  ;;  %2282 = vmatpush1.msra.mxu1 %v2281_v55  ;;  %v2322_v35 = vsub.f32 %v9679_v23, %v14314_v48  ;;  %v2334_v55 = vsub.f32 %v9693_v45, %v13584_v24  ;;  %v14330_v24 = vld [vmem:[#allocation23_spill] sm:$0xff] }
 0x125   :  { %2112 = vmatprep.subr.mxu0 %v9658_v56  ;;  %2288 = vmatprep.subr.mxu1 %v2287_v52  ;;  %v2328_v30 = vsub.f32 %v9666_v18, %v14315_v17  ;;  %v2317_v6 = vand.u32 4294901760, %v2316_v31  ;;  %v14316_v52 = vand.u32 4294901760, %v9697_v4  ;;  %v14317_v31 = vld [vmem:[#allocation38_spill] sm:$0xff] }
 0x126   :  { %2114 = vmatpush1.msra.mxu0 %v9668_v49  ;;  %2294 = vmatpush1.msra.mxu1 %v2293_v7  ;;  %v2323_v48 = vand.u32 4294901760, %v2322_v35  ;;  %v2346_v7 = vsub.f32 %v9709_v19, %v13583_v1  ;;  %v269_v1 = vld [vmem:[#allocation5 + $0x648] sm:$0xff] }
 0x127   :  { %2116 = vmatprep.subr.mxu0 %v9675_v3  ;;  %2300 = vmatprep.subr.mxu1 %v2299_v5  ;;  %v2340_v44 = vsub.f32 %v9697_v4, %v14316_v52  ;;  %v2329_v17 = vand.u32 4294901760, %v2328_v30  ;;  %v2352_v5 = vsub.f32 %v9713_v28, %v13582_v10  ;;  %v2335_v52 = vand.u32 4294901760, %v2334_v55  ;;  %v14318_v30 = vld [vmem:[#allocation15_spill] sm:$0xff]  ;;  %v14319_v55 = vld [vmem:[#allocation36_spill] sm:$0xff]  ;;  %v14329_v10 = vld [vmem:[#allocation22_spill] sm:$0xff] }
 0x128   :  { %2118 = vmatpush1.msra.mxu0 %v9685_v62  ;;  %2306 = vmatpush1.msra.mxu1 %v2305_v29  ;;  %v2347_v35 = vand.u32 4294901760, %v2346_v7  ;;  %v14323_v7 = vld [vmem:[#allocation25_spill] sm:$0xff] }
 0x129   :  { %2151 = vmatprep.mubr.f32.mxu0 %v14106_v34  ;;  %2312 = vmatprep.subr.mxu1 %v2311_v43  ;;  %v2341_v29 = vand.u32 4294901760, %v2340_v44  ;;  %v2353_v43 = vand.u32 4294901760, %v2352_v5  ;;  %v14321_v44 = vld [vmem:[#allocation17_spill] sm:$0xff]  ;;  %v14325_v5 = vld [vmem:[#allocation19_spill] sm:$0xff] }
 0x12a   :  { %2397 = vmatprep.subr.mxu0 %v9361_v59  ;;  %2157 = vmatmul.mubr.f32.vlgmr.msra.gmra.mxu0 %v14317_v31 }
 0x12b   :  { %2318 = vmatpush1.msra.mxu1 %v2317_v6  ;;  %2400 = vmatpush1.msra.mxu0 %v9356_v2  ;;  %v14320_v6 = vld [vmem:[#allocation24_spill] sm:$0xff] }
 0x12c   :  { %2324 = vmatprep.subr.mxu1 %v2323_v48  ;;  %2403 = vmatprep.subr.mxu0 %v9377_v25  ;;  %v14322_v48 = vld [vmem:[#allocation16_spill] sm:$0xff] }
 0x12d   :  { %2330 = vmatpush1.msra.mxu1 %v2329_v17  ;;  %2406 = vmatpush1.msra.mxu0 %v9372_v33  ;;  %v14324_v17 = vld [vmem:[#allocation37_spill] sm:$0xff] }
 0x12e   :  { %2336 = vmatprep.subr.mxu1 %v2335_v52  ;;  %2409 = vmatprep.subr.mxu0 %v9392_v8  ;;  %v14326_v52 = vld [vmem:[#allocation18_spill] sm:$0xff] }
 0x12f   :  { %2342 = vmatpush1.msra.mxu1 %v2341_v29  ;;  %2412 = vmatpush1.msra.mxu0 %v9398_v22  ;;  %v14327_v29 = vld [vmem:[#allocation20_spill] sm:$0xff] }
 0x130   :  { %2348 = vmatprep.subr.mxu1 %v2347_v35  ;;  %2415 = vmatprep.subr.mxu0 %v9408_v53  ;;  %v270_v35 = vld [vmem:[#allocation5 + $0x650] sm:$0xff] }
 0x131   :  { %2354 = vmatpush1.msra.mxu1 %v2353_v43  ;;  %2387 = vmatprep.mubr.f32.mxu1 %v14106_v34  ;;  %v14328_v43 = vld [vmem:[#allocation21_spill] sm:$0xff]  ;;  %v9795_v31 = vand.u32 4294901760, %v270_v35 }
 0x132   :  { %2418 = vmatpush1.msra.mxu0 %v9414_v51  ;;  %2389 = vmatmul.mubr.f32.vlgmr.msra.gmra.mxu1 %v14272_v21  ;;  %v14332_v21 = vld [vmem:[#allocation29_spill] sm:$0xff] }
 0x133   :  { %2421 = vmatprep.subr.mxu0 %v9444_v32  ;;  %2533 = vmatprep.subr.mxu1 %v9335_v36  ;;  %14331 = vst [vmem:[#allocation15_spill] sm:$0xff] %v9795_v31 }
 0x134   :  { %2424 = vmatpush1.msra.mxu0 %v9429_v11  ;;  %2535 = vmatpush1.msra.mxu1 %v9337_v27 }
 0x135   :  { %2427 = vmatprep.subr.mxu0 %v9470_v39  ;;  %2537 = vmatprep.subr.mxu1 %v9345_v13 }
 0x136   :  { %2430 = vmatpush1.msra.mxu0 %v9464_v0  ;;  %2539 = vmatpush1.msra.mxu1 %v9347_v40 }
 0x137   :  { %2433 = vmatprep.subr.mxu0 %v9505_v20  ;;  %2541 = vmatprep.subr.mxu1 %v9358_v12 }
 0x138   :  { %2436 = vmatpush1.msra.mxu0 %v9485_v41  ;;  %2543 = vmatpush1.msra.mxu1 %v14318_v30 }
 0x139   :  { %2439 = vmatprep.subr.mxu0 %v9541_v16  ;;  %2545 = vmatprep.subr.mxu1 %v14319_v55 }
 0x13a   :  { %2442 = vmatpush1.msra.mxu0 %v14320_v6  ;;  %2547 = vmatpush1.msra.mxu1 %v14321_v44 }
 0x13b   :  { %2445 = vmatprep.subr.mxu0 %v9573_v42  ;;  %2549 = vmatprep.subr.mxu1 %v14322_v48 }
 0x13c   :  { %2448 = vmatpush1.msra.mxu0 %v9567_v50  ;;  %2551 = vmatpush1.msra.mxu1 %v14323_v7 }
 0x13d   :  { %2451 = vmatprep.subr.mxu0 %v14324_v17  ;;  %2553 = vmatprep.subr.mxu1 %v14325_v5 }
 0x13e   :  { %2454 = vmatpush1.msra.mxu0 %v9587_v37  ;;  %2555 = vmatpush1.msra.mxu1 %v14326_v52  ;;  %v280_v52 = vlaneseq }
 0x13f   :  { %2457 = vmatprep.subr.mxu0 %v9616_v60  ;;  %2557 = vmatprep.subr.mxu1 %v14327_v29  ;;  %v257_v29 = vld [vmem:[#allocation5 + $0x5e8] sm:$0xff]  ;;  %v256_v60 = vld [vmem:[#allocation5 + $0x5e0] sm:$0xff] }
 0x140   :  { %2460 = vmatpush1.msra.mxu0 %v9620_v63  ;;  %2559 = vmatpush1.msra.mxu1 %v14328_v43  ;;  %v14333_v43 = vld [vmem:[#allocation32_spill] sm:$0xff] }
 0x141   :  { %2463 = vmatprep.subr.mxu0 %v9633_v15  ;;  %2561 = vmatprep.subr.mxu1 %v14329_v10  ;;  %v9801_v15 = vand.u32 4294901760, %v269_v1  ;;  %v244_v10 = vld [vmem:[#allocation5 + $0x580] sm:$0xff]  ;;  %v243_v63 = vld [vmem:[#allocation5 + $0x578] sm:$0xff] }
 0x142   :  { %2466 = vmatpush1.msra.mxu0 %v9637_v57  ;;  %2563 = vmatpush1.msra.mxu1 %v14330_v24  ;;  %v14335_v24 = vld [vmem:[#allocation30_spill] sm:$0xff]  ;;  %v9809_v57 = vand.u32 4294901760, %v256_v60  ;;  %v9816_v37 = vand.u32 4294901760, %v244_v10 }
 0x143   :  { %2469 = vmatprep.subr.mxu0 %v9652_v26  ;;  %2565 = vmatprep.subr.mxu1 %v14332_v21  ;;  %14334 = vst [vmem:[#allocation36_spill] sm:$0xff] %v9801_v15  ;;  %v14336_v26 = vld [vmem:[#allocation26_spill] sm:$0xff]  ;;  %v9807_v21 = vand.u32 4294901760, %v257_v29 }
 0x144   :  { %2472 = vmatpush1.msra.mxu0 %v9648_v46  ;;  %2567 = vmatpush1.msra.mxu1 %v14333_v43  ;;  %14338 = vst [vmem:[#allocation17_spill] sm:$0xff] %v9809_v57  ;;  %v9812_v46 = vsub.f32 %v270_v35, %v9795_v31  ;;  %v14340_v43 = vld [vmem:[#allocation31_spill] sm:$0xff]  ;;  %14341 = vst [vmem:[#allocation25_spill] sm:$0xff] %v9816_v37  ;;  %v231_v35 = vld [vmem:[#allocation5 + $0x518] sm:$0xff]  ;;  %v9832_v31 = vsub.f32 %v256_v60, %v9809_v57  ;;  %v14350_v60 = vand.u32 4294901760, %v9361_v59 }
 0x145   :  { %2475 = vmatprep.subr.mxu0 %v9679_v23  ;;  %2569 = vmatprep.subr.mxu1 %v14335_v24  ;;  %14337 = vst [vmem:[#allocation24_spill] sm:$0xff] %v9807_v21  ;;  %v9818_v23 = vand.u32 4294901760, %v243_v63  ;;  %v9849_v57 = vand.u32 4294901760, %v231_v35 }
 0x146   :  { %2478 = vmatpush1.msra.mxu0 %v9666_v18  ;;  %2571 = vmatpush1.msra.mxu1 %v14336_v26  ;;  %14339 = vst [vmem:[#allocation16_spill] sm:$0xff] %v9812_v46  ;;  %v9823_v26 = vsub.f32 %v269_v1, %v9801_v15  ;;  %v9825_v18 = vshrl.u32 %v280_v52, 7  ;;  %14345 = vst [vmem:[#allocation31_spill] sm:$0xff] %v9832_v31  ;;  %v9836_v1 = vsub.f32 %v257_v29, %v9807_v21  ;;  %v14347_v52 = vld [vmem:[#allocation34_spill] sm:$0xff] }
 0x147   :  { %2481 = vmatprep.subr.mxu0 %v9693_v45  ;;  %2573 = vmatprep.subr.mxu1 %v14340_v43  ;;  %14342 = vst [vmem:[#allocation37_spill] sm:$0xff] %v9818_v23  ;;  %v9841_v15 = vsub.f32 %v243_v63, %v9818_v23  ;;  %14351 = vst [vmem:[#allocation57_spill] sm:$0xff] %v9849_v57  ;;  %v14353_v63 = vand.u32 4294901760, %v9356_v2  ;;  %v9860_v23 = vld [vmem:[#allocation7] sm:$0xff]  ;;  %v14357_v29 = vand.u32 4294901760, %v9812_v46  ;;  %v205_v2 = vld [vmem:[#allocation5 + $0x448] sm:$0xff] }
 0x148   :  { %2484 = vmatpush1.msra.mxu0 %v9697_v4  ;;  %2575 = vmatpush1.msra.mxu1 %v9577_v38  ;;  %14343 = vst [vmem:[#allocation19_spill] sm:$0xff] %v9823_v26  ;;  %14344 = vst [vmem:[#allocation30_spill] sm:$0xff] %v9825_v18  ;;  %v230_v4 = vld [vmem:[#allocation5 + $0x510] sm:$0xff]  ;;  %v9853_v21 = vsub.s32 0, %v9825_v18  ;;  %v9863_v59 = vsub.s32 1, %v9825_v18  ;;  %v14359_v18 = vand.u32 4294901760, %v9372_v33 }
 0x149   :  { %2487 = vmatprep.subr.mxu0 %v9709_v19  ;;  %2577 = vmatprep.subr.mxu1 %v9594_v47  ;;  %14346 = vst [vmem:[#allocation54_spill] sm:$0xff] %v9836_v1  ;;  %14348 = vst [vmem:[#allocation55_spill] sm:$0xff] %v9841_v15  ;;  %v218_v38 = vld [vmem:[#allocation5 + $0x4b0] sm:$0xff]  ;;  %v191_v33 = vld [vmem:[#allocation5 + $0x3d8] sm:$0xff] }
 0x14a   :  { %2490 = vmatpush1.msra.mxu0 %v9713_v28  ;;  %2523 = vmatprep.mubr.f32.mxu0 %v14106_v34  ;;  %v9844_v28 = vsub.f32 %v244_v10, %v9816_v37  ;;  %14352 = vst [vmem:[#allocation58_spill] sm:$0xff] %v9853_v21  ;;  %v9858_v10 = vand.u32 4294901760, %v230_v4  ;;  %14355 = vst [vmem:[#allocation60_spill] sm:$0xff] %v9863_v59  ;;  %v9871_v37 = vsub.f32 %v9812_v46, %v14357_v29 }
 0x14b   :  { %2579 = vmatpush1.msra.mxu1 %v9602_v14  ;;  %2526 = vmatmul.mubr.f32.vlgmr.msra.gmra.mxu0 %v14347_v52  ;;  %v217_v52 = vld [vmem:[#allocation5 + $0x4a8] sm:$0xff]  ;;  %v14361_v29 = vand.u32 4294901760, %v9392_v8 }
 0x14c   :  { %14349 = vst [vmem:[#allocation56_spill] sm:$0xff] %v9844_v28  ;;  %2581 = vmatprep.subr.mxu1 %v9610_v61  ;;  %2641 = vmatprep.subr.mxu0 %v14350_v60  ;;  %14354 = vst [vmem:[#allocation59_spill] sm:$0xff] %v9858_v10  ;;  %v14356_v60 = vand.u32 4294901760, %v9377_v25  ;;  %v14363_v61 = vand.u32 4294901760, %v9823_v26  ;;  %v9901_v8 = vsub.f32 %v230_v4, %v9858_v10  ;;  %v14369_v25 = vand.u32 4294901760, %v9408_v53 }
 0x14d   :  { %2583 = vmatpush1.msra.mxu1 %v9613_v58  ;;  %2645 = vmatpush1.msra.mxu0 %v14353_v63  ;;  %14358 = vst [vmem:[#allocation61_spill] sm:$0xff] %v9871_v37  ;;  %v204_v58 = vld [vmem:[#allocation5 + $0x440] sm:$0xff]  ;;  %v9885_v63 = vand.u32 4294901760, %v217_v52  ;;  %v14377_v37 = vld [vmem:[#allocation35_spill] sm:$0xff] }
 0x14e   :  { %2585 = vmatprep.subr.mxu1 %v9640_v9  ;;  %2649 = vmatprep.subr.mxu0 %v14356_v60  ;;  %v9878_v9 = vand.u32 4294901760, %v218_v38  ;;  %v9890_v46 = vsub.f32 %v9823_v26, %v14363_v61  ;;  %v14365_v60 = vand.u32 4294901760, %v9398_v22  ;;  %14366 = vst [vmem:[#allocation65_spill] sm:$0xff] %v9901_v8  ;;  %v192_v61 = vld [vmem:[#allocation5 + $0x3e0] sm:$0xff]  ;;  %v14370_v22 = vand.u32 4294901760, %v9836_v1 }
 0x14f   :  { %2587 = vmatpush1.msra.mxu1 %v9630_v54  ;;  %2653 = vmatpush1.msra.mxu0 %v14359_v18  ;;  %14362 = vst [vmem:[#allocation63_spill] sm:$0xff] %v9885_v63  ;;  %v9893_v18 = vsub.f32 %v231_v35, %v9849_v57  ;;  %v14372_v35 = vand.u32 4294901760, %v9844_v28  ;;  %v14374_v26 = vand.u32 4294901760, %v9841_v15 }
 0x150   :  { %14360 = vst [vmem:[#allocation62_spill] sm:$0xff] %v9878_v9  ;;  %2589 = vmatprep.subr.mxu1 %v9658_v56  ;;  %2657 = vmatprep.subr.mxu0 %v14361_v29  ;;  %v9903_v29 = vand.u32 4294901760, %v205_v2  ;;  %v9905_v56 = vand.u32 4294901760, %v204_v58  ;;  %v9916_v4 = vsub.f32 %v9836_v1, %v14370_v22  ;;  %v178_v1 = vld [vmem:[#allocation5 + $0x370] sm:$0xff] }
 0x151   :  { %14364 = vst [vmem:[#allocation64_spill] sm:$0xff] %v9893_v18  ;;  %2591 = vmatpush1.msra.mxu1 %v9668_v49  ;;  %2661 = vmatpush1.msra.mxu0 %v14365_v60  ;;  %v14371_v60 = vand.u32 4294901760, %v9832_v31  ;;  %v9928_v53 = vsub.f32 %v9844_v28, %v14372_v35  ;;  %v9935_v22 = vsub.f32 %v9841_v15, %v14374_v26  ;;  %v9947_v28 = vand.u32 4294901760, %v192_v61 }
 0x152   :  { %14367 = vst [vmem:[#allocation66_spill] sm:$0xff] %v9903_v29  ;;  %14368 = vst [vmem:[#allocation67_spill] sm:$0xff] %v9905_v56  ;;  %2593 = vmatprep.subr.mxu1 %v9675_v3  ;;  %2665 = vmatprep.subr.mxu0 %v14369_v25  ;;  %v9930_v25 = vand.u32 4294901760, %v191_v33  ;;  %v14380_v26 = vand.u32 4294901760, %v9444_v32  ;;  %v14383_v35 = vand.u32 4294901760, %v9429_v11  ;;  %v14386_v32 = vand.u32 4294901760, %v9464_v0  ;;  %v448_v11 = vpop.f32.mrf.mxu0 }
 0x153   :  { %v9921_v10 = vsub.f32 %v9832_v31, %v14371_v60  ;;  %2595 = vmatpush1.msra.mxu1 %v9685_v62  ;;  %2628 = vmatprep.mubr.f32.mxu1 %v14106_v34  ;;  %v9938_v60 = vsub.f32 %v218_v38, %v9878_v9  ;;  %v14376_v31 = vand.u32 4294901760, %v9414_v51  ;;  %v9944_v62 = vsub.f32 %v217_v52, %v9885_v63  ;;  %v179_v51 = vld [vmem:[#allocation5 + $0x378] sm:$0xff] }
 0x154   :  { %14373 = vst [vmem:[#allocation68_spill] sm:$0xff] %v9930_v25  ;;  %2632 = vmatmul.mubr.f32.vlgmr.msra.gmra.mxu1 %v14377_v37  ;;  %14379 = vst [vmem:[#allocation71_spill] sm:$0xff] %v9947_v28  ;;  %2807 = vmatprep.subr.mxu1 %v9335_v36  ;;  %v9954_v38 = vsub.f32 %v204_v58, %v9905_v56  ;;  %v9958_v52 = vsub.f32 %v205_v2, %v9903_v29  ;;  %v166_v36 = vld [vmem:[#allocation5 + $0x310] sm:$0xff]  ;;  %v14384_v58 = vand.u32 4294901760, %v9470_v39  ;;  %v450_v37 = vpop.f32.mrf.mxu0 }
 0x155   :  { %14375 = vst [vmem:[#allocation69_spill] sm:$0xff] %v9938_v60  ;;  %2669 = vmatpush1.msra.mxu0 %v14376_v31  ;;  %14378 = vst [vmem:[#allocation70_spill] sm:$0xff] %v9944_v62  ;;  %2809 = vmatpush1.msra.mxu1 %v9337_v27  ;;  %v9972_v31 = vsub.f32 %v191_v33, %v9930_v25  ;;  %v9979_v57 = vand.u32 4294901760, %v179_v51  ;;  %v14388_v39 = vand.u32 4294901760, %v9893_v18  ;;  %v14390_v2 = vand.u32 4294901760, %v9505_v20  ;;  %v152_v27 = vld [vmem:[#allocation5 + $0x2a0] sm:$0xff] }
 0x156   :  { %2673 = vmatprep.subr.mxu0 %v14380_v26  ;;  %14381 = vst [vmem:[#allocation72_spill] sm:$0xff] %v9954_v38  ;;  %14382 = vst [vmem:[#allocation73_spill] sm:$0xff] %v9958_v52  ;;  %v9965_v26 = vand.u32 4294901760, %v178_v1  ;;  %2811 = vmatprep.subr.mxu1 %v9345_v13  ;;  %v10018_v33 = vld [vmem:[#allocation5 + $0x2a8] sm:$0xff] }
 0x157   :  { %2677 = vmatpush1.msra.mxu0 %v14383_v35  ;;  %14385 = vst [vmem:[#allocation74_spill] sm:$0xff] %v9972_v31  ;;  %v165_v35 = vld [vmem:[#allocation5 + $0x308] sm:$0xff]  ;;  %2813 = vmatpush1.msra.mxu1 %v9347_v40  ;;  %14387 = vst [vmem:[#allocation75_spill] sm:$0xff] %v9979_v57  ;;  %v9984_v13 = vsub.f32 %v9893_v18, %v14388_v39  ;;  %v14391_v40 = vand.u32 4294901760, %v9901_v8 }
 0x158   :  { %2681 = vmatprep.subr.mxu0 %v14384_v58  ;;  %v9988_v58 = vsub.f32 %v192_v61, %v9947_v28  ;;  %2815 = vmatprep.subr.mxu1 %v9358_v12  ;;  %v14393_v61 = vand.u32 4294901760, %v9485_v41  ;;  %v10006_v20 = vsub.f32 %v178_v1, %v9965_v26  ;;  %v10008_v12 = vand.u32 4294901760, %v165_v35  ;;  %v680_v41 = vpop.f32.mrf.mxu1 }
 0x159   :  { %2685 = vmatpush1.msra.mxu0 %v14386_v32  ;;  %v9996_v0 = vsub.f32 %v9901_v8, %v14391_v40  ;;  %v9998_v32 = vand.u32 4294901760, %v166_v36  ;;  %2817 = vmatpush1.msra.mxu1 %v14318_v30  ;;  %v14397_v40 = vand.u32 4294901760, %v9938_v60  ;;  %v14398_v30 = vand.u32 4294901760, %v14320_v6 }
 0x15a   :  { %14389 = vst [vmem:[#allocation76_spill] sm:$0xff] %v9988_v58  ;;  %2689 = vmatprep.subr.mxu0 %v14390_v2  ;;  %14394 = vst [vmem:[#allocation78_spill] sm:$0xff] %v10006_v20  ;;  %v14396_v2 = vand.u32 4294901760, %v9541_v16  ;;  %2819 = vmatprep.subr.mxu1 %v14319_v55  ;;  %v14399_v1 = vand.u32 4294901760, %v9944_v62  ;;  %v10029_v55 = vand.u32 4294901760, %v152_v27  ;;  %v14403_v6 = vand.u32 4294901760, %v9573_v42 }
 0x15b   :  { %14392 = vst [vmem:[#allocation77_spill] sm:$0xff] %v9998_v32  ;;  %2693 = vmatpush1.msra.mxu0 %v14393_v61  ;;  %14395 = vst [vmem:[#allocation79_spill] sm:$0xff] %v10008_v12  ;;  %v10016_v39 = vsub.f32 %v9938_v60, %v14397_v40  ;;  %2821 = vmatpush1.msra.mxu1 %v14321_v44  ;;  %v10033_v40 = vsub.f32 %v179_v51, %v9979_v57  ;;  %v14406_v61 = vand.u32 4294901760, %v9954_v38  ;;  %v10062_v44 = vld [vmem:[#allocation5 + $0x240] sm:$0xff]  ;;  %v14417_v60 = vld [vmem:[#allocation40_spill] sm:$0xff] }
 0x15c   :  { %2697 = vmatprep.subr.mxu0 %v14396_v2  ;;  %v10027_v16 = vsub.f32 %v9944_v62, %v14399_v1  ;;  %14401 = vst [vmem:[#allocation81_spill] sm:$0xff] %v10029_v55  ;;  %v139_v2 = vld [vmem:[#allocation5 + $0x238] sm:$0xff]  ;;  %2823 = vmatprep.subr.mxu1 %v14322_v48  ;;  %v10050_v51 = vsub.f32 %v166_v36, %v9998_v32  ;;  %v14409_v42 = vand.u32 4294901760, %v9567_v50  ;;  %v817_v50 = vpop.f32.mrf.mxu0  ;;  %v14415_v48 = vand.u32 4294901760, %v9972_v31 }
 0x15d   :  { %2701 = vmatpush1.msra.mxu0 %v14398_v30  ;;  %14402 = vst [vmem:[#allocation82_spill] sm:$0xff] %v10033_v40  ;;  %v14404_v30 = vand.u32 4294901760, %v9958_v52  ;;  %v10047_v62 = vsub.f32 %v9954_v38, %v14406_v61  ;;  %2825 = vmatpush1.msra.mxu1 %v14323_v7  ;;  %v14412_v36 = vrot.slane %v9860_v23, %v9853_v21  ;;  %v126_v61 = vld [vmem:[#allocation5 + $0x1d0] sm:$0xff]  ;;  %v14418_v8 = vand.u32 4294901760, %v14417_v60  ;;  %v10091_v7 = vld [vmem:[#allocation5 + $0x1d8] sm:$0xff]  ;;  %v682_v21 = vpop.f32.mrf.mxu1 }
 0x15e   :  { %14400 = vst [vmem:[#allocation80_spill] sm:$0xff] %v10027_v16  ;;  %2705 = vmatprep.subr.mxu0 %v14403_v6  ;;  %14408 = vst [vmem:[#allocation85_spill] sm:$0xff] %v10050_v51  ;;  %v10057_v6 = vsub.f32 %v165_v35, %v10008_v12  ;;  %2827 = vmatprep.subr.mxu1 %v14325_v5  ;;  %v10072_v35 = vand.u32 4294901760, %v139_v2  ;;  %v14421_v5 = vand.u32 4294901760, %v9988_v58  ;;  %v14449_v16 = vld [vmem:[#allocation50_spill] sm:$0xff] }
 0x15f   :  { %v10042_v1 = vsub.f32 %v9958_v52, %v14404_v30  ;;  %14407 = vst [vmem:[#allocation84_spill] sm:$0xff] %v10047_v62  ;;  %2709 = vmatpush1.msra.mxu0 %v14409_v42  ;;  %v10060_v30 = vand.u32 4294901760, %v10018_v33  ;;  %v449_v38 = vadd.f32 %v448_v11, %v14412_v36  ;;  %v14413_v42 = vand.u32 4294901760, %v14324_v17  ;;  %v14419_v11 = vld [vmem:[#allocation18_spill] sm:$0xff]  ;;  %2798 = vmatprep.mubr.f32.mxu0 %v14106_v34 }
 0x160   :  { %14410 = vst [vmem:[#allocation86_spill] sm:$0xff] %v10057_v6  ;;  %14414 = vst [vmem:[#allocation88_spill] sm:$0xff] %v10072_v35  ;;  %v10077_v52 = vsub.f32 %v9972_v31, %v14415_v48  ;;  %2829 = vmatpush1.msra.mxu1 %v14419_v11  ;;  %v10084_v36 = vsub.f32 %v152_v27, %v10029_v55  ;;  %v14423_v31 = vld [vmem:[#allocation28_spill] sm:$0xff]  ;;  %v10100_v17 = vand.u32 4294901760, %v10062_v44  ;;  %v14427_v48 = vld [vmem:[#allocation42_spill] sm:$0xff]  ;;  %v14450_v12 = vand.u32 4294901760, %v14449_v16 }
 0x161   :  { %14405 = vst [vmem:[#allocation83_spill] sm:$0xff] %v10042_v1  ;;  %14411 = vst [vmem:[#allocation87_spill] sm:$0xff] %v10060_v30  ;;  %2713 = vmatprep.subr.mxu0 %v14413_v42  ;;  %v10089_v42 = vsub.f32 %v9988_v58, %v14421_v5  ;;  %v14424_v60 = vand.u32 4294901760, %v14423_v31  ;;  %v14426_v58 = vrot.slane %v9860_v23, %v9863_v59  ;;  %v14428_v15 = vand.u32 4294901760, %v14427_v48  ;;  %v14429_v31 = vld [vmem:[#allocation21_spill] sm:$0xff]  ;;  %v10116_v11 = vld [vmem:[#allocation5 + $0x170] sm:$0xff]  ;;  %v819_v23 = vpop.f32.mrf.mxu0 }
 0x162   :  { %14416 = vst [vmem:[#allocation89_spill] sm:$0xff] %v10077_v52  ;;  %2717 = vmatpush1.msra.mxu0 %v14418_v8  ;;  %14420 = vst [vmem:[#allocation40_spill] sm:$0xff] %v10084_v36  ;;  %v14425_v8 = vld [vmem:[#allocation20_spill] sm:$0xff]  ;;  %v113_v62 = vld [vmem:[#allocation5 + $0x168] sm:$0xff]  ;;  %v681_v55 = vadd.f32 %v680_v41, %v449_v38  ;;  %v14438_v41 = vand.u32 4294901760, %v10033_v40  ;;  %2902 = vmatprep.mubr.f32.mxu1 %v14106_v34 }
 0x163   :  { %14422 = vst [vmem:[#allocation18_spill] sm:$0xff] %v10089_v42  ;;  %2721 = vmatprep.subr.mxu0 %v14424_v60  ;;  %2831 = vmatprep.subr.mxu1 %v14425_v8  ;;  %v451_v18 = vadd.f32 %v450_v37, %v14426_v58  ;;  %v10109_v60 = vand.u32 4294901760, %v126_v61  ;;  %v14430_v8 = vand.u32 4294901760, %v10006_v20  ;;  %v923_v37 = vpop.f32.mrf.mxu1  ;;  %v14431_v58 = vld [vmem:[#allocation43_spill] sm:$0xff]  ;;  %v1091_v38 = vpop.f32.mrf.mxu0  ;;  %v14454_v16 = vld [vmem:[#allocation26_spill] sm:$0xff] }
 0x164   :  { %2725 = vmatpush1.msra.mxu0 %v14428_v15  ;;  %2833 = vmatpush1.msra.mxu1 %v14429_v31  ;;  %v14432_v48 = vand.u32 4294901760, %v14431_v58  ;;  %v14433_v15 = vld [vmem:[#allocation22_spill] sm:$0xff]  ;;  %v10123_v31 = vsub.f32 %v139_v2, %v10072_v35  ;;  %v14437_v5 = vld [vmem:[#allocation23_spill] sm:$0xff]  ;;  %v10136_v58 = vsub.f32 %v10033_v40, %v14438_v41  ;;  %v10142_v2 = vsub.f32 %v10018_v33, %v10060_v30 }
 0x165   :  { %v10114_v27 = vsub.f32 %v10006_v20, %v14430_v8  ;;  %2835 = vmatprep.subr.mxu1 %v14433_v15  ;;  %v10127_v8 = vand.u32 4294901760, %v10091_v7  ;;  %v14435_v20 = vld [vmem:[#allocation44_spill] sm:$0xff]  ;;  %v100_v15 = vld [vmem:[#allocation5 + $0x100] sm:$0xff]  ;;  %v10149_v35 = vand.u32 4294901760, %v10116_v11  ;;  %v14443_v41 = vand.u32 4294901760, %v10050_v51  ;;  %v14444_v30 = vld [vmem:[#allocation46_spill] sm:$0xff] }
 0x166   :  { %2729 = vmatprep.subr.mxu0 %v14432_v48  ;;  %14434 = vst [vmem:[#allocation28_spill] sm:$0xff] %v10123_v31  ;;  %v14436_v1 = vand.u32 4294901760, %v14435_v20  ;;  %2837 = vmatpush1.msra.mxu1 %v14437_v5  ;;  %v10138_v48 = vld [vmem:[#allocation5 + $0x108] sm:$0xff]  ;;  %14439 = vst [vmem:[#allocation20_spill] sm:$0xff] %v10142_v2  ;;  %v818_v20 = vadd.f32 %v817_v50, %v681_v55  ;;  %v14442_v5 = vld [vmem:[#allocation29_spill] sm:$0xff]  ;;  %v10156_v33 = vand.u32 4294901760, %v113_v62 }
 0x167   :  { %2839 = vmatprep.subr.mxu1 %v14442_v5  ;;  %v10154_v40 = vsub.f32 %v10050_v51, %v14443_v41  ;;  %v683_v42 = vadd.f32 %v682_v21, %v451_v18  ;;  %v14445_v59 = vand.u32 4294901760, %v14444_v30  ;;  %v14446_v55 = vld [vmem:[#allocation32_spill] sm:$0xff]  ;;  %v925_v51 = vpop.f32.mrf.mxu1  ;;  %v10174_v21 = vand.u32 4294901760, %v10138_v48  ;;  %v10178_v18 = vld [vmem:[#allocation5 + $0xa0] sm:$0xff] }
 0x168   :  { %2733 = vmatpush1.msra.mxu0 %v14436_v1  ;;  %v14440_v1 = vld [vmem:[#allocation47_spill] sm:$0xff]  ;;  %2841 = vmatpush1.msra.mxu1 %v14446_v55  ;;  %v924_v41 = vadd.f32 %v923_v37, %v818_v20  ;;  %v10182_v30 = vsub.f32 %v10062_v44, %v10100_v17  ;;  %v14452_v37 = vld [vmem:[#allocation49_spill] sm:$0xff] }
 0x169   :  { %v14441_v52 = vand.u32 4294901760, %v14440_v1  ;;  %v14448_v1 = vand.u32 4294901760, %v10057_v6  ;;  %2843 = vmatprep.subr.mxu1 %v14335_v24  ;;  %v820_v55 = vadd.f32 %v819_v23, %v683_v42  ;;  %v14453_v20 = vand.u32 4294901760, %v14452_v37  ;;  %v1093_v42 = vpop.f32.mrf.mxu0  ;;  %v14459_v24 = vld [vmem:[#allocation52_spill] sm:$0xff] }
 0x16a   :  { %14451 = vst [vmem:[#allocation21_spill] sm:$0xff] %v10182_v30  ;;  %2845 = vmatpush1.msra.mxu1 %v14454_v16  ;;  %v1092_v44 = vadd.f32 %v1091_v38, %v924_v41  ;;  %v10199_v37 = vsub.f32 %v113_v62, %v10156_v33  ;;  %v10205_v16 = vsub.f32 %v10091_v7, %v10127_v8  ;;  %v10212_v38 = vand.u32 4294901760, %v10178_v18 }
 0x16b   :  { %2737 = vmatprep.subr.mxu0 %v14441_v52  ;;  %v10162_v52 = vsub.f32 %v126_v61, %v10109_v60  ;;  %v10168_v5 = vsub.f32 %v10057_v6, %v14448_v1  ;;  %v87_v61 = vld [vmem:[#allocation5 + $0x98] sm:$0xff]  ;;  %v14455_v1 = vand.u32 4294901760, %v10084_v36  ;;  %v14456_v6 = vand.u32 4294901760, %v9693_v45  ;;  %2847 = vmatprep.subr.mxu1 %v14340_v43  ;;  %v14461_v45 = vld [vmem:[#allocation39_spill] sm:$0xff]  ;;  %v1195_v43 = vpop.f32.mrf.mxu1 }
 0x16c   :  { %2741 = vmatpush1.msra.mxu0 %v14445_v59  ;;  %v10176_v59 = vand.u32 4294901760, %v100_v15  ;;  %14457 = vst [vmem:[#allocation43_spill] sm:$0xff] %v10199_v37  ;;  %14458 = vst [vmem:[#allocation22_spill] sm:$0xff] %v10205_v16  ;;  %2849 = vmatpush1.msra.mxu1 %v14461_v45  ;;  %v10214_v62 = vand.u32 4294901760, %v87_v61  ;;  %v14462_v41 = vand.u32 4294901760, %v9709_v19  ;;  %v10219_v7 = vadd.f32 %v1195_v43, %v1092_v44  ;;  %v14465_v45 = vld [vmem:[#allocation53_spill] sm:$0xff] }
 0x16d   :  { %14447 = vst [vmem:[#allocation42_spill] sm:$0xff] %v10162_v52  ;;  %2745 = vmatprep.subr.mxu0 %v14450_v12  ;;  %v10192_v50 = vsub.f32 %v10084_v36, %v14455_v1  ;;  %v926_v1 = vadd.f32 %v925_v51, %v820_v55  ;;  %v14460_v12 = vand.u32 4294901760, %v14459_v24  ;;  %2851 = vmatprep.subr.mxu1 %v9594_v47  ;;  %v1197_v19 = vpop.f32.mrf.mxu1  ;;  %v14468_v43 = vld [vmem:[#allocation33_spill] sm:$0xff]  ;;  %v14469_v24 = vld [vmem:[#allocation27_spill] sm:$0xff] }
 0x16e   :  { %2749 = vmatpush1.msra.mxu0 %v14453_v20  ;;  %v10201_v20 = vld [vmem:[#allocation5 + $0x38] sm:$0xff]  ;;  %14463 = vst [vmem:[#allocation44_spill] sm:$0xff] %v10219_v7  ;;  %v10222_v51 = vsub.f32 %v100_v15, %v10176_v59  ;;  %2853 = vmatpush1.msra.mxu1 %v9602_v14  ;;  %v10249_v55 = vsub.f32 %v87_v61, %v10214_v62  ;;  %v14474_v36 = vld [vmem:[#allocation41_spill] sm:$0xff] }
 0x16f   :  { %2753 = vmatprep.subr.mxu0 %v14456_v6  ;;  %v14466_v6 = vand.u32 4294901760, %v14465_v45  ;;  %v1094_v23 = vadd.f32 %v1093_v42, %v926_v1  ;;  %v10236_v44 = vand.u32 4294901760, %v10201_v20  ;;  %v6119_v45 = vand.u32 2139095040, %v10219_v7  ;;  %2855 = vmatprep.subr.mxu1 %v14469_v24  ;;  %v14475_v42 = vld [vmem:[#allocation36_spill] sm:$0xff] }
 0x170   :  { %2757 = vmatpush1.msra.mxu0 %v14460_v12  ;;  %14464 = vst [vmem:[#allocation23_spill] sm:$0xff] %v10222_v51  ;;  %v74_v12 = vld [vmem:[#allocation5 + $0x30] sm:$0xff]  ;;  %2857 = vmatpush1.msra.mxu1 %v14474_v36  ;;  %v14476_v24 = vand.u32 4294901760, %v10182_v30  ;;  %v14480_v36 = vld [vmem:[#allocation24_spill] sm:$0xff] }
 0x171   :  { %2761 = vmatprep.subr.mxu0 %v14462_v41  ;;  %v14467_v41 = vand.u32 4294901760, %v10142_v2  ;;  %v10246_v15 = vadd.f32 %v1197_v19, %v1094_v23  ;;  %v10251_v14 = vand.u32 4294901760, %v74_v12  ;;  %v6120_v1 = vshrl.u32 %v6119_v45, 23 }
 0x172   :  { %2765 = vmatpush1.msra.mxu0 %v14466_v6  ;;  %v10255_v6 = vsub.f32 %v10116_v11, %v10149_v35  ;;  %v14477_v23 = vand.u32 4294901760, %v10123_v31  ;;  %v10271_v19 = vsub.f32 %v10138_v48, %v10174_v21  ;;  %v14479_v11 = vld [vmem:[#allocation45_spill] sm:$0xff]  ;;  %v14481_v45 = vand.u32 2147483647, %v10219_v7 }
 0x173   :  { %v10232_v47 = vsub.f32 %v10142_v2, %v14467_v41  ;;  %2800 = vmatmul.mubr.f32.vlgmr.msra.gmra.mxu0 %v14468_v43  ;;  %v14470_v41 = vld [vmem:[#allocation15_spill] sm:$0xff]  ;;  %14471 = vst [vmem:[#allocation47_spill] sm:$0xff] %v10246_v15  ;;  %14472 = vst [vmem:[#allocation29_spill] sm:$0xff] %v10251_v14  ;;  %v10262_v2 = vsub.f32 %v10182_v30, %v14476_v24  ;;  %2859 = vmatprep.subr.mxu1 %v14479_v11  ;;  %v14483_v11 = vand.u32 4294901760, %v10205_v16  ;;  %v14485_v24 = vld [vmem:[#allocation48_spill] sm:$0xff] }
 0x174   :  { %2911 = vmatprep.subr.mxu0 %v14470_v41  ;;  %14473 = vst [vmem:[#allocation46_spill] sm:$0xff] %v10255_v6  ;;  %v10267_v61 = vsub.f32 %v10123_v31, %v14477_v23  ;;  %14478 = vst [vmem:[#allocation32_spill] sm:$0xff] %v10271_v19  ;;  %v6223_v41 = vand.u32 2139095040, %v10246_v15  ;;  %2861 = vmatpush1.msra.mxu1 %v9630_v54  ;;  %v14482_v23 = vld [vmem:[#allocation17_spill] sm:$0xff]  ;;  %v7600_v31 = vadd.s32 4294967169, %v6120_v1  ;;  %v14490_v1 = vand.u32 4294901760, %v10199_v37 }
 0x175   :  { %2913 = vmatpush1.msra.mxu0 %v14475_v42  ;;  %v6123_v42 = vand.u32 8388607, %v14481_v45  ;;  %v14484_v45 = vand.u32 4294901760, %v10162_v52  ;;  %2863 = vmatprep.subr.mxu1 %v14485_v24  ;;  %v14486_v30 = vld [vmem:[#allocation25_spill] sm:$0xff]  ;;  %v14494_v24 = vand.u32 4294901760, %v10255_v6 }
 0x176   :  { %2915 = vmatprep.subr.mxu0 %v14480_v36  ;;  %v10286_v36 = vsub.f32 %v10205_v16, %v14483_v11  ;;  %v6224_v54 = vshrl.u32 %v6223_v41, 23  ;;  %2865 = vmatpush1.msra.mxu1 %v9668_v49  ;;  %v14488_v11 = vld [vmem:[#allocation37_spill] sm:$0xff]  ;;  %v6126_v16 = vadd.s32 1, %v7600_v31  ;;  %v10310_v48 = vsub.f32 %v10199_v37, %v14490_v1  ;;  %v14491_v31 = vld [vmem:[#allocation51_spill] sm:$0xff] }
 0x177   :  { %2917 = vmatpush1.msra.mxu0 %v14482_v23  ;;  %v10291_v7 = vsub.f32 %v10162_v52, %v14484_v45  ;;  %v10296_v23 = vsub.f32 %v74_v12, %v10251_v14  ;;  %2867 = vmatprep.subr.mxu1 %v9675_v3  ;;  %v14489_v41 = vld [vmem:[#allocation57_spill] sm:$0xff]  ;;  %v6124_v12 = vor.u32 8388608, %v6123_v42  ;;  %v10314_v49 = vsub.f32 %v10178_v18, %v10212_v38  ;;  %v14493_v45 = vld [vmem:[#allocation59_spill] sm:$0xff] }
 0x178   :  { %2919 = vmatprep.subr.mxu0 %v14486_v30  ;;  %v7604_v30 = vadd.s32 4294967169, %v6224_v54  ;;  %2869 = vmatpush1.msra.mxu1 %v14491_v31  ;;  %vm6127_vm0 = vcmp.gt.s32.totalorder %v6126_v16, 0  ;;  %v14492_v3 = vand.u32 2147483647, %v10246_v15  ;;  %v10329_v31 = vsub.f32 %v10255_v6, %v14494_v24  ;;  %v14496_v54 = vld [vmem:[#allocation61_spill] sm:$0xff] }
 0x179   :  { %14487 = vst [vmem:[#allocation50_spill] sm:$0xff] %v10296_v23  ;;  %2921 = vmatpush1.msra.mxu0 %v14488_v11  ;;  %v6128_v1 = vsel %vm6127_vm0, %v6126_v16, 0  ;;  %2904 = vmatmul.mubr.f32.vlgmr.msra.gmra.mxu1 %v14468_v43  ;;  %v14495_v37 = vand.u32 4294901760, %v10222_v51  ;;  %v14497_v16 = vand.u32 4294901760, %v14496_v54  ;;  %v10347_v6 = vshll.u32 %v6124_v12, 8 }
 0x17a   :  { %2923 = vmatprep.subr.mxu0 %v14489_v41  ;;  %v10320_v52 = vand.u32 8388607, %v14492_v3  ;;  %v6230_v18 = vadd.s32 1, %v7604_v30  ;;  %v10336_v15 = vshrl.u32 %v6128_v1, 5  ;;  %v6130_v42 = vand.u32 31, %v6128_v1  ;;  %3006 = vmatprep.mubr.f32.mxu0 %v14106_v34 }
 0x17b   :  { %2925 = vmatpush1.msra.mxu0 %v14493_v45  ;;  %v10334_v3 = vsub.f32 %v10222_v51, %v14495_v37  ;;  %3023 = vmatprep.subr.mxu1 %v14497_v16  ;;  %v14498_v30 = vand.u32 4294901760, %v10271_v19  ;;  %v14499_v37 = vand.u32 4294901760, %v9890_v46  ;;  %v10355_v54 = vsub.f32 %v10201_v20, %v10236_v44 }
 0x17c   :  { %2927 = vmatprep.subr.mxu0 %v9878_v9  ;;  %v6131_v51 = vsub.s32 32, %v6130_v42  ;;  %v13714_v24 = vmov 2475754826   ;;  %v14500_v46 = vand.u32 4294901760, %v9916_v4  ;;  %v13710_v1 = vmov 2102212464   ;;  %3242 = vmatprep.mubr.f32.mxu1 %v14106_v34 }
 0x17d   :  { %v10344_v45 = vsub.f32 %v10271_v19, %v14498_v30  ;;  %2929 = vmatpush1.msra.mxu0 %v9885_v63  ;;  %3029 = vmatpush1.msra.mxu1 %v14499_v37  ;;  %v13703_v30 = vmov 683565275   ;;  %v6136_v12 = vshll.u32 %v13714_v24, %v6130_v42  ;;  %v13712_v37 = vmov 2131351028  }
 0x17e   :  { %v6133_v19 = vshll.u32 %v13703_v30, %v6130_v42  ;;  %2931 = vmatprep.subr.mxu0 %v9903_v29  ;;  %3035 = vmatprep.subr.mxu1 %v14500_v46  ;;  %v6139_v20 = vshll.u32 %v13712_v37, %v6130_v42  ;;  %v6142_v16 = vshll.u32 %v13710_v1, %v6130_v42  ;;  %v13718_v9 = vmov 920167782  }
 0x17f   :  { %v6145_v41 = vshll.u32 %v13718_v9, %v6130_v42  ;;  %vm6231_vm1 = vcmp.gt.s32.totalorder %v6230_v18, 0  ;;  %2933 = vmatpush1.msra.mxu0 %v9905_v56  ;;  %v14501_v30 = vand.u32 4294901760, %v9921_v10  ;;  %v6134_v63 = vshrl.u32 %v13714_v24, %v6131_v51 }
 0x180   :  { %v6137_v4 = vshrl.u32 %v13712_v37, %v6131_v51  ;;  %v6140_v46 = vshrl.u32 %v13710_v1, %v6131_v51  ;;  %vm6148_vm2 = vcmp.lt.s32.totalorder %v10336_v15, 1  ;;  %2935 = vmatprep.subr.mxu0 %v9947_v28  ;;  %v14502_v29 = vmov 683565275  }
 0x181   :  { %3041 = vmatpush1.msra.mxu1 %v14501_v30  ;;  %v6132_v11 = vshrl.u32 %v14502_v29, %v6131_v51  ;;  %v6143_v42 = vshrl.u32 %v13718_v9, %v6131_v51  ;;  %v13725_v43 = vmov 1326507024   ;;  %vm6150_vm3 = vcmp.lt.s32.totalorder %v10336_v15, 3  ;;  %2937 = vmatpush1.msra.mxu0 %v9930_v25 }
 0x182   :  { %v6146_v56 = vshrl.u32 %v13725_v43, %v6131_v51  ;;  %v14503_v10 = vand.u32 4294901760, %v9928_v53  ;;  %v6135_v30 = vor.u32 %v6134_v63, %v6133_v19  ;;  %v6138_v1 = vor.u32 %v6137_v4, %v6136_v12  ;;  %2939 = vmatprep.subr.mxu0 %v9979_v57  ;;  %v14508_v12 = vld [vmem:[#allocation79_spill] sm:$0xff] }
 0x183   :  { %v6141_v37 = vor.u32 %v6140_v46, %v6139_v20  ;;  %v6232_v24 = vsel %vm6231_vm1, %v6230_v18, 0  ;;  %v14504_v28 = vand.u32 4294901760, %v9935_v22  ;;  %v6144_v9 = vor.u32 %v6143_v42, %v6142_v16  ;;  %2941 = vmatpush1.msra.mxu0 %v9965_v26  ;;  %v14509_v46 = vld [vmem:[#allocation80_spill] sm:$0xff] }
 0x184   :  { %3047 = vmatprep.subr.mxu1 %v14503_v10  ;;  %v6147_v23 = vor.u32 %v6146_v56, %v6145_v41  ;;  %vm6151_vm4 = vcmp.lt.s32.totalorder %v10336_v15, 4  ;;  %v6234_v51 = vand.u32 31, %v6232_v24  ;;  %v14505_v53 = vand.u32 4294901760, %v9984_v13  ;;  %2943 = vmatprep.subr.mxu0 %v9998_v32 }
 0x185   :  { %3053 = vmatpush1.msra.mxu1 %v14504_v28  ;;  %v6152_v63 = vsel %vm6148_vm2, %v6132_v11, %v6135_v30  ;;  %v6153_v19 = vsel %vm6151_vm4, %v6141_v37, 2102212464  ;;  %v6156_v22 = vsel %vm6148_vm2, %v6135_v30, %v6138_v1  ;;  %v6160_v28 = vsel %vm6148_vm2, %v6138_v1, %v6141_v37  ;;  %2945 = vmatpush1.msra.mxu0 %v14508_v12  ;;  %v14511_v30 = vld [vmem:[#allocation87_spill] sm:$0xff] }
 0x186   :  { %3059 = vmatprep.subr.mxu1 %v14505_v53  ;;  %v14506_v56 = vand.u32 4294901760, %v9996_v0  ;;  %v6154_v13 = vsel %vm6150_vm3, %v6138_v1, %v6153_v19  ;;  %v6157_v41 = vsel %vm6151_vm4, %v6144_v9, 920167782  ;;  %v6161_v18 = vsel %vm6151_vm4, %v6147_v23, 1326507024  ;;  %2947 = vmatprep.subr.mxu0 %v14511_v30  ;;  %v14524_v30 = vld [vmem:[#allocation88_spill] sm:$0xff] }
 0x187   :  { %v6235_v16 = vsub.s32 32, %v6234_v51  ;;  %v14507_v11 = vand.u32 4294901760, %v10016_v39  ;;  %vm6149_vm5 = vcmp.lt.s32.totalorder %v10336_v15, 2  ;;  %v6158_v20 = vsel %vm6150_vm3, %v6141_v37, %v6157_v41 }
 0x188   :  { %3065 = vmatpush1.msra.mxu1 %v14506_v56  ;;  %v6162_v0 = vsel %vm6150_vm3, %v6144_v9, %v6161_v18  ;;  %v10409_v4 = vshrl.u32 %v6232_v24, 5  ;;  %v14510_v1 = vand.u32 4294901760, %v14509_v46  ;;  %v6155_v23 = vsel %vm6149_vm5, %v6152_v63, %v6154_v13  ;;  %v14512_v9 = vld [vmem:[#allocation83_spill] sm:$0xff]  ;;  %v14514_v56 = vld [vmem:[#allocation81_spill] sm:$0xff] }
 0x189   :  { %3071 = vmatprep.subr.mxu1 %v14507_v11  ;;  %v6159_v42 = vsel %vm6149_vm5, %v6156_v22, %v6158_v20  ;;  %v6163_v10 = vsel %vm6149_vm5, %v6160_v28, %v6162_v0  ;;  %v6237_v39 = vshll.u32 %v14502_v29, %v6234_v51  ;;  %v14513_v24 = vand.u32 4294901760, %v14512_v9  ;;  %2949 = vmatpush1.msra.mxu0 %v14514_v56  ;;  %v14517_v11 = vld [vmem:[#allocation84_spill] sm:$0xff] }
 0x18a   :  { %3077 = vmatpush1.msra.mxu1 %v14510_v1  ;;  %v10416_v53 = vmul.u32.u64.low %v10347_v6, %v6163_v10  ;;  %v10417_v19 = vmul.u32.u64.high %v10347_v6, %v6163_v10, %v10416_v53  ;;  %v10420_v37 = vmul.u32.u64.low %v10347_v6, %v6159_v42  ;;  %v10421_v15 = vmul.u32.u64.high %v10347_v6, %v6159_v42, %v10420_v37  ;;  %2951 = vmatprep.subr.mxu0 %v10100_v17 }
 0x18b   :  { %3083 = vmatprep.subr.mxu1 %v14513_v24  ;;  %v14515_v63 = vmov 2475754826   ;;  %v14516_v13 = vmov 2131351028   ;;  %v14518_v20 = vand.u32 4294901760, %v14517_v11  ;;  %v14521_v56 = vor.u32 8388608, %v10320_v52  ;;  %2953 = vmatpush1.msra.mxu0 %v14524_v30 }
 0x18c   :  { %v6238_v22 = vshrl.u32 %v14515_v63, %v6235_v16  ;;  %v6240_v28 = vshll.u32 %v14515_v63, %v6234_v51  ;;  %v6241_v41 = vshrl.u32 %v14516_v13, %v6235_v16  ;;  %v6243_v18 = vshll.u32 %v14516_v13, %v6234_v51  ;;  %v14522_v11 = vld [vmem:[#allocation18_spill] sm:$0xff]  ;;  %2955 = vmatprep.subr.mxu0 %v10127_v8 }
 0x18d   :  { %3089 = vmatpush1.msra.mxu1 %v14518_v20  ;;  %v14519_v0 = vmov 2102212464   ;;  %v14520_v42 = vmov 920167782   ;;  %v6250_v63 = vshrl.u32 %v13725_v43, %v6235_v16  ;;  %v10441_v13 = vshll.u32 %v14521_v56, 8  ;;  %2957 = vmatpush1.msra.mxu0 %v10109_v60 }
 0x18e   :  { %v6244_v46 = vshrl.u32 %v14519_v0, %v6235_v16  ;;  %v6246_v1 = vshll.u32 %v14519_v0, %v6234_v51  ;;  %v6247_v10 = vshrl.u32 %v14520_v42, %v6235_v16  ;;  %v6249_v53 = vshll.u32 %v14520_v42, %v6234_v51  ;;  %2959 = vmatprep.subr.mxu0 %v10149_v35 }
 0x18f   :  { %v6239_v9 = vor.u32 %v6238_v22, %v6237_v39  ;;  %v6242_v24 = vor.u32 %v6241_v41, %v6240_v28  ;;  %v14523_v20 = vand.u32 4294901760, %v14522_v11  ;;  %v6171_v0 = vmul.u32 %v10347_v6, %v6155_v23  ;;  %v14525_v22 = vld [vmem:[#allocation89_spill] sm:$0xff]  ;;  %2961 = vmatpush1.msra.mxu0 %v10156_v33 }
 0x190   :  { %vm6173_vm6 = vc.u32 %v10417_v19, %v10420_v37  ;;  %v6174_v51 = vadd.s32 1, %v10421_v15  ;;  %v6245_v39 = vor.u32 %v6244_v46, %v6243_v18  ;;  %v14526_v28 = vand.u32 4294901760, %v14525_v22  ;;  %2963 = vmatprep.subr.mxu0 %v10174_v21 }
 0x191   :  { %3095 = vmatprep.subr.mxu1 %v14523_v20  ;;  %v6236_v52 = vshrl.u32 %v14502_v29, %v6235_v16  ;;  %v6248_v56 = vor.u32 %v6247_v10, %v6246_v1  ;;  %v6251_v41 = vor.u32 %v6250_v63, %v6249_v53  ;;  %vm6252_vm7 = vcmp.lt.s32.totalorder %v10409_v4, 1  ;;  %2965 = vmatpush1.msra.mxu0 %v10176_v59 }
 0x192   :  { %3101 = vmatpush1.msra.mxu1 %v14526_v28  ;;  %v14527_v11 = vand.u32 4294901760, %v10136_v58  ;;  %v6175_v6 = vsel %vm6173_vm6, %v6174_v51, %v10421_v15  ;;  %vm6254_vm8 = vcmp.lt.s32.totalorder %v10409_v4, 3  ;;  %vm6255_vm9 = vcmp.lt.s32.totalorder %v10409_v4, 4  ;;  %2967 = vmatprep.subr.mxu0 %v10212_v38 }
 0x193   :  { %v6260_v23 = vsel %vm6252_vm7, %v6239_v9, %v6242_v24  ;;  %v14528_v16 = vand.u32 4294901760, %v10114_v27  ;;  %v6176_v63 = vadd.s32 %v6175_v6, %v6171_v0  ;;  %v6257_v18 = vsel %vm6255_vm9, %v6245_v39, 2102212464  ;;  %2969 = vmatpush1.msra.mxu0 %v10214_v62 }
 0x194   :  { %3107 = vmatprep.subr.mxu1 %v14527_v11  ;;  %v6261_v58 = vsel %vm6255_vm9, %v6248_v56, 920167782  ;;  %v6264_v46 = vsel %vm6252_vm7, %v6242_v24, %v6245_v39  ;;  %v14529_v15 = vand.u32 4294901760, %v10154_v40  ;;  %vm6253_vm10 = vcmp.lt.s32.totalorder %v10409_v4, 2  ;;  %2971 = vmatprep.subr.mxu0 %v10236_v44 }
 0x195   :  { %3113 = vmatpush1.msra.mxu1 %v14528_v16  ;;  %v6256_v1 = vsel %vm6252_vm7, %v6236_v52, %v6239_v9  ;;  %v6262_v27 = vsel %vm6254_vm8, %v6245_v39, %v6261_v58  ;;  %v6265_v10 = vsel %vm6255_vm9, %v6251_v41, 1326507024  ;;  %v14530_v0 = vand.u32 4294901760, %v10168_v5  ;;  %2973 = vmatpush1.msra.mxu0 %v10251_v14 }
 0x196   :  { %3119 = vmatprep.subr.mxu1 %v14529_v15  ;;  %v6177_v53 = vadd.s32 536870912, %v6176_v63  ;;  %v6258_v40 = vsel %vm6254_vm8, %v6242_v24, %v6257_v18  ;;  %v6263_v20 = vsel %vm6253_vm10, %v6260_v23, %v6262_v27  ;;  %v6266_v51 = vsel %vm6254_vm8, %v6248_v56, %v6265_v10 }
 0x197   :  { %3125 = vmatpush1.msra.mxu1 %v14530_v0  ;;  %v14531_v9 = vand.u32 4294901760, %v10232_v47  ;;  %v6267_v5 = vsel %vm6253_vm10, %v6264_v46, %v6266_v51  ;;  %v10491_v39 = vmul.u32.u64.low %v10441_v13, %v6263_v20  ;;  %v10492_v22 = vmul.u32.u64.high %v10441_v13, %v6263_v20, %v10491_v39 }
 0x198   :  { %v14532_v24 = vand.u32 4294901760, %v10192_v50  ;;  %v13727_v28 = vand.u32 4294901760, %v10355_v54  ;;  %v10499_v52 = vshrl.u32 %v6177_v53, 30  ;;  %v14533_v41 = vand.u32 4294901760, %v10262_v2  ;;  %v14541_v53 = vld [vmem:[#allocation16_spill] sm:$0xff] }
 0x199   :  { %3131 = vmatprep.subr.mxu1 %v14531_v9  ;;  %v10502_v47 = vmul.u32.u64.low %v10441_v13, %v6267_v5  ;;  %v10503_v56 = vmul.u32.u64.high %v10441_v13, %v6267_v5, %v10502_v47  ;;  %v3166_v11 = vand.u32 4294901760, %v10329_v31  ;;  %v6259_v50 = vsel %vm6253_vm10, %v6256_v1, %v6258_v40  ;;  %3252 = vmatprep.subr.mxu0 %v14541_v53  ;;  %v14544_v9 = vld [vmem:[#allocation54_spill] sm:$0xff] }
 0x19a   :  { %3137 = vmatpush1.msra.mxu1 %v14532_v24  ;;  %v14534_v6 = vand.u32 4294901760, %v10267_v61  ;;  %v14535_v23 = vand.u32 4294901760, %v10314_v49  ;;  %v6179_v18 = vshll.u32 %v10499_v52, 30  ;;  %v14536_v2 = vand.u32 4294901760, %v10286_v36 }
 0x19b   :  { %3143 = vmatprep.subr.mxu1 %v14533_v41  ;;  %v3172_v31 = vand.u32 4294901760, %v10310_v48  ;;  %v14537_v4 = vand.u32 4294901760, %v10249_v55  ;;  %v6278_v58 = vadd.s32 1, %v10492_v22  ;;  %v14538_v46 = vand.u32 4294901760, %v10291_v7  ;;  %v14539_v7 = vld [vmem:[#allocation50_spill] sm:$0xff] }
 0x19c   :  { %3149 = vmatpush1.msra.mxu1 %v14534_v6  ;;  %v3189_v16 = vsub.f32 %v10314_v49, %v14535_v23  ;;  %v3178_v15 = vand.u32 4294901760, %v10344_v45  ;;  %v3184_v36 = vand.u32 4294901760, %v10334_v3  ;;  %v3201_v1 = vsub.f32 %v10355_v54, %v13727_v28  ;;  %v14542_v3 = vld [vmem:[#allocation38_spill] sm:$0xff]  ;;  %v14547_v6 = vld [vmem:[#allocation55_spill] sm:$0xff] }
 0x19d   :  { %3155 = vmatprep.subr.mxu1 %v14536_v2  ;;  %v3195_v61 = vsub.f32 %v10249_v55, %v14537_v4  ;;  %v10534_v48 = vsub.s32 %v6176_v63, %v6179_v18  ;;  %v6275_v27 = vmul.u32 %v10441_v13, %v6259_v50  ;;  %vm6277_vm11 = vc.u32 %v10503_v56, %v10491_v39  ;;  %v14543_v13 = vld [vmem:[#allocation19_spill] sm:$0xff]  ;;  %v14549_v4 = vld [vmem:[#allocation65_spill] sm:$0xff] }
 0x19e   :  { %3161 = vmatpush1.msra.mxu1 %v14538_v46  ;;  %v14540_v10 = vand.u32 4294901760, %v14539_v7  ;;  %v6279_v45 = vsel %vm6277_vm11, %v6278_v58, %v10492_v22  ;;  %3012 = vmatmul.mubr.f32.vlgmr.msra.gmra.mxu0 %v14542_v3  ;;  %v3190_v40 = vand.u32 4294901760, %v3189_v16  ;;  %v3202_v5 = vand.u32 4294901760, %v3201_v1  ;;  %v14545_v22 = vld [vmem:[#allocation31_spill] sm:$0xff]  ;;  %v14548_v16 = vld [vmem:[#allocation64_spill] sm:$0xff]  ;;  %v14551_v58 = vld [vmem:[#allocation69_spill] sm:$0xff] }
 0x19f   :  { %3167 = vmatprep.subr.mxu1 %v3166_v11  ;;  %v6182_v63 = vsub.s32 0, %v10534_v48  ;;  %v6280_v20 = vadd.s32 %v6279_v45, %v6275_v27  ;;  %3255 = vmatpush1.msra.mxu0 %v14543_v13  ;;  %v3196_v51 = vand.u32 4294901760, %v3195_v61  ;;  %v14546_v11 = vld [vmem:[#allocation56_spill] sm:$0xff]  ;;  %v7468_v18 = vld [vmem:[#allocation8] sm:$0xff]  ;;  %v14550_v61 = vld [vmem:[#allocation33_spill] sm:$0xff]  ;;  %v13730_v3 = vmov 0  }
 0x1a0   :  { %v3207_v0 = vsub.f32 %v14539_v7, %v14540_v10  ;;  %3173 = vmatpush1.msra.mxu1 %v3172_v31  ;;  %3258 = vmatprep.subr.mxu0 %v14544_v9  ;;  %v14552_v46 = vld [vmem:[#allocation15_spill] sm:$0xff]  ;;  %vm7470_vm13 = vcmp.gt.f32.partialorder %v7468_v18, 0.5  ;;  %v14553_v1 = vld [vmem:[#allocation70_spill] sm:$0xff]  ;;  %v14554_v27 = vld [vmem:[#allocation36_spill] sm:$0xff] }
 0x1a1   :  { %3179 = vmatprep.subr.mxu1 %v3178_v15  ;;  %v7601_v24 = vmin.u32 %v6182_v63, %v10534_v48  ;;  %v6281_v47 = vadd.s32 536870912, %v6280_v20  ;;  %3261 = vmatpush1.msra.mxu0 %v14545_v22  ;;  %v272_v10 = vld [vmem:[#allocation5 + $0x660] sm:$0xff]  ;;  %v10579_v42 = vsel %vm7470_vm13, 1, %v13730_v3  ;;  %v14570_v3 = vld [vmem:[#allocation30_spill] sm:$0xff] }
 0x1a2   :  { %3185 = vmatpush1.msra.mxu1 %v3184_v36  ;;  %v3208_v41 = vand.u32 4294901760, %v3207_v0  ;;  %3264 = vmatprep.subr.mxu0 %v14546_v11  ;;  %v6172_v0 = vadd.s32 %v10420_v37, %v10417_v19  ;;  %v14555_v63 = vld [vmem:[#allocation73_spill] sm:$0xff]  ;;  %v14559_v19 = vld [vmem:[#allocation76_spill] sm:$0xff]  ;;  %v10575_v28 = vand.u32 4294901760, %v272_v10  ;;  %14562 = vst [vmem:[#allocation26_spill] sm:$0xff] %v10579_v42 }
 0x1a3   :  { %3191 = vmatprep.subr.mxu1 %v3190_v40  ;;  %v6184_v50 = vclz %v7601_v24  ;;  %3267 = vmatpush1.msra.mxu0 %v14547_v6  ;;  %v10552_v23 = vshrl.u32 %v6281_v47, 30  ;;  %v14557_v47 = vld [vmem:[#allocation72_spill] sm:$0xff]  ;;  %v14560_v37 = vld [vmem:[#allocation25_spill] sm:$0xff] }
 0x1a4   :  { %3197 = vmatpush1.msra.mxu1 %v3196_v51  ;;  %3270 = vmatprep.subr.mxu0 %v14548_v16  ;;  %v14556_v51 = vld [vmem:[#allocation24_spill] sm:$0xff]  ;;  %14561 = vst [vmem:[#allocation49_spill] sm:$0xff] %v10575_v28 }
 0x1a5   :  { %3203 = vmatprep.subr.mxu1 %v3202_v5  ;;  %v7602_v2 = vadd.s32 4294967294, %v6184_v50  ;;  %v6283_v31 = vshll.u32 %v10552_v23, 30  ;;  %3273 = vmatpush1.msra.mxu0 %v14549_v4  ;;  %v271_v5 = vld [vmem:[#allocation5 + $0x658] sm:$0xff]  ;;  %v258_v50 = vld [vmem:[#allocation5 + $0x5f0] sm:$0xff] }
 0x1a6   :  { %3209 = vmatpush1.msra.mxu1 %v3208_v41  ;;  %3276 = vmatprep.subr.mxu0 %v14551_v58  ;;  %v259_v41 = vld [vmem:[#allocation5 + $0x5f8] sm:$0xff] }
 0x1a7   :  { %3244 = vmatmul.mubr.f32.vlgmr.msra.gmra.mxu1 %v14550_v61  ;;  %vm7603_vm12 = vcmp.lt.s32.totalorder %v7602_v2, 0  ;;  %3388 = vmatprep.subr.mxu1 %v14552_v46  ;;  %v10561_v36 = vsub.s32 %v6280_v20, %v6283_v31  ;;  %v14558_v20 = vld [vmem:[#allocation17_spill] sm:$0xff]  ;;  %v14563_v61 = vld [vmem:[#allocation74_spill] sm:$0xff]  ;;  %v14583_v46 = vld [vmem:[#allocation20_spill] sm:$0xff] }
 0x1a8   :  { %v6187_v15 = vsel %vm7603_vm12, 0, %v7602_v2  ;;  %3279 = vmatpush1.msra.mxu0 %v14553_v1  ;;  %3390 = vmatpush1.msra.mxu1 %v14554_v27  ;;  %v14580_v1 = vld [vmem:[#allocation86_spill] sm:$0xff] }
 0x1a9   :  { %v6188_v45 = vsub.s32 32, %v6187_v15  ;;  %v6192_v40 = vsub.s32 4294967266, %v6187_v15  ;;  %3282 = vmatprep.subr.mxu0 %v14555_v63  ;;  %3392 = vmatprep.subr.mxu1 %v14556_v51  ;;  %v6286_v24 = vsub.s32 0, %v10561_v36  ;;  %v6189_v2 = vshll.u32 %v10534_v48, %v6187_v15  ;;  %v14579_v63 = vld [vmem:[#allocation60_spill] sm:$0xff] }
 0x1aa   :  { %3285 = vmatpush1.msra.mxu0 %v14557_v47  ;;  %3394 = vmatpush1.msra.mxu1 %v14558_v20  ;;  %v14564_v20 = vld [vmem:[#allocation37_spill] sm:$0xff]  ;;  %v10584_v48 = vand.u32 4294901760, %v271_v5  ;;  %v10593_v47 = vsub.s32 2, %v14570_v3 }
 0x1ab   :  { %v6190_v31 = vshrl.u32 %v6172_v0, %v6188_v45  ;;  %v6193_v43 = vadd.s32 127, %v6192_v40  ;;  %3288 = vmatprep.subr.mxu0 %v14559_v19  ;;  %3396 = vmatprep.subr.mxu1 %v14560_v37  ;;  %v7605_v29 = vmin.u32 %v6286_v24, %v10561_v36  ;;  %v14566_v45 = vld [vmem:[#allocation82_spill] sm:$0xff]  ;;  %v14567_v40 = vld [vmem:[#allocation57_spill] sm:$0xff]  ;;  %v10588_v37 = vand.u32 4294901760, %v259_v41 }
 0x1ac   :  { %3291 = vmatpush1.msra.mxu0 %v14563_v61  ;;  %3398 = vmatpush1.msra.mxu1 %v14564_v20  ;;  %14565 = vst [vmem:[#allocation52_spill] sm:$0xff] %v10584_v48  ;;  %v10590_v19 = vand.u32 4294901760, %v258_v50  ;;  %14571 = vst [vmem:[#allocation27_spill] sm:$0xff] %v10593_v47  ;;  %v10596_v24 = vsub.s32 3, %v14570_v3  ;;  %v14573_v20 = vld [vmem:[#allocation78_spill] sm:$0xff]  ;;  %v14574_v61 = vld [vmem:[#allocation59_spill] sm:$0xff] }
 0x1ad   :  { %v6191_v15 = vor.u32 %v6190_v31, %v6189_v2  ;;  %v6194_v0 = vshll.u32 %v6193_v43, 23  ;;  %3294 = vmatprep.subr.mxu0 %v14566_v45  ;;  %3400 = vmatprep.subr.mxu1 %v14567_v40  ;;  %14568 = vst [vmem:[#allocation39_spill] sm:$0xff] %v10588_v37  ;;  %v6288_v18 = vclz %v7605_v29  ;;  %v14575_v2 = vld [vmem:[#allocation85_spill] sm:$0xff]  ;;  %v14576_v31 = vld [vmem:[#allocation62_spill] sm:$0xff]  ;;  %v246_v40 = vld [vmem:[#allocation5 + $0x590] sm:$0xff]  ;;  %v10603_v45 = vsub.f32 %v272_v10, %v10575_v28 }
 0x1ae   :  { %14569 = vst [vmem:[#allocation53_spill] sm:$0xff] %v10590_v19  ;;  %14572 = vst [vmem:[#allocation41_spill] sm:$0xff] %v10596_v24  ;;  %3297 = vmatpush1.msra.mxu0 %v14573_v20  ;;  %3402 = vmatpush1.msra.mxu1 %v14574_v61  ;;  %v14578_v29 = vld [vmem:[#allocation58_spill] sm:$0xff]  ;;  %v14581_v20 = vld [vmem:[#allocation63_spill] sm:$0xff]  ;;  %v10617_v51 = vsub.f32 %v258_v50, %v10590_v19  ;;  %v10632_v50 = vand.u32 4294901760, %v246_v40 }
 0x1af   :  { %v6195_v43 = vor.u32 4788187, %v6194_v0  ;;  %3300 = vmatprep.subr.mxu0 %v14575_v2  ;;  %3404 = vmatprep.subr.mxu1 %v14576_v31  ;;  %14577 = vst [vmem:[#allocation45_spill] sm:$0xff] %v10603_v45  ;;  %v7606_v27 = vadd.s32 4294967294, %v6288_v18  ;;  %v10612_v0 = vsub.f32 %v271_v5, %v10584_v48  ;;  %v245_v2 = vld [vmem:[#allocation5 + $0x588] sm:$0xff]  ;;  %v6198_v61 = vcvt.s32.f32 %v6191_v15  ;;  %v10624_v3 = vld [vmem:[#allocation7] sm:$0xff] }
 0x1b0   :  { %3303 = vmatpush1.msra.mxu0 %v14580_v1  ;;  %3406 = vmatpush1.msra.mxu1 %v14581_v20  ;;  %v14584_v10 = vld [vmem:[#allocation66_spill] sm:$0xff]  ;;  %14585 = vst [vmem:[#allocation51_spill] sm:$0xff] %v10617_v51  ;;  %v10622_v18 = vsub.f32 %v259_v41, %v10588_v37  ;;  %v14588_v48 = vld [vmem:[#allocation67_spill] sm:$0xff]  ;;  %14589 = vst [vmem:[#allocation80_spill] sm:$0xff] %v10632_v50  ;;  %v10636_v37 = vand.u32 4294901760, %v245_v2  ;;  %v6276_v5 = vadd.s32 %v10491_v39, %v10503_v56 }
 0x1b1   :  { %14582 = vst [vmem:[#allocation48_spill] sm:$0xff] %v10612_v0  ;;  %v6196_v31 = vand.u32 2147483647, %v6195_v43  ;;  %3306 = vmatprep.subr.mxu0 %v14583_v46  ;;  %3408 = vmatprep.subr.mxu1 %v14584_v10  ;;  %v10619_v28 = vld [vmem:[#allocation5 + $0x528] sm:$0xff]  ;;  %vm7607_vm14 = vcmp.lt.s32.totalorder %v7606_v27, 0  ;;  %v14587_v43 = vld [vmem:[#allocation40_spill] sm:$0xff] }
 0x1b2   :  { %14586 = vst [vmem:[#allocation61_spill] sm:$0xff] %v10622_v18  ;;  %3309 = vmatpush1.msra.mxu0 %v14587_v43  ;;  %3410 = vmatpush1.msra.mxu1 %v14588_v48  ;;  %v6291_v10 = vsel %vm7607_vm14, 0, %v7606_v27  ;;  %v14590_v46 = vld [vmem:[#allocation21_spill] sm:$0xff]  ;;  %v14591_v41 = vld [vmem:[#allocation71_spill] sm:$0xff]  ;;  %14592 = vst [vmem:[#allocation83_spill] sm:$0xff] %v10636_v37  ;;  %v14647_v20 = vand.u32 4294901760, %v14546_v11 }
 0x1b3   :  { %v6199_v19 = vmul.f32 %v6198_v61, %v6196_v31  ;;  %3312 = vmatprep.subr.mxu0 %v14590_v46  ;;  %3412 = vmatprep.subr.mxu1 %v14591_v41  ;;  %v6292_v15 = vsub.s32 32, %v6291_v10  ;;  %v6296_v24 = vsub.s32 4294967266, %v6291_v10  ;;  %v14593_v43 = vld [vmem:[#allocation28_spill] sm:$0xff]  ;;  %v10644_v61 = vand.u32 4294901760, %v10619_v28  ;;  %v232_v27 = vld [vmem:[#allocation5 + $0x520] sm:$0xff]  ;;  %v14595_v46 = vld [vmem:[#allocation22_spill] sm:$0xff] }
 0x1b4   :  { %3315 = vmatpush1.msra.mxu0 %v14593_v43  ;;  %3414 = vmatpush1.msra.mxu1 %v9930_v25  ;;  %v14596_v56 = vld [vmem:[#allocation44_spill] sm:$0xff]  ;;  %v6293_v43 = vshll.u32 %v10561_v36, %v6291_v10  ;;  %v14597_v1 = vld [vmem:[#allocation42_spill] sm:$0xff]  ;;  %v10655_v47 = vld [vmem:[#allocation5 + $0x4c0] sm:$0xff]  ;;  %v10667_v36 = vand.u32 4294901760, %v232_v27 }
 0x1b5   :  { %14594 = vst [vmem:[#allocation84_spill] sm:$0xff] %v10644_v61  ;;  %v6200_v31 = vxor.u32 2147483648, %v6199_v19  ;;  %3318 = vmatprep.subr.mxu0 %v14595_v46  ;;  %3416 = vmatprep.subr.mxu1 %v9979_v57  ;;  %vm6118_vm15 = vcmp.lt.s32.totalorder %v14596_v56, 0  ;;  %v6294_v25 = vshrl.u32 %v6276_v5, %v6292_v15  ;;  %v6297_v48 = vadd.s32 127, %v6296_v24  ;;  %v219_v46 = vld [vmem:[#allocation5 + $0x4b8] sm:$0xff]  ;;  %v14601_v41 = vld [vmem:[#allocation46_spill] sm:$0xff] }
 0x1b6   :  { %3321 = vmatpush1.msra.mxu0 %v14597_v1  ;;  %3418 = vmatpush1.msra.mxu1 %v9965_v26  ;;  %v14598_v57 = vand.u32 2147483647, %v14596_v56  ;;  %14602 = vst [vmem:[#allocation18_spill] sm:$0xff] %v10667_v36  ;;  %v10670_v24 = vsub.f32 %v246_v40, %v10632_v50  ;;  %v14604_v15 = vld [vmem:[#allocation43_spill] sm:$0xff]  ;;  %v10685_v40 = vsub.f32 %v245_v2, %v10636_v37  ;;  %v14615_v50 = vld [vmem:[#allocation81_spill] sm:$0xff]  ;;  %v14616_v2 = vand.u32 4294901760, %v10622_v18 }
 0x1b7   :  { %v6201_v39 = vsel %vm6118_vm15, %v6200_v31, %v6199_v19  ;;  %3324 = vmatprep.subr.mxu0 %v14601_v41  ;;  %3420 = vmatprep.subr.mxu1 %v9998_v32  ;;  %v6298_v5 = vshll.u32 %v6297_v48, 23  ;;  %v14605_v19 = vand.u32 4294901760, %v10603_v45  ;;  %v14607_v32 = vld [vmem:[#allocation32_spill] sm:$0xff]  ;;  %v14608_v41 = vld [vmem:[#allocation87_spill] sm:$0xff]  ;;  %v14612_v48 = vand.u32 4294901760, %v10612_v0 }
 0x1b8   :  { %vm10659_vm0 = vcmp.le.f32.partialorder %v14598_v57, 0.7853982  ;;  %14603 = vst [vmem:[#allocation88_spill] sm:$0xff] %v10670_v24  ;;  %v6295_v57 = vor.u32 %v6294_v25, %v6293_v43  ;;  %3327 = vmatpush1.msra.mxu0 %v14604_v15  ;;  %3422 = vmatpush1.msra.mxu1 %v14508_v12  ;;  %14609 = vst [vmem:[#allocation50_spill] sm:$0xff] %v10685_v40  ;;  %v10690_v25 = vand.u32 4294901760, %v219_v46  ;;  %vm6208_vm5 = vweird.f32 %v14596_v56 }
 0x1b9   :  { %v6204_v10 = vsel %vm10659_vm0, %v14596_v56, %v6201_v39  ;;  %v10680_v31 = vsub.f32 %v10603_v45, %v14605_v19  ;;  %3330 = vmatprep.subr.mxu0 %v14607_v32  ;;  %3424 = vmatprep.subr.mxu1 %v14608_v41  ;;  %v10688_v39 = vand.u32 4294901760, %v10655_v47  ;;  %v10695_v43 = vsub.f32 %v10612_v0, %v14612_v48  ;;  %v14614_v45 = vld [vmem:[#allocation23_spill] sm:$0xff]  ;;  %v207_v41 = vld [vmem:[#allocation5 + $0x458] sm:$0xff] }
 0x1ba   :  { %14611 = vst [vmem:[#allocation19_spill] sm:$0xff] %v10690_v25  ;;  %8032 = vcosq.f32 %v6204_v10  ;;  %v6299_v19 = vor.u32 4788187, %v6298_v5  ;;  %3333 = vmatpush1.msra.mxu0 %v14614_v45  ;;  %3426 = vmatpush1.msra.mxu1 %v14615_v50  ;;  %v10702_v37 = vsub.f32 %v10622_v18, %v14616_v2  ;;  %v14618_v32 = vand.u32 4294901760, %v10617_v51  ;;  %v206_v48 = vld [vmem:[#allocation5 + $0x450] sm:$0xff] }
 0x1bb   :  { %14606 = vst [vmem:[#allocation89_spill] sm:$0xff] %v10680_v31  ;;  %14610 = vst [vmem:[#allocation16_spill] sm:$0xff] %v10688_v39  ;;  %8034 = vsinq.f32 %v6204_v10  ;;  %3336 = vmatprep.subr.mxu0 %v10314_v49  ;;  %3428 = vmatprep.subr.mxu1 %v10100_v17  ;;  %v10712_v5 = vsub.f32 %v232_v27, %v10667_v36  ;;  %v10717_v2 = vsub.f32 %v10619_v28, %v10644_v61 }
 0x1bc   :  { %14613 = vst [vmem:[#allocation54_spill] sm:$0xff] %v10695_v43  ;;  %14617 = vst [vmem:[#allocation31_spill] sm:$0xff] %v10702_v37  ;;  %v10707_v12 = vsub.f32 %v10617_v51, %v14618_v32  ;;  %v6202_v18 = vsub.s32 4, %v10499_v52  ;;  %v6300_v50 = vand.u32 2147483647, %v6299_v19  ;;  %v6302_v32 = vcvt.s32.f32 %v6295_v57  ;;  %3339 = vmatpush1.msra.mxu0 %v10249_v55  ;;  %3430 = vmatpush1.msra.mxu1 %v14524_v30  ;;  %v194_v51 = vld [vmem:[#allocation5 + $0x3f0] sm:$0xff] }
 0x1bd   :  { %14620 = vst [vmem:[#allocation55_spill] sm:$0xff] %v10712_v5  ;;  %14621 = vst [vmem:[#allocation64_spill] sm:$0xff] %v10717_v2  ;;  %3342 = vmatprep.subr.mxu0 %v10355_v54  ;;  %3432 = vmatprep.subr.mxu1 %v10127_v8  ;;  %v10726_v27 = vsub.f32 %v219_v46, %v10690_v25  ;;  %v10729_v0 = vand.u32 4294901760, %v207_v41  ;;  %v193_v19 = vld [vmem:[#allocation5 + $0x3e8] sm:$0xff]  ;;  %v10735_v31 = vand.u32 4294901760, %v206_v48  ;;  %v10740_v28 = vand.u32 4294901760, %v194_v51 }
 0x1be   :  { %14619 = vst [vmem:[#allocation56_spill] sm:$0xff] %v10707_v12  ;;  %v6303_v36 = vmul.f32 %v6302_v32, %v6300_v50  ;;  %3345 = vmatpush1.msra.mxu0 %v14539_v7  ;;  %3378 = vmatprep.mubr.f32.mxu0 %v14106_v34  ;;  %v14625_v46 = vld [vmem:[#allocation34_spill] sm:$0xff]  ;;  %v14627_v43 = vand.u32 4294901760, %v10670_v24  ;;  %v6203_v10 = vsel %vm6118_vm15, %v6202_v18, %v10499_v52  ;;  %v10755_v12 = vand.u32 4294901760, %v193_v19 }
 0x1bf   :  { %14622 = vst [vmem:[#allocation65_spill] sm:$0xff] %v10726_v27  ;;  %14623 = vst [vmem:[#allocation69_spill] sm:$0xff] %v10729_v0  ;;  %3434 = vmatpush1.msra.mxu1 %v10109_v60  ;;  %3381 = vmatmul.mubr.f32.vlgmr.msra.gmra.mxu0 %v14625_v46  ;;  %v14629_v46 = vand.u32 4294901760, %v14541_v53  ;;  %v6306_v57 = vsub.s32 4, %v10552_v23  ;;  %v14633_v52 = vand.u32 4294901760, %v14543_v13  ;;  %v14634_v18 = vand.u32 4294901760, %v10685_v40 }
 0x1c0   :  { %14624 = vst [vmem:[#allocation44_spill] sm:$0xff] %v10735_v31  ;;  %14626 = vst [vmem:[#allocation42_spill] sm:$0xff] %v10740_v28  ;;  %v10745_v50 = vsub.f32 %v10670_v24, %v14627_v43  ;;  %v6304_v61 = vxor.u32 2147483648, %v6303_v36  ;;  %3436 = vmatprep.subr.mxu1 %v10149_v35  ;;  %v10759_v43 = vsub.f32 %v10655_v47, %v10688_v39  ;;  %v14632_v24 = vld [vmem:[#allocation47_spill] sm:$0xff]  ;;  %v14640_v13 = vand.u32 4294901760, %v14544_v9 }
 0x1c1   :  { %3496 = vmatprep.subr.mxu0 %v14629_v46  ;;  %14630 = vst [vmem:[#allocation23_spill] sm:$0xff] %v10755_v12  ;;  %vm6222_vm1 = vcmp.lt.s32.totalorder %v14632_v24, 0  ;;  %3438 = vmatpush1.msra.mxu1 %v10156_v33  ;;  %v10769_v53 = vsub.f32 %v10685_v40, %v14634_v18  ;;  %v10772_v46 = vsub.f32 %v207_v41, %v10729_v0  ;;  %v14637_v47 = vand.u32 2147483647, %v14632_v24  ;;  %v180_v18 = vld [vmem:[#allocation5 + $0x380] sm:$0xff] }
 0x1c2   :  { %14628 = vst [vmem:[#allocation43_spill] sm:$0xff] %v10745_v50  ;;  %14631 = vst [vmem:[#allocation90_spill] sm:$0xff] %v10759_v43  ;;  %3500 = vmatpush1.msra.mxu0 %v14633_v52  ;;  %v6305_v37 = vsel %vm6222_vm1, %v6304_v61, %v6303_v36  ;;  %3440 = vmatprep.subr.mxu1 %v10174_v21  ;;  %v10786_v52 = vsub.f32 %v206_v48, %v10735_v31  ;;  %v14642_v61 = vand.u32 4294901760, %v14545_v22  ;;  %v181_v22 = vld [vmem:[#allocation5 + $0x388] sm:$0xff]  ;;  %v14673_v50 = vld [vmem:[#allocation73_spill] sm:$0xff] }
 0x1c3   :  { %14635 = vst [vmem:[#allocation47_spill] sm:$0xff] %v10769_v53  ;;  %14636 = vst [vmem:[#allocation91_spill] sm:$0xff] %v10772_v46  ;;  %vm10776_vm2 = vcmp.le.f32.partialorder %v14637_v47, 0.7853982  ;;  %3504 = vmatprep.subr.mxu0 %v14640_v13  ;;  %v6205_v47 = vsel %vm10659_vm0, 0, %v6203_v10  ;;  %3442 = vmatpush1.msra.mxu1 %v10176_v59  ;;  %v14643_v9 = vand.u32 4294901760, %v10717_v2  ;;  %vm6312_vm8 = vweird.f32 %v14632_v24 }
 0x1c4   :  { %14641 = vst [vmem:[#allocation92_spill] sm:$0xff] %v10786_v52  ;;  %v6308_v40 = vsel %vm10776_vm2, %v14632_v24, %v6305_v37  ;;  %3508 = vmatpush1.msra.mxu0 %v14642_v61  ;;  %v14645_v48 = vand.u32 4294901760, %v10712_v5  ;;  %3444 = vmatprep.subr.mxu1 %v10212_v38  ;;  %v10811_v37 = vsub.f32 %v193_v19, %v10755_v12  ;;  %v10823_v11 = vand.u32 4294901760, %v180_v18  ;;  %v167_v19 = vld [vmem:[#allocation5 + $0x318] sm:$0xff]  ;;  %v14701_v0 = vld [vmem:[#allocation57_spill] sm:$0xff] }
 0x1c5   :  { %v10800_v36 = vsub.f32 %v10717_v2, %v14643_v9  ;;  %8036 = vcosq.f32 %v6308_v40  ;;  %3512 = vmatprep.subr.mxu0 %v14647_v20  ;;  %v10815_v61 = vsub.f32 %v194_v51, %v10740_v28  ;;  %v6307_v9 = vsel %vm6222_vm1, %v6306_v57, %v10552_v23  ;;  %3446 = vmatpush1.msra.mxu1 %v10214_v62  ;;  %v10830_v23 = vld [vmem:[#allocation5 + $0x320] sm:$0xff]  ;;  %v154_v20 = vld [vmem:[#allocation5 + $0x2b0] sm:$0xff] }
 0x1c6   :  { %v10805_v13 = vsub.f32 %v10712_v5, %v14645_v48  ;;  %14648 = vst [vmem:[#allocation95_spill] sm:$0xff] %v10811_v37  ;;  %8038 = vsinq.f32 %v6308_v40  ;;  %v14650_v48 = vand.u32 4294901760, %v14547_v6  ;;  %14651 = vst [vmem:[#allocation97_spill] sm:$0xff] %v10823_v11  ;;  %v6209_v41 = vadd.s32 3, %v6205_v47  ;;  %3448 = vmatprep.subr.mxu1 %v10236_v44  ;;  %3483 = vmatprep.mubr.f32.mxu1 %v14106_v34 }
 0x1c7   :  { %14644 = vst [vmem:[#allocation93_spill] sm:$0xff] %v10800_v36  ;;  %14649 = vst [vmem:[#allocation96_spill] sm:$0xff] %v10815_v61  ;;  %v14652_v51 = vand.u32 4294901760, %v14548_v16  ;;  %v14653_v40 = vand.u32 4294901760, %v10726_v27  ;;  %3450 = vmatpush1.msra.mxu1 %v10251_v14  ;;  %v10843_v47 = vand.u32 4294901760, %v181_v22  ;;  %v14656_v57 = vand.u32 4294901760, %v14549_v4  ;;  %3653 = vmatprep.mubr.f32.mxu0 %v14106_v34 }
 0x1c8   :  { %14646 = vst [vmem:[#allocation94_spill] sm:$0xff] %v10805_v13  ;;  %3516 = vmatpush1.msra.mxu0 %v14650_v48  ;;  %v10838_v48 = vpop.eup %8032  ;;  %v14658_v2 = vand.u32 4294901760, %v10759_v43  ;;  %v10857_v53 = vand.u32 4294901760, %v167_v19  ;;  %v14661_v10 = vand.u32 4294901760, %v14551_v58  ;;  %v14662_v13 = vld [vmem:[#allocation15_spill] sm:$0xff]  ;;  %v10864_v32 = vsub.f32 %v180_v18, %v10823_v11  ;;  %v1303_v58 = vpop.f32.mrf.mxu0 }
 0x1c9   :  { %3520 = vmatprep.subr.mxu0 %v14652_v51  ;;  %v10835_v6 = vsub.f32 %v10726_v27, %v14653_v40  ;;  %14655 = vst [vmem:[#allocation99_spill] sm:$0xff] %v10843_v47  ;;  %v8035_v5 = vpop.eup %8034  ;;  %v6309_v40 = vsel %vm10776_vm2, 0, %v6307_v9  ;;  %v14657_v27 = vld [vmem:[#allocation35_spill] sm:$0xff]  ;;  %3662 = vmatprep.subr.mxu1 %v14662_v13  ;;  %v10867_v4 = vand.u32 4294901760, %v10830_v23  ;;  %v10869_v9 = vld [vmem:[#allocation5 + $0x2b8] sm:$0xff]  ;;  %v10881_v11 = vand.u32 4294901760, %v154_v20 }
 0x1ca   :  { %3524 = vmatpush1.msra.mxu0 %v14656_v57  ;;  %3487 = vmatmul.mubr.f32.vlgmr.msra.gmra.mxu1 %v14657_v27  ;;  %v10855_v16 = vsub.f32 %v10759_v43, %v14658_v2  ;;  %14660 = vst [vmem:[#allocation101_spill] sm:$0xff] %v10857_v53  ;;  %14663 = vst [vmem:[#allocation15_spill] sm:$0xff] %v10864_v32  ;;  %v14665_v2 = vand.u32 4294901760, %v10772_v46  ;;  %v6210_v27 = vand.u32 3, %v6209_v41  ;;  %v14669_v13 = vld [vmem:[#allocation36_spill] sm:$0xff]  ;;  %v14671_v36 = vand.u32 4294901760, %v10786_v52 }
 0x1cb   :  { %14654 = vst [vmem:[#allocation98_spill] sm:$0xff] %v10835_v6  ;;  %3528 = vmatprep.subr.mxu0 %v14661_v10  ;;  %14664 = vst [vmem:[#allocation102_spill] sm:$0xff] %v10867_v4  ;;  %v14667_v10 = vld [vmem:[#allocation70_spill] sm:$0xff]  ;;  %3664 = vmatpush1.msra.mxu1 %v14669_v13  ;;  %v6216_v51 = vxor.u32 2147483648, %v10838_v48  ;;  %v6313_v41 = vadd.s32 3, %v6309_v40  ;;  %v14674_v28 = vand.u32 4294901760, %v14673_v50 }
 0x1cc   :  { %14659 = vst [vmem:[#allocation100_spill] sm:$0xff] %v10855_v16  ;;  %v10874_v57 = vsub.f32 %v10772_v46, %v14665_v2  ;;  %v14668_v43 = vand.u32 4294901760, %v14667_v10  ;;  %14670 = vst [vmem:[#allocation70_spill] sm:$0xff] %v10881_v11  ;;  %v10886_v12 = vsub.f32 %v10786_v52, %v14671_v36  ;;  %v141_v2 = vld [vmem:[#allocation5 + $0x248] sm:$0xff]  ;;  %v6213_v46 = vxor.u32 2147483648, %v8035_v5  ;;  %v14677_v13 = vld [vmem:[#allocation72_spill] sm:$0xff]  ;;  %3757 = vmatprep.mubr.f32.mxu1 %v14106_v34 }
 0x1cd   :  { %v10893_v10 = vsub.f32 %v181_v22, %v10843_v47  ;;  %v14678_v18 = vand.u32 4294901760, %v14677_v13  ;;  %v14679_v6 = vld [vmem:[#allocation17_spill] sm:$0xff]  ;;  %v10900_v52 = vsub.f32 %v167_v19, %v10857_v53  ;;  %v10903_v40 = vand.u32 4294901760, %v10869_v9  ;;  %v10905_v50 = vld [vmem:[#allocation5 + $0x250] sm:$0xff]  ;;  %v14689_v13 = vld [vmem:[#allocation76_spill] sm:$0xff] }
 0x1ce   :  { %14666 = vst [vmem:[#allocation103_spill] sm:$0xff] %v10874_v57  ;;  %3532 = vmatpush1.msra.mxu0 %v14668_v43  ;;  %14672 = vst [vmem:[#allocation36_spill] sm:$0xff] %v10886_v12  ;;  %v14675_v43 = vld [vmem:[#allocation24_spill] sm:$0xff]  ;;  %v14686_v19 = vrot.slane %v10579_v42, %v14579_v63  ;;  %v14690_v36 = vand.u32 4294901760, %v14689_v13  ;;  %vm6212_vm6 = vcmp.eq.s32.totalorder %v6210_v27, 0  ;;  %vm6215_vm7 = vcmp.eq.s32.totalorder %v6210_v27, 2  ;;  %v1535_v63 = vpop.f32.mrf.mxu1 }
 0x1cf   :  { %3536 = vmatprep.subr.mxu0 %v14674_v28  ;;  %3666 = vmatprep.subr.mxu1 %v14675_v43  ;;  %14676 = vst [vmem:[#allocation73_spill] sm:$0xff] %v10893_v10  ;;  %14680 = vst [vmem:[#allocation24_spill] sm:$0xff] %v10900_v52  ;;  %v14681_v28 = vand.u32 4294901760, %v10815_v61  ;;  %v14697_v13 = vld [vmem:[#allocation37_spill] sm:$0xff]  ;;  %v6214_v57 = vsel %vm6212_vm6, %v10838_v48, %v6213_v46  ;;  %v14699_v47 = vld [vmem:[#allocation82_spill] sm:$0xff]  ;;  %vm6211_vm9 = vcmp.lt.s32.totalorder %v6210_v27, 2 }
 0x1d0   :  { %3540 = vmatpush1.msra.mxu0 %v14678_v18  ;;  %3668 = vmatpush1.msra.mxu1 %v14679_v6  ;;  %v14683_v18 = vrot.slane %v10579_v42, %v14578_v29  ;;  %vm10922_vm4 = vcmp.eq.s32.totalorder %v14686_v19, 1  ;;  %v1305_v19 = vpop.f32.mrf.mxu0  ;;  %v14695_v42 = vld [vmem:[#allocation74_spill] sm:$0xff]  ;;  %v14700_v31 = vand.u32 4294901760, %v14699_v47  ;;  %v14706_v48 = vld [vmem:[#allocation59_spill] sm:$0xff]  ;;  %v14738_v6 = vld [vmem:[#allocation77_spill] sm:$0xff] }
 0x1d1   :  { %v10910_v22 = vsub.f32 %v10815_v61, %v14681_v28  ;;  %3544 = vmatprep.subr.mxu0 %v14690_v36  ;;  %v14691_v28 = vld [vmem:[#allocation25_spill] sm:$0xff]  ;;  %v14693_v61 = vand.u32 4294901760, %v10811_v37  ;;  %v14696_v16 = vand.u32 4294901760, %v14695_v42  ;;  %v10942_v36 = vsub.f32 %v154_v20, %v10881_v11  ;;  %v10945_v29 = vld [vmem:[#allocation5 + $0x1e8] sm:$0xff]  ;;  %v14702_v20 = vld [vmem:[#allocation27_spill] sm:$0xff] }
 0x1d2   :  { %vm10915_vm3 = vcmp.eq.s32.totalorder %v14683_v18, 1  ;;  %3670 = vmatprep.subr.mxu1 %v14691_v28  ;;  %v10931_v18 = vand.u32 4294901760, %v141_v2  ;;  %v10952_v42 = vand.u32 4294901760, %v10905_v50  ;;  %v1672_v12 = vpop.f32.mrf.mxu0  ;;  %v14704_v46 = vld [vmem:[#allocation78_spill] sm:$0xff]  ;;  %v8037_v47 = vpop.eup %8036  ;;  %v14713_v27 = vld [vmem:[#allocation63_spill] sm:$0xff] }
 0x1d3   :  { %14682 = vst [vmem:[#allocation72_spill] sm:$0xff] %v10910_v22  ;;  %v10936_v53 = vsub.f32 %v10811_v37, %v14693_v61  ;;  %3548 = vmatpush1.msra.mxu0 %v14696_v16  ;;  %3672 = vmatpush1.msra.mxu1 %v14697_v13  ;;  %14698 = vst [vmem:[#allocation25_spill] sm:$0xff] %v10942_v36  ;;  %v6217_v61 = vsel %vm6215_vm7, %v6216_v51, %v8035_v5  ;;  %v6314_v37 = vand.u32 3, %v6313_v41  ;;  %v10954_v16 = vld [vmem:[#allocation5 + $0x1e0] sm:$0xff]  ;;  %v14709_v11 = vld [vmem:[#allocation62_spill] sm:$0xff] }
 0x1d4   :  { %14692 = vst [vmem:[#allocation17_spill] sm:$0xff] %v10931_v18  ;;  %3552 = vmatprep.subr.mxu0 %v14700_v31  ;;  %3674 = vmatprep.subr.mxu1 %v14701_v0  ;;  %v14703_v13 = vrot.slane %v10624_v3, %v14702_v20  ;;  %v14705_v5 = vand.u32 4294901760, %v14704_v46  ;;  %v14707_v51 = vld [vmem:[#allocation85_spill] sm:$0xff]  ;;  %v10969_v20 = vsub.f32 %v141_v2, %v10931_v18  ;;  %v8039_v46 = vpop.eup %8038  ;;  %v1537_v31 = vpop.f32.mrf.mxu1  ;;  %v14711_v0 = vld [vmem:[#allocation86_spill] sm:$0xff]  ;;  %v14722_v14 = vld [vmem:[#allocation67_spill] sm:$0xff] }
 0x1d5   :  { %14694 = vst [vmem:[#allocation76_spill] sm:$0xff] %v10936_v53  ;;  %3676 = vmatpush1.msra.mxu1 %v14706_v48  ;;  %v14708_v41 = vand.u32 4294901760, %v14707_v51  ;;  %v6320_v48 = vxor.u32 2147483648, %v8037_v47  ;;  %v14712_v22 = vand.u32 4294901760, %v14711_v0  ;;  %v10979_v51 = vand.u32 4294901760, %v10954_v16  ;;  %v14719_v0 = vld [vmem:[#allocation66_spill] sm:$0xff]  ;;  %v1674_v25 = vpop.f32.mrf.mxu0 }
 0x1d6   :  { %v1304_v28 = vadd.f32 %v1303_v58, %v14703_v13  ;;  %3556 = vmatpush1.msra.mxu0 %v14705_v5  ;;  %3678 = vmatprep.subr.mxu1 %v14709_v11  ;;  %14710 = vst [vmem:[#allocation74_spill] sm:$0xff] %v10969_v20  ;;  %v10973_v13 = vand.u32 4294901760, %v10945_v29  ;;  %v6218_v5 = vsel %vm6211_vm9, %v6214_v57, %v6217_v61  ;;  %v6317_v2 = vxor.u32 2147483648, %v8039_v46  ;;  %v14717_v61 = vld [vmem:[#allocation20_spill] sm:$0xff]  ;;  %v1778_v39 = vpop.f32.mrf.mxu1 }
 0x1d7   :  { %3560 = vmatprep.subr.mxu0 %v14708_v41  ;;  %3680 = vmatpush1.msra.mxu1 %v14713_v27  ;;  %v10983_v11 = vsub.f32 %v10830_v23, %v10867_v4  ;;  %vm6319_vm10 = vcmp.eq.s32.totalorder %v6314_v37, 2  ;;  %v14715_v41 = vld [vmem:[#allocation41_spill] sm:$0xff]  ;;  %v14718_v53 = vand.u32 4294901760, %v14717_v61  ;;  %vm6316_vm11 = vcmp.eq.s32.totalorder %v6314_v37, 0  ;;  %v14720_v23 = vld [vmem:[#allocation40_spill] sm:$0xff] }
 0x1d8   :  { %3564 = vmatpush1.msra.mxu0 %v14712_v22  ;;  %v14716_v58 = vrot.slane %v10624_v3, %v14715_v41  ;;  %3682 = vmatprep.subr.mxu1 %v14719_v0  ;;  %v13832_v22 = vand.u32 4294901760, %v10864_v32  ;;  %v6321_v27 = vsel %vm6319_vm10, %v6320_v48, %v8039_v46  ;;  %v1536_v18 = vadd.f32 %v1535_v63, %v1304_v28  ;;  %v14724_v61 = vld [vmem:[#allocation21_spill] sm:$0xff]  ;;  %v14726_v63 = vld [vmem:[#allocation71_spill] sm:$0xff]  ;;  %v115_v28 = vld [vmem:[#allocation5 + $0x178] sm:$0xff] }
 0x1d9   :  { %14714 = vst [vmem:[#allocation37_spill] sm:$0xff] %v10983_v11  ;;  %3568 = vmatprep.subr.mxu0 %v14718_v53  ;;  %v14721_v4 = vand.u32 4294901760, %v14720_v23  ;;  %3684 = vmatpush1.msra.mxu1 %v14722_v14  ;;  %v14723_v3 = vand.u32 4294901760, %v10893_v10  ;;  %v6219_v53 = vsel %vm6208_vm5, nan, %v6218_v5  ;;  %vm6315_vm12 = vcmp.lt.s32.totalorder %v6314_v37, 2  ;;  %v14728_v0 = vld [vmem:[#allocation28_spill] sm:$0xff]  ;;  %v1946_v5 = vpop.f32.mrf.mxu0 }
 0x1da   :  { %v1306_v57 = vadd.f32 %v1305_v19, %v14716_v58  ;;  %v6318_v58 = vsel %vm6316_vm11, %v8037_v47, %v6317_v2  ;;  %v14725_v46 = vand.u32 4294901760, %v14724_v61  ;;  %3686 = vmatprep.subr.mxu1 %v14726_v63  ;;  %v1673_v48 = vadd.f32 %v1672_v12, %v1536_v18  ;;  %v11024_v18 = vld [vmem:[#allocation5 + $0x180] sm:$0xff] }
 0x1db   :  { %3572 = vmatpush1.msra.mxu0 %v14721_v4  ;;  %v10998_v19 = vsub.f32 %v10893_v10, %v14723_v3  ;;  %v11007_v4 = vsub.f32 %v10869_v9, %v10903_v40  ;;  %v6322_v14 = vsel %vm6315_vm12, %v6318_v58, %v6321_v27  ;;  %v14729_v23 = vand.u32 4294901760, %v14728_v0  ;;  %v14730_v3 = vld [vmem:[#allocation68_spill] sm:$0xff]  ;;  %v14733_v9 = vld [vmem:[#allocation75_spill] sm:$0xff]  ;;  %v14781_v10 = vld [vmem:[#allocation69_spill] sm:$0xff] }
 0x1dc   :  { %3576 = vmatprep.subr.mxu0 %v14725_v46  ;;  %3688 = vmatpush1.msra.mxu1 %v14730_v3  ;;  %v13831_v37 = vand.u32 4294901760, %v10983_v11  ;;  %v13830_v47 = vand.u32 4294901760, %v10900_v52  ;;  %v6323_v2 = vsel %vm6312_vm8, nan, %v6322_v14  ;;  %v1538_v61 = vadd.f32 %v1537_v31, %v1306_v57  ;;  %v14731_v46 = vld [vmem:[#allocation22_spill] sm:$0xff]  ;;  %v1780_v14 = vpop.f32.mrf.mxu1 }
 0x1dd   :  { %14727 = vst [vmem:[#allocation82_spill] sm:$0xff] %v11007_v4  ;;  %3580 = vmatpush1.msra.mxu0 %v14729_v23  ;;  %v14732_v63 = vand.u32 4294901760, %v14731_v46  ;;  %3690 = vmatprep.subr.mxu1 %v14733_v9  ;;  %v11022_v12 = vsub.f32 %v10864_v32, %v13832_v22  ;;  %v11028_v27 = vsub.f32 %v10905_v50, %v10952_v42  ;;  %v14735_v0 = vand.u32 4294901760, %v14597_v1  ;;  %v14736_v46 = vld [vmem:[#allocation46_spill] sm:$0xff]  ;;  %v14744_v9 = vld [vmem:[#allocation87_spill] sm:$0xff]  ;;  %v14759_v22 = vld [vmem:[#allocation52_spill] sm:$0xff] }
 0x1de   :  { %v7539_v31 = vsel %vm10915_vm3, %v14596_v56, %v6219_v53  ;;  %v7540_v57 = vsel %vm10922_vm4, %v14632_v24, %v6323_v2  ;;  %v1779_v58 = vadd.f32 %v1778_v39, %v1673_v48  ;;  %3692 = vmatpush1.msra.mxu1 %v9965_v26  ;;  %v11039_v23 = vand.u32 4294901760, %v115_v28  ;;  %v102_v39 = vld [vmem:[#allocation5 + $0x110] sm:$0xff]  ;;  %v1948_v53 = vpop.f32.mrf.mxu0  ;;  %v11065_v2 = vld [vmem:[#allocation5 + $0x118] sm:$0xff] }
 0x1df   :  { %3584 = vmatprep.subr.mxu0 %v14732_v63  ;;  %14734 = vst [vmem:[#allocation57_spill] sm:$0xff] %v11028_v27  ;;  %v7564_v3 = vcombine.low %v7539_v31, %v7540_v57  ;;  %v1675_v50 = vadd.f32 %v1674_v25, %v1538_v61  ;;  %v14737_v63 = vand.u32 4294901760, %v14736_v46  ;;  %3694 = vmatprep.subr.mxu1 %v14738_v6  ;;  %v13827_v24 = vand.u32 4294901760, %v11007_v4  ;;  %v14741_v26 = vld [vmem:[#allocation79_spill] sm:$0xff]  ;;  %v14742_v61 = vld [vmem:[#allocation32_spill] sm:$0xff]  ;;  %v2050_v31 = vpop.f32.mrf.mxu1 }
 0x1e0   :  { %3588 = vmatpush1.msra.mxu0 %v14735_v0  ;;  %v11046_v56 = vsub.f32 %v10954_v16, %v10979_v51  ;;  %v14740_v1 = vand.u32 4294901760, %v14604_v15  ;;  %3696 = vmatpush1.msra.mxu1 %v14741_v26  ;;  %v1947_v43 = vadd.f32 %v1946_v5, %v1779_v58  ;;  %v11053_v25 = vand.u32 4294901760, %v11024_v18 }
 0x1e1   :  { %3592 = vmatprep.subr.mxu0 %v14737_v63  ;;  %v11058_v48 = vsub.f32 %v10983_v11, %v13831_v37  ;;  %v11063_v16 = vsub.f32 %v10900_v52, %v13830_v47  ;;  %7576 = vst [vmem:[#allocation10] sm:$0xff] %v7564_v3  ;;  %v1781_v15 = vadd.f32 %v1780_v14, %v1675_v50  ;;  %v14743_v5 = vand.u32 4294901760, %v14742_v61  ;;  %v14746_v63 = vld [vmem:[#allocation81_spill] sm:$0xff] }
 0x1e2   :  { %14739 = vst [vmem:[#allocation78_spill] sm:$0xff] %v11046_v56  ;;  %3596 = vmatpush1.msra.mxu0 %v14740_v1  ;;  %3698 = vmatprep.subr.mxu1 %v14744_v9  ;;  %v13829_v0 = vand.u32 4294901760, %v10942_v36  ;;  %v14745_v46 = vand.u32 4294901760, %v14614_v45  ;;  %v11076_v6 = vadd.f32 %v2050_v31, %v1947_v43  ;;  %v11079_v14 = vsub.f32 %v115_v28, %v11039_v23  ;;  %v89_v1 = vld [vmem:[#allocation5 + $0xa8] sm:$0xff]  ;;  %v2052_v45 = vpop.f32.mrf.mxu1  ;;  %v11095_v43 = vld [vmem:[#allocation5 + $0xb0] sm:$0xff] }
 0x1e3   :  { %3600 = vmatprep.subr.mxu0 %v14743_v5  ;;  %3700 = vmatpush1.msra.mxu1 %v14746_v63  ;;  %v11081_v3 = vand.u32 4294901760, %v102_v39  ;;  %v13828_v50 = vand.u32 4294901760, %v11028_v27  ;;  %v14749_v26 = vand.u32 4294901760, %v10314_v49  ;;  %v1949_v61 = vadd.f32 %v1948_v53, %v1781_v15 }
 0x1e4   :  { %3604 = vmatpush1.msra.mxu0 %v14745_v46  ;;  %14747 = vst [vmem:[#allocation59_spill] sm:$0xff] %v11076_v6  ;;  %14748 = vst [vmem:[#allocation85_spill] sm:$0xff] %v11079_v14  ;;  %3702 = vmatprep.subr.mxu1 %v10100_v17  ;;  %v11088_v5 = vand.u32 4294901760, %v11065_v2  ;;  %v11093_v28 = vsub.f32 %v11007_v4, %v13827_v24  ;;  %v13834_v9 = vand.u32 4294901760, %v10969_v20  ;;  %v14750_v31 = vand.u32 4294901760, %v10249_v55  ;;  %v14774_v4 = vld [vmem:[#allocation16_spill] sm:$0xff] }
 0x1e5   :  { %3608 = vmatprep.subr.mxu0 %v14749_v26  ;;  %3704 = vmatpush1.msra.mxu1 %v14524_v30  ;;  %v13833_v17 = vand.u32 2147483647, %v11076_v6  ;;  %v6327_v49 = vand.u32 2139095040, %v11076_v6  ;;  %v14751_v46 = vand.u32 4294901760, %v10355_v54  ;;  %v11108_v63 = vadd.f32 %v2052_v45, %v1949_v61 }
 0x1e6   :  { %3612 = vmatpush1.msra.mxu0 %v14750_v31  ;;  %3706 = vmatprep.subr.mxu1 %v10127_v8  ;;  %v11113_v55 = vsub.f32 %v10942_v36, %v13829_v0  ;;  %v11115_v30 = vand.u32 4294901760, %v89_v1  ;;  %v11119_v26 = vsub.f32 %v10945_v29, %v10973_v13  ;;  %v76_v31 = vld [vmem:[#allocation5 + $0x40] sm:$0xff]  ;;  %v14755_v24 = vand.u32 4294901760, %v14539_v7 }
 0x1e7   :  { %3616 = vmatprep.subr.mxu0 %v14751_v46  ;;  %14752 = vst [vmem:[#allocation62_spill] sm:$0xff] %v11108_v63  ;;  %v6328_v8 = vshrl.u32 %v6327_v49, 23  ;;  %v11125_v54 = vsub.f32 %v102_v39, %v11081_v3  ;;  %v11128_v61 = vand.u32 4294901760, %v11095_v43  ;;  %v11133_v45 = vsub.f32 %v11028_v27, %v13828_v50  ;;  %3708 = vmatpush1.msra.mxu1 %v10109_v60  ;;  %v14756_v29 = vld [vmem:[#allocation33_spill] sm:$0xff]  ;;  %v77_v46 = vld [vmem:[#allocation5 + $0x48] sm:$0xff] }
 0x1e8   :  { %14753 = vst [vmem:[#allocation86_spill] sm:$0xff] %v11115_v30  ;;  %14754 = vst [vmem:[#allocation63_spill] sm:$0xff] %v11119_v26  ;;  %3620 = vmatpush1.msra.mxu0 %v14755_v24  ;;  %v6331_v7 = vand.u32 8388607, %v13833_v17  ;;  %v6431_v24 = vand.u32 2139095040, %v11108_v63  ;;  %v11144_v49 = vsub.f32 %v10969_v20, %v13834_v9  ;;  %3710 = vmatprep.subr.mxu1 %v10149_v35  ;;  %v14757_v50 = vld [vmem:[#allocation49_spill] sm:$0xff] }
 0x1e9   :  { %3655 = vmatmul.mubr.f32.vlgmr.msra.gmra.mxu0 %v14756_v29  ;;  %3766 = vmatprep.subr.mxu0 %v14757_v50  ;;  %v7608_v60 = vadd.s32 4294967169, %v6328_v8  ;;  %v13835_v0 = vand.u32 2147483647, %v11108_v63  ;;  %v11149_v47 = vand.u32 4294901760, %v76_v31  ;;  %v13836_v37 = vand.u32 4294901760, %v11046_v56  ;;  %v14760_v8 = vld [vmem:[#allocation39_spill] sm:$0xff] }
 0x1ea   :  { %3712 = vmatpush1.msra.mxu1 %v10156_v33  ;;  %3768 = vmatpush1.msra.mxu0 %v14759_v22  ;;  %v6432_v17 = vshrl.u32 %v6431_v24, 23  ;;  %v11156_v39 = vsub.f32 %v89_v1, %v11115_v30  ;;  %v13839_v35 = vand.u32 4294901760, %v11119_v26  ;;  %v11162_v58 = vand.u32 4294901760, %v77_v46  ;;  %v14763_v24 = vld [vmem:[#allocation53_spill] sm:$0xff]  ;;  %v14782_v22 = vld [vmem:[#allocation31_spill] sm:$0xff] }
 0x1eb   :  { %14758 = vst [vmem:[#allocation20_spill] sm:$0xff] %v11149_v47  ;;  %3714 = vmatprep.subr.mxu1 %v10174_v21  ;;  %3770 = vmatprep.subr.mxu0 %v14760_v8  ;;  %v6334_v15 = vadd.s32 1, %v7608_v60  ;;  %v11166_v33 = vsub.f32 %v11024_v18, %v11053_v25  ;;  %v6332_v1 = vor.u32 8388608, %v6331_v7  ;;  %v11173_v21 = vsub.f32 %v11065_v2, %v11088_v5  ;;  %v14764_v60 = vld [vmem:[#allocation80_spill] sm:$0xff]  ;;  %v14765_v2 = vld [vmem:[#allocation83_spill] sm:$0xff] }
 0x1ec   :  { %14761 = vst [vmem:[#allocation66_spill] sm:$0xff] %v11162_v58  ;;  %3716 = vmatpush1.msra.mxu1 %v10176_v59  ;;  %3772 = vmatpush1.msra.mxu0 %v14763_v24  ;;  %v7612_v9 = vadd.s32 4294967169, %v6432_v17  ;;  %v11179_v18 = vand.u32 8388607, %v13835_v0  ;;  %v11182_v59 = vsub.f32 %v76_v31, %v11149_v47  ;;  %v11187_v17 = vsub.f32 %v11046_v56, %v13836_v37  ;;  %v14766_v31 = vld [vmem:[#allocation84_spill] sm:$0xff] }
 0x1ed   :  { %14762 = vst [vmem:[#allocation40_spill] sm:$0xff] %v11166_v33  ;;  %3718 = vmatprep.subr.mxu1 %v10212_v38  ;;  %3774 = vmatprep.subr.mxu0 %v14764_v60  ;;  %vm6335_vm13 = vcmp.gt.s32.totalorder %v6334_v15, 0  ;;  %v11194_v57 = vsub.f32 %v11119_v26, %v13839_v35  ;;  %v11213_v0 = vsub.f32 %v77_v46, %v11162_v58  ;;  %v14769_v56 = vmov 683565275   ;;  %v14775_v46 = vld [vmem:[#allocation89_spill] sm:$0xff]  ;;  %v14785_v47 = vld [vmem:[#allocation56_spill] sm:$0xff] }
 0x1ee   :  { %3720 = vmatpush1.msra.mxu1 %v10214_v62  ;;  %3776 = vmatpush1.msra.mxu0 %v14765_v2  ;;  %v6336_v38 = vsel %vm6335_vm13, %v6334_v15, 0  ;;  %v6438_v7 = vadd.s32 1, %v7612_v9  ;;  %v14767_v15 = vld [vmem:[#allocation29_spill] sm:$0xff]  ;;  %v11205_v9 = vshll.u32 %v6332_v1, 8  ;;  %v14770_v26 = vmov 2475754826  }
 0x1ef   :  { %3722 = vmatprep.subr.mxu1 %v10236_v44  ;;  %3778 = vmatprep.subr.mxu0 %v14766_v31  ;;  %v11199_v53 = vshrl.u32 %v6336_v38, 5  ;;  %v6338_v37 = vand.u32 31, %v6336_v38  ;;  %v11210_v44 = vsub.f32 %v11095_v43, %v11128_v61  ;;  %v14768_v38 = vld [vmem:[#allocation18_spill] sm:$0xff]  ;;  %v14771_v20 = vmov 2131351028   ;;  %v14777_v1 = vld [vmem:[#allocation19_spill] sm:$0xff] }
 0x1f0   :  { %3724 = vmatpush1.msra.mxu1 %v14767_v15  ;;  %3780 = vmatpush1.msra.mxu0 %v14768_v38  ;;  %v14772_v27 = vmov 2102212464   ;;  %v14773_v43 = vmov 920167782   ;;  %v14776_v52 = vand.u32 4294901760, %v14775_v46  ;;  %vm6439_vm14 = vcmp.gt.s32.totalorder %v6438_v7, 0 }
 0x1f1   :  { %v6339_v62 = vsub.s32 32, %v6338_v37  ;;  %v6341_v63 = vshll.u32 %v14769_v56, %v6338_v37  ;;  %v6344_v15 = vshll.u32 %v14770_v26, %v6338_v37  ;;  %3759 = vmatmul.mubr.f32.vlgmr.msra.gmra.mxu1 %v14756_v29  ;;  %v6347_v35 = vshll.u32 %v14771_v20, %v6338_v37  ;;  %3782 = vmatprep.subr.mxu0 %v14774_v4 }
 0x1f2   :  { %v6350_v6 = vshll.u32 %v14772_v27, %v6338_v37  ;;  %v6353_v36 = vshll.u32 %v14773_v43, %v6338_v37  ;;  %3878 = vmatprep.subr.mxu1 %v14776_v52  ;;  %vm6356_vm15 = vcmp.lt.s32.totalorder %v11199_v53, 1  ;;  %3784 = vmatpush1.msra.mxu0 %v14777_v1  ;;  %v14778_v31 = vmov 1326507024   ;;  %v14779_v52 = vld [vmem:[#allocation54_spill] sm:$0xff]  ;;  %v14784_v1 = vld [vmem:[#allocation44_spill] sm:$0xff] }
 0x1f3   :  { %v6342_v11 = vshrl.u32 %v14770_v26, %v6339_v62  ;;  %v6345_v41 = vshrl.u32 %v14771_v20, %v6339_v62  ;;  %v6348_v38 = vshrl.u32 %v14772_v27, %v6339_v62  ;;  %v6340_v32 = vshrl.u32 %v14769_v56, %v6339_v62  ;;  %3786 = vmatprep.subr.mxu0 %v14781_v10 }
 0x1f4   :  { %v6351_v37 = vshrl.u32 %v14773_v43, %v6339_v62  ;;  %v6354_v4 = vshrl.u32 %v14778_v31, %v6339_v62  ;;  %vm6358_vm0 = vcmp.lt.s32.totalorder %v11199_v53, 3  ;;  %v14780_v46 = vand.u32 4294901760, %v14779_v52  ;;  %3788 = vmatpush1.msra.mxu0 %v14784_v1  ;;  %v14787_v52 = vld [vmem:[#allocation42_spill] sm:$0xff] }
 0x1f5   :  { %v6343_v2 = vor.u32 %v6342_v11, %v6341_v63  ;;  %v6346_v60 = vor.u32 %v6345_v41, %v6344_v15  ;;  %v6349_v24 = vor.u32 %v6348_v38, %v6347_v35  ;;  %v6440_v8 = vsel %vm6439_vm14, %v6438_v7, 0  ;;  %3790 = vmatprep.subr.mxu0 %v14787_v52  ;;  %v14791_v7 = vld [vmem:[#allocation47_spill] sm:$0xff] }
 0x1f6   :  { %3884 = vmatpush1.msra.mxu1 %v14780_v46  ;;  %v14783_v50 = vand.u32 4294901760, %v14782_v22  ;;  %v6352_v29 = vor.u32 %v6351_v37, %v6350_v6  ;;  %v6355_v34 = vor.u32 %v6354_v4, %v6353_v36  ;;  %vm6359_vm1 = vcmp.lt.s32.totalorder %v11199_v53, 4  ;;  %v14788_v6 = vld [vmem:[#allocation43_spill] sm:$0xff]  ;;  %v14794_v46 = vld [vmem:[#allocation93_spill] sm:$0xff] }
 0x1f7   :  { %v6442_v62 = vand.u32 31, %v6440_v8  ;;  %v14786_v58 = vand.u32 4294901760, %v14785_v47  ;;  %v6360_v11 = vsel %vm6356_vm15, %v6340_v32, %v6343_v2  ;;  %v6361_v41 = vsel %vm6359_vm1, %v6349_v24, 2102212464  ;;  %v14790_v4 = vld [vmem:[#allocation23_spill] sm:$0xff] }
 0x1f8   :  { %3890 = vmatprep.subr.mxu1 %v14783_v50  ;;  %v6364_v22 = vsel %vm6356_vm15, %v6343_v2, %v6346_v60  ;;  %v6368_v50 = vsel %vm6356_vm15, %v6346_v60, %v6349_v24  ;;  %v14789_v36 = vand.u32 4294901760, %v14788_v6  ;;  %3792 = vmatpush1.msra.mxu0 %v14790_v4  ;;  %v6362_v47 = vsel %vm6358_vm0, %v6346_v60, %v6361_v41  ;;  %v14793_v38 = vld [vmem:[#allocation99_spill] sm:$0xff] }
 0x1f9   :  { %3896 = vmatpush1.msra.mxu1 %v14786_v58  ;;  %v6365_v58 = vsel %vm6359_vm1, %v6352_v29, 920167782  ;;  %v6369_v63 = vsel %vm6359_vm1, %v6355_v34, 1326507024  ;;  %v6443_v35 = vsub.s32 32, %v6442_v62  ;;  %v14792_v32 = vand.u32 4294901760, %v14791_v7  ;;  %3794 = vmatprep.subr.mxu0 %v14793_v38 }
 0x1fa   :  { %3902 = vmatprep.subr.mxu1 %v14789_v36  ;;  %vm6357_vm2 = vcmp.lt.s32.totalorder %v11199_v53, 2  ;;  %v6366_v2 = vsel %vm6358_vm0, %v6349_v24, %v6365_v58  ;;  %v6370_v15 = vsel %vm6358_vm0, %v6352_v29, %v6369_v63  ;;  %v11264_v37 = vshrl.u32 %v6440_v8, 5  ;;  %v14796_v7 = vld [vmem:[#allocation97_spill] sm:$0xff]  ;;  %v14797_v29 = vld [vmem:[#allocation94_spill] sm:$0xff]  ;;  %v14800_v63 = vld [vmem:[#allocation100_spill] sm:$0xff] }
 0x1fb   :  { %3908 = vmatpush1.msra.mxu1 %v14792_v32  ;;  %v14795_v60 = vand.u32 4294901760, %v14794_v46  ;;  %v6363_v34 = vsel %vm6357_vm2, %v6360_v11, %v6362_v47  ;;  %v6367_v41 = vsel %vm6357_vm2, %v6364_v22, %v6366_v2  ;;  %v6371_v6 = vsel %vm6357_vm2, %v6368_v50, %v6370_v15  ;;  %3796 = vmatpush1.msra.mxu0 %v14796_v7  ;;  %v14799_v58 = vld [vmem:[#allocation102_spill] sm:$0xff] }
 0x1fc   :  { %v6445_v36 = vshll.u32 %v14769_v56, %v6442_v62  ;;  %v11271_v32 = vmul.u32.u64.low %v11205_v9, %v6371_v6  ;;  %v11272_v38 = vmul.u32.u64.high %v11205_v9, %v6371_v6, %v11271_v32  ;;  %v14798_v8 = vand.u32 4294901760, %v14797_v29  ;;  %3798 = vmatprep.subr.mxu0 %v14799_v58  ;;  %v14802_v6 = vld [vmem:[#allocation101_spill] sm:$0xff] }
 0x1fd   :  { %3914 = vmatprep.subr.mxu1 %v14795_v60  ;;  %v11275_v24 = vmul.u32.u64.low %v11205_v9, %v6367_v41  ;;  %v11276_v53 = vmul.u32.u64.high %v11205_v9, %v6367_v41, %v11275_v24  ;;  %v6446_v11 = vshrl.u32 %v14770_v26, %v6443_v35  ;;  %v6448_v22 = vshll.u32 %v14770_v26, %v6442_v62  ;;  %3800 = vmatpush1.msra.mxu0 %v14802_v6 }
 0x1fe   :  { %3920 = vmatpush1.msra.mxu1 %v14798_v8  ;;  %v6449_v50 = vshrl.u32 %v14771_v20, %v6443_v35  ;;  %v6451_v47 = vshll.u32 %v14771_v20, %v6442_v62  ;;  %v14801_v2 = vand.u32 4294901760, %v14800_v63  ;;  %v6452_v15 = vshrl.u32 %v14772_v27, %v6443_v35  ;;  %v14804_v63 = vld [vmem:[#allocation98_spill] sm:$0xff]  ;;  %3802 = vmatprep.subr.mxu0 %v10903_v40 }
 0x1ff   :  { %v6454_v46 = vshll.u32 %v14772_v27, %v6442_v62  ;;  %v6455_v60 = vshrl.u32 %v14773_v43, %v6443_v35  ;;  %v6457_v41 = vshll.u32 %v14773_v43, %v6442_v62  ;;  %v6447_v32 = vor.u32 %v6446_v11, %v6445_v36  ;;  %v14806_v11 = vld [vmem:[#allocation103_spill] sm:$0xff]  ;;  %v261_v43 = vld [vmem:[#allocation5 + $0x608] sm:$0xff] }
 0x200   :  { %3926 = vmatprep.subr.mxu1 %v14801_v2  ;;  %v6450_v29 = vor.u32 %v6449_v50, %v6448_v22  ;;  %v6458_v8 = vshrl.u32 %v14778_v31, %v6443_v35  ;;  %v14803_v26 = vor.u32 8388608, %v11179_v18  ;;  %v14805_v2 = vand.u32 4294901760, %v14804_v63  ;;  %v14808_v50 = vld [vmem:[#allocation70_spill] sm:$0xff] }
 0x201   :  { %v6379_v27 = vmul.u32 %v11205_v9, %v6363_v34  ;;  %vm6381_vm3 = vc.u32 %v11272_v38, %v11275_v24  ;;  %v6382_v62 = vadd.s32 1, %v11276_v53  ;;  %v6453_v36 = vor.u32 %v6452_v15, %v6451_v47  ;;  %3804 = vmatpush1.msra.mxu0 %v14808_v50  ;;  %v14811_v47 = vld [vmem:[#allocation72_spill] sm:$0xff]  ;;  %v14813_v15 = vld [vmem:[#allocation17_spill] sm:$0xff] }
 0x202   :  { %v11296_v20 = vshll.u32 %v14803_v26, 8  ;;  %3932 = vmatpush1.msra.mxu1 %v14805_v2  ;;  %v14807_v22 = vand.u32 4294901760, %v14806_v11  ;;  %v6444_v26 = vshrl.u32 %v14769_v56, %v6443_v35  ;;  %v6456_v18 = vor.u32 %v6455_v60, %v6454_v46  ;;  %v14809_v2 = vld [vmem:[#allocation36_spill] sm:$0xff]  ;;  %3806 = vmatprep.subr.mxu0 %v10952_v42 }
 0x203   :  { %v6459_v63 = vor.u32 %v6458_v8, %v6457_v41  ;;  %vm6460_vm4 = vcmp.lt.s32.totalorder %v11264_v37, 1  ;;  %v14810_v31 = vand.u32 4294901760, %v14809_v2  ;;  %v6383_v9 = vsel %vm6381_vm3, %v6382_v62, %v11276_v53  ;;  %3808 = vmatpush1.msra.mxu0 %v14813_v15  ;;  %v14814_v8 = vld [vmem:[#allocation76_spill] sm:$0xff] }
 0x204   :  { %3938 = vmatprep.subr.mxu1 %v14807_v22  ;;  %vm6462_vm5 = vcmp.lt.s32.totalorder %v11264_v37, 3  ;;  %vm6463_vm6 = vcmp.lt.s32.totalorder %v11264_v37, 4  ;;  %v6468_v34 = vsel %vm6460_vm4, %v6447_v32, %v6450_v29  ;;  %v14812_v35 = vand.u32 4294901760, %v14811_v47  ;;  %3810 = vmatprep.subr.mxu0 %v10973_v13 }
 0x205   :  { %3944 = vmatpush1.msra.mxu1 %v14810_v31  ;;  %v6384_v46 = vadd.s32 %v6383_v9, %v6379_v27  ;;  %v6465_v60 = vsel %vm6463_vm6, %v6453_v36, 2102212464  ;;  %v6469_v41 = vsel %vm6463_vm6, %v6456_v18, 920167782  ;;  %v6472_v31 = vsel %vm6460_vm4, %v6450_v29, %v6453_v36  ;;  %3812 = vmatpush1.msra.mxu0 %v10979_v51 }
 0x206   :  { %3950 = vmatprep.subr.mxu1 %v14812_v35  ;;  %v14815_v53 = vand.u32 4294901760, %v14814_v8  ;;  %vm6461_vm7 = vcmp.lt.s32.totalorder %v11264_v37, 2  ;;  %v6464_v62 = vsel %vm6460_vm4, %v6444_v26, %v6447_v32  ;;  %v6470_v11 = vsel %vm6462_vm5, %v6453_v36, %v6469_v41  ;;  %3814 = vmatprep.subr.mxu0 %v11053_v25 }
 0x207   :  { %v6473_v22 = vsel %vm6463_vm6, %v6459_v63, 1326507024  ;;  %v14816_v27 = vand.u32 4294901760, %v10998_v19  ;;  %v6385_v2 = vadd.s32 536870912, %v6384_v46  ;;  %v6466_v9 = vsel %vm6462_vm5, %v6450_v29, %v6465_v60  ;;  %3816 = vmatpush1.msra.mxu0 %v11039_v23 }
 0x208   :  { %3956 = vmatpush1.msra.mxu1 %v14815_v53  ;;  %v6471_v47 = vsel %vm6461_vm7, %v6468_v34, %v6470_v11  ;;  %v6474_v35 = vsel %vm6462_vm5, %v6456_v18, %v6473_v22  ;;  %v14817_v32 = vand.u32 4294901760, %v11022_v12  ;;  %v14818_v29 = vand.u32 4294901760, %v11058_v48  ;;  %3818 = vmatprep.subr.mxu0 %v11088_v5 }
 0x209   :  { %3962 = vmatprep.subr.mxu1 %v14816_v27  ;;  %v6475_v19 = vsel %vm6461_vm7, %v6472_v31, %v6474_v35  ;;  %v11346_v36 = vmul.u32.u64.low %v11296_v20, %v6471_v47  ;;  %v11347_v26 = vmul.u32.u64.high %v11296_v20, %v6471_v47, %v11346_v36  ;;  %v14819_v18 = vand.u32 4294901760, %v11166_v33  ;;  %3820 = vmatpush1.msra.mxu0 %v11081_v3 }
 0x20a   :  { %3968 = vmatpush1.msra.mxu1 %v14817_v32  ;;  %v11356_v63 = vshrl.u32 %v6385_v2, 30  ;;  %v11359_v34 = vmul.u32.u64.low %v11296_v20, %v6475_v19  ;;  %v11360_v60 = vmul.u32.u64.high %v11296_v20, %v6475_v19, %v11359_v34  ;;  %v14820_v41 = vand.u32 4294901760, %v11063_v16  ;;  %3822 = vmatprep.subr.mxu0 %v11128_v61 }
 0x20b   :  { %3974 = vmatprep.subr.mxu1 %v14818_v29  ;;  %v4020_v12 = vsub.f32 %v11166_v33, %v14819_v18  ;;  %v13875_v48 = vand.u32 4294901760, %v11210_v44  ;;  %v6467_v31 = vsel %vm6461_vm7, %v6464_v62, %v6466_v9  ;;  %v14821_v8 = vand.u32 4294901760, %v11093_v28  ;;  %3824 = vmatpush1.msra.mxu0 %v11115_v30  ;;  %v14828_v34 = vld [vmem:[#allocation66_spill] sm:$0xff] }
 0x20c   :  { %3980 = vmatpush1.msra.mxu1 %v14820_v41  ;;  %v4009_v53 = vand.u32 4294901760, %v11194_v57  ;;  %v14822_v11 = vand.u32 4294901760, %v11079_v14  ;;  %v13874_v16 = vand.u32 4294901760, %v11156_v39  ;;  %v6387_v27 = vshll.u32 %v11356_v63, 30  ;;  %3826 = vmatprep.subr.mxu0 %v14828_v34 }
 0x20d   :  { %3986 = vmatprep.subr.mxu1 %v14821_v8  ;;  %v14823_v2 = vand.u32 4294901760, %v11113_v55  ;;  %v4015_v28 = vand.u32 4294901760, %v11187_v17  ;;  %v14824_v37 = vand.u32 4294901760, %v11173_v21  ;;  %v13873_v57 = vand.u32 4294901760, %v11213_v0  ;;  %v14829_v8 = vld [vmem:[#allocation20_spill] sm:$0xff] }
 0x20e   :  { %v4026_v22 = vsub.f32 %v11079_v14, %v14822_v11  ;;  %v6486_v9 = vadd.s32 1, %v11347_v26  ;;  %v14825_v47 = vand.u32 4294901760, %v11133_v45  ;;  %v4021_v35 = vand.u32 4294901760, %v4020_v12  ;;  %3828 = vmatpush1.msra.mxu0 %v14829_v8  ;;  %v14866_v8 = vld [vmem:[#allocation24_spill] sm:$0xff] }
 0x20f   :  { %3992 = vmatpush1.msra.mxu1 %v14823_v2  ;;  %v4032_v62 = vsub.f32 %v11173_v21, %v14824_v37  ;;  %v14826_v55 = vand.u32 4294901760, %v11125_v54  ;;  %v13872_v17 = vand.u32 4294901760, %v11182_v59  ;;  %v11393_v19 = vsub.s32 %v6384_v46, %v6387_v27  ;;  %v14831_v37 = vld [vmem:[#allocation45_spill] sm:$0xff] }
 0x210   :  { %3998 = vmatprep.subr.mxu1 %v14825_v47  ;;  %v6483_v29 = vmul.u32 %v11296_v20, %v6467_v31  ;;  %vm6485_vm8 = vc.u32 %v11360_v60, %v11346_v36  ;;  %v14827_v18 = vand.u32 4294901760, %v11144_v49  ;;  %v4044_v45 = vsub.f32 %v11210_v44, %v13875_v48  ;;  %4107 = vmatprep.subr.mxu0 %v14831_v37  ;;  %v14846_v48 = vld [vmem:[#allocation39_spill] sm:$0xff] }
 0x211   :  { %v4038_v32 = vsub.f32 %v11125_v54, %v14826_v55  ;;  %v6487_v12 = vsel %vm6485_vm8, %v6486_v9, %v11347_v26  ;;  %v4027_v41 = vand.u32 4294901760, %v4026_v22  ;;  %v4050_v20 = vsub.f32 %v11156_v39, %v13874_v16  ;;  %v14832_v9 = vld [vmem:[#allocation38_spill] sm:$0xff]  ;;  %v14845_v16 = vld [vmem:[#allocation91_spill] sm:$0xff] }
 0x212   :  { %4004 = vmatpush1.msra.mxu1 %v14827_v18  ;;  %v6390_v46 = vsub.s32 0, %v11393_v19  ;;  %v6488_v31 = vadd.s32 %v6487_v12, %v6483_v29  ;;  %v4033_v49 = vand.u32 4294901760, %v4032_v62  ;;  %v4056_v11 = vsub.f32 %v11213_v0, %v13873_v57  ;;  %v14833_v62 = vld [vmem:[#allocation48_spill] sm:$0xff]  ;;  %v14835_v18 = vld [vmem:[#allocation51_spill] sm:$0xff]  ;;  %v14843_v57 = vld [vmem:[#allocation65_spill] sm:$0xff] }
 0x213   :  { %4010 = vmatprep.subr.mxu1 %v4009_v53  ;;  %v14830_v26 = vmov 0.0   ;;  %v4039_v53 = vand.u32 4294901760, %v4038_v32  ;;  %v4062_v22 = vsub.f32 %v11182_v59, %v13872_v17  ;;  %v4051_v47 = vand.u32 4294901760, %v4050_v20  ;;  %v14836_v17 = vld [vmem:[#allocation88_spill] sm:$0xff] }
 0x214   :  { %4016 = vmatpush1.msra.mxu1 %v4015_v28  ;;  %3861 = vmatprep.mubr.f32.mxu0 %v14830_v26  ;;  %v7609_v27 = vmin.u32 %v6390_v46, %v11393_v19  ;;  %v6489_v2 = vadd.s32 536870912, %v6488_v31  ;;  %v4045_v28 = vand.u32 4294901760, %v4044_v45  ;;  %v4057_v32 = vand.u32 4294901760, %v4056_v11  ;;  %v14838_v20 = vld [vmem:[#allocation64_spill] sm:$0xff] }
 0x215   :  { %4022 = vmatprep.subr.mxu1 %v4021_v35  ;;  %3867 = vmatmul.mubr.f32.vlgmr.msra.gmra.mxu0 %v14832_v9  ;;  %v14834_v35 = vld [vmem:[#allocation61_spill] sm:$0xff]  ;;  %v4063_v12 = vand.u32 4294901760, %v4062_v22  ;;  %v273_v9 = vld [vmem:[#allocation5 + $0x668] sm:$0xff] }
 0x216   :  { %4028 = vmatpush1.msra.mxu1 %v4027_v41  ;;  %4110 = vmatpush1.msra.mxu0 %v14833_v62  ;;  %v6392_v55 = vclz %v7609_v27  ;;  %v11422_v29 = vshrl.u32 %v6489_v2, 30  ;;  %v14837_v41 = vld [vmem:[#allocation50_spill] sm:$0xff]  ;;  %v14839_v2 = vld [vmem:[#allocation55_spill] sm:$0xff] }
 0x217   :  { %4034 = vmatprep.subr.mxu1 %v4033_v49  ;;  %4113 = vmatprep.subr.mxu0 %v14834_v35 }
 0x218   :  { %4040 = vmatpush1.msra.mxu1 %v4039_v53  ;;  %4116 = vmatpush1.msra.mxu0 %v14835_v18  ;;  %v7610_v46 = vadd.s32 4294967294, %v6392_v55  ;;  %v6491_v45 = vshll.u32 %v11422_v29, 30  ;;  %v6380_v53 = vadd.s32 %v11275_v24, %v11272_v38  ;;  %v14841_v55 = vld [vmem:[#allocation90_spill] sm:$0xff]  ;;  %v14844_v38 = vld [vmem:[#allocation52_spill] sm:$0xff] }
 0x219   :  { %4046 = vmatprep.subr.mxu1 %v4045_v28  ;;  %4119 = vmatprep.subr.mxu0 %v14836_v17  ;;  %v14840_v28 = vld [vmem:[#allocation33_spill] sm:$0xff] }
 0x21a   :  { %4052 = vmatpush1.msra.mxu1 %v4051_v47  ;;  %4122 = vmatpush1.msra.mxu0 %v14837_v41  ;;  %vm7611_vm9 = vcmp.lt.s32.totalorder %v7610_v46, 0  ;;  %v11429_v11 = vsub.s32 %v6488_v31, %v6491_v45  ;;  %v274_v31 = vld [vmem:[#allocation5 + $0x670] sm:$0xff] }
 0x21b   :  { %4058 = vmatprep.subr.mxu1 %v4057_v32  ;;  %4125 = vmatprep.subr.mxu0 %v14838_v20  ;;  %v6395_v49 = vsel %vm7611_vm9, 0, %v7610_v46  ;;  %v14842_v32 = vld [vmem:[#allocation49_spill] sm:$0xff] }
 0x21c   :  { %4064 = vmatpush1.msra.mxu1 %v4063_v12  ;;  %4097 = vmatprep.mubr.f32.mxu1 %v14830_v26  ;;  %v6396_v22 = vsub.s32 32, %v6395_v49  ;;  %v6400_v27 = vsub.s32 4294967266, %v6395_v49  ;;  %v6494_v47 = vsub.s32 0, %v11429_v11  ;;  %v6397_v12 = vshll.u32 %v11393_v19, %v6395_v49 }
 0x21d   :  { %4128 = vmatpush1.msra.mxu0 %v14839_v2  ;;  %4099 = vmatmul.mubr.f32.vlgmr.msra.gmra.mxu1 %v14840_v28  ;;  %v11447_v19 = vand.u32 4294901760, %v274_v31  ;;  %v6484_v2 = vadd.s32 %v11346_v36, %v11360_v60  ;;  %v14876_v60 = vld [vmem:[#allocation59_spill] sm:$0xff] }
 0x21e   :  { %4131 = vmatprep.subr.mxu0 %v14841_v55  ;;  %4243 = vmatprep.subr.mxu1 %v14842_v32  ;;  %v6398_v46 = vshrl.u32 %v6380_v53, %v6396_v22  ;;  %v6401_v45 = vadd.s32 127, %v6400_v27  ;;  %v7613_v24 = vmin.u32 %v6494_v47, %v11429_v11  ;;  %v14847_v32 = vld [vmem:[#allocation92_spill] sm:$0xff]  ;;  %v14848_v55 = vld [vmem:[#allocation53_spill] sm:$0xff]  ;;  %v14852_v47 = vld [vmem:[#allocation95_spill] sm:$0xff]  ;;  %vm6326_vm11 = vcmp.lt.s32.totalorder %v14876_v60, 0 }
 0x21f   :  { %4134 = vmatpush1.msra.mxu0 %v14843_v57  ;;  %4245 = vmatpush1.msra.mxu1 %v14844_v38  ;;  %14849 = vst [vmem:[#allocation67_spill] sm:$0xff] %v11447_v19  ;;  %v14850_v53 = vld [vmem:[#allocation96_spill] sm:$0xff]  ;;  %v14858_v38 = vld [vmem:[#allocation15_spill] sm:$0xff]  ;;  %vm6416_vm15 = vweird.f32 %v14876_v60 }
 0x220   :  { %4137 = vmatprep.subr.mxu0 %v14845_v16  ;;  %4247 = vmatprep.subr.mxu1 %v14846_v48  ;;  %v6399_v56 = vor.u32 %v6398_v46, %v6397_v12  ;;  %v6402_v28 = vshll.u32 %v6401_v45, 23  ;;  %v6496_v49 = vclz %v7613_v24  ;;  %v14851_v22 = vld [vmem:[#allocation80_spill] sm:$0xff]  ;;  %v14853_v16 = vld [vmem:[#allocation83_spill] sm:$0xff]  ;;  %v11453_v48 = vand.u32 4294901760, %v273_v9  ;;  %v14856_v45 = vld [vmem:[#allocation73_spill] sm:$0xff] }
 0x221   :  { %4140 = vmatpush1.msra.mxu0 %v14847_v32  ;;  %4249 = vmatpush1.msra.mxu1 %v14848_v55  ;;  %v11455_v12 = vand.u32 4294901760, %v261_v43  ;;  %v14857_v55 = vld [vmem:[#allocation84_spill] sm:$0xff] }
 0x222   :  { %4143 = vmatprep.subr.mxu0 %v14850_v53  ;;  %4251 = vmatprep.subr.mxu1 %v14851_v22  ;;  %v6403_v27 = vor.u32 4788187, %v6402_v28  ;;  %14854 = vst [vmem:[#allocation21_spill] sm:$0xff] %v11453_v48  ;;  %v7614_v46 = vadd.s32 4294967294, %v6496_v49  ;;  %v6406_v24 = vcvt.s32.f32 %v6399_v56  ;;  %v14859_v53 = vld [vmem:[#allocation18_spill] sm:$0xff]  ;;  %v11462_v28 = vsub.f32 %v274_v31, %v11447_v19  ;;  %v14864_v49 = vld [vmem:[#allocation37_spill] sm:$0xff] }
 0x223   :  { %4146 = vmatpush1.msra.mxu0 %v14852_v47  ;;  %4253 = vmatpush1.msra.mxu1 %v14853_v16  ;;  %14855 = vst [vmem:[#allocation71_spill] sm:$0xff] %v11455_v12  ;;  %v14862_v16 = vld [vmem:[#allocation26_spill] sm:$0xff]  ;;  %v248_v56 = vld [vmem:[#allocation5 + $0x5a0] sm:$0xff]  ;;  %v11473_v31 = vsub.f32 %v273_v9, %v11453_v48  ;;  %v11476_v22 = vsub.f32 %v261_v43, %v11455_v12 }
 0x224   :  { %4149 = vmatprep.subr.mxu0 %v14856_v45  ;;  %4255 = vmatprep.subr.mxu1 %v14857_v55  ;;  %v6404_v32 = vand.u32 2147483647, %v6403_v27  ;;  %14860 = vst [vmem:[#allocation28_spill] sm:$0xff] %v11462_v28  ;;  %vm7615_vm10 = vcmp.lt.s32.totalorder %v7614_v46, 0  ;;  %v14865_v45 = vld [vmem:[#allocation16_spill] sm:$0xff]  ;;  %v260_v27 = vld [vmem:[#allocation5 + $0x600] sm:$0xff] }
 0x225   :  { %4152 = vmatpush1.msra.mxu0 %v14858_v38  ;;  %4257 = vmatpush1.msra.mxu1 %v14859_v53  ;;  %v6499_v38 = vsel %vm7615_vm10, 0, %v7614_v46  ;;  %v14867_v53 = vld [vmem:[#allocation19_spill] sm:$0xff]  ;;  %14868 = vst [vmem:[#allocation68_spill] sm:$0xff] %v11473_v31  ;;  %14869 = vst [vmem:[#allocation22_spill] sm:$0xff] %v11476_v22  ;;  %v11487_v9 = vand.u32 4294901760, %v260_v27  ;;  %v11489_v43 = vand.u32 4294901760, %v248_v56 }
 0x226   :  { %4155 = vmatprep.subr.mxu0 %v14864_v49  ;;  %4259 = vmatprep.subr.mxu1 %v14865_v45  ;;  %v6407_v55 = vmul.f32 %v6406_v24, %v6404_v32  ;;  %v6500_v19 = vsub.s32 32, %v6499_v38  ;;  %v6504_v49 = vsub.s32 4294967266, %v6499_v38  ;;  %v14870_v45 = vld [vmem:[#allocation30_spill] sm:$0xff]  ;;  %v14873_v24 = vld [vmem:[#allocation25_spill] sm:$0xff]  ;;  %v6501_v12 = vshll.u32 %v11429_v11, %v6499_v38  ;;  %v234_v11 = vld [vmem:[#allocation5 + $0x530] sm:$0xff] }
 0x227   :  { %4158 = vmatpush1.msra.mxu0 %v14866_v8  ;;  %4261 = vmatpush1.msra.mxu1 %v14867_v53  ;;  %v11481_v57 = vsub.s32 4, %v14870_v45  ;;  %v14872_v32 = vld [vmem:[#allocation82_spill] sm:$0xff]  ;;  %14874 = vst [vmem:[#allocation46_spill] sm:$0xff] %v11487_v9  ;;  %14875 = vst [vmem:[#allocation77_spill] sm:$0xff] %v11489_v43  ;;  %v11521_v38 = vsub.f32 %v260_v27, %v11487_v9  ;;  %v14891_v9 = vand.u32 4294901760, %v11473_v31  ;;  %v14916_v8 = vand.u32 4294901760, %v14833_v62 }
 0x228   :  { %4161 = vmatprep.subr.mxu0 %v14872_v32  ;;  %4263 = vmatprep.subr.mxu1 %v14781_v10  ;;  %v6408_v46 = vxor.u32 2147483648, %v6407_v55  ;;  %v6502_v48 = vshrl.u32 %v6484_v2, %v6500_v19  ;;  %v6505_v53 = vadd.s32 127, %v6504_v49  ;;  %v14877_v32 = vld [vmem:[#allocation57_spill] sm:$0xff]  ;;  %v247_v10 = vld [vmem:[#allocation5 + $0x598] sm:$0xff]  ;;  %v14881_v47 = vld [vmem:[#allocation74_spill] sm:$0xff]  ;;  %v14919_v62 = vand.u32 4294901760, %v14834_v35 }
 0x229   :  { %14871 = vst [vmem:[#allocation75_spill] sm:$0xff] %v11481_v57  ;;  %4164 = vmatpush1.msra.mxu0 %v14873_v24  ;;  %4265 = vmatpush1.msra.mxu1 %v14784_v1  ;;  %v235_v24 = vld [vmem:[#allocation5 + $0x538] sm:$0xff]  ;;  %v14878_v1 = vand.u32 2147483647, %v14876_v60  ;;  %v14884_v2 = vld [vmem:[#allocation78_spill] sm:$0xff]  ;;  %14885 = vst [vmem:[#allocation79_spill] sm:$0xff] %v11521_v38 }
 0x22a   :  { %4167 = vmatprep.subr.mxu0 %v14877_v32  ;;  %4267 = vmatprep.subr.mxu1 %v14787_v52  ;;  %v6409_v36 = vsel %vm6326_vm11, %v6408_v46, %v6407_v55  ;;  %v6506_v49 = vshll.u32 %v6505_v53, 23  ;;  %v11511_v52 = vld [vmem:[#allocation7] sm:$0xff]  ;;  %v14882_v46 = vld [vmem:[#allocation63_spill] sm:$0xff]  ;;  %v11525_v53 = vand.u32 4294901760, %v235_v24  ;;  %v11529_v55 = vand.u32 4294901760, %v234_v11  ;;  %v221_v27 = vld [vmem:[#allocation5 + $0x4c8] sm:$0xff] }
 0x22b   :  { %vm11498_vm12 = vcmp.le.f32.partialorder %v14878_v1, 0.7853982  ;;  %4170 = vmatpush1.msra.mxu0 %v14881_v47  ;;  %4269 = vmatpush1.msra.mxu1 %v14790_v4  ;;  %v6503_v1 = vor.u32 %v6502_v48, %v6501_v12  ;;  %v14883_v47 = vld [vmem:[#allocation99_spill] sm:$0xff]  ;;  %v11523_v48 = vand.u32 4294901760, %v247_v10  ;;  %v14889_v4 = vand.u32 4294901760, %v11462_v28 }
 0x22c   :  { %v6412_v19 = vsel %vm11498_vm12, %v14876_v60, %v6409_v36  ;;  %4173 = vmatprep.subr.mxu0 %v14882_v46  ;;  %4271 = vmatprep.subr.mxu1 %v14883_v47  ;;  %14887 = vst [vmem:[#allocation87_spill] sm:$0xff] %v11525_v53  ;;  %v222_v12 = vld [vmem:[#allocation5 + $0x4d0] sm:$0xff]  ;;  %v6507_v36 = vor.u32 4788187, %v6506_v49  ;;  %14888 = vst [vmem:[#allocation81_spill] sm:$0xff] %v11529_v55  ;;  %v11541_v49 = vsub.f32 %v11473_v31, %v14891_v9  ;;  %v209_v9 = vld [vmem:[#allocation5 + $0x468] sm:$0xff] }
 0x22d   :  { %4176 = vmatpush1.msra.mxu0 %v14884_v2  ;;  %4273 = vmatpush1.msra.mxu1 %v14796_v7  ;;  %14886 = vst [vmem:[#allocation32_spill] sm:$0xff] %v11523_v48  ;;  %8040 = vcosq.f32 %v6412_v19  ;;  %v11534_v7 = vsub.f32 %v11462_v28, %v14889_v4  ;;  %v208_v2 = vld [vmem:[#allocation5 + $0x460] sm:$0xff]  ;;  %v11549_v4 = vsub.f32 %v248_v56, %v11489_v43  ;;  %v14897_v31 = vsub.s32 5, %v14870_v45 }
 0x22e   :  { %4179 = vmatprep.subr.mxu0 %v11166_v33  ;;  %4275 = vmatprep.subr.mxu1 %v14799_v58  ;;  %8042 = vsinq.f32 %v6412_v19  ;;  %14892 = vst [vmem:[#allocation89_spill] sm:$0xff] %v11541_v49  ;;  %v14893_v58 = vand.u32 4294901760, %v11476_v22  ;;  %v6410_v19 = vsub.s32 4, %v11356_v63  ;;  %v6508_v28 = vand.u32 2147483647, %v6507_v36  ;;  %v14905_v49 = vld [vmem:[#allocation62_spill] sm:$0xff] }
 0x22f   :  { %14890 = vst [vmem:[#allocation29_spill] sm:$0xff] %v11534_v7  ;;  %4182 = vmatpush1.msra.mxu0 %v11079_v14  ;;  %4277 = vmatpush1.msra.mxu1 %v14802_v6  ;;  %14895 = vst [vmem:[#allocation31_spill] sm:$0xff] %v11549_v4  ;;  %v6510_v14 = vcvt.s32.f32 %v6503_v1  ;;  %v11554_v6 = vand.u32 4294901760, %v222_v12  ;;  %v11564_v56 = vsub.f32 %v247_v10, %v11523_v48  ;;  %v11566_v1 = vand.u32 4294901760, %v221_v27  ;;  %v195_v7 = vld [vmem:[#allocation5 + $0x3f8] sm:$0xff] }
 0x230   :  { %v11546_v33 = vsub.f32 %v11476_v22, %v14893_v58  ;;  %4185 = vmatprep.subr.mxu0 %v11173_v21  ;;  %4279 = vmatprep.subr.mxu1 %v10903_v40  ;;  %v11559_v58 = vrot.slane %v11511_v52, %v14897_v31  ;;  %v11572_v45 = vsub.f32 %v234_v11, %v11529_v55  ;;  %v11575_v43 = vand.u32 4294901760, %v208_v2 }
 0x231   :  { %14896 = vst [vmem:[#allocation56_spill] sm:$0xff] %v11554_v6  ;;  %4188 = vmatpush1.msra.mxu0 %v11125_v54  ;;  %4281 = vmatpush1.msra.mxu1 %v14808_v50  ;;  %14898 = vst [vmem:[#allocation43_spill] sm:$0xff] %v11564_v56  ;;  %v6511_v22 = vmul.f32 %v6510_v14, %v6508_v28  ;;  %v11580_v48 = vand.u32 4294901760, %v209_v9  ;;  %v11584_v28 = vsub.f32 %v235_v24, %v11525_v53  ;;  %v14968_v53 = vld [vmem:[#allocation92_spill] sm:$0xff] }
 0x232   :  { %14894 = vst [vmem:[#allocation54_spill] sm:$0xff] %v11546_v33  ;;  %14899 = vst [vmem:[#allocation47_spill] sm:$0xff] %v11566_v1  ;;  %4191 = vmatprep.subr.mxu0 %v11210_v44  ;;  %4283 = vmatprep.subr.mxu1 %v10952_v42  ;;  %v6411_v11 = vsel %vm6326_vm11, %v6410_v19, %v11356_v63  ;;  %v11593_v10 = vsub.f32 %v222_v12, %v11554_v6  ;;  %vm6430_vm13 = vcmp.lt.s32.totalorder %v14905_v49, 0  ;;  %v14912_v6 = vld [vmem:[#allocation34_spill] sm:$0xff]  ;;  %v2158_v12 = vpop.f32.mrf.mxu0 }
 0x233   :  { %14900 = vst [vmem:[#allocation93_spill] sm:$0xff] %v11572_v45  ;;  %14901 = vst [vmem:[#allocation94_spill] sm:$0xff] %v11575_v43  ;;  %4194 = vmatpush1.msra.mxu0 %v11156_v39  ;;  %4285 = vmatpush1.msra.mxu1 %v14813_v15  ;;  %v6512_v31 = vxor.u32 2147483648, %v6511_v22  ;;  %v6514_v24 = vsub.s32 4, %v11422_v29  ;;  %v11600_v63 = vsub.f32 %v221_v27, %v11566_v1  ;;  %v14907_v19 = vand.u32 4294901760, %v11521_v38  ;;  %v11640_v1 = vld [vmem:[#allocation5 + $0x398] sm:$0xff] }
 0x234   :  { %14902 = vst [vmem:[#allocation100_spill] sm:$0xff] %v11580_v48  ;;  %14903 = vst [vmem:[#allocation98_spill] sm:$0xff] %v11584_v28  ;;  %4197 = vmatprep.subr.mxu0 %v11213_v0  ;;  %4287 = vmatprep.subr.mxu1 %v10973_v13  ;;  %v14909_v36 = vand.u32 2147483647, %v14905_v49  ;;  %v11618_v27 = vsub.f32 %v208_v2, %v11575_v43  ;;  %vm6520_vm4 = vweird.f32 %v14905_v49 }
 0x235   :  { %14904 = vst [vmem:[#allocation103_spill] sm:$0xff] %v11593_v10  ;;  %4200 = vmatpush1.msra.mxu0 %v11182_v59  ;;  %4233 = vmatprep.mubr.f32.mxu0 %v14830_v26  ;;  %14906 = vst [vmem:[#allocation70_spill] sm:$0xff] %v11600_v63  ;;  %v11605_v14 = vsub.f32 %v11521_v38, %v14907_v19  ;;  %v6513_v33 = vsel %vm6430_vm13, %v6512_v31, %v6511_v22  ;;  %v6413_v19 = vsel %vm11498_vm12, 0, %v6411_v11  ;;  %v196_v31 = vld [vmem:[#allocation5 + $0x400] sm:$0xff] }
 0x236   :  { %vm11609_vm14 = vcmp.le.f32.partialorder %v14909_v36, 0.7853982  ;;  %4289 = vmatpush1.msra.mxu1 %v10979_v51  ;;  %4236 = vmatmul.mubr.f32.vlgmr.msra.gmra.mxu0 %v14912_v6  ;;  %14913 = vst [vmem:[#allocation72_spill] sm:$0xff] %v11618_v27  ;;  %v14914_v22 = vand.u32 4294901760, %v14831_v37  ;;  %v11629_v38 = vand.u32 4294901760, %v195_v7  ;;  %v182_v6 = vld [vmem:[#allocation5 + $0x390] sm:$0xff]  ;;  %v6515_v2 = vsel %vm6430_vm13, %v6514_v24, %v11422_v29 }
 0x237   :  { %14908 = vst [vmem:[#allocation36_spill] sm:$0xff] %v11605_v14  ;;  %v6516_v36 = vsel %vm11609_vm14, %v14905_v49, %v6513_v33  ;;  %4291 = vmatprep.subr.mxu1 %v11053_v25  ;;  %v14917_v11 = vand.u32 4294901760, %v11549_v4  ;;  %v6417_v43 = vadd.s32 3, %v6413_v19  ;;  %v11657_v37 = vand.u32 4294901760, %v196_v31  ;;  %v11693_v19 = vld [vmem:[#allocation5 + $0x330] sm:$0xff]  ;;  %v14940_v14 = vld [vmem:[#allocation20_spill] sm:$0xff]  ;;  %4338 = vmatprep.mubr.f32.mxu1 %v14830_v26 }
 0x238   :  { %4351 = vmatprep.subr.mxu0 %v14914_v22  ;;  %14915 = vst [vmem:[#allocation17_spill] sm:$0xff] %v11629_v38  ;;  %8044 = vcosq.f32 %v6516_v36  ;;  %4293 = vmatpush1.msra.mxu1 %v11039_v23  ;;  %v14921_v22 = vand.u32 4294901760, %v14835_v18  ;;  %v14923_v29 = vand.u32 4294901760, %v11564_v56  ;;  %v11664_v35 = vand.u32 4294901760, %v182_v6 }
 0x239   :  { %4355 = vmatpush1.msra.mxu0 %v14916_v8  ;;  %v11638_v33 = vsub.f32 %v11549_v4, %v14917_v11  ;;  %8046 = vsinq.f32 %v6516_v36  ;;  %4295 = vmatprep.subr.mxu1 %v11088_v5  ;;  %v169_v8 = vld [vmem:[#allocation5 + $0x328] sm:$0xff]  ;;  %v11652_v4 = vsub.f32 %v209_v9, %v11580_v48  ;;  %14922 = vst [vmem:[#allocation48_spill] sm:$0xff] %v11657_v37  ;;  %v14926_v9 = vand.u32 4294901760, %v14836_v17  ;;  %v14945_v48 = vld [vmem:[#allocation35_spill] sm:$0xff] }
 0x23a   :  { %4359 = vmatprep.subr.mxu0 %v14919_v62  ;;  %4297 = vmatpush1.msra.mxu1 %v11081_v3  ;;  %v11662_v24 = vsub.f32 %v11564_v56, %v14923_v29  ;;  %14925 = vst [vmem:[#allocation51_spill] sm:$0xff] %v11664_v35  ;;  %v11666_v36 = vpop.eup %8040  ;;  %v11673_v18 = vsub.f32 %v195_v7, %v11629_v38  ;;  %v14929_v62 = vand.u32 4294901760, %v11584_v28  ;;  %v6517_v56 = vsel %vm11609_vm14, 0, %v6515_v2  ;;  %v156_v2 = vld [vmem:[#allocation5 + $0x2c0] sm:$0xff] }
 0x23b   :  { %14918 = vst [vmem:[#allocation76_spill] sm:$0xff] %v11638_v33  ;;  %14920 = vst [vmem:[#allocation45_spill] sm:$0xff] %v11652_v4  ;;  %4363 = vmatpush1.msra.mxu0 %v14921_v22  ;;  %4299 = vmatprep.subr.mxu1 %v11128_v61  ;;  %v11676_v22 = vand.u32 4294901760, %v11640_v1  ;;  %v8043_v11 = vpop.eup %8042  ;;  %v14931_v17 = vand.u32 4294901760, %v14837_v41  ;;  %v14932_v7 = vand.u32 4294901760, %v11572_v45  ;;  %v14934_v38 = vand.u32 4294901760, %v11593_v10 }
 0x23c   :  { %14924 = vst [vmem:[#allocation61_spill] sm:$0xff] %v11662_v24  ;;  %4367 = vmatprep.subr.mxu0 %v14926_v9  ;;  %14927 = vst [vmem:[#allocation88_spill] sm:$0xff] %v11673_v18  ;;  %v11681_v29 = vsub.f32 %v11584_v28, %v14929_v62  ;;  %4301 = vmatpush1.msra.mxu1 %v11115_v30  ;;  %v11700_v28 = vand.u32 4294901760, %v169_v8  ;;  %v14937_v41 = vand.u32 4294901760, %v14838_v20  ;;  %v11729_v55 = vand.u32 4294901760, %v11693_v19  ;;  %v2160_v24 = vpop.f32.mrf.mxu0  ;;  %v14970_v30 = vld [vmem:[#allocation53_spill] sm:$0xff] }
 0x23d   :  { %14928 = vst [vmem:[#allocation50_spill] sm:$0xff] %v11676_v22  ;;  %4371 = vmatpush1.msra.mxu0 %v14931_v17  ;;  %v11691_v9 = vsub.f32 %v11572_v45, %v14932_v7  ;;  %v11698_v62 = vsub.f32 %v11593_v10, %v14934_v38  ;;  %4303 = vmatprep.subr.mxu1 %v14828_v34  ;;  %v14938_v17 = vand.u32 4294901760, %v11600_v63  ;;  %v11713_v10 = vand.u32 3, %v6417_v43  ;;  %v14943_v38 = vld [vmem:[#allocation55_spill] sm:$0xff] }
 0x23e   :  { %14930 = vst [vmem:[#allocation64_spill] sm:$0xff] %v11681_v29  ;;  %14936 = vst [vmem:[#allocation63_spill] sm:$0xff] %v11700_v28  ;;  %4375 = vmatprep.subr.mxu0 %v14937_v41  ;;  %4305 = vmatpush1.msra.mxu1 %v14940_v14  ;;  %v11719_v41 = vsub.f32 %v182_v6, %v11664_v35  ;;  %v11722_v33 = vsub.f32 %v196_v31, %v11657_v37  ;;  %v6424_v45 = vxor.u32 2147483648, %v11666_v36  ;;  %v14946_v6 = vld [vmem:[#allocation90_spill] sm:$0xff]  ;;  %v14948_v35 = vld [vmem:[#allocation49_spill] sm:$0xff]  ;;  %v2390_v31 = vpop.f32.mrf.mxu1 }
 0x23f   :  { %14933 = vst [vmem:[#allocation59_spill] sm:$0xff] %v11691_v9  ;;  %14935 = vst [vmem:[#allocation57_spill] sm:$0xff] %v11698_v62  ;;  %v11709_v7 = vsub.f32 %v11600_v63, %v14938_v17  ;;  %v6421_v17 = vxor.u32 2147483648, %v8043_v11  ;;  %v6521_v63 = vadd.s32 3, %v6517_v56  ;;  %v14944_v43 = vand.u32 4294901760, %v14943_v38  ;;  %4342 = vmatmul.mubr.f32.vlgmr.msra.gmra.mxu1 %v14945_v48  ;;  %4517 = vmatprep.subr.mxu1 %v14948_v35  ;;  %v14958_v56 = vld [vmem:[#allocation65_spill] sm:$0xff] }
 0x240   :  { %14941 = vst [vmem:[#allocation62_spill] sm:$0xff] %v11719_v41  ;;  %14942 = vst [vmem:[#allocation104_spill] sm:$0xff] %v11722_v33  ;;  %v14947_v20 = vand.u32 4294901760, %v14946_v6  ;;  %v11739_v38 = vsub.f32 %v169_v8, %v11700_v28  ;;  %v14959_v62 = vand.u32 4294901760, %v14958_v56  ;;  %v14960_v8 = vld [vmem:[#allocation52_spill] sm:$0xff]  ;;  %v14961_v28 = vand.u32 4294901760, %v11652_v4  ;;  %4508 = vmatprep.mubr.f32.mxu0 %v14830_v26  ;;  %4612 = vmatprep.mubr.f32.mxu1 %v14830_v26 }
 0x241   :  { %14939 = vst [vmem:[#allocation99_spill] sm:$0xff] %v11709_v7  ;;  %4379 = vmatpush1.msra.mxu0 %v14944_v43  ;;  %v14950_v43 = vld [vmem:[#allocation27_spill] sm:$0xff]  ;;  %4519 = vmatpush1.msra.mxu1 %v14960_v8  ;;  %v11773_v56 = vld [vmem:[#allocation5 + $0x260] sm:$0xff]  ;;  %vm6420_vm2 = vcmp.eq.s32.totalorder %v11713_v10, 0  ;;  %vm6423_vm3 = vcmp.eq.s32.totalorder %v11713_v10, 2  ;;  %v6522_v14 = vand.u32 3, %v6521_v63 }
 0x242   :  { %4383 = vmatprep.subr.mxu0 %v14947_v20  ;;  %14949 = vst [vmem:[#allocation55_spill] sm:$0xff] %v11739_v38  ;;  %v14951_v48 = vrot.slane %v14862_v16, %v14950_v43  ;;  %v14954_v20 = vld [vmem:[#allocation41_spill] sm:$0xff]  ;;  %v11764_v9 = vsub.f32 %v11652_v4, %v14961_v28  ;;  %v14964_v28 = vrot.slane %v11511_v52, %v11481_v57  ;;  %v14965_v43 = vld [vmem:[#allocation91_spill] sm:$0xff]  ;;  %v14969_v34 = vand.u32 4294901760, %v14968_v53  ;;  %v15061_v26 = vld [vmem:[#allocation56_spill] sm:$0xff] }
 0x243   :  { %v14955_v6 = vrot.slane %v14862_v16, %v14954_v20  ;;  %4387 = vmatpush1.msra.mxu0 %v14959_v62  ;;  %v14962_v20 = vand.u32 4294901760, %v11618_v27  ;;  %v143_v62 = vld [vmem:[#allocation5 + $0x258] sm:$0xff]  ;;  %v14966_v4 = vand.u32 4294901760, %v14965_v43  ;;  %v14967_v7 = vld [vmem:[#allocation39_spill] sm:$0xff]  ;;  %v6425_v29 = vsel %vm6423_vm3, %v6424_v45, %v8043_v11  ;;  %v14979_v57 = vld [vmem:[#allocation73_spill] sm:$0xff] }
 0x244   :  { %vm11744_vm0 = vcmp.eq.s32.totalorder %v14951_v48, 1  ;;  %v11759_v48 = vld [vmem:[#allocation5 + $0x2c8] sm:$0xff]  ;;  %v2159_v8 = vadd.f32 %v2158_v12, %v14964_v28  ;;  %4521 = vmatprep.subr.mxu1 %v14967_v7  ;;  %v11791_v52 = vsub.f32 %v11640_v1, %v11676_v22  ;;  %v2161_v12 = vadd.f32 %v2160_v24, %v11559_v58  ;;  %v14972_v43 = vld [vmem:[#allocation96_spill] sm:$0xff]  ;;  %v2392_v1 = vpop.f32.mrf.mxu1  ;;  %v14975_v63 = vld [vmem:[#allocation95_spill] sm:$0xff] }
 0x245   :  { %vm11751_vm1 = vcmp.eq.s32.totalorder %v14955_v6, 1  ;;  %v11766_v6 = vand.u32 4294901760, %v156_v2  ;;  %v11771_v16 = vsub.f32 %v11618_v27, %v14962_v20  ;;  %4391 = vmatprep.subr.mxu0 %v14966_v4  ;;  %v6422_v27 = vsel %vm6420_vm2, %v11666_v36, %v6421_v17  ;;  %4523 = vmatpush1.msra.mxu1 %v14970_v30  ;;  %v2527_v4 = vpop.f32.mrf.mxu0  ;;  %v14974_v28 = vld [vmem:[#allocation80_spill] sm:$0xff]  ;;  %v8045_v30 = vpop.eup %8044  ;;  %v14977_v11 = vld [vmem:[#allocation83_spill] sm:$0xff] }
 0x246   :  { %4395 = vmatpush1.msra.mxu0 %v14969_v34  ;;  %14971 = vst [vmem:[#allocation49_spill] sm:$0xff] %v11791_v52  ;;  %v14973_v7 = vand.u32 4294901760, %v14972_v43  ;;  %4525 = vmatprep.subr.mxu1 %v14974_v28  ;;  %v11798_v45 = vand.u32 4294901760, %v11759_v48  ;;  %v11801_v53 = vand.u32 4294901760, %v11773_v56  ;;  %v11803_v34 = vand.u32 4294901760, %v143_v62  ;;  %v8047_v43 = vpop.eup %8046  ;;  %v11884_v35 = vld [vmem:[#allocation5 + $0x190] sm:$0xff] }
 0x247   :  { %14963 = vst [vmem:[#allocation90_spill] sm:$0xff] %v11771_v16  ;;  %vm6419_vm5 = vcmp.lt.s32.totalorder %v11713_v10, 2  ;;  %v14976_v58 = vand.u32 4294901760, %v14975_v63  ;;  %4527 = vmatpush1.msra.mxu1 %v14977_v11  ;;  %v11811_v36 = vsub.f32 %v156_v2, %v11766_v6  ;;  %v6528_v28 = vxor.u32 2147483648, %v8045_v30  ;;  %v14981_v10 = vld [vmem:[#allocation84_spill] sm:$0xff]  ;;  %v14982_v11 = vld [vmem:[#allocation15_spill] sm:$0xff] }
 0x248   :  { %4399 = vmatprep.subr.mxu0 %v14973_v7  ;;  %v6426_v7 = vsel %vm6419_vm5, %v6422_v27, %v6425_v29  ;;  %v2391_v20 = vadd.f32 %v2390_v31, %v2159_v8  ;;  %v14980_v22 = vand.u32 4294901760, %v14979_v57  ;;  %4529 = vmatprep.subr.mxu1 %v14981_v10  ;;  %vm6527_vm6 = vcmp.eq.s32.totalorder %v6522_v14, 2  ;;  %v14984_v2 = vld [vmem:[#allocation18_spill] sm:$0xff]  ;;  %v2529_v31 = vpop.f32.mrf.mxu0  ;;  %v2633_v8 = vpop.f32.mrf.mxu1  ;;  %v14986_v10 = vld [vmem:[#allocation37_spill] sm:$0xff]  ;;  %v14988_v16 = vld [vmem:[#allocation16_spill] sm:$0xff] }
 0x249   :  { %4403 = vmatpush1.msra.mxu0 %v14976_v58  ;;  %14978 = vst [vmem:[#allocation65_spill] sm:$0xff] %v11811_v36  ;;  %v6525_v58 = vxor.u32 2147483648, %v8047_v43  ;;  %v14983_v24 = vand.u32 4294901760, %v14982_v11  ;;  %4531 = vmatpush1.msra.mxu1 %v14984_v2  ;;  %v14985_v17 = vand.u32 4294901760, %v11722_v33  ;;  %vm6524_vm7 = vcmp.eq.s32.totalorder %v6522_v14, 0  ;;  %v130_v11 = vld [vmem:[#allocation5 + $0x1f0] sm:$0xff] }
 0x24a   :  { %4407 = vmatprep.subr.mxu0 %v14980_v22  ;;  %v6529_v57 = vsel %vm6527_vm6, %v6528_v28, %v8047_v43  ;;  %v2393_v22 = vadd.f32 %v2392_v1, %v2161_v12  ;;  %v14987_v63 = vand.u32 4294901760, %v14986_v10  ;;  %4533 = vmatprep.subr.mxu1 %v14988_v16  ;;  %vm6523_vm8 = vcmp.lt.s32.totalorder %v6522_v14, 2  ;;  %v14990_v29 = vld [vmem:[#allocation24_spill] sm:$0xff]  ;;  %v14992_v12 = vld [vmem:[#allocation19_spill] sm:$0xff]  ;;  %v14994_v28 = vld [vmem:[#allocation82_spill] sm:$0xff]  ;;  %v2801_v14 = vpop.f32.mrf.mxu0 }
 0x24b   :  { %4411 = vmatpush1.msra.mxu0 %v14983_v24  ;;  %v11824_v27 = vsub.f32 %v11722_v33, %v14985_v17  ;;  %v11831_v24 = vsub.f32 %v143_v62, %v11803_v34  ;;  %v6427_v17 = vsel %vm6416_vm15, nan, %v6426_v7  ;;  %v6526_v2 = vsel %vm6524_vm7, %v8045_v30, %v6525_v58  ;;  %4535 = vmatpush1.msra.mxu1 %v14992_v12  ;;  %v11838_v1 = vld [vmem:[#allocation5 + $0x1f8] sm:$0xff]  ;;  %v14996_v10 = vld [vmem:[#allocation69_spill] sm:$0xff]  ;;  %v15006_v7 = vld [vmem:[#allocation74_spill] sm:$0xff] }
 0x24c   :  { %4415 = vmatprep.subr.mxu0 %v14987_v63  ;;  %v14991_v33 = vand.u32 4294901760, %v14990_v29  ;;  %v11842_v43 = vsub.f32 %v11693_v19, %v11729_v55  ;;  %v6530_v16 = vsel %vm6523_vm8, %v6526_v2, %v6529_v57  ;;  %v2528_v62 = vadd.f32 %v2527_v4, %v2391_v20  ;;  %4537 = vmatprep.subr.mxu1 %v14996_v10  ;;  %v14998_v19 = vld [vmem:[#allocation25_spill] sm:$0xff]  ;;  %v15000_v20 = vld [vmem:[#allocation44_spill] sm:$0xff]  ;;  %v2635_v10 = vpop.f32.mrf.mxu1 }
 0x24d   :  { %14989 = vst [vmem:[#allocation52_spill] sm:$0xff] %v11831_v24  ;;  %v14995_v63 = vand.u32 4294901760, %v14994_v28  ;;  %v14997_v30 = vand.u32 4294901760, %v11673_v18  ;;  %v6531_v58 = vsel %vm6520_vm4, nan, %v6530_v16  ;;  %v14999_v29 = vand.u32 4294901760, %v14998_v19  ;;  %4539 = vmatpush1.msra.mxu1 %v15000_v20  ;;  %v15005_v19 = vld [vmem:[#allocation42_spill] sm:$0xff] }
 0x24e   :  { %4419 = vmatpush1.msra.mxu0 %v14991_v33  ;;  %14993 = vst [vmem:[#allocation91_spill] sm:$0xff] %v11842_v43  ;;  %v15001_v4 = vand.u32 4294901760, %v11791_v52  ;;  %v11863_v2 = vand.u32 4294901760, %v130_v11  ;;  %v11867_v12 = vsub.f32 %v11759_v48, %v11798_v45  ;;  %v7541_v16 = vsel %vm11744_vm0, %v14876_v60, %v6427_v17  ;;  %4541 = vmatprep.subr.mxu1 %v15005_v19  ;;  %v117_v48 = vld [vmem:[#allocation5 + $0x188] sm:$0xff]  ;;  %v15008_v60 = vld [vmem:[#allocation23_spill] sm:$0xff]  ;;  %v15016_v19 = vld [vmem:[#allocation40_spill] sm:$0xff] }
 0x24f   :  { %4423 = vmatprep.subr.mxu0 %v14995_v63  ;;  %v11850_v33 = vsub.f32 %v11673_v18, %v14997_v30  ;;  %v7542_v28 = vsel %vm11751_vm1, %v14905_v49, %v6531_v58  ;;  %v2634_v63 = vadd.f32 %v2633_v8, %v2528_v62  ;;  %v15004_v30 = vand.u32 4294901760, %v14877_v32  ;;  %4543 = vmatpush1.msra.mxu1 %v15008_v60  ;;  %v15018_v60 = vld [vmem:[#allocation102_spill] sm:$0xff] }
 0x250   :  { %4427 = vmatpush1.msra.mxu0 %v14999_v29  ;;  %v11861_v57 = vsub.f32 %v11791_v52, %v15001_v4  ;;  %15002 = vst [vmem:[#allocation39_spill] sm:$0xff] %v11863_v2  ;;  %15003 = vst [vmem:[#allocation92_spill] sm:$0xff] %v11867_v12  ;;  %v11879_v29 = vand.u32 4294901760, %v11838_v1  ;;  %v7565_v20 = vcombine.low %v7541_v16, %v7542_v28  ;;  %v15007_v37 = vand.u32 4294901760, %v15006_v7 }
 0x251   :  { %4431 = vmatprep.subr.mxu0 %v15004_v30  ;;  %v2530_v4 = vadd.f32 %v2529_v31, %v2393_v22  ;;  %v13964_v49 = vand.u32 4294901760, %v11842_v43  ;;  %v11889_v32 = vsub.f32 %v11773_v56, %v11801_v53  ;;  %v15010_v8 = vand.u32 4294901760, %v14882_v46  ;;  %4545 = vmatprep.subr.mxu1 %v14883_v47  ;;  %v2803_v22 = vpop.f32.mrf.mxu0  ;;  %v15012_v56 = vld [vmem:[#allocation78_spill] sm:$0xff]  ;;  %v15014_v46 = vld [vmem:[#allocation97_spill] sm:$0xff]  ;;  %v2905_v30 = vpop.f32.mrf.mxu1 }
 0x252   :  { %4435 = vmatpush1.msra.mxu0 %v15007_v37  ;;  %v2802_v17 = vadd.f32 %v2801_v14, %v2634_v63  ;;  %v15011_v62 = vand.u32 4294901760, %v11719_v41  ;;  %v13965_v58 = vand.u32 4294901760, %v11739_v38  ;;  %7577 = vst [vmem:[#allocation10 + $0x8] sm:$0xff] %v7565_v20  ;;  %v15013_v28 = vand.u32 4294901760, %v15012_v56  ;;  %4547 = vmatpush1.msra.mxu1 %v15014_v46  ;;  %v15021_v56 = vld [vmem:[#allocation85_spill] sm:$0xff] }
 0x253   :  { %15009 = vst [vmem:[#allocation53_spill] sm:$0xff] %v11889_v32  ;;  %4439 = vmatprep.subr.mxu0 %v15010_v8  ;;  %v2636_v16 = vadd.f32 %v2635_v10, %v2530_v4  ;;  %v11906_v14 = vsub.f32 %v130_v11, %v11863_v2  ;;  %v11908_v63 = vand.u32 4294901760, %v117_v48  ;;  %v15017_v37 = vand.u32 4294901760, %v15016_v19  ;;  %4549 = vmatprep.subr.mxu1 %v15018_v60  ;;  %v11918_v4 = vld [vmem:[#allocation5 + $0x128] sm:$0xff]  ;;  %v15023_v46 = vld [vmem:[#allocation101_spill] sm:$0xff] }
 0x254   :  { %v11898_v7 = vsub.f32 %v11719_v41, %v15011_v62  ;;  %4443 = vmatpush1.msra.mxu0 %v15013_v28  ;;  %v11913_v20 = vadd.f32 %v2905_v30, %v2802_v17  ;;  %v11916_v10 = vand.u32 4294901760, %v11884_v35  ;;  %v13967_v8 = vand.u32 4294901760, %v11867_v12  ;;  %v104_v62 = vld [vmem:[#allocation5 + $0x120] sm:$0xff]  ;;  %4551 = vmatpush1.msra.mxu1 %v15023_v46  ;;  %v91_v46 = vld [vmem:[#allocation5 + $0xb8] sm:$0xff] }
 0x255   :  { %15015 = vst [vmem:[#allocation96_spill] sm:$0xff] %v11908_v63  ;;  %4447 = vmatprep.subr.mxu0 %v15017_v37  ;;  %v13966_v11 = vand.u32 4294901760, %v11811_v36  ;;  %v15022_v28 = vand.u32 4294901760, %v15021_v56  ;;  %v2804_v19 = vadd.f32 %v2803_v22, %v2636_v16  ;;  %v2907_v37 = vpop.f32.mrf.mxu1  ;;  %v11929_v30 = vsub.f32 %v11842_v43, %v13964_v49  ;;  %4553 = vmatprep.subr.mxu1 %v10903_v40 }
 0x256   :  { %15019 = vst [vmem:[#allocation80_spill] sm:$0xff] %v11913_v20  ;;  %15020 = vst [vmem:[#allocation95_spill] sm:$0xff] %v11916_v10  ;;  %v13968_v60 = vand.u32 4294901760, %v11889_v32  ;;  %v15024_v47 = vand.u32 4294901760, %v11173_v21  ;;  %v13969_v56 = vand.u32 2147483647, %v11913_v20  ;;  %v11941_v16 = vsub.f32 %v11739_v38, %v13965_v58  ;;  %4555 = vmatpush1.msra.mxu1 %v14808_v50 }
 0x257   :  { %4451 = vmatpush1.msra.mxu0 %v15022_v28  ;;  %v6535_v28 = vand.u32 2139095040, %v11913_v20  ;;  %v15025_v49 = vand.u32 4294901760, %v11125_v54  ;;  %v11946_v21 = vadd.f32 %v2907_v37, %v2804_v19  ;;  %v11949_v40 = vsub.f32 %v117_v48, %v11908_v63  ;;  %4557 = vmatprep.subr.mxu1 %v10952_v42  ;;  %v92_v48 = vld [vmem:[#allocation5 + $0xc0] sm:$0xff] }
 0x258   :  { %4455 = vmatprep.subr.mxu0 %v15024_v47  ;;  %v11952_v47 = vand.u32 4294901760, %v11918_v4  ;;  %v11954_v22 = vand.u32 4294901760, %v104_v62  ;;  %v15029_v17 = vand.u32 4294901760, %v11210_v44  ;;  %v11962_v54 = vsub.f32 %v11867_v12, %v13967_v8  ;;  %v78_v44 = vld [vmem:[#allocation5 + $0x50] sm:$0xff]  ;;  %4559 = vmatpush1.msra.mxu1 %v14813_v15  ;;  %v79_v8 = vld [vmem:[#allocation5 + $0x58] sm:$0xff] }
 0x259   :  { %4459 = vmatpush1.msra.mxu0 %v15025_v49  ;;  %15026 = vst [vmem:[#allocation83_spill] sm:$0xff] %v11946_v21  ;;  %v6536_v58 = vshrl.u32 %v6535_v28, 23  ;;  %v11967_v50 = vsub.f32 %v11811_v36, %v13966_v11  ;;  %v11971_v49 = vsub.f32 %v11838_v1, %v11879_v29  ;;  %v15031_v19 = vand.u32 4294901760, %v11156_v39  ;;  %4561 = vmatprep.subr.mxu1 %v10973_v13 }
 0x25a   :  { %15027 = vst [vmem:[#allocation73_spill] sm:$0xff] %v11952_v47  ;;  %15028 = vst [vmem:[#allocation84_spill] sm:$0xff] %v11954_v22  ;;  %4463 = vmatprep.subr.mxu0 %v15029_v17  ;;  %v6639_v42 = vand.u32 2139095040, %v11946_v21  ;;  %v11981_v17 = vsub.f32 %v11889_v32, %v13968_v60  ;;  %v11983_v28 = vand.u32 4294901760, %v91_v46  ;;  %v15034_v1 = vand.u32 4294901760, %v11213_v0  ;;  %4563 = vmatpush1.msra.mxu1 %v10979_v51 }
 0x25b   :  { %15030 = vst [vmem:[#allocation15_spill] sm:$0xff] %v11971_v49  ;;  %4467 = vmatpush1.msra.mxu0 %v15031_v19  ;;  %v7616_v39 = vadd.s32 4294967169, %v6536_v58  ;;  %v6539_v15 = vand.u32 8388607, %v13969_v56  ;;  %v15035_v37 = vand.u32 4294901760, %v11182_v59  ;;  %v11996_v0 = vsub.f32 %v104_v62, %v11954_v22  ;;  %v15038_v58 = vld [vmem:[#allocation33_spill] sm:$0xff]  ;;  %4565 = vmatprep.subr.mxu1 %v11053_v25 }
 0x25c   :  { %15032 = vst [vmem:[#allocation18_spill] sm:$0xff] %v11981_v17  ;;  %15033 = vst [vmem:[#allocation37_spill] sm:$0xff] %v11983_v28  ;;  %4471 = vmatprep.subr.mxu0 %v15034_v1  ;;  %v6640_v60 = vshrl.u32 %v6639_v42, 23  ;;  %v11998_v1 = vand.u32 4294901760, %v92_v48  ;;  %v12000_v13 = vand.u32 4294901760, %v78_v44  ;;  %v15039_v42 = vld [vmem:[#allocation67_spill] sm:$0xff]  ;;  %v12011_v11 = vsub.f32 %v91_v46, %v11983_v28  ;;  %4567 = vmatpush1.msra.mxu1 %v11039_v23 }
 0x25d   :  { %4475 = vmatpush1.msra.mxu0 %v15035_v37  ;;  %v6542_v56 = vadd.s32 1, %v7616_v39  ;;  %v12013_v51 = vand.u32 4294901760, %v79_v8  ;;  %v15041_v39 = vld [vmem:[#allocation21_spill] sm:$0xff]  ;;  %v6540_v19 = vor.u32 8388608, %v6539_v15  ;;  %v15042_v25 = vand.u32 4294901760, %v11831_v24  ;;  %4569 = vmatprep.subr.mxu1 %v11088_v5  ;;  %v15045_v15 = vld [vmem:[#allocation46_spill] sm:$0xff] }
 0x25e   :  { %15036 = vst [vmem:[#allocation16_spill] sm:$0xff] %v11998_v1  ;;  %15037 = vst [vmem:[#allocation24_spill] sm:$0xff] %v12000_v13  ;;  %4510 = vmatmul.mubr.f32.vlgmr.msra.gmra.mxu0 %v15038_v58  ;;  %4621 = vmatprep.subr.mxu0 %v15039_v42  ;;  %v7620_v62 = vadd.s32 4294967169, %v6640_v60  ;;  %v15043_v60 = vld [vmem:[#allocation71_spill] sm:$0xff]  ;;  %v12026_v32 = vsub.f32 %v78_v44, %v12000_v13  ;;  %v15047_v44 = vld [vmem:[#allocation77_spill] sm:$0xff] }
 0x25f   :  { %15040 = vst [vmem:[#allocation19_spill] sm:$0xff] %v12013_v51  ;;  %4623 = vmatpush1.msra.mxu0 %v15041_v39  ;;  %vm6543_vm9 = vcmp.gt.s32.totalorder %v6542_v56, 0  ;;  %v12021_v37 = vsub.f32 %v11831_v24, %v15042_v25  ;;  %4571 = vmatpush1.msra.mxu1 %v11081_v3  ;;  %v15046_v25 = vand.u32 4294901760, %v11971_v49  ;;  %v15048_v23 = vld [vmem:[#allocation86_spill] sm:$0xff]  ;;  %v12058_v12 = vshll.u32 %v6540_v19, 8 }
 0x260   :  { %4625 = vmatprep.subr.mxu0 %v15043_v60  ;;  %v6544_v46 = vsel %vm6543_vm9, %v6542_v56, 0  ;;  %v6646_v31 = vadd.s32 1, %v7620_v62  ;;  %15044 = vst [vmem:[#allocation82_spill] sm:$0xff] %v12026_v32  ;;  %v12040_v56 = vsub.f32 %v11884_v35, %v11916_v10  ;;  %4573 = vmatprep.subr.mxu1 %v11128_v61  ;;  %v12047_v62 = vsub.f32 %v11918_v4, %v11952_v47  ;;  %v15049_v35 = vld [vmem:[#allocation32_spill] sm:$0xff]  ;;  %v15052_v4 = vld [vmem:[#allocation66_spill] sm:$0xff]  ;;  %v15064_v32 = vld [vmem:[#allocation47_spill] sm:$0xff] }
 0x261   :  { %4627 = vmatpush1.msra.mxu0 %v15045_v15  ;;  %v12031_v59 = vshrl.u32 %v6544_v46, 5  ;;  %v6546_v36 = vand.u32 31, %v6544_v46  ;;  %v12036_v5 = vsub.f32 %v11971_v49, %v15046_v25  ;;  %v12050_v46 = vsub.f32 %v92_v48, %v11998_v1  ;;  %4575 = vmatpush1.msra.mxu1 %v15048_v23  ;;  %v15053_v48 = vld [vmem:[#allocation87_spill] sm:$0xff]  ;;  %v15065_v1 = vld [vmem:[#allocation89_spill] sm:$0xff] }
 0x262   :  { %4629 = vmatprep.subr.mxu0 %v15047_v44  ;;  %v12053_v25 = vsub.f32 %v79_v8, %v12013_v51  ;;  %v15050_v61 = vmov 683565275   ;;  %v15051_v3 = vand.u32 2147483647, %v11946_v21  ;;  %4577 = vmatprep.subr.mxu1 %v15052_v4  ;;  %v15054_v38 = vmov 2475754826  }
 0x263   :  { %4631 = vmatpush1.msra.mxu0 %v15049_v35  ;;  %v6547_v49 = vsub.s32 32, %v6546_v36  ;;  %v6549_v24 = vshll.u32 %v15050_v61, %v6546_v36  ;;  %v6552_v8 = vshll.u32 %v15054_v38, %v6546_v36  ;;  %v15055_v43 = vmov 2131351028   ;;  %v15057_v35 = vld [vmem:[#allocation20_spill] sm:$0xff]  ;;  %v15059_v4 = vld [vmem:[#allocation81_spill] sm:$0xff] }
 0x264   :  { %v12062_v20 = vand.u32 8388607, %v15051_v3  ;;  %4633 = vmatprep.subr.mxu0 %v15053_v48  ;;  %v6555_v41 = vshll.u32 %v15055_v43, %v6546_v36  ;;  %v15056_v23 = vmov 2102212464   ;;  %vm6647_vm10 = vcmp.gt.s32.totalorder %v6646_v31, 0  ;;  %4579 = vmatpush1.msra.mxu1 %v15057_v35 }
 0x265   :  { %v6558_v52 = vshll.u32 %v15056_v23, %v6546_v36  ;;  %v6550_v19 = vshrl.u32 %v15054_v38, %v6547_v49  ;;  %v6553_v3 = vshrl.u32 %v15055_v43, %v6547_v49  ;;  %v15058_v21 = vmov 920167782   ;;  %4635 = vmatpush1.msra.mxu0 %v15059_v4  ;;  %4614 = vmatmul.mubr.f32.vlgmr.msra.gmra.mxu1 %v15038_v58 }
 0x266   :  { %v6561_v18 = vshll.u32 %v15058_v21, %v6546_v36  ;;  %vm6564_vm11 = vcmp.lt.s32.totalorder %v12031_v59, 1  ;;  %v6556_v48 = vshrl.u32 %v15056_v23, %v6547_v49  ;;  %v6559_v44 = vshrl.u32 %v15058_v21, %v6547_v49  ;;  %4637 = vmatprep.subr.mxu0 %v15061_v26  ;;  %v15062_v36 = vld [vmem:[#allocation29_spill] sm:$0xff] }
 0x267   :  { %v15060_v15 = vmov 1326507024   ;;  %vm6565_vm12 = vcmp.lt.s32.totalorder %v12031_v59, 2  ;;  %v6548_v35 = vshrl.u32 %v15050_v61, %v6547_v49  ;;  %v6551_v39 = vor.u32 %v6550_v19, %v6549_v24  ;;  %4639 = vmatpush1.msra.mxu0 %v15064_v32 }
 0x268   :  { %v6562_v60 = vshrl.u32 %v15060_v15, %v6547_v49  ;;  %v6554_v42 = vor.u32 %v6553_v3, %v6552_v8  ;;  %v15063_v13 = vand.u32 4294901760, %v15062_v36  ;;  %v6648_v4 = vsel %vm6647_vm10, %v6646_v31, 0  ;;  %v15067_v31 = vld [vmem:[#allocation100_spill] sm:$0xff] }
 0x269   :  { %v6557_v51 = vor.u32 %v6556_v48, %v6555_v41  ;;  %v6560_v28 = vor.u32 %v6559_v44, %v6558_v52  ;;  %vm6566_vm13 = vcmp.lt.s32.totalorder %v12031_v59, 3  ;;  %v15066_v58 = vand.u32 4294901760, %v15065_v1  ;;  %4641 = vmatprep.subr.mxu0 %v15067_v31  ;;  %v15068_v41 = vld [vmem:[#allocation54_spill] sm:$0xff]  ;;  %v15071_v48 = vld [vmem:[#allocation36_spill] sm:$0xff] }
 0x26a   :  { %4733 = vmatprep.subr.mxu1 %v15063_v13  ;;  %v6563_v17 = vor.u32 %v6562_v60, %v6561_v18  ;;  %vm6567_vm14 = vcmp.lt.s32.totalorder %v12031_v59, 4  ;;  %v6568_v24 = vsel %vm6564_vm11, %v6548_v35, %v6551_v39  ;;  %v6572_v49 = vsel %vm6564_vm11, %v6551_v39, %v6554_v42  ;;  %v15070_v44 = vld [vmem:[#allocation94_spill] sm:$0xff]  ;;  %v15073_v36 = vld [vmem:[#allocation48_spill] sm:$0xff] }
 0x26b   :  { %4739 = vmatpush1.msra.mxu1 %v15066_v58  ;;  %v6650_v13 = vand.u32 31, %v6648_v4  ;;  %v15069_v18 = vand.u32 4294901760, %v15068_v41  ;;  %v6569_v52 = vsel %vm6567_vm14, %v6557_v51, 2102212464  ;;  %v6573_v60 = vsel %vm6567_vm14, %v6560_v28, 920167782  ;;  %4643 = vmatpush1.msra.mxu0 %v15070_v44 }
 0x26c   :  { %v6576_v1 = vsel %vm6564_vm11, %v6554_v42, %v6557_v51  ;;  %v6577_v58 = vsel %vm6567_vm14, %v6563_v17, 1326507024  ;;  %v15072_v8 = vand.u32 4294901760, %v15071_v48  ;;  %v6570_v39 = vsel %vm6566_vm13, %v6554_v42, %v6569_v52  ;;  %4645 = vmatprep.subr.mxu0 %v15073_v36  ;;  %v15074_v41 = vld [vmem:[#allocation76_spill] sm:$0xff] }
 0x26d   :  { %4745 = vmatprep.subr.mxu1 %v15069_v18  ;;  %v6574_v19 = vsel %vm6566_vm13, %v6557_v51, %v6573_v60  ;;  %v6578_v3 = vsel %vm6566_vm13, %v6560_v28, %v6577_v58  ;;  %v6651_v35 = vsub.s32 32, %v6650_v13  ;;  %v15075_v18 = vand.u32 4294901760, %v15074_v41  ;;  %v15076_v51 = vld [vmem:[#allocation17_spill] sm:$0xff] }
 0x26e   :  { %4751 = vmatpush1.msra.mxu1 %v15072_v8  ;;  %v6575_v17 = vsel %vm6565_vm12, %v6572_v49, %v6574_v19  ;;  %v6579_v48 = vsel %vm6565_vm12, %v6576_v1, %v6578_v3  ;;  %v6644_v42 = vor.u32 8388608, %v12062_v20  ;;  %v12117_v52 = vshrl.u32 %v6648_v4, 5  ;;  %4647 = vmatpush1.msra.mxu0 %v15076_v51  ;;  %v15077_v41 = vld [vmem:[#allocation61_spill] sm:$0xff]  ;;  %v15079_v19 = vld [vmem:[#allocation50_spill] sm:$0xff]  ;;  %v15083_v51 = vld [vmem:[#allocation59_spill] sm:$0xff] }
 0x26f   :  { %4757 = vmatprep.subr.mxu1 %v15075_v18  ;;  %v12121_v28 = vmul.u32.u64.low %v12058_v12, %v6579_v48  ;;  %v12122_v60 = vmul.u32.u64.high %v12058_v12, %v6579_v48, %v12121_v28  ;;  %v12125_v58 = vmul.u32.u64.low %v12058_v12, %v6575_v17  ;;  %v12126_v8 = vmul.u32.u64.high %v12058_v12, %v6575_v17, %v12125_v58  ;;  %4649 = vmatprep.subr.mxu0 %v15079_v19  ;;  %v15080_v18 = vld [vmem:[#allocation64_spill] sm:$0xff]  ;;  %v15082_v19 = vld [vmem:[#allocation51_spill] sm:$0xff] }
 0x270   :  { %v15078_v49 = vand.u32 4294901760, %v15077_v41  ;;  %v6571_v20 = vsel %vm6565_vm12, %v6568_v24, %v6570_v39  ;;  %v6653_v4 = vshll.u32 %v15050_v61, %v6650_v13  ;;  %v6654_v1 = vshrl.u32 %v15054_v38, %v6651_v35  ;;  %4651 = vmatpush1.msra.mxu0 %v15082_v19 }
 0x271   :  { %v6656_v3 = vshll.u32 %v15054_v38, %v6650_v13  ;;  %v15081_v48 = vand.u32 4294901760, %v15080_v18  ;;  %v6657_v17 = vshrl.u32 %v15055_v43, %v6651_v35  ;;  %v6659_v28 = vshll.u32 %v15055_v43, %v6650_v13  ;;  %4653 = vmatprep.subr.mxu0 %v11729_v55 }
 0x272   :  { %4763 = vmatpush1.msra.mxu1 %v15078_v49  ;;  %v6660_v41 = vshrl.u32 %v15056_v23, %v6651_v35  ;;  %v6662_v49 = vshll.u32 %v15056_v23, %v6650_v13  ;;  %v6655_v59 = vor.u32 %v6654_v1, %v6653_v4  ;;  %v6663_v24 = vshrl.u32 %v15058_v21, %v6651_v35  ;;  %v15085_v4 = vld [vmem:[#allocation57_spill] sm:$0xff] }
 0x273   :  { %4769 = vmatprep.subr.mxu1 %v15081_v48  ;;  %v6665_v39 = vshll.u32 %v15058_v21, %v6650_v13  ;;  %v6666_v38 = vshrl.u32 %v15060_v15, %v6651_v35  ;;  %v15084_v18 = vand.u32 4294901760, %v15083_v51  ;;  %v6587_v48 = vmul.u32 %v12058_v12, %v6571_v20  ;;  %v15087_v15 = vld [vmem:[#allocation63_spill] sm:$0xff] }
 0x274   :  { %vm6589_vm15 = vc.u32 %v12122_v60, %v12125_v58  ;;  %v6590_v43 = vadd.s32 1, %v12126_v8  ;;  %v6658_v23 = vor.u32 %v6657_v17, %v6656_v3  ;;  %v15086_v1 = vand.u32 4294901760, %v15085_v4  ;;  %4655 = vmatpush1.msra.mxu0 %v15087_v15  ;;  %v15088_v51 = vld [vmem:[#allocation99_spill] sm:$0xff] }
 0x275   :  { %4775 = vmatpush1.msra.mxu1 %v15084_v18  ;;  %v6661_v19 = vor.u32 %v6660_v41, %v6659_v28  ;;  %v6664_v13 = vor.u32 %v6663_v24, %v6662_v49  ;;  %v6667_v21 = vor.u32 %v6666_v38, %v6665_v39  ;;  %v15089_v18 = vand.u32 4294901760, %v15088_v51  ;;  %4657 = vmatprep.subr.mxu0 %v11798_v45 }
 0x276   :  { %4781 = vmatprep.subr.mxu1 %v15086_v1  ;;  %v14017_v12 = vand.u32 4294901760, %v12040_v56  ;;  %v6591_v20 = vsel %vm6589_vm15, %v6590_v43, %v12126_v8  ;;  %v6652_v36 = vshrl.u32 %v15050_v61, %v6651_v35  ;;  %vm6668_vm0 = vcmp.lt.s32.totalorder %v12117_v52, 1  ;;  %4659 = vmatpush1.msra.mxu0 %v11766_v6  ;;  %v15091_v43 = vld [vmem:[#allocation90_spill] sm:$0xff]  ;;  %v15132_v61 = vld [vmem:[#allocation32_spill] sm:$0xff] }
 0x277   :  { %4787 = vmatpush1.msra.mxu1 %v15089_v18  ;;  %v12163_v3 = vshll.u32 %v6644_v42, 8  ;;  %v15090_v17 = vand.u32 4294901760, %v11764_v9  ;;  %v6592_v38 = vadd.s32 %v6591_v20, %v6587_v48  ;;  %vm6670_vm1 = vcmp.lt.s32.totalorder %v12117_v52, 3  ;;  %4661 = vmatprep.subr.mxu0 %v11801_v53 }
 0x278   :  { %vm6671_vm2 = vcmp.lt.s32.totalorder %v12117_v52, 4  ;;  %v6676_v28 = vsel %vm6668_vm0, %v6655_v59, %v6658_v23  ;;  %v15092_v35 = vand.u32 4294901760, %v15091_v43  ;;  %v6680_v41 = vsel %vm6668_vm0, %v6658_v23, %v6661_v19  ;;  %4663 = vmatpush1.msra.mxu0 %v11803_v34 }
 0x279   :  { %4793 = vmatprep.subr.mxu1 %v15090_v17  ;;  %v6673_v42 = vsel %vm6671_vm2, %v6661_v19, 2102212464  ;;  %v6677_v8 = vsel %vm6671_vm2, %v6664_v13, 920167782  ;;  %v6681_v9 = vsel %vm6671_vm2, %v6667_v21, 1326507024  ;;  %v6672_v21 = vsel %vm6668_vm0, %v6652_v36, %v6655_v59  ;;  %4665 = vmatprep.subr.mxu0 %v11879_v29 }
 0x27a   :  { %4799 = vmatpush1.msra.mxu1 %v15092_v35  ;;  %v15093_v49 = vand.u32 4294901760, %v11824_v27  ;;  %v6593_v24 = vadd.s32 536870912, %v6592_v38  ;;  %vm6669_vm3 = vcmp.lt.s32.totalorder %v12117_v52, 2  ;;  %v6678_v39 = vsel %vm6670_vm1, %v6661_v19, %v6677_v8  ;;  %4667 = vmatpush1.msra.mxu0 %v11863_v2 }
 0x27b   :  { %v6682_v48 = vsel %vm6670_vm1, %v6664_v13, %v6681_v9  ;;  %v15094_v4 = vand.u32 4294901760, %v11850_v33  ;;  %v6679_v27 = vsel %vm6669_vm3, %v6676_v28, %v6678_v39  ;;  %v15095_v19 = vand.u32 4294901760, %v11861_v57  ;;  %4669 = vmatprep.subr.mxu0 %v11916_v10 }
 0x27c   :  { %4805 = vmatprep.subr.mxu1 %v15093_v49  ;;  %v6683_v1 = vsel %vm6669_vm3, %v6680_v41, %v6682_v48  ;;  %v14016_v13 = vand.u32 4294901760, %v12047_v62  ;;  %v12198_v51 = vshrl.u32 %v6593_v24, 30  ;;  %v6674_v33 = vsel %vm6670_vm1, %v6658_v23, %v6673_v42  ;;  %4671 = vmatpush1.msra.mxu0 %v11908_v63 }
 0x27d   :  { %4811 = vmatpush1.msra.mxu1 %v15094_v4  ;;  %v12203_v36 = vmul.u32.u64.low %v12163_v3, %v6683_v1  ;;  %v12204_v59 = vmul.u32.u64.high %v12163_v3, %v6683_v1, %v12203_v36  ;;  %v15096_v18 = vand.u32 4294901760, %v11898_v7  ;;  %v15097_v17 = vand.u32 4294901760, %v11929_v30  ;;  %4673 = vmatprep.subr.mxu0 %v11952_v47  ;;  %v15103_v4 = vld [vmem:[#allocation16_spill] sm:$0xff] }
 0x27e   :  { %4817 = vmatprep.subr.mxu1 %v15095_v19  ;;  %v12210_v20 = vmul.u32.u64.low %v12163_v3, %v6679_v27  ;;  %v12211_v57 = vmul.u32.u64.high %v12163_v3, %v6679_v27, %v12210_v20  ;;  %v15098_v23 = vand.u32 4294901760, %v11906_v14  ;;  %v14015_v43 = vand.u32 4294901760, %v11996_v0  ;;  %4675 = vmatpush1.msra.mxu0 %v11954_v22  ;;  %v15104_v27 = vld [vmem:[#allocation82_spill] sm:$0xff] }
 0x27f   :  { %4823 = vmatpush1.msra.mxu1 %v15096_v18  ;;  %v6595_v35 = vshll.u32 %v12198_v51, 30  ;;  %v15099_v7 = vand.u32 4294901760, %v11941_v16  ;;  %v4858_v42 = vand.u32 4294901760, %v12021_v37  ;;  %v4875_v30 = vsub.f32 %v12040_v56, %v14017_v12  ;;  %4677 = vmatprep.subr.mxu0 %v15103_v4  ;;  %v15105_v36 = vld [vmem:[#allocation18_spill] sm:$0xff]  ;;  %v15129_v12 = vld [vmem:[#allocation104_spill] sm:$0xff] }
 0x280   :  { %4829 = vmatprep.subr.mxu1 %v15097_v17  ;;  %v4869_v28 = vsub.f32 %v11906_v14, %v15098_v23  ;;  %v14014_v8 = vand.u32 4294901760, %v12050_v46  ;;  %v6675_v41 = vsel %vm6669_vm3, %v6672_v21, %v6674_v33  ;;  %v15100_v9 = vand.u32 4294901760, %v11962_v54  ;;  %v15107_v17 = vld [vmem:[#allocation37_spill] sm:$0xff] }
 0x281   :  { %4835 = vmatpush1.msra.mxu1 %v15099_v7  ;;  %v4864_v49 = vand.u32 4294901760, %v12036_v5  ;;  %v15101_v16 = vand.u32 4294901760, %v11949_v40  ;;  %v14013_v24 = vand.u32 4294901760, %v12011_v11  ;;  %v12240_v39 = vsub.s32 %v6592_v38, %v6595_v35  ;;  %4679 = vmatpush1.msra.mxu0 %v15107_v17  ;;  %v15108_v35 = vld [vmem:[#allocation19_spill] sm:$0xff] }
 0x282   :  { %4841 = vmatprep.subr.mxu1 %v15100_v9  ;;  %vm6693_vm4 = vc.u32 %v12204_v59, %v12210_v20  ;;  %v4887_v54 = vsub.f32 %v12047_v62, %v14016_v13  ;;  %v14011_v52 = vand.u32 4294901760, %v12053_v25  ;;  %v6694_v5 = vadd.s32 1, %v12211_v57  ;;  %4681 = vmatprep.subr.mxu0 %v15108_v35  ;;  %v15109_v9 = vld [vmem:[#allocation24_spill] sm:$0xff]  ;;  %v15128_v13 = vld [vmem:[#allocation46_spill] sm:$0xff] }
 0x283   :  { %v4881_v37 = vsub.f32 %v11949_v40, %v15101_v16  ;;  %v15102_v48 = vand.u32 4294901760, %v11967_v50  ;;  %v4870_v38 = vand.u32 4294901760, %v4869_v28  ;;  %v4893_v21 = vsub.f32 %v11996_v0, %v14015_v43  ;;  %4683 = vmatpush1.msra.mxu0 %v15109_v9 }
 0x284   :  { %v14012_v1 = vand.u32 4294901760, %v15104_v27  ;;  %v6598_v19 = vsub.s32 0, %v12240_v39  ;;  %v6691_v33 = vmul.u32 %v12163_v3, %v6675_v41  ;;  %v15106_v18 = vand.u32 4294901760, %v15105_v36  ;;  %v15112_v36 = vld [vmem:[#allocation38_spill] sm:$0xff] }
 0x285   :  { %4847 = vmatpush1.msra.mxu1 %v15102_v48  ;;  %v4876_v50 = vand.u32 4294901760, %v4875_v30  ;;  %v4899_v23 = vsub.f32 %v12050_v46, %v14014_v8  ;;  %v6695_v28 = vsel %vm6693_vm4, %v6694_v5, %v12211_v57  ;;  %v4882_v7 = vand.u32 4294901760, %v4881_v37  ;;  %v15120_v8 = vld [vmem:[#allocation33_spill] sm:$0xff] }
 0x286   :  { %4853 = vmatprep.subr.mxu1 %v15106_v18  ;;  %v4905_v3 = vsub.f32 %v12011_v11, %v14013_v24  ;;  %v7617_v41 = vmin.u32 %v6598_v19, %v12240_v39  ;;  %v6696_v30 = vadd.s32 %v6695_v28, %v6691_v33  ;;  %v4888_v16 = vand.u32 4294901760, %v4887_v54  ;;  %v15111_v19 = vld [vmem:[#allocation28_spill] sm:$0xff]  ;;  %v15119_v24 = vld [vmem:[#allocation93_spill] sm:$0xff] }
 0x287   :  { %4859 = vmatpush1.msra.mxu1 %v4858_v42  ;;  %v4911_v48 = vsub.f32 %v12053_v25, %v14011_v52  ;;  %v15110_v57 = vmov 0.0   ;;  %v4894_v42 = vand.u32 4294901760, %v4893_v21  ;;  %v4917_v37 = vsub.f32 %v15104_v27, %v14012_v1  ;;  %4962 = vmatprep.subr.mxu0 %v15111_v19  ;;  %v15113_v28 = vld [vmem:[#allocation68_spill] sm:$0xff]  ;;  %v15114_v52 = vld [vmem:[#allocation22_spill] sm:$0xff] }
 0x288   :  { %4865 = vmatprep.subr.mxu1 %v4864_v49  ;;  %4716 = vmatprep.mubr.f32.mxu0 %v15110_v57  ;;  %v6600_v5 = vclz %v7617_v41  ;;  %v4900_v49 = vand.u32 4294901760, %v4899_v23  ;;  %v6697_v33 = vadd.s32 536870912, %v6696_v30  ;;  %v4906_v54 = vand.u32 4294901760, %v4905_v3 }
 0x289   :  { %4871 = vmatpush1.msra.mxu1 %v4870_v38  ;;  %4722 = vmatmul.mubr.f32.vlgmr.msra.gmra.mxu0 %v15112_v36  ;;  %v4912_v38 = vand.u32 4294901760, %v4911_v48  ;;  %v4918_v41 = vand.u32 4294901760, %v4917_v37  ;;  %v6588_v3 = vadd.s32 %v12125_v58, %v12122_v60  ;;  %v15118_v37 = vld [vmem:[#allocation98_spill] sm:$0xff]  ;;  %v15121_v60 = vld [vmem:[#allocation103_spill] sm:$0xff]  ;;  %v15131_v36 = vld [vmem:[#allocation88_spill] sm:$0xff] }
 0x28a   :  { %4877 = vmatprep.subr.mxu1 %v4876_v50  ;;  %v7618_v18 = vadd.s32 4294967294, %v6600_v5  ;;  %4965 = vmatpush1.msra.mxu0 %v15113_v28  ;;  %v12285_v21 = vshrl.u32 %v6697_v33, 30  ;;  %v15115_v50 = vld [vmem:[#allocation79_spill] sm:$0xff] }
 0x28b   :  { %4883 = vmatpush1.msra.mxu1 %v4882_v7  ;;  %4968 = vmatprep.subr.mxu0 %v15114_v52  ;;  %v15116_v7 = vld [vmem:[#allocation31_spill] sm:$0xff] }
 0x28c   :  { %4889 = vmatprep.subr.mxu1 %v4888_v16  ;;  %vm7619_vm5 = vcmp.lt.s32.totalorder %v7618_v18, 0  ;;  %4971 = vmatpush1.msra.mxu0 %v15115_v50  ;;  %v6699_v1 = vshll.u32 %v12285_v21, 30  ;;  %v15117_v5 = vld [vmem:[#allocation43_spill] sm:$0xff] }
 0x28d   :  { %4895 = vmatpush1.msra.mxu1 %v4894_v42  ;;  %v6603_v23 = vsel %vm7619_vm5, 0, %v7618_v18  ;;  %4974 = vmatprep.subr.mxu0 %v15116_v7 }
 0x28e   :  { %4901 = vmatprep.subr.mxu1 %v4900_v49  ;;  %v6604_v16 = vsub.s32 32, %v6603_v23  ;;  %v6608_v48 = vsub.s32 4294967266, %v6603_v23  ;;  %4977 = vmatpush1.msra.mxu0 %v15117_v5  ;;  %v6700_v42 = vsub.s32 %v6696_v30, %v6699_v1  ;;  %v6605_v49 = vshll.u32 %v12240_v39, %v6603_v23  ;;  %v15123_v1 = vld [vmem:[#allocation70_spill] sm:$0xff]  ;;  %v15125_v39 = vld [vmem:[#allocation45_spill] sm:$0xff] }
 0x28f   :  { %4907 = vmatpush1.msra.mxu1 %v4906_v54  ;;  %4980 = vmatprep.subr.mxu0 %v15118_v37 }
 0x290   :  { %4913 = vmatprep.subr.mxu1 %v4912_v38  ;;  %v6606_v33 = vshrl.u32 %v6588_v3, %v6604_v16  ;;  %v6609_v18 = vadd.s32 127, %v6608_v48  ;;  %4952 = vmatprep.mubr.f32.mxu1 %v15110_v57  ;;  %v6702_v54 = vsub.s32 0, %v6700_v42  ;;  %v15122_v38 = vld [vmem:[#allocation67_spill] sm:$0xff]  ;;  %v15127_v16 = vld [vmem:[#allocation72_spill] sm:$0xff] }
 0x291   :  { %4919 = vmatpush1.msra.mxu1 %v4918_v41  ;;  %4983 = vmatpush1.msra.mxu0 %v15119_v24  ;;  %v15124_v41 = vld [vmem:[#allocation21_spill] sm:$0xff]  ;;  %v15126_v3 = vld [vmem:[#allocation71_spill] sm:$0xff] }
 0x292   :  { %4954 = vmatmul.mubr.f32.vlgmr.msra.gmra.mxu1 %v15120_v8  ;;  %4986 = vmatprep.subr.mxu0 %v15121_v60  ;;  %v6607_v58 = vor.u32 %v6606_v33, %v6605_v49  ;;  %v6610_v43 = vshll.u32 %v6609_v18, 23  ;;  %v7621_v30 = vmin.u32 %v6702_v54, %v6700_v42  ;;  %v15130_v18 = vld [vmem:[#allocation77_spill] sm:$0xff] }
 0x293   :  { %5098 = vmatprep.subr.mxu1 %v15122_v38  ;;  %4989 = vmatpush1.msra.mxu0 %v15123_v1  ;;  %v15133_v8 = vld [vmem:[#allocation49_spill] sm:$0xff] }
 0x294   :  { %5100 = vmatpush1.msra.mxu1 %v15124_v41  ;;  %4992 = vmatprep.subr.mxu0 %v15125_v39  ;;  %v6611_v23 = vor.u32 4788187, %v6610_v43  ;;  %v6704_v48 = vclz %v7621_v30  ;;  %v6614_v33 = vcvt.s32.f32 %v6607_v58  ;;  %v15136_v30 = vld [vmem:[#allocation81_spill] sm:$0xff] }
 0x295   :  { %5102 = vmatprep.subr.mxu1 %v15126_v3  ;;  %4995 = vmatpush1.msra.mxu0 %v15127_v16  ;;  %v15134_v3 = vld [vmem:[#allocation87_spill] sm:$0xff]  ;;  %v15135_v16 = vld [vmem:[#allocation62_spill] sm:$0xff] }
 0x296   :  { %5104 = vmatpush1.msra.mxu1 %v15128_v13  ;;  %4998 = vmatprep.subr.mxu0 %v15129_v12  ;;  %v6612_v49 = vand.u32 2147483647, %v6611_v23  ;;  %v7622_v54 = vadd.s32 4294967294, %v6704_v48  ;;  %v15137_v12 = vld [vmem:[#allocation91_spill] sm:$0xff]  ;;  %v15139_v48 = vld [vmem:[#allocation80_spill] sm:$0xff] }
 0x297   :  { %5106 = vmatprep.subr.mxu1 %v15130_v18  ;;  %5001 = vmatpush1.msra.mxu0 %v15131_v36  ;;  %v15138_v36 = vld [vmem:[#allocation55_spill] sm:$0xff]  ;;  %vm6534_vm7 = vcmp.lt.s32.totalorder %v15139_v48, 0  ;;  %vm6624_vm1 = vweird.f32 %v15139_v48 }
 0x298   :  { %5108 = vmatpush1.msra.mxu1 %v15132_v61  ;;  %5004 = vmatprep.subr.mxu0 %v15133_v8  ;;  %v6615_v43 = vmul.f32 %v6614_v33, %v6612_v49  ;;  %vm7623_vm6 = vcmp.lt.s32.totalorder %v7622_v54, 0  ;;  %v6692_v49 = vadd.s32 %v12210_v20, %v12204_v59  ;;  %v15149_v8 = vld [vmem:[#allocation15_spill] sm:$0xff] }
 0x299   :  { %5110 = vmatprep.subr.mxu1 %v15134_v3  ;;  %5007 = vmatpush1.msra.mxu0 %v15135_v16  ;;  %v6707_v23 = vsel %vm7623_vm6, 0, %v7622_v54  ;;  %v15140_v16 = vld [vmem:[#allocation92_spill] sm:$0xff]  ;;  %v15141_v54 = vld [vmem:[#allocation65_spill] sm:$0xff] }
 0x29a   :  { %5112 = vmatpush1.msra.mxu1 %v15136_v30  ;;  %5010 = vmatprep.subr.mxu0 %v15137_v12  ;;  %v6616_v58 = vxor.u32 2147483648, %v6615_v43  ;;  %v6708_v33 = vsub.s32 32, %v6707_v23  ;;  %v6712_v3 = vsub.s32 4294967266, %v6707_v23  ;;  %v6709_v59 = vshll.u32 %v6700_v42, %v6707_v23  ;;  %v15150_v42 = vld [vmem:[#allocation50_spill] sm:$0xff]  ;;  %v15151_v23 = vld [vmem:[#allocation51_spill] sm:$0xff] }
 0x29b   :  { %5114 = vmatprep.subr.mxu1 %v15061_v26  ;;  %5013 = vmatpush1.msra.mxu0 %v15138_v36  ;;  %v15142_v36 = vand.u32 2147483647, %v15139_v48  ;;  %v15158_v26 = vand.u32 4294901760, %v15113_v28 }
 0x29c   :  { %5116 = vmatpush1.msra.mxu1 %v15064_v32  ;;  %5016 = vmatprep.subr.mxu0 %v15140_v16  ;;  %v6617_v12 = vsel %vm6534_vm7, %v6616_v58, %v6615_v43  ;;  %v6710_v20 = vshrl.u32 %v6692_v49, %v6708_v33  ;;  %v6713_v30 = vadd.s32 127, %v6712_v3  ;;  %v15145_v32 = vld [vmem:[#allocation53_spill] sm:$0xff]  ;;  %v15146_v58 = vld [vmem:[#allocation48_spill] sm:$0xff] }
 0x29d   :  { %5118 = vmatprep.subr.mxu1 %v15067_v31  ;;  %5019 = vmatpush1.msra.mxu0 %v15141_v54  ;;  %vm12329_vm8 = vcmp.le.f32.partialorder %v15142_v36, 0.7853982  ;;  %v15147_v54 = vld [vmem:[#allocation52_spill] sm:$0xff]  ;;  %v15148_v16 = vld [vmem:[#allocation17_spill] sm:$0xff] }
 0x29e   :  { %5120 = vmatpush1.msra.mxu1 %v15070_v44  ;;  %5022 = vmatprep.subr.mxu0 %v15145_v32  ;;  %v6620_v43 = vsel %vm12329_vm8, %v15139_v48, %v6617_v12  ;;  %v6711_v31 = vor.u32 %v6710_v20, %v6709_v59  ;;  %v6714_v36 = vshll.u32 %v6713_v30, 23  ;;  %v6618_v12 = vsub.s32 4, %v12198_v51  ;;  %v15152_v20 = vld [vmem:[#allocation83_spill] sm:$0xff] }
 0x29f   :  { %5122 = vmatprep.subr.mxu1 %v15146_v58  ;;  %5025 = vmatpush1.msra.mxu0 %v15147_v54  ;;  %8048 = vcosq.f32 %v6620_v43  ;;  %vm6638_vm9 = vcmp.lt.s32.totalorder %v15152_v20, 0  ;;  %vm6728_vm4 = vweird.f32 %v15152_v20 }
 0x2a0   :  { %5124 = vmatpush1.msra.mxu1 %v15148_v16  ;;  %5028 = vmatprep.subr.mxu0 %v15149_v8  ;;  %v6715_v3 = vor.u32 4788187, %v6714_v36  ;;  %8050 = vsinq.f32 %v6620_v43  ;;  %v6718_v49 = vcvt.s32.f32 %v6711_v31  ;;  %v6619_v31 = vsel %vm6534_vm7, %v6618_v12, %v12198_v51  ;;  %v275_v12 = vld [vmem:[#allocation5 + $0x678] sm:$0xff] }
 0x2a1   :  { %5126 = vmatprep.subr.mxu1 %v15150_v42  ;;  %5031 = vmatpush1.msra.mxu0 %v11906_v14  ;;  %v6722_v43 = vsub.s32 4, %v12285_v21  ;;  %v15153_v36 = vand.u32 2147483647, %v15152_v20 }
 0x2a2   :  { %5128 = vmatpush1.msra.mxu1 %v15151_v23  ;;  %5034 = vmatprep.subr.mxu0 %v12040_v56  ;;  %v6716_v30 = vand.u32 2147483647, %v6715_v3  ;;  %v15166_v3 = vand.u32 4294901760, %v15118_v37 }
 0x2a3   :  { %5130 = vmatprep.subr.mxu1 %v11729_v55  ;;  %5037 = vmatpush1.msra.mxu0 %v11949_v40  ;;  %vm12368_vm10 = vcmp.le.f32.partialorder %v15153_v36, 0.7853982  ;;  %v15157_v36 = vand.u32 4294901760, %v15111_v19 }
 0x2a4   :  { %5132 = vmatpush1.msra.mxu1 %v15087_v15  ;;  %5040 = vmatprep.subr.mxu0 %v12047_v62  ;;  %v6719_v33 = vmul.f32 %v6718_v49, %v6716_v30  ;;  %v6621_v30 = vsel %vm12329_vm8, 0, %v6619_v31  ;;  %v12392_v31 = vand.u32 4294901760, %v275_v12 }
 0x2a5   :  { %5134 = vmatprep.subr.mxu1 %v11798_v45  ;;  %5043 = vmatpush1.msra.mxu0 %v11996_v0 }
 0x2a6   :  { %5136 = vmatpush1.msra.mxu1 %v11766_v6  ;;  %5046 = vmatprep.subr.mxu0 %v12050_v46  ;;  %v6720_v59 = vxor.u32 2147483648, %v6719_v33  ;;  %15159 = vst [vmem:[#allocation69_spill] sm:$0xff] %v12392_v31 }
 0x2a7   :  { %5138 = vmatprep.subr.mxu1 %v11801_v53  ;;  %5049 = vmatpush1.msra.mxu0 %v12011_v11 }
 0x2a8   :  { %5140 = vmatpush1.msra.mxu1 %v11803_v34  ;;  %5052 = vmatprep.subr.mxu0 %v12053_v25  ;;  %v6721_v51 = vsel %vm6638_vm9, %v6720_v59, %v6719_v33  ;;  %v6723_v33 = vsel %vm6638_vm9, %v6722_v43, %v12285_v21  ;;  %v6625_v59 = vadd.s32 3, %v6621_v30  ;;  %v262_v21 = vld [vmem:[#allocation5 + $0x610] sm:$0xff] }
 0x2a9   :  { %5142 = vmatprep.subr.mxu1 %v11879_v29  ;;  %5055 = vmatpush1.msra.mxu0 %v15104_v27  ;;  %v6724_v49 = vsel %vm12368_vm10, %v15152_v20, %v6721_v51  ;;  %v15156_v27 = vld [vmem:[#allocation34_spill] sm:$0xff]  ;;  %v15160_v51 = vand.u32 4294901760, %v15114_v52  ;;  %v6725_v28 = vsel %vm12368_vm10, 0, %v6723_v33 }
 0x2aa   :  { %5088 = vmatprep.mubr.f32.mxu0 %v15110_v57  ;;  %5144 = vmatpush1.msra.mxu1 %v11863_v2  ;;  %8052 = vcosq.f32 %v6724_v49  ;;  %v15163_v52 = vld [vmem:[#allocation30_spill] sm:$0xff]  ;;  %v6729_v30 = vadd.s32 3, %v6725_v28  ;;  %v15173_v28 = vand.u32 4294901760, %v15121_v60  ;;  %v15177_v60 = vand.u32 4294901760, %v15125_v39  ;;  %v15199_v2 = vld [vmem:[#allocation55_spill] sm:$0xff] }
 0x2ab   :  { %5091 = vmatmul.mubr.f32.vlgmr.msra.gmra.mxu0 %v15156_v27  ;;  %5146 = vmatprep.subr.mxu1 %v11916_v10  ;;  %8054 = vsinq.f32 %v6724_v49  ;;  %v15162_v49 = vand.u32 4294901760, %v15116_v7  ;;  %v12415_v7 = vand.u32 4294901760, %v262_v21  ;;  %v3013_v27 = vpop.f32.mrf.mxu0  ;;  %v15183_v39 = vsub.s32 7, %v15163_v52  ;;  %v15198_v10 = vld [vmem:[#allocation56_spill] sm:$0xff] }
 0x2ac   :  { %5206 = vmatprep.subr.mxu0 %v15157_v36  ;;  %5148 = vmatpush1.msra.mxu1 %v11908_v63  ;;  %v8049_v19 = vpop.eup %8048  ;;  %v15161_v36 = vand.u32 4294901760, %v15115_v50  ;;  %v12410_v50 = vsub.f32 %v275_v12, %v12392_v31  ;;  %v15169_v12 = vld [vmem:[#allocation75_spill] sm:$0xff] }
 0x2ad   :  { %5210 = vmatpush1.msra.mxu0 %v15158_v26  ;;  %5150 = vmatprep.subr.mxu1 %v11952_v47  ;;  %v8051_v43 = vpop.eup %8050  ;;  %v15164_v26 = vand.u32 4294901760, %v15117_v5  ;;  %15167 = vst [vmem:[#allocation44_spill] sm:$0xff] %v12415_v7  ;;  %v15168_v5 = vand.u32 4294901760, %v15119_v24  ;;  %v15175_v24 = vsub.s32 6, %v15163_v52  ;;  %v223_v47 = vld [vmem:[#allocation5 + $0x4d8] sm:$0xff] }
 0x2ae   :  { %5214 = vmatprep.subr.mxu0 %v15160_v51  ;;  %5152 = vmatpush1.msra.mxu1 %v11954_v22  ;;  %15165 = vst [vmem:[#allocation25_spill] sm:$0xff] %v12410_v50  ;;  %v249_v51 = vld [vmem:[#allocation5 + $0x5a8] sm:$0xff]  ;;  %v6629_v33 = vxor.u32 2147483648, %v8051_v43  ;;  %v3245_v22 = vpop.f32.mrf.mxu1 }
 0x2af   :  { %5218 = vmatpush1.msra.mxu0 %v15161_v36  ;;  %5154 = vmatprep.subr.mxu1 %v15103_v4  ;;  %v6626_v36 = vand.u32 3, %v6625_v59  ;;  %v15171_v59 = vsub.s32 5, %v15163_v52  ;;  %v8086_v4 = vld [vmem:[#allocation7] sm:$0xff]  ;;  %v15192_v52 = vld [vmem:[#allocation87_spill] sm:$0xff] }
 0x2b0   :  { %5222 = vmatprep.subr.mxu0 %v15162_v49  ;;  %5156 = vmatpush1.msra.mxu1 %v15107_v17  ;;  %v6632_v49 = vxor.u32 2147483648, %v8049_v19  ;;  %v12431_v17 = vand.u32 4294901760, %v249_v51 }
 0x2b1   :  { %5226 = vmatpush1.msra.mxu0 %v15164_v26  ;;  %5158 = vmatprep.subr.mxu1 %v15108_v35  ;;  %v15170_v26 = vld [vmem:[#allocation26_spill] sm:$0xff]  ;;  %vm6628_vm11 = vcmp.eq.s32.totalorder %v6626_v36, 0  ;;  %vm6631_vm12 = vcmp.eq.s32.totalorder %v6626_v36, 2  ;;  %vm6627_vm15 = vcmp.lt.s32.totalorder %v6626_v36, 2  ;;  %v15190_v36 = vld [vmem:[#allocation49_spill] sm:$0xff] }
 0x2b2   :  { %5230 = vmatprep.subr.mxu0 %v15166_v3  ;;  %5160 = vmatpush1.msra.mxu1 %v15109_v9  ;;  %v7493_v35 = vrot.slane %v15170_v26, %v15169_v12  ;;  %v12425_v37 = vrot.slane %v15170_v26, %v15171_v59  ;;  %v15172_v9 = vld [vmem:[#allocation35_spill] sm:$0xff]  ;;  %15174 = vst [vmem:[#allocation42_spill] sm:$0xff] %v12431_v17  ;;  %v15176_v12 = vand.u32 4294901760, %v15123_v1  ;;  %v236_v3 = vld [vmem:[#allocation5 + $0x540] sm:$0xff] }
 0x2b3   :  { %5193 = vmatprep.mubr.f32.mxu1 %v15110_v57  ;;  %5234 = vmatpush1.msra.mxu0 %v15168_v5  ;;  %v307_v5 = vrot.slane %v8086_v4, %v15175_v24  ;;  %v6630_v26 = vsel %vm6628_vm11, %v8049_v19, %v6629_v33  ;;  %v6633_v24 = vsel %vm6631_vm12, %v6632_v49, %v8051_v43  ;;  %v15178_v1 = vld [vmem:[#allocation71_spill] sm:$0xff]  ;;  %v15184_v19 = vld [vmem:[#allocation104_spill] sm:$0xff]  ;;  %v12461_v49 = vld [vmem:[#allocation5 + $0x408] sm:$0xff]  ;;  %v15200_v57 = vand.u32 4294901760, %v15199_v2 }
 0x2b4   :  { %5197 = vmatmul.mubr.f32.vlgmr.msra.gmra.mxu1 %v15172_v9  ;;  %5238 = vmatprep.subr.mxu0 %v15173_v28  ;;  %v12443_v28 = vsub.f32 %v262_v21, %v12415_v7  ;;  %v6730_v9 = vand.u32 3, %v6729_v30  ;;  %vm12448_vm13 = vcmp.eq.s32.totalorder %v7493_v35, 1  ;;  %vm7531_vm14 = vcmp.eq.s32.totalorder %v12425_v37, 1  ;;  %v210_v33 = vld [vmem:[#allocation5 + $0x470] sm:$0xff]  ;;  %v184_v7 = vld [vmem:[#allocation5 + $0x3a0] sm:$0xff] }
 0x2b5   :  { %5372 = vmatprep.subr.mxu1 %v15122_v38  ;;  %5242 = vmatpush1.msra.mxu0 %v15176_v12  ;;  %v3015_v38 = vpop.f32.mrf.mxu0  ;;  %v15179_v12 = vld [vmem:[#allocation72_spill] sm:$0xff]  ;;  %v311_v21 = vrot.slane %v8086_v4, %v15183_v39  ;;  %v15185_v43 = vand.u32 4294901760, %v15184_v19  ;;  %v12459_v30 = vsub.f32 %v249_v51, %v12431_v17  ;;  %v12466_v4 = vand.u32 4294901760, %v236_v3  ;;  %v15193_v17 = vld [vmem:[#allocation62_spill] sm:$0xff]  ;;  %v15205_v2 = vld [vmem:[#allocation65_spill] sm:$0xff] }
 0x2b6   :  { %5374 = vmatpush1.msra.mxu1 %v15124_v41  ;;  %5246 = vmatprep.subr.mxu0 %v15177_v60  ;;  %v15180_v59 = vand.u32 4294901760, %v15179_v12  ;;  %v6634_v19 = vsel %vm6627_vm15, %v6630_v26, %v6633_v24  ;;  %vm6735_vm0 = vcmp.eq.s32.totalorder %v6730_v9, 2  ;;  %v12485_v26 = vand.u32 4294901760, %v12461_v49  ;;  %v158_v37 = vld [vmem:[#allocation5 + $0x2d0] sm:$0xff] }
 0x2b7   :  { %5376 = vmatprep.subr.mxu1 %v15178_v1  ;;  %v8053_v35 = vpop.eup %8052  ;;  %v3382_v60 = vpop.f32.mrf.mxu0  ;;  %v15186_v1 = vld [vmem:[#allocation88_spill] sm:$0xff]  ;;  %15188 = vst [vmem:[#allocation74_spill] sm:$0xff] %v12466_v4  ;;  %vm6732_vm2 = vcmp.eq.s32.totalorder %v6730_v9, 0  ;;  %v3016_v24 = vadd.f32 %v3015_v38, %v311_v21  ;;  %vm6731_vm3 = vcmp.lt.s32.totalorder %v6730_v9, 2  ;;  %v15201_v21 = vld [vmem:[#allocation47_spill] sm:$0xff]  ;;  %v15209_v41 = vand.u32 4294901760, %v15147_v54 }
 0x2b8   :  { %5250 = vmatpush1.msra.mxu0 %v15180_v59  ;;  %5378 = vmatpush1.msra.mxu1 %v15128_v13  ;;  %v3014_v59 = vadd.f32 %v3013_v27, %v307_v5  ;;  %v15187_v12 = vand.u32 4294901760, %v15186_v1  ;;  %v15189_v13 = vand.u32 4294901760, %v12410_v50  ;;  %v8055_v51 = vpop.eup %8054  ;;  %v15191_v27 = vand.u32 4294901760, %v15190_v36  ;;  %v15195_v36 = vld [vmem:[#allocation81_spill] sm:$0xff]  ;;  %v171_v9 = vld [vmem:[#allocation5 + $0x338] sm:$0xff] }
 0x2b9   :  { %5254 = vmatprep.subr.mxu0 %v15185_v43  ;;  %5380 = vmatprep.subr.mxu1 %v15130_v18  ;;  %v6736_v43 = vxor.u32 2147483648, %v8053_v35  ;;  %v12476_v5 = vand.u32 4294901760, %v223_v47  ;;  %v6733_v1 = vxor.u32 2147483648, %v8055_v51  ;;  %v3384_v31 = vpop.f32.mrf.mxu0  ;;  %v15212_v54 = vand.u32 4294901760, %v11906_v14 }
 0x2ba   :  { %5258 = vmatpush1.msra.mxu0 %v15187_v12  ;;  %v12471_v39 = vsub.f32 %v12410_v50, %v15189_v13  ;;  %5382 = vmatpush1.msra.mxu1 %v15132_v61  ;;  %v3247_v12 = vpop.f32.mrf.mxu1  ;;  %v15194_v13 = vand.u32 4294901760, %v15193_v17  ;;  %v12482_v50 = vand.u32 4294901760, %v210_v33  ;;  %v15215_v14 = vand.u32 4294901760, %v12443_v28 }
 0x2bb   :  { %5262 = vmatprep.subr.mxu0 %v15191_v27  ;;  %5384 = vmatprep.subr.mxu1 %v15192_v52  ;;  %v6737_v61 = vsel %vm6735_vm0, %v6736_v43, %v8055_v51  ;;  %v15196_v27 = vld [vmem:[#allocation91_spill] sm:$0xff]  ;;  %v6635_v52 = vsel %vm6624_vm1, nan, %v6634_v19  ;;  %v6734_v17 = vsel %vm6732_vm2, %v8053_v35, %v6733_v1  ;;  %v15202_v51 = vld [vmem:[#allocation92_spill] sm:$0xff]  ;;  %v12499_v19 = vsub.f32 %v236_v3, %v12466_v4 }
 0x2bc   :  { %5266 = vmatpush1.msra.mxu0 %v15194_v13  ;;  %5386 = vmatpush1.msra.mxu1 %v15195_v36  ;;  %v15197_v18 = vand.u32 4294901760, %v15196_v27  ;;  %v3246_v13 = vadd.f32 %v3245_v22, %v3014_v59  ;;  %v3488_v63 = vpop.f32.mrf.mxu1  ;;  %v6738_v38 = vsel %vm6731_vm3, %v6734_v17, %v6737_v61  ;;  %v15203_v43 = vand.u32 4294901760, %v15202_v51  ;;  %v15204_v59 = vld [vmem:[#allocation100_spill] sm:$0xff] }
 0x2bd   :  { %5388 = vmatprep.subr.mxu1 %v15198_v10  ;;  %v12502_v22 = vsub.f32 %v223_v47, %v12476_v5  ;;  %v6739_v35 = vsel %vm6728_vm4, nan, %v6738_v38  ;;  %v12508_v1 = vsub.f32 %v210_v33, %v12482_v50  ;;  %v12510_v61 = vand.u32 4294901760, %v184_v7 }
 0x2be   :  { %5270 = vmatprep.subr.mxu0 %v15197_v18  ;;  %5390 = vmatpush1.msra.mxu1 %v15201_v21  ;;  %v3383_v10 = vadd.f32 %v3382_v60, %v3246_v13  ;;  %v3656_v18 = vpop.f32.mrf.mxu0  ;;  %v7543_v3 = vsel %vm12448_vm13, %v15139_v48, %v6635_v52  ;;  %v7544_v47 = vsel %vm7531_vm14, %v15152_v20, %v6739_v35  ;;  %v15208_v36 = vand.u32 4294901760, %v15145_v32  ;;  %v3490_v13 = vpop.f32.mrf.mxu1 }
 0x2bf   :  { %5274 = vmatpush1.msra.mxu0 %v15200_v57  ;;  %5392 = vmatprep.subr.mxu1 %v15204_v59  ;;  %v15206_v57 = vand.u32 4294901760, %v15205_v2  ;;  %15207 = vst [vmem:[#allocation23_spill] sm:$0xff] %v12508_v1  ;;  %v3248_v60 = vadd.f32 %v3247_v12, %v3016_v24  ;;  %v14049_v27 = vand.u32 4294901760, %v12459_v30  ;;  %v7566_v33 = vcombine.low %v7543_v3, %v7544_v47  ;;  %v132_v24 = vld [vmem:[#allocation5 + $0x200] sm:$0xff] }
 0x2c0   :  { %5278 = vmatprep.subr.mxu0 %v15203_v43  ;;  %5394 = vmatpush1.msra.mxu1 %v15070_v44  ;;  %v3489_v17 = vadd.f32 %v3488_v63, %v3383_v10  ;;  %v12527_v48 = vsub.f32 %v12461_v49, %v12485_v26  ;;  %v12529_v20 = vand.u32 4294901760, %v171_v9  ;;  %v15211_v32 = vand.u32 4294901760, %v15149_v8  ;;  %v3658_v49 = vpop.f32.mrf.mxu0  ;;  %v145_v8 = vld [vmem:[#allocation5 + $0x268] sm:$0xff] }
 0x2c1   :  { %5282 = vmatpush1.msra.mxu0 %v15206_v57  ;;  %5396 = vmatprep.subr.mxu1 %v15146_v58  ;;  %v3385_v44 = vadd.f32 %v3384_v31, %v3248_v60  ;;  %v14048_v63 = vand.u32 4294901760, %v12499_v19  ;;  %7578 = vst [vmem:[#allocation10 + $0x10] sm:$0xff] %v7566_v33  ;;  %v12540_v31 = vsub.f32 %v184_v7, %v12510_v61  ;;  %v15214_v38 = vand.u32 4294901760, %v12040_v56 }
 0x2c2   :  { %5286 = vmatprep.subr.mxu0 %v15208_v36  ;;  %15210 = vst [vmem:[#allocation78_spill] sm:$0xff] %v12527_v48  ;;  %5398 = vmatpush1.msra.mxu1 %v15148_v16  ;;  %v3657_v58 = vadd.f32 %v3656_v18, %v3489_v17  ;;  %v14047_v16 = vand.u32 4294901760, %v12502_v22  ;;  %v12549_v21 = vsub.f32 %v12443_v28, %v15215_v14  ;;  %v14046_v51 = vand.u32 4294901760, %v12508_v1 }
 0x2c3   :  { %5290 = vmatpush1.msra.mxu0 %v15209_v41  ;;  %5400 = vmatprep.subr.mxu1 %v15150_v42  ;;  %15213 = vst [vmem:[#allocation97_spill] sm:$0xff] %v12540_v31  ;;  %v3491_v52 = vadd.f32 %v3490_v13, %v3385_v44  ;;  %v3760_v42 = vpop.f32.mrf.mxu1  ;;  %v12554_v7 = vsub.f32 %v12459_v30, %v14049_v27  ;;  %v12565_v35 = vand.u32 4294901760, %v158_v37  ;;  %v14045_v10 = vand.u32 4294901760, %v12527_v48  ;;  %v119_v41 = vld [vmem:[#allocation5 + $0x198] sm:$0xff] }
 0x2c4   :  { %5294 = vmatprep.subr.mxu0 %v15211_v32  ;;  %5402 = vmatpush1.msra.mxu1 %v15151_v23  ;;  %v15216_v23 = vand.u32 4294901760, %v11949_v40  ;;  %v12560_v56 = vadd.f32 %v3760_v42, %v3657_v58  ;;  %v12563_v43 = vsub.f32 %v171_v9, %v12529_v20  ;;  %v15219_v59 = vand.u32 4294901760, %v12047_v62  ;;  %v106_v32 = vld [vmem:[#allocation5 + $0x130] sm:$0xff] }
 0x2c5   :  { %5298 = vmatpush1.msra.mxu0 %v15212_v54  ;;  %5404 = vmatprep.subr.mxu1 %v11729_v55  ;;  %v3659_v2 = vadd.f32 %v3658_v49, %v3491_v52  ;;  %v3762_v57 = vpop.f32.mrf.mxu1  ;;  %v12574_v55 = vsub.f32 %v12499_v19, %v14048_v63  ;;  %v12576_v40 = vand.u32 4294901760, %v145_v8  ;;  %v12578_v9 = vand.u32 4294901760, %v132_v24  ;;  %v15228_v49 = vld [vmem:[#allocation82_spill] sm:$0xff] }
 0x2c6   :  { %5302 = vmatprep.subr.mxu0 %v15214_v38  ;;  %15217 = vst [vmem:[#allocation40_spill] sm:$0xff] %v12560_v56  ;;  %15218 = vst [vmem:[#allocation102_spill] sm:$0xff] %v12563_v43  ;;  %5406 = vmatpush1.msra.mxu1 %v15087_v15  ;;  %v15220_v18 = vand.u32 4294901760, %v11996_v0  ;;  %v14050_v15 = vand.u32 2147483647, %v12560_v56  ;;  %v6743_v62 = vand.u32 2139095040, %v12560_v56  ;;  %v12588_v3 = vsub.f32 %v12502_v22, %v14047_v16 }
 0x2c7   :  { %5306 = vmatpush1.msra.mxu0 %v15216_v23  ;;  %5408 = vmatprep.subr.mxu1 %v11798_v45  ;;  %v14043_v47 = vand.u32 4294901760, %v12540_v31  ;;  %v15221_v60 = vand.u32 4294901760, %v12050_v46  ;;  %v12594_v45 = vadd.f32 %v3762_v57, %v3659_v2  ;;  %v12601_v33 = vsub.f32 %v12508_v1, %v14046_v51  ;;  %v15232_v57 = vld [vmem:[#allocation33_spill] sm:$0xff] }
 0x2c8   :  { %5310 = vmatprep.subr.mxu0 %v15219_v59  ;;  %5410 = vmatpush1.msra.mxu1 %v11766_v6  ;;  %v15223_v17 = vand.u32 4294901760, %v12011_v11  ;;  %v6744_v6 = vshrl.u32 %v6743_v62, 23  ;;  %v12607_v46 = vsub.f32 %v158_v37, %v12565_v35  ;;  %v12612_v13 = vsub.f32 %v12527_v48, %v14045_v10  ;;  %v12663_v51 = vld [vmem:[#allocation5 + $0x60] sm:$0xff] }
 0x2c9   :  { %5314 = vmatpush1.msra.mxu0 %v15220_v18  ;;  %15222 = vst [vmem:[#allocation85_spill] sm:$0xff] %v12594_v45  ;;  %5412 = vmatprep.subr.mxu1 %v11801_v53  ;;  %v14044_v44 = vand.u32 4294901760, %v12563_v43  ;;  %v15225_v53 = vand.u32 4294901760, %v12053_v25  ;;  %v6847_v11 = vand.u32 2139095040, %v12594_v45  ;;  %v12621_v37 = vsub.f32 %v145_v8, %v12576_v40  ;;  %v93_v8 = vld [vmem:[#allocation5 + $0xc8] sm:$0xff]  ;;  %v15233_v18 = vld [vmem:[#allocation95_spill] sm:$0xff] }
 0x2ca   :  { %5318 = vmatprep.subr.mxu0 %v15221_v60  ;;  %15224 = vst [vmem:[#allocation101_spill] sm:$0xff] %v12607_v46  ;;  %5414 = vmatpush1.msra.mxu1 %v11803_v34  ;;  %v12624_v58 = vsub.f32 %v132_v24, %v12578_v9  ;;  %v15229_v52 = vand.u32 4294901760, %v15228_v49  ;;  %v7624_v38 = vadd.s32 4294967169, %v6744_v6  ;;  %v6747_v34 = vand.u32 8388607, %v14050_v15  ;;  %v15231_v24 = vld [vmem:[#allocation39_spill] sm:$0xff] }
 0x2cb   :  { %5322 = vmatpush1.msra.mxu0 %v15223_v17  ;;  %15226 = vst [vmem:[#allocation86_spill] sm:$0xff] %v12621_v37  ;;  %5416 = vmatprep.subr.mxu1 %v11879_v29  ;;  %v12635_v42 = vsub.f32 %v12540_v31, %v14043_v47  ;;  %v15230_v14 = vmov 0.0   ;;  %v6848_v29 = vshrl.u32 %v6847_v11, 23  ;;  %v12640_v59 = vand.u32 4294901760, %v119_v41  ;;  %v15244_v25 = vld [vmem:[#allocation24_spill] sm:$0xff] }
 0x2cc   :  { %5326 = vmatprep.subr.mxu0 %v15225_v53  ;;  %15227 = vst [vmem:[#allocation66_spill] sm:$0xff] %v12624_v58  ;;  %5363 = vmatprep.mubr.f32.mxu0 %v15230_v14  ;;  %v12642_v2 = vand.u32 4294901760, %v106_v32  ;;  %v6750_v62 = vadd.s32 1, %v7624_v38  ;;  %v12650_v17 = vsub.f32 %v12563_v43, %v14044_v44  ;;  %v14051_v6 = vand.u32 4294901760, %v12607_v46  ;;  %v15234_v53 = vld [vmem:[#allocation96_spill] sm:$0xff] }
 0x2cd   :  { %5330 = vmatpush1.msra.mxu0 %v15229_v52  ;;  %5418 = vmatpush1.msra.mxu1 %v15231_v24  ;;  %v7628_v11 = vadd.s32 4294967169, %v6848_v29  ;;  %v12655_v49 = vand.u32 4294901760, %v93_v8  ;;  %v14052_v52 = vand.u32 4294901760, %v12621_v37  ;;  %v14053_v38 = vand.u32 4294901760, %v12624_v58  ;;  %v15235_v24 = vld [vmem:[#allocation69_spill] sm:$0xff]  ;;  %v15237_v29 = vld [vmem:[#allocation84_spill] sm:$0xff] }
 0x2ce   :  { %5365 = vmatmul.mubr.f32.vlgmr.msra.gmra.mxu0 %v15232_v57  ;;  %5420 = vmatprep.subr.mxu1 %v15233_v18  ;;  %v15236_v18 = vld [vmem:[#allocation73_spill] sm:$0xff]  ;;  %v6748_v47 = vor.u32 8388608, %v6747_v34  ;;  %vm6751_vm5 = vcmp.gt.s32.totalorder %v6750_v62, 0  ;;  %v14056_v44 = vand.u32 2147483647, %v12594_v45  ;;  %v12668_v63 = vsub.f32 %v119_v41, %v12640_v59  ;;  %v15238_v34 = vld [vmem:[#allocation44_spill] sm:$0xff] }
 0x2cf   :  { %7754 = vmatprep.subr.mxu0 %v15230_v14  ;;  %5422 = vmatpush1.msra.mxu1 %v15234_v53  ;;  %v6752_v53 = vsel %vm6751_vm5, %v6750_v62, 0  ;;  %v6854_v16 = vadd.s32 1, %v7628_v11  ;;  %v12671_v27 = vsub.f32 %v106_v32, %v12642_v2  ;;  %v12681_v62 = vsub.f32 %v12607_v46, %v14051_v6  ;;  %v15240_v41 = vld [vmem:[#allocation37_spill] sm:$0xff]  ;;  %v15242_v6 = vld [vmem:[#allocation19_spill] sm:$0xff] }
 0x2d0   :  { %7755 = vmatpush3.msra.mxu0 %v15235_v24  ;;  %5424 = vmatprep.subr.mxu1 %v15236_v18  ;;  %v15239_v18 = vld [vmem:[#allocation16_spill] sm:$0xff]  ;;  %v12675_v15 = vshrl.u32 %v6752_v53, 5  ;;  %v6754_v10 = vand.u32 31, %v6752_v53  ;;  %v12686_v32 = vsub.f32 %v93_v8, %v12655_v49  ;;  %v12691_v11 = vsub.f32 %v12621_v37, %v14052_v52 }
 0x2d1   :  { %7756 = vmatprep.subr.mxu0 %v15230_v14  ;;  %5426 = vmatpush1.msra.mxu1 %v15237_v29  ;;  %v12694_v29 = vand.u32 4294901760, %v12663_v51  ;;  %v12699_v53 = vsub.f32 %v12624_v58, %v14053_v38  ;;  %v15243_v8 = vmov 683565275   ;;  %v12704_v23 = vshll.u32 %v6748_v47, 8 }
 0x2d2   :  { %7757 = vmatpush3.msra.mxu0 %v15238_v34  ;;  %5428 = vmatprep.subr.mxu1 %v15239_v18  ;;  %v15241_v18 = vld [vmem:[#allocation42_spill] sm:$0xff]  ;;  %v6757_v60 = vshll.u32 %v15243_v8, %v6754_v10  ;;  %v12708_v52 = vand.u32 8388607, %v14056_v44  ;;  %v15245_v54 = vmov 2475754826   ;;  %vm6855_vm6 = vcmp.gt.s32.totalorder %v6854_v16, 0 }
 0x2d3   :  { %7758 = vmatprep.subr.mxu0 %v15230_v14  ;;  %5430 = vmatpush1.msra.mxu1 %v15240_v41  ;;  %v6755_v41 = vsub.s32 32, %v6754_v10  ;;  %v6760_v38 = vshll.u32 %v15245_v54, %v6754_v10  ;;  %v15246_v36 = vmov 2131351028   ;;  %v15247_v12 = vmov 2102212464  }
 0x2d4   :  { %7759 = vmatpush3.msra.mxu0 %v15241_v18  ;;  %5432 = vmatprep.subr.mxu1 %v15242_v6  ;;  %v6763_v0 = vshll.u32 %v15246_v36, %v6754_v10  ;;  %v6766_v58 = vshll.u32 %v15247_v12, %v6754_v10  ;;  %v15248_v44 = vmov 920167782   ;;  %vm6772_vm7 = vcmp.lt.s32.totalorder %v12675_v15, 1 }
 0x2d5   :  { %7760 = vmatprep.subr.mxu0 %v15230_v14  ;;  %5434 = vmatpush1.msra.mxu1 %v15244_v25  ;;  %v6758_v47 = vshrl.u32 %v15245_v54, %v6755_v41  ;;  %v6761_v6 = vshrl.u32 %v15246_v36, %v6755_v41  ;;  %v6769_v45 = vshll.u32 %v15248_v44, %v6754_v10  ;;  %v15249_v46 = vmov 1326507024  }
 0x2d6   :  { %5467 = vmatprep.mubr.f32.mxu1 %v15230_v14  ;;  %7761 = vmatpush3.msra.mxu0 %v12466_v4  ;;  %v6764_v25 = vshrl.u32 %v15247_v12, %v6755_v41  ;;  %v6767_v37 = vshrl.u32 %v15248_v44, %v6755_v41  ;;  %v6770_v56 = vshrl.u32 %v15249_v46, %v6755_v41  ;;  %vm6773_vm8 = vcmp.lt.s32.totalorder %v12675_v15, 2 }
 0x2d7   :  { %5469 = vmatmul.mubr.f32.vlgmr.msra.gmra.mxu1 %v15232_v57  ;;  %7762 = vmatprep.subr.mxu0 %v15230_v14  ;;  %v6756_v43 = vshrl.u32 %v15243_v8, %v6755_v41  ;;  %v6759_v4 = vor.u32 %v6758_v47, %v6757_v60  ;;  %v6762_v31 = vor.u32 %v6761_v6, %v6760_v38  ;;  %v6856_v10 = vsel %vm6855_vm6, %v6854_v16, 0 }
 0x2d8   :  { %7789 = vmatprep.subr.mxu1 %v15230_v14  ;;  %7763 = vmatpush3.msra.mxu0 %v12476_v5  ;;  %v6765_v18 = vor.u32 %v6764_v25, %v6763_v0  ;;  %v6768_v48 = vor.u32 %v6767_v37, %v6766_v58  ;;  %v6771_v34 = vor.u32 %v6770_v56, %v6769_v45  ;;  %vm6774_vm9 = vcmp.lt.s32.totalorder %v12675_v15, 3 }
 0x2d9   :  { %v15250_v1 = vand.u32 4294901760, %v12471_v39  ;;  %7764 = vmatprep.subr.mxu0 %v15230_v14  ;;  %vm6775_vm10 = vcmp.lt.s32.totalorder %v12675_v15, 4  ;;  %v6776_v60 = vsel %vm6772_vm7, %v6756_v43, %v6759_v4  ;;  %v6780_v38 = vsel %vm6772_vm7, %v6759_v4, %v6762_v31 }
 0x2da   :  { %v6858_v41 = vand.u32 31, %v6856_v10  ;;  %7765 = vmatpush3.msra.mxu0 %v12482_v50  ;;  %v6777_v16 = vsel %vm6775_vm10, %v6765_v18, 2102212464  ;;  %v6781_v56 = vsel %vm6775_vm10, %v6768_v48, 920167782  ;;  %v6784_v39 = vsel %vm6772_vm7, %v6762_v31, %v6765_v18 }
 0x2db   :  { %7790 = vmatpush3.msra.mxu1 %v15250_v1  ;;  %v6785_v1 = vsel %vm6775_vm10, %v6771_v34, 1326507024  ;;  %v15251_v45 = vand.u32 4294901760, %v12549_v21  ;;  %7766 = vmatprep.subr.mxu0 %v15230_v14  ;;  %v6778_v43 = vsel %vm6774_vm9, %v6762_v31, %v6777_v16  ;;  %v6782_v4 = vsel %vm6774_vm9, %v6765_v18, %v6781_v56 }
 0x2dc   :  { %7791 = vmatprep.subr.mxu1 %v15230_v14  ;;  %v6786_v0 = vsel %vm6774_vm9, %v6768_v48, %v6785_v1  ;;  %v6859_v37 = vsub.s32 32, %v6858_v41  ;;  %7767 = vmatpush3.msra.mxu0 %v12485_v26  ;;  %v6783_v21 = vsel %vm6773_vm8, %v6780_v38, %v6782_v4  ;;  %v6852_v34 = vor.u32 8388608, %v12708_v52 }
 0x2dd   :  { %7792 = vmatpush3.msra.mxu1 %v15251_v45  ;;  %v6787_v58 = vsel %vm6773_vm8, %v6784_v39, %v6786_v0  ;;  %v12760_v31 = vshrl.u32 %v6856_v10, 5  ;;  %v15252_v18 = vand.u32 4294901760, %v12554_v7  ;;  %7768 = vmatprep.subr.mxu0 %v15230_v14  ;;  %v6779_v52 = vsel %vm6773_vm8, %v6776_v60, %v6778_v43 }
 0x2de   :  { %7793 = vmatprep.subr.mxu1 %v15230_v14  ;;  %v12765_v48 = vmul.u32.u64.low %v12704_v23, %v6787_v58  ;;  %v12766_v47 = vmul.u32.u64.high %v12704_v23, %v6787_v58, %v12765_v48  ;;  %v12769_v6 = vmul.u32.u64.low %v12704_v23, %v6783_v21  ;;  %v12770_v25 = vmul.u32.u64.high %v12704_v23, %v6783_v21, %v12769_v6  ;;  %7769 = vmatpush3.msra.mxu0 %v12510_v61 }
 0x2df   :  { %7794 = vmatpush3.msra.mxu1 %v15252_v18  ;;  %v6861_v10 = vshll.u32 %v15243_v8, %v6858_v41  ;;  %v6862_v7 = vshrl.u32 %v15245_v54, %v6859_v37  ;;  %v6864_v38 = vshll.u32 %v15245_v54, %v6858_v41  ;;  %v6865_v16 = vshrl.u32 %v15246_v36, %v6859_v37 }
 0x2e0   :  { %7795 = vmatprep.subr.mxu1 %v15230_v14  ;;  %v6867_v56 = vshll.u32 %v15246_v36, %v6858_v41  ;;  %v6868_v39 = vshrl.u32 %v15247_v12, %v6859_v37  ;;  %v6870_v1 = vshll.u32 %v15247_v12, %v6858_v41  ;;  %v15253_v45 = vand.u32 4294901760, %v12574_v55  ;;  %7770 = vmatprep.subr.mxu0 %v15230_v14 }
 0x2e1   :  { %v6863_v15 = vor.u32 %v6862_v7, %v6861_v10  ;;  %v6871_v60 = vshrl.u32 %v15248_v44, %v6859_v37  ;;  %v6873_v43 = vshll.u32 %v15248_v44, %v6858_v41  ;;  %v6874_v4 = vshrl.u32 %v15249_v46, %v6859_v37  ;;  %7771 = vmatpush3.msra.mxu0 %v12529_v20 }
 0x2e2   :  { %7796 = vmatpush3.msra.mxu1 %v15253_v45  ;;  %v6795_v0 = vmul.u32 %v12704_v23, %v6779_v52  ;;  %vm6797_vm11 = vc.u32 %v12766_v47, %v12769_v6  ;;  %v6798_v21 = vadd.s32 1, %v12770_v25  ;;  %v6866_v58 = vor.u32 %v6865_v16, %v6864_v38  ;;  %7772 = vmatprep.subr.mxu0 %v15230_v14 }
 0x2e3   :  { %7797 = vmatprep.subr.mxu1 %v15230_v14  ;;  %v6869_v55 = vor.u32 %v6868_v39, %v6867_v56  ;;  %v6872_v18 = vor.u32 %v6871_v60, %v6870_v1  ;;  %v6875_v48 = vor.u32 %v6874_v4, %v6873_v43  ;;  %v15254_v41 = vand.u32 4294901760, %v12588_v3  ;;  %7773 = vmatpush3.msra.mxu0 %v12565_v35 }
 0x2e4   :  { %v5634_v23 = vand.u32 4294901760, %v12681_v62  ;;  %v6799_v52 = vsel %vm6797_vm11, %v6798_v21, %v12770_v25  ;;  %v6860_v10 = vshrl.u32 %v15243_v8, %v6859_v37  ;;  %vm6876_vm12 = vcmp.lt.s32.totalorder %v12760_v31, 1  ;;  %7774 = vmatprep.subr.mxu0 %v15230_v14 }
 0x2e5   :  { %7798 = vmatpush3.msra.mxu1 %v15254_v41  ;;  %v12804_v7 = vshll.u32 %v6852_v34, 8  ;;  %v6800_v38 = vadd.s32 %v6799_v52, %v6795_v0  ;;  %vm6878_vm13 = vcmp.lt.s32.totalorder %v12760_v31, 3  ;;  %vm6879_vm14 = vcmp.lt.s32.totalorder %v12760_v31, 4  ;;  %7775 = vmatpush3.msra.mxu0 %v12576_v40 }
 0x2e6   :  { %7799 = vmatprep.subr.mxu1 %v15230_v14  ;;  %v6884_v3 = vsel %vm6876_vm12, %v6863_v15, %v6866_v58  ;;  %v15255_v62 = vand.u32 4294901760, %v12601_v33  ;;  %v6881_v37 = vsel %vm6879_vm14, %v6869_v55, 2102212464  ;;  %v6885_v34 = vsel %vm6879_vm14, %v6872_v18, 920167782  ;;  %7776 = vmatprep.subr.mxu0 %v15230_v14 }
 0x2e7   :  { %v6888_v25 = vsel %vm6876_vm12, %v6866_v58, %v6869_v55  ;;  %v6889_v16 = vsel %vm6879_vm14, %v6875_v48, 1326507024  ;;  %v6801_v56 = vadd.s32 536870912, %v6800_v38  ;;  %vm6877_vm15 = vcmp.lt.s32.totalorder %v12760_v31, 2  ;;  %7777 = vmatpush3.msra.mxu0 %v12578_v9 }
 0x2e8   :  { %7800 = vmatpush3.msra.mxu1 %v15255_v62  ;;  %v6886_v39 = vsel %vm6878_vm13, %v6869_v55, %v6885_v34  ;;  %v6890_v33 = vsel %vm6878_vm13, %v6872_v18, %v6889_v16  ;;  %v15256_v1 = vand.u32 4294901760, %v12612_v13  ;;  %v6880_v45 = vsel %vm6876_vm12, %v6860_v10, %v6863_v15  ;;  %7778 = vmatprep.subr.mxu0 %v15230_v14 }
 0x2e9   :  { %7801 = vmatprep.subr.mxu1 %v15230_v14  ;;  %v6887_v60 = vsel %vm6877_vm15, %v6884_v3, %v6886_v39  ;;  %v6891_v43 = vsel %vm6877_vm15, %v6888_v25, %v6890_v33  ;;  %v5653_v4 = vand.u32 4294901760, %v12668_v63  ;;  %v12836_v0 = vshrl.u32 %v6801_v56, 30  ;;  %7779 = vmatpush3.msra.mxu0 %v12640_v59 }
 0x2ea   :  { %7802 = vmatpush3.msra.mxu1 %v15256_v1  ;;  %v6882_v13 = vsel %vm6878_vm13, %v6866_v58, %v6881_v37  ;;  %v12841_v21 = vmul.u32.u64.low %v12804_v7, %v6891_v43  ;;  %v12842_v15 = vmul.u32.u64.high %v12804_v7, %v6891_v43, %v12841_v21  ;;  %v15257_v55 = vand.u32 4294901760, %v12635_v42  ;;  %7780 = vmatprep.subr.mxu0 %v15230_v14  ;;  %v15260_v43 = vld [vmem:[#allocation25_spill] sm:$0xff] }
 0x2eb   :  { %7803 = vmatprep.subr.mxu1 %v15230_v14  ;;  %v12848_v18 = vmul.u32.u64.low %v12804_v7, %v6887_v60  ;;  %v12849_v48 = vmul.u32.u64.high %v12804_v7, %v6887_v60, %v12848_v18  ;;  %v12856_v58 = vsub.f32 %v12663_v51, %v12694_v29  ;;  %v5660_v41 = vand.u32 4294901760, %v12671_v27  ;;  %7781 = vmatpush3.msra.mxu0 %v12642_v2 }
 0x2ec   :  { %7804 = vmatpush3.msra.mxu1 %v15257_v55  ;;  %v6803_v42 = vshll.u32 %v12836_v0, 30  ;;  %v15258_v52 = vand.u32 4294901760, %v12650_v17  ;;  %v5641_v10 = vand.u32 4294901760, %v12691_v11  ;;  %v6883_v3 = vsel %vm6877_vm15, %v6880_v45, %v6882_v13  ;;  %7782 = vmatprep.subr.mxu0 %v15230_v14  ;;  %v15259_v45 = vld [vmem:[#allocation38_spill] sm:$0xff] }
 0x2ed   :  { %7805 = vmatprep.subr.mxu1 %v15230_v14  ;;  %v5654_v51 = vsub.f32 %v12668_v63, %v5653_v4  ;;  %v5667_v62 = vand.u32 4294901760, %v12686_v32  ;;  %vm6901_vm0 = vc.u32 %v12842_v15, %v12848_v18  ;;  %v5648_v17 = vand.u32 4294901760, %v12699_v53  ;;  %7783 = vmatpush3.msra.mxu0 %v12655_v49 }
 0x2ee   :  { %7806 = vmatpush3.msra.mxu1 %v15258_v52  ;;  %v12872_v37 = vsub.s32 %v6800_v38, %v6803_v42  ;;  %v6902_v11 = vadd.s32 1, %v12849_v48  ;;  %v5661_v31 = vsub.f32 %v12671_v27, %v5660_v41  ;;  %v5674_v34 = vand.u32 4294901760, %v12856_v58  ;;  %7784 = vmatprep.subr.mxu0 %v15230_v14 }
 0x2ef   :  { %7807 = vmatprep.subr.mxu1 %v15230_v14  ;;  %v6899_v25 = vmul.u32 %v12804_v7, %v6883_v3  ;;  %v5668_v16 = vsub.f32 %v12686_v32, %v5667_v62  ;;  %7785 = vmatpush3.msra.mxu0 %v12694_v29  ;;  %vm8210_vm1 = vmmov 0  }
 0x2f0   :  { %7808 = vmatpush3.msra.mxu1 %v5634_v23  ;;  %v6806_v38 = vsub.s32 0, %v12872_v37  ;;  %v6903_v53 = vsel %vm6901_vm0, %v6902_v11, %v12849_v48  ;;  %v5655_v23 = vand.u32 4294901760, %v5654_v51  ;;  %7786 = vmatprep.mubr.msk.f32.mxu0 %vm8210_vm1, %v15230_v14  ;;  %v5662_v7 = vand.u32 4294901760, %v5661_v31 }
 0x2f1   :  { %7809 = vmatprep.subr.mxu1 %v15230_v14  ;;  %v6904_v39 = vadd.s32 %v6903_v53, %v6899_v25  ;;  %v5675_v33 = vsub.f32 %v12856_v58, %v5674_v34  ;;  %7824 = vmatprep.subr.mxu0 %v15230_v14  ;;  %v5669_v13 = vand.u32 4294901760, %v5668_v16  ;;  %v15262_v16 = vld [vmem:[#allocation44_spill] sm:$0xff] }
 0x2f2   :  { %7810 = vmatpush3.msra.mxu1 %v5641_v10  ;;  %v7625_v56 = vmin.u32 %v6806_v38, %v12872_v37  ;;  %7787 = vmatmul.mubr.f32.vlgmr.msra.gmra.mxu0 %v15259_v45  ;;  %v6796_v10 = vadd.s32 %v12769_v6, %v12766_v47 }
 0x2f3   :  { %7811 = vmatprep.subr.mxu1 %v15230_v14  ;;  %v6905_v60 = vadd.s32 536870912, %v6904_v39  ;;  %7825 = vmatpush3.msra.mxu0 %v15260_v43  ;;  %v5676_v48 = vand.u32 4294901760, %v5675_v33  ;;  %v15263_v33 = vld [vmem:[#allocation78_spill] sm:$0xff] }
 0x2f4   :  { %7812 = vmatpush3.msra.mxu1 %v5648_v17  ;;  %v6808_v1 = vclz %v7625_v56  ;;  %7826 = vmatprep.subr.mxu0 %v15230_v14 }
 0x2f5   :  { %7813 = vmatprep.subr.mxu1 %v15230_v14  ;;  %v12906_v55 = vshrl.u32 %v6905_v60, 30  ;;  %7827 = vmatpush3.msra.mxu0 %v12443_v28 }
 0x2f6   :  { %7814 = vmatpush3.msra.mxu1 %v5655_v23  ;;  %v7626_v21 = vadd.s32 4294967294, %v6808_v1  ;;  %7828 = vmatprep.subr.mxu0 %v15230_v14  ;;  %v15261_v23 = vld [vmem:[#allocation23_spill] sm:$0xff]  ;;  %v15264_v1 = vld [vmem:[#allocation42_spill] sm:$0xff] }
 0x2f7   :  { %7815 = vmatprep.subr.mxu1 %v15230_v14  ;;  %v6907_v52 = vshll.u32 %v12906_v55, 30  ;;  %7829 = vmatpush3.msra.mxu0 %v12459_v30 }
 0x2f8   :  { %7816 = vmatpush3.msra.mxu1 %v5662_v7  ;;  %vm7627_vm2 = vcmp.lt.s32.totalorder %v7626_v21, 0  ;;  %7830 = vmatprep.subr.mxu0 %v15230_v14 }
 0x2f9   :  { %7817 = vmatprep.subr.mxu1 %v15230_v14  ;;  %v6811_v42 = vsel %vm7627_vm2, 0, %v7626_v21  ;;  %v6908_v17 = vsub.s32 %v6904_v39, %v6907_v52  ;;  %7821 = vmatprep.mubr.msk.f32.mxu1 %vm8210_vm1, %v15230_v14  ;;  %v15266_v21 = vld [vmem:[#allocation74_spill] sm:$0xff] }
 0x2fa   :  { %7818 = vmatpush3.msra.mxu1 %v5669_v13  ;;  %v6812_v3 = vsub.s32 32, %v6811_v42  ;;  %v6816_v51 = vsub.s32 4294967266, %v6811_v42  ;;  %v6813_v11 = vshll.u32 %v12872_v37, %v6811_v42  ;;  %7831 = vmatpush3.msra.mxu0 %v12499_v19  ;;  %v15265_v13 = vld [vmem:[#allocation97_spill] sm:$0xff]  ;;  %v15267_v52 = vld [vmem:[#allocation102_spill] sm:$0xff] }
 0x2fb   :  { %7819 = vmatprep.subr.mxu1 %v15230_v14  ;;  %v6910_v47 = vsub.s32 0, %v6908_v17  ;;  %7832 = vmatprep.subr.mxu0 %v15230_v14 }
 0x2fc   :  { %7820 = vmatpush3.msra.mxu1 %v5676_v48  ;;  %v6814_v31 = vshrl.u32 %v6796_v10, %v6812_v3  ;;  %v6817_v38 = vadd.s32 127, %v6816_v51  ;;  %7833 = vmatpush3.msra.mxu0 %v12502_v22  ;;  %v15268_v10 = vld [vmem:[#allocation40_spill] sm:$0xff]  ;;  %v6900_v3 = vadd.s32 %v12848_v18, %v12842_v15 }
 0x2fd   :  { %7822 = vmatmul.mubr.f32.vlgmr.msra.gmra.mxu1 %v15232_v57  ;;  %7859 = vmatprep.subr.mxu1 %v15230_v14  ;;  %v7629_v53 = vmin.u32 %v6910_v47, %v6908_v17  ;;  %vm6742_vm4 = vcmp.lt.s32.totalorder %v15268_v10, 0  ;;  %v15270_v47 = vand.u32 2147483647, %v15268_v10  ;;  %vm6832_vm14 = vweird.f32 %v15268_v10 }
 0x2fe   :  { %v6815_v6 = vor.u32 %v6814_v31, %v6813_v11  ;;  %v6818_v25 = vshll.u32 %v6817_v38, 23  ;;  %7860 = vmatpush3.msra.mxu1 %v15235_v24  ;;  %7834 = vmatprep.subr.mxu0 %v15230_v14  ;;  %v15269_v38 = vld [vmem:[#allocation101_spill] sm:$0xff] }
 0x2ff   :  { %7861 = vmatprep.subr.mxu1 %v15230_v14  ;;  %7835 = vmatpush3.msra.mxu0 %v15261_v23  ;;  %v6912_v56 = vclz %v7629_v53  ;;  %vm12953_vm5 = vcmp.le.f32.partialorder %v15270_v47, 0.7853982 }
 0x300   :  { %v6819_v37 = vor.u32 4788187, %v6818_v25  ;;  %7862 = vmatpush3.msra.mxu1 %v15262_v16  ;;  %7836 = vmatprep.subr.mxu0 %v15230_v14  ;;  %v6822_v7 = vcvt.s32.f32 %v6815_v6 }
 0x301   :  { %7863 = vmatprep.subr.mxu1 %v15230_v14  ;;  %7837 = vmatpush3.msra.mxu0 %v15263_v33  ;;  %v7630_v45 = vadd.s32 4294967294, %v6912_v56 }
 0x302   :  { %v6820_v39 = vand.u32 2147483647, %v6819_v37  ;;  %7864 = vmatpush3.msra.mxu1 %v15264_v1  ;;  %7838 = vmatprep.subr.mxu0 %v15230_v14  ;;  %v15273_v37 = vld [vmem:[#allocation86_spill] sm:$0xff] }
 0x303   :  { %7865 = vmatprep.subr.mxu1 %v15230_v14  ;;  %7839 = vmatpush3.msra.mxu0 %v15265_v13  ;;  %vm7631_vm3 = vcmp.lt.s32.totalorder %v7630_v45, 0 }
 0x304   :  { %v6823_v60 = vmul.f32 %v6822_v7, %v6820_v39  ;;  %7866 = vmatpush3.msra.mxu1 %v15266_v21  ;;  %7840 = vmatprep.subr.mxu0 %v15230_v14  ;;  %v6915_v42 = vsel %vm7631_vm3, 0, %v7630_v45  ;;  %v6826_v45 = vsub.s32 4, %v12836_v0 }
 0x305   :  { %7867 = vmatprep.subr.mxu1 %v15230_v14  ;;  %7841 = vmatpush3.msra.mxu0 %v15267_v52  ;;  %v6916_v51 = vsub.s32 32, %v6915_v42  ;;  %v6920_v11 = vsub.s32 4294967266, %v6915_v42  ;;  %v6917_v15 = vshll.u32 %v6908_v17, %v6915_v42  ;;  %v15274_v17 = vld [vmem:[#allocation66_spill] sm:$0xff] }
 0x306   :  { %v6824_v48 = vxor.u32 2147483648, %v6823_v60  ;;  %7868 = vmatpush3.msra.mxu1 %v12476_v5  ;;  %7842 = vmatprep.subr.mxu0 %v15230_v14 }
 0x307   :  { %7869 = vmatprep.subr.mxu1 %v15230_v14  ;;  %7843 = vmatpush3.msra.mxu0 %v15269_v38  ;;  %v6918_v18 = vshrl.u32 %v6900_v3, %v6916_v51  ;;  %v6921_v25 = vadd.s32 127, %v6920_v11  ;;  %v6827_v3 = vsel %vm6742_vm4, %v6826_v45, %v12836_v0  ;;  %v15275_v11 = vld [vmem:[#allocation85_spill] sm:$0xff] }
 0x308   :  { %v6825_v31 = vsel %vm6742_vm4, %v6824_v48, %v6823_v60  ;;  %7870 = vmatpush3.msra.mxu1 %v12482_v50  ;;  %7844 = vmatprep.subr.mxu0 %v15230_v14  ;;  %vm6846_vm6 = vcmp.lt.s32.totalorder %v15275_v11, 0  ;;  %v15276_v47 = vand.u32 2147483647, %v15275_v11  ;;  %vm6936_vm2 = vweird.f32 %v15275_v11 }
 0x309   :  { %7871 = vmatprep.subr.mxu1 %v15230_v14  ;;  %v6828_v53 = vsel %vm12953_vm5, %v15268_v10, %v6825_v31  ;;  %7845 = vmatpush3.msra.mxu0 %v15273_v37  ;;  %v6919_v56 = vor.u32 %v6918_v18, %v6917_v15  ;;  %v6922_v39 = vshll.u32 %v6921_v25, 23  ;;  %v6930_v31 = vsub.s32 4, %v12906_v55  ;;  %v15279_v18 = vld [vmem:[#allocation34_spill] sm:$0xff] }
 0x30a   :  { %7872 = vmatpush3.msra.mxu1 %v12485_v26  ;;  %7846 = vmatprep.subr.mxu0 %v15230_v14  ;;  %8056 = vcosq.f32 %v6828_v53  ;;  %vm12993_vm7 = vcmp.le.f32.partialorder %v15276_v47, 0.7853982  ;;  %v6829_v25 = vsel %vm12953_vm5, 0, %v6827_v3  ;;  %v15283_v47 = vand.u32 4294901760, %v12499_v19  ;;  %v15285_v15 = vld [vmem:[#allocation58_spill] sm:$0xff] }
 0x30b   :  { %7873 = vmatprep.subr.mxu1 %v15230_v14  ;;  %7847 = vmatpush3.msra.mxu0 %v15274_v17  ;;  %v6923_v7 = vor.u32 4788187, %v6922_v39  ;;  %8058 = vsinq.f32 %v6828_v53  ;;  %v6926_v48 = vcvt.s32.f32 %v6919_v56  ;;  %v15280_v56 = vand.u32 4294901760, %v15260_v43 }
 0x30c   :  { %7874 = vmatpush3.msra.mxu1 %v12510_v61  ;;  %7848 = vmatprep.subr.mxu0 %v15230_v14  ;;  %v6931_v39 = vsel %vm6846_vm6, %v6930_v31, %v12906_v55  ;;  %v6833_v6 = vadd.s32 3, %v6829_v25  ;;  %v3868_v31 = vpop.f32.mrf.mxu0  ;;  %v15287_v25 = vld [vmem:[#allocation30_spill] sm:$0xff] }
 0x30d   :  { %7875 = vmatprep.subr.mxu1 %v15230_v14  ;;  %7849 = vmatpush3.msra.mxu0 %v12668_v63  ;;  %v6924_v60 = vand.u32 2147483647, %v6923_v7  ;;  %v15281_v7 = vand.u32 4294901760, %v12443_v28  ;;  %v6933_v55 = vsel %vm12993_vm7, 0, %v6931_v39  ;;  %v15290_v19 = vsub.s32 7, %v15287_v25 }
 0x30e   :  { %7876 = vmatpush3.msra.mxu1 %v12529_v20  ;;  %7850 = vmatprep.subr.mxu0 %v15230_v14  ;;  %v6834_v28 = vand.u32 3, %v6833_v6 }
 0x30f   :  { %7877 = vmatprep.subr.mxu1 %v15230_v14  ;;  %7851 = vmatpush3.msra.mxu0 %v12671_v27  ;;  %v6927_v42 = vmul.f32 %v6926_v48, %v6924_v60  ;;  %v15282_v60 = vand.u32 4294901760, %v12459_v30  ;;  %v13024_v48 = vld [vmem:[#allocation7 + $0x8] sm:$0x1f]  ;;  %v15284_v30 = vld [vmem:[#allocation35_spill] sm:$0xff] }
 0x310   :  { %7878 = vmatpush3.msra.mxu1 %v12565_v35  ;;  %7852 = vmatprep.subr.mxu0 %v15230_v14  ;;  %vm6836_vm8 = vcmp.eq.s32.totalorder %v6834_v28, 0  ;;  %vm6839_vm9 = vcmp.eq.s32.totalorder %v6834_v28, 2  ;;  %vm6835_vm10 = vcmp.lt.s32.totalorder %v6834_v28, 2  ;;  %v15294_v28 = vand.u32 4294901760, %v15265_v13 }
 0x311   :  { %7879 = vmatprep.subr.mxu1 %v15230_v14  ;;  %7853 = vmatpush3.msra.mxu0 %v12686_v32  ;;  %v6928_v51 = vxor.u32 2147483648, %v6927_v42  ;;  %v15295_v13 = vand.u32 4294901760, %v15267_v52 }
 0x312   :  { %7880 = vmatpush3.msra.mxu1 %v12576_v40  ;;  %7854 = vmatprep.subr.mxu0 %v15230_v14 }
 0x313   :  { %7881 = vmatprep.subr.mxu1 %v15230_v14  ;;  %7855 = vmatpush3.msra.mxu0 %v12856_v58  ;;  %v6929_v0 = vsel %vm6846_vm6, %v6928_v51, %v6927_v42  ;;  %v6937_v51 = vadd.s32 3, %v6933_v55 }
 0x314   :  { %7856 = vmatprep.mubr.msk.f32.mxu0 %vm8210_vm1, %v15230_v14  ;;  %7882 = vmatpush3.msra.mxu1 %v12578_v9  ;;  %v6932_v53 = vsel %vm12993_vm7, %v15275_v11, %v6929_v0  ;;  %v315_v0 = vrot.slane %v13024_v48, %v15285_v15 }
 0x315   :  { %7857 = vmatmul.mubr.f32.vlgmr.msra.gmra.mxu0 %v15279_v18  ;;  %7883 = vmatprep.subr.mxu1 %v15230_v14  ;;  %8060 = vcosq.f32 %v6932_v53  ;;  %v15286_v18 = vand.u32 4294901760, %v12502_v22  ;;  %v6938_v22 = vand.u32 3, %v6937_v51 }
 0x316   :  { %7894 = vmatprep.subr.mxu0 %v15230_v14  ;;  %7884 = vmatpush3.msra.mxu1 %v12640_v59  ;;  %8062 = vsinq.f32 %v6932_v53  ;;  %v15288_v53 = vsub.s32 6, %v15287_v25 }
 0x317   :  { %7895 = vmatpush3.msra.mxu0 %v15280_v56  ;;  %7885 = vmatprep.subr.mxu1 %v15230_v14  ;;  %v8057_v45 = vpop.eup %8056  ;;  %v15289_v56 = vld [vmem:[#allocation26_spill] sm:$0xff]  ;;  %vm6943_vm13 = vcmp.eq.s32.totalorder %v6938_v22, 2  ;;  %vm6940_vm15 = vcmp.eq.s32.totalorder %v6938_v22, 0  ;;  %vm6939_vm0 = vcmp.lt.s32.totalorder %v6938_v22, 2  ;;  %v15296_v22 = vand.u32 4294901760, %v15269_v38 }
 0x318   :  { %7896 = vmatprep.subr.mxu0 %v15230_v14  ;;  %7886 = vmatpush3.msra.mxu1 %v12642_v2  ;;  %v8059_v43 = vpop.eup %8058  ;;  %v6840_v3 = vxor.u32 2147483648, %v8057_v45  ;;  %v7501_v39 = vrot.slane %v15289_v56, %v15288_v53  ;;  %v7505_v6 = vrot.slane %v15289_v56, %v15290_v19  ;;  %v3869_v53 = vadd.f32 %v3868_v31, %v315_v0 }
 0x319   :  { %7897 = vmatpush3.msra.mxu0 %v15281_v7  ;;  %7887 = vmatprep.subr.mxu1 %v15230_v14  ;;  %v6837_v42 = vxor.u32 2147483648, %v8059_v43  ;;  %v15297_v38 = vand.u32 4294901760, %v15273_v37 }
 0x31a   :  { %7898 = vmatprep.subr.mxu0 %v15230_v14  ;;  %7888 = vmatpush3.msra.mxu1 %v12655_v49  ;;  %v6841_v55 = vsel %vm6839_vm9, %v6840_v3, %v8059_v43  ;;  %v15293_v43 = vand.u32 4294901760, %v15263_v33  ;;  %vm7532_vm11 = vcmp.eq.s32.totalorder %v7501_v39, 1  ;;  %vm7533_vm12 = vcmp.eq.s32.totalorder %v7505_v6, 1 }
 0x31b   :  { %7899 = vmatpush3.msra.mxu0 %v15282_v60  ;;  %7889 = vmatprep.subr.mxu1 %v15230_v14  ;;  %v6838_v7 = vsel %vm6836_vm8, %v8057_v45, %v6837_v42  ;;  %v3870_v60 = vpop.f32.mrf.mxu0 }
 0x31c   :  { %7900 = vmatprep.subr.mxu0 %v15230_v14  ;;  %7890 = vmatpush3.msra.mxu1 %v12694_v29  ;;  %v6842_v42 = vsel %vm6835_vm10, %v6838_v7, %v6841_v55 }
 0x31d   :  { %7891 = vmatprep.mubr.msk.f32.mxu1 %vm8210_vm1, %v15230_v14  ;;  %7901 = vmatpush3.msra.mxu0 %v15283_v47  ;;  %v4100_v47 = vpop.f32.mrf.mxu1  ;;  %v4237_v45 = vpop.f32.mrf.mxu0  ;;  %v6843_v31 = vsel %vm6832_vm14, nan, %v6842_v42 }
 0x31e   :  { %7892 = vmatmul.mubr.f32.vlgmr.msra.gmra.mxu1 %v15284_v30  ;;  %7902 = vmatprep.subr.mxu0 %v15230_v14  ;;  %v15292_v30 = vld [vmem:[#allocation60_spill] sm:$0xff]  ;;  %v4101_v56 = vadd.f32 %v4100_v47, %v3869_v53  ;;  %v7545_v52 = vsel %vm7532_vm11, %v15268_v10, %v6843_v31  ;;  %v15298_v10 = vand.u32 4294901760, %v15274_v17 }
 0x31f   :  { %7929 = vmatprep.subr.mxu1 %v15230_v14  ;;  %7903 = vmatpush3.msra.mxu0 %v15286_v18  ;;  %v319_v18 = vrot.slane %v13024_v48, %v15292_v30  ;;  %v4102_v51 = vpop.f32.mrf.mxu1  ;;  %v4239_v19 = vpop.f32.mrf.mxu0 }
 0x320   :  { %7930 = vmatpush3.msra.mxu1 %v15235_v24  ;;  %7904 = vmatprep.subr.mxu0 %v15230_v14  ;;  %v15291_v24 = vand.u32 4294901760, %v15261_v23 }
 0x321   :  { %7931 = vmatprep.subr.mxu1 %v15230_v14  ;;  %v4343_v7 = vpop.f32.mrf.mxu1  ;;  %v4511_v47 = vpop.f32.mrf.mxu0  ;;  %7926 = vmatprep.mubr.msk.f32.mxu0 %vm8210_vm1, %v15230_v14 }
 0x322   :  { %7905 = vmatpush3.msra.mxu0 %v15291_v24  ;;  %7932 = vmatpush3.msra.mxu1 %v15262_v16  ;;  %v8061_v25 = vpop.eup %8060 }
 0x323   :  { %7906 = vmatprep.subr.mxu0 %v15230_v14  ;;  %7933 = vmatprep.subr.mxu1 %v15230_v14  ;;  %v8063_v23 = vpop.eup %8062  ;;  %v6944_v3 = vxor.u32 2147483648, %v8061_v25  ;;  %v4345_v53 = vpop.f32.mrf.mxu1 }
 0x324   :  { %7907 = vmatpush3.msra.mxu0 %v15293_v43  ;;  %7934 = vmatpush3.msra.mxu1 %v15264_v1  ;;  %v6941_v16 = vxor.u32 2147483648, %v8063_v23  ;;  %v3871_v1 = vadd.f32 %v3870_v60, %v319_v18  ;;  %v4238_v60 = vadd.f32 %v4237_v45, %v4101_v56  ;;  %v4513_v39 = vpop.f32.mrf.mxu0 }
 0x325   :  { %7908 = vmatprep.subr.mxu0 %v15230_v14  ;;  %7935 = vmatprep.subr.mxu1 %v15230_v14  ;;  %v6945_v33 = vsel %vm6943_vm13, %v6944_v3, %v8063_v23  ;;  %v4615_v37 = vpop.f32.mrf.mxu1 }
 0x326   :  { %7909 = vmatpush3.msra.mxu0 %v15294_v28  ;;  %7936 = vmatpush3.msra.mxu1 %v15266_v21  ;;  %v6942_v0 = vsel %vm6940_vm15, %v8061_v25, %v6941_v16  ;;  %v4103_v24 = vadd.f32 %v4102_v51, %v3871_v1  ;;  %v4344_v25 = vadd.f32 %v4343_v7, %v4238_v60 }
 0x327   :  { %7910 = vmatprep.subr.mxu0 %v15230_v14  ;;  %7937 = vmatprep.subr.mxu1 %v15230_v14  ;;  %v6946_v21 = vsel %vm6939_vm0, %v6942_v0, %v6945_v33  ;;  %v4617_v17 = vpop.f32.mrf.mxu1 }
 0x328   :  { %7911 = vmatpush3.msra.mxu0 %v15295_v13  ;;  %7938 = vmatpush3.msra.mxu1 %v12476_v5  ;;  %v6947_v55 = vsel %vm6936_vm2, nan, %v6946_v21 }
 0x329   :  { %7912 = vmatprep.subr.mxu0 %v15230_v14  ;;  %7939 = vmatprep.subr.mxu1 %v15230_v14  ;;  %v7546_v5 = vsel %vm7533_vm12, %v15275_v11, %v6947_v55  ;;  %v4512_v11 = vadd.f32 %v4511_v47, %v4344_v25 }
 0x32a   :  { %7913 = vmatpush3.msra.mxu0 %v15296_v22  ;;  %7940 = vmatpush3.msra.mxu1 %v12482_v50  ;;  %v7567_v18 = vcombine.low %v7545_v52, %v7546_v5  ;;  %v4240_v50 = vadd.f32 %v4239_v19, %v4103_v24 }
 0x32b   :  { %7914 = vmatprep.subr.mxu0 %v15230_v14  ;;  %7941 = vmatprep.subr.mxu1 %v15230_v14 }
 0x32c   :  { %7915 = vmatpush3.msra.mxu0 %v15297_v38  ;;  %7942 = vmatpush3.msra.mxu1 %v12485_v26  ;;  %7579 = vst [vmem:[#allocation10 + $0x18] sm:$0xff] %v7567_v18  ;;  %v4346_v6 = vadd.f32 %v4345_v53, %v4240_v50  ;;  %v13093_v26 = vadd.f32 %v4615_v37, %v4512_v11 }
 0x32d   :  { %7916 = vmatprep.subr.mxu0 %v15230_v14  ;;  %7943 = vmatprep.subr.mxu1 %v15230_v14 }
 0x32e   :  { %7917 = vmatpush3.msra.mxu0 %v15298_v10  ;;  %7944 = vmatpush3.msra.mxu1 %v12510_v61  ;;  %v4514_v61 = vadd.f32 %v4513_v39, %v4346_v6  ;;  %v6948_v45 = vand.u32 2147483647, %v13093_v26  ;;  %v6951_v63 = vand.u32 2139095040, %v13093_v26  ;;  %vm6950_vm0 = vcmp.lt.s32.totalorder %v13093_v26, 0 }
 0x32f   :  { %7918 = vmatprep.subr.mxu0 %v15230_v14  ;;  %7945 = vmatprep.subr.mxu1 %v15230_v14 }
 0x330   :  { %7919 = vmatpush3.msra.mxu0 %v5653_v4  ;;  %7946 = vmatpush3.msra.mxu1 %v12529_v20  ;;  %v13104_v20 = vadd.f32 %v4617_v17, %v4514_v61  ;;  %v6952_v4 = vshrl.u32 %v6951_v63, 23  ;;  %v6955_v27 = vand.u32 8388607, %v6948_v45  ;;  %vm13194_vm2 = vcmp.le.f32.partialorder %v6948_v45, 0.7853982 }
 0x331   :  { %7920 = vmatprep.subr.mxu0 %v15230_v14  ;;  %7947 = vmatprep.subr.mxu1 %v15230_v14 }
 0x332   :  { %7921 = vmatpush3.msra.mxu0 %v5660_v41  ;;  %7948 = vmatpush3.msra.mxu1 %v12565_v35  ;;  %v7055_v35 = vand.u32 2139095040, %v13104_v20  ;;  %v7632_v32 = vadd.s32 4294967169, %v6952_v4  ;;  %v7052_v41 = vand.u32 2147483647, %v13104_v20  ;;  %v6956_v58 = vor.u32 8388608, %v6955_v27 }
 0x333   :  { %7922 = vmatprep.subr.mxu0 %v15230_v14  ;;  %7949 = vmatprep.subr.mxu1 %v15230_v14 }
 0x334   :  { %7923 = vmatpush3.msra.mxu0 %v5667_v62  ;;  %7950 = vmatpush3.msra.mxu1 %v12576_v40  ;;  %v7056_v40 = vshrl.u32 %v7055_v35, 23  ;;  %v6958_v62 = vadd.s32 1, %v7632_v32  ;;  %v7059_v43 = vand.u32 8388607, %v7052_v41  ;;  %v13131_v16 = vshll.u32 %v6956_v58, 8 }
 0x335   :  { %7924 = vmatprep.subr.mxu0 %v15230_v14  ;;  %7951 = vmatprep.subr.mxu1 %v15230_v14 }
 0x336   :  { %7925 = vmatpush3.msra.mxu0 %v5674_v34  ;;  %7952 = vmatpush3.msra.mxu1 %v12578_v9  ;;  %v7636_v34 = vadd.s32 4294967169, %v7056_v40  ;;  %vm6959_vm3 = vcmp.gt.s32.totalorder %v6958_v62, 0  ;;  %v7060_v28 = vor.u32 8388608, %v7059_v43 }
 0x337   :  { %7927 = vmatmul.mubr.f32.vlgmr.msra.gmra.mxu0 %v15232_v57  ;;  %7953 = vmatprep.subr.mxu1 %v15230_v14  ;;  %v6960_v9 = vsel %vm6959_vm3, %v6958_v62, 0  ;;  %vm7054_vm3 = vcmp.lt.s32.totalorder %v13104_v20, 0 }
 0x338   :  { %7961 = vmatprep.mubr.msk.f32.mxu1 %vm8210_vm1, %v15230_v14  ;;  %7954 = vmatpush3.msra.mxu1 %v12640_v59  ;;  %v7062_v23 = vadd.s32 1, %v7636_v34  ;;  %v6961_v42 = vshrl.u32 %v6960_v9, 5  ;;  %v6962_v3 = vand.u32 31, %v6960_v9  ;;  %v7100_v11 = vshll.u32 %v7060_v28, 8 }
 0x339   :  { %7955 = vmatprep.subr.mxu1 %v15230_v14 }
 0x33a   :  { %7956 = vmatpush3.msra.mxu1 %v12642_v2  ;;  %v6963_v59 = vsub.s32 32, %v6962_v3  ;;  %v6965_v51 = vshll.u32 %v15243_v8, %v6962_v3  ;;  %vm7063_vm1 = vcmp.gt.s32.totalorder %v7062_v23, 0  ;;  %v6968_v2 = vshll.u32 %v15245_v54, %v6962_v3 }
 0x33b   :  { %7957 = vmatprep.subr.mxu1 %v15230_v14  ;;  %v6971_v33 = vshll.u32 %v15246_v36, %v6962_v3  ;;  %v6974_v1 = vshll.u32 %v15247_v12, %v6962_v3  ;;  %v6977_v31 = vshll.u32 %v15248_v44, %v6962_v3  ;;  %vm6980_vm4 = vcmp.lt.s32.totalorder %v6961_v42, 1 }
 0x33c   :  { %7958 = vmatpush3.msra.mxu1 %v12655_v49  ;;  %v6966_v49 = vshrl.u32 %v15245_v54, %v6963_v59  ;;  %v6969_v0 = vshrl.u32 %v15246_v36, %v6963_v59  ;;  %v6964_v56 = vshrl.u32 %v15243_v8, %v6963_v59  ;;  %v6978_v19 = vshrl.u32 %v15249_v46, %v6963_v59 }
 0x33d   :  { %7959 = vmatprep.subr.mxu1 %v15230_v14  ;;  %v6972_v14 = vshrl.u32 %v15247_v12, %v6963_v59  ;;  %vm6982_vm5 = vcmp.lt.s32.totalorder %v6961_v42, 3  ;;  %v7064_v55 = vsel %vm7063_vm1, %v7062_v23, 0  ;;  %vm6983_vm6 = vcmp.lt.s32.totalorder %v6961_v42, 4 }
 0x33e   :  { %7960 = vmatpush3.msra.mxu1 %v12694_v29  ;;  %v6975_v29 = vshrl.u32 %v15248_v44, %v6963_v59  ;;  %v6967_v7 = vor.u32 %v6966_v49, %v6965_v51  ;;  %v6970_v13 = vor.u32 %v6969_v0, %v6968_v2  ;;  %v6979_v22 = vor.u32 %v6978_v19, %v6977_v31 }
 0x33f   :  { %7962 = vmatmul.mubr.f32.vlgmr.msra.gmra.mxu1 %v15232_v57  ;;  %v6973_v21 = vor.u32 %v6972_v14, %v6971_v33  ;;  %v7066_v47 = vand.u32 31, %v7064_v55  ;;  %vm6981_vm7 = vcmp.lt.s32.totalorder %v6961_v42, 2  ;;  %v7065_v61 = vshrl.u32 %v7064_v55, 5 }
 0x340   :  { %v6976_v60 = vor.u32 %v6975_v29, %v6974_v1  ;;  %v6984_v52 = vsel %vm6980_vm4, %v6964_v56, %v6967_v7  ;;  %v6988_v57 = vsel %vm6980_vm4, %v6967_v7, %v6970_v13  ;;  %v6993_v53 = vsel %vm6983_vm6, %v6979_v22, 1326507024 }
 0x341   :  { %v6985_v5 = vsel %vm6983_vm6, %v6973_v21, 2102212464  ;;  %v6992_v24 = vsel %vm6980_vm4, %v6970_v13, %v6973_v21  ;;  %v7067_v38 = vsub.s32 32, %v7066_v47  ;;  %v7069_v35 = vshll.u32 %v15243_v8, %v7066_v47 }
 0x342   :  { %v6986_v18 = vsel %vm6982_vm5, %v6970_v13, %v6985_v5  ;;  %v6989_v25 = vsel %vm6983_vm6, %v6976_v60, 920167782  ;;  %v6994_v10 = vsel %vm6982_vm5, %v6976_v60, %v6993_v53  ;;  %v7072_v40 = vshll.u32 %v15245_v54, %v7066_v47 }
 0x343   :  { %v6990_v50 = vsel %vm6982_vm5, %v6973_v21, %v6989_v25  ;;  %v6987_v39 = vsel %vm6981_vm7, %v6984_v52, %v6986_v18  ;;  %v6995_v37 = vsel %vm6981_vm7, %v6992_v24, %v6994_v10  ;;  %v7070_v32 = vshrl.u32 %v15245_v54, %v7067_v38 }
 0x344   :  { %v6991_v6 = vsel %vm6981_vm7, %v6988_v57, %v6990_v50  ;;  %v13155_v17 = vmul.u32.u64.low %v13131_v16, %v6995_v37  ;;  %v13156_v63 = vmul.u32.u64.high %v13131_v16, %v6995_v37, %v13155_v17  ;;  %v7073_v62 = vshrl.u32 %v15246_v36, %v7067_v38 }
 0x345   :  { %v13159_v4 = vmul.u32.u64.low %v13131_v16, %v6991_v6  ;;  %v13160_v27 = vmul.u32.u64.high %v13131_v16, %v6991_v6, %v13159_v4  ;;  %v7075_v58 = vshll.u32 %v15246_v36, %v7066_v47  ;;  %v7076_v34 = vshrl.u32 %v15247_v12, %v7067_v38 }
 0x346   :  { %v7078_v43 = vshll.u32 %v15247_v12, %v7066_v47  ;;  %v7079_v9 = vshrl.u32 %v15248_v44, %v7067_v38  ;;  %v7071_v23 = vor.u32 %v7070_v32, %v7069_v35  ;;  %v7074_v42 = vor.u32 %v7073_v62, %v7072_v40 }
 0x347   :  { %v7081_v3 = vshll.u32 %v15248_v44, %v7066_v47  ;;  %v7082_v59 = vshrl.u32 %v15249_v46, %v7067_v38  ;;  %v7003_v51 = vmul.u32 %v13131_v16, %v6987_v39  ;;  %vm7005_vm8 = vc.u32 %v13156_v63, %v13159_v4 }
 0x348   :  { %v7006_v28 = vadd.s32 1, %v13160_v27  ;;  %v7077_v2 = vor.u32 %v7076_v34, %v7075_v58  ;;  %v7068_v33 = vshrl.u32 %v15243_v8, %v7067_v38  ;;  %v7080_v1 = vor.u32 %v7079_v9, %v7078_v43 }
 0x349   :  { %v7083_v31 = vor.u32 %v7082_v59, %v7081_v3  ;;  %vm7084_vm9 = vcmp.lt.s32.totalorder %v7065_v61, 1  ;;  %vm7086_vm10 = vcmp.lt.s32.totalorder %v7065_v61, 3  ;;  %vm7087_vm11 = vcmp.lt.s32.totalorder %v7065_v61, 4 }
 0x34a   :  { %v7007_v49 = vsel %vm7005_vm8, %v7006_v28, %v13160_v27  ;;  %v7092_v0 = vsel %vm7084_vm9, %v7071_v23, %v7074_v42  ;;  %v7089_v56 = vsel %vm7087_vm11, %v7077_v2, 2102212464  ;;  %v7093_v29 = vsel %vm7087_vm11, %v7080_v1, 920167782 }
 0x34b   :  { %v7008_v14 = vadd.s32 %v7007_v49, %v7003_v51  ;;  %v7096_v16 = vsel %vm7084_vm9, %v7074_v42, %v7077_v2  ;;  %vm7085_vm12 = vcmp.lt.s32.totalorder %v7065_v61, 2  ;;  %v7088_v19 = vsel %vm7084_vm9, %v7068_v33, %v7071_v23 }
 0x34c   :  { %v7094_v7 = vsel %vm7086_vm10, %v7077_v2, %v7093_v29  ;;  %v7097_v13 = vsel %vm7087_vm11, %v7083_v31, 1326507024  ;;  %v7090_v55 = vsel %vm7086_vm10, %v7074_v42, %v7089_v56  ;;  %v7004_v34 = vadd.s32 %v13159_v4, %v13156_v63 }
 0x34d   :  { %v7009_v21 = vadd.s32 536870912, %v7008_v14  ;;  %v7095_v60 = vsel %vm7085_vm12, %v7092_v0, %v7094_v7  ;;  %v7098_v22 = vsel %vm7086_vm10, %v7080_v1, %v7097_v13  ;;  %v7091_v25 = vsel %vm7085_vm12, %v7088_v19, %v7090_v55 }
 0x34e   :  { %v7099_v47 = vsel %vm7085_vm12, %v7096_v16, %v7098_v22  ;;  %v13179_v52 = vmul.u32.u64.low %v7100_v11, %v7095_v60  ;;  %v13180_v5 = vmul.u32.u64.high %v7100_v11, %v7095_v60, %v13179_v52  ;;  %v7107_v10 = vmul.u32 %v7100_v11, %v7091_v25 }
 0x34f   :  { %v7010_v57 = vshrl.u32 %v7009_v21, 30  ;;  %v13182_v24 = vmul.u32.u64.low %v7100_v11, %v7099_v47  ;;  %v13183_v18 = vmul.u32.u64.high %v7100_v11, %v7099_v47, %v13182_v24  ;;  %vm13208_vm1 = vcmp.le.f32.partialorder %v7052_v41, 0.7853982 }
 0x350   :  { %v7110_v38 = vadd.s32 1, %v13180_v5  ;;  %vm7040_vm10 = vweird.f32 %v13093_v26 }
 0x351   :  { %v7011_v53 = vshll.u32 %v7010_v57, 30  ;;  %vm7109_vm13 = vc.u32 %v13183_v18, %v13179_v52  ;;  %v7108_v56 = vadd.s32 %v13179_v52, %v13183_v18  ;;  %v7034_v52 = vsub.s32 4, %v7010_v57 }
 0x352   :  { %v7111_v39 = vsel %vm7109_vm13, %v7110_v38, %v13180_v5 }
 0x353   :  { %v7012_v50 = vsub.s32 %v7008_v14, %v7011_v53  ;;  %v7112_v37 = vadd.s32 %v7111_v39, %v7107_v10  ;;  %v7035_v45 = vsel %vm6950_vm0, %v7034_v52, %v7010_v57 }
 0x354   :  { %v7037_v10 = vsel %vm13194_vm2, 0, %v7035_v45 }
 0x355   :  { %v7014_v6 = vsub.s32 0, %v7012_v50  ;;  %v7113_v17 = vadd.s32 536870912, %v7112_v37 }
 0x357   :  { %v7633_v61 = vmin.u32 %v7014_v6, %v7012_v50  ;;  %v7114_v35 = vshrl.u32 %v7113_v17, 30  ;;  %v7041_v6 = vadd.s32 3, %v7037_v10 }
 0x359   :  { %v7016_v27 = vclz %v7633_v61  ;;  %v7115_v40 = vshll.u32 %v7114_v35, 30  ;;  %v7138_v53 = vsub.s32 4, %v7114_v35  ;;  %v7469_v61 = vld [vmem:[#allocation8 + $0x8] sm:$0x1f] }
 0x35a   :  { %vm7471_vm4 = vcmp.gt.f32.partialorder %v7469_v61, 0.5 }
 0x35b   :  { %v7634_v32 = vadd.s32 4294967294, %v7016_v27  ;;  %v7116_v58 = vsub.s32 %v7112_v37, %v7115_v40  ;;  %v7139_v57 = vsel %vm7054_vm3, %v7138_v53, %v7114_v35  ;;  %v7042_v27 = vand.u32 3, %v7041_v6 }
 0x35c   :  { %v7141_v41 = vsel %vm13208_vm1, 0, %v7139_v57 }
 0x35d   :  { %vm7635_vm14 = vcmp.lt.s32.totalorder %v7634_v32, 0  ;;  %v7118_v9 = vsub.s32 0, %v7116_v58  ;;  %vm7044_vm5 = vcmp.eq.s32.totalorder %v7042_v27, 0  ;;  %vm7047_vm6 = vcmp.eq.s32.totalorder %v7042_v27, 2 }
 0x35e   :  { %v7019_v62 = vsel %vm7635_vm14, 0, %v7634_v32  ;;  %vm7043_vm7 = vcmp.lt.s32.totalorder %v7042_v27, 2  ;;  %vm7144_vm14 = vweird.f32 %v13104_v20 }
 0x35f   :  { %v7020_v43 = vsub.s32 32, %v7019_v62  ;;  %v7024_v11 = vsub.s32 4294967266, %v7019_v62  ;;  %v7021_v23 = vshll.u32 %v7012_v50, %v7019_v62  ;;  %v7637_v59 = vmin.u32 %v7118_v9, %v7116_v58 }
 0x360   :  { %v7145_v62 = vadd.s32 3, %v7141_v41 }
 0x361   :  { %v7022_v42 = vshrl.u32 %v7004_v34, %v7020_v43  ;;  %v7025_v3 = vadd.s32 127, %v7024_v11  ;;  %v7120_v2 = vclz %v7637_v59  ;;  %v4723_v43 = vpop.f32.mrf.mxu0 }
 0x362   :  { %v7146_v9 = vand.u32 3, %v7145_v62 }
 0x363   :  { %v7023_v51 = vor.u32 %v7022_v42, %v7021_v23  ;;  %v7026_v28 = vshll.u32 %v7025_v3, 23  ;;  %v7638_v1 = vadd.s32 4294967294, %v7120_v2  ;;  %v15304_v23 = vld [vmem:[#allocation27_spill] sm:$0xff]  ;;  %v4955_v2 = vpop.f32.mrf.mxu1 }
 0x364   :  { %v323_v42 = vrot.slane %v13024_v48, %v15304_v23  ;;  %vm7151_vm8 = vcmp.eq.s32.totalorder %v7146_v9, 2  ;;  %vm7148_vm11 = vcmp.eq.s32.totalorder %v7146_v9, 0  ;;  %vm7147_vm13 = vcmp.lt.s32.totalorder %v7146_v9, 2 }
 0x365   :  { %v7027_v33 = vor.u32 4788187, %v7026_v28  ;;  %v7030_v49 = vcvt.s32.f32 %v7023_v51  ;;  %vm7639_vm15 = vcmp.lt.s32.totalorder %v7638_v1, 0  ;;  %v4725_v28 = vpop.f32.mrf.mxu0 }
 0x366   :  { %v7123_v14 = vsel %vm7639_vm15, 0, %v7638_v1 }
 0x367   :  { %v7028_v31 = vand.u32 2147483647, %v7027_v33  ;;  %v7124_v63 = vsub.s32 32, %v7123_v14  ;;  %v7128_v4 = vsub.s32 4294967266, %v7123_v14  ;;  %v7125_v16 = vshll.u32 %v7116_v58, %v7123_v14 }
 0x368   :  { %v15303_v58 = vmov 0  }
 0x369   :  { %v7031_v0 = vmul.f32 %v7030_v49, %v7028_v31  ;;  %v7126_v19 = vshrl.u32 %v7108_v56, %v7124_v63  ;;  %v7129_v7 = vadd.s32 127, %v7128_v4  ;;  %v13220_v34 = vsel %vm7471_vm4, 1, %v15303_v58  ;;  %v15305_v49 = vld [vmem:[#allocation41_spill] sm:$0xff] }
 0x36a   :  { %v7509_v3 = vrot.slane %v13220_v34, %v15285_v15  ;;  %v7513_v51 = vrot.slane %v13220_v34, %v15292_v30  ;;  %v4724_v56 = vadd.f32 %v4723_v43, %v323_v42 }
 0x36b   :  { %v7032_v29 = vxor.u32 2147483648, %v7031_v0  ;;  %v7127_v60 = vor.u32 %v7126_v19, %v7125_v16  ;;  %v7130_v22 = vshll.u32 %v7129_v7, 23  ;;  %v5092_v63 = vpop.f32.mrf.mxu0  ;;  %v4957_v16 = vpop.f32.mrf.mxu1 }
 0x36c   :  { %vm13230_vm9 = vcmp.eq.s32.totalorder %v7509_v3, 1  ;;  %vm7535_vm12 = vcmp.eq.s32.totalorder %v7513_v51, 1  ;;  %v4956_v13 = vadd.f32 %v4955_v2, %v4724_v56 }
 0x36d   :  { %v7033_v21 = vsel %vm6950_vm0, %v7032_v29, %v7031_v0  ;;  %v7131_v47 = vor.u32 4788187, %v7130_v22  ;;  %v7134_v24 = vcvt.s32.f32 %v7127_v60  ;;  %v327_v0 = vrot.slane %v13024_v48, %v15305_v49 }
 0x36e   :  { %v7036_v55 = vsel %vm13194_vm2, %v13093_v26, %v7033_v21  ;;  %v5094_v21 = vpop.f32.mrf.mxu0  ;;  %v5093_v52 = vadd.f32 %v5092_v63, %v4956_v13 }
 0x36f   :  { %8064 = vcosq.f32 %v7036_v55  ;;  %v7132_v5 = vand.u32 2147483647, %v7131_v47  ;;  %v4726_v19 = vadd.f32 %v4725_v28, %v327_v0 }
 0x370   :  { %8066 = vsinq.f32 %v7036_v55 }
 0x371   :  { %v7135_v18 = vmul.f32 %v7134_v24, %v7132_v5  ;;  %v4958_v24 = vadd.f32 %v4957_v16, %v4726_v19 }
 0x373   :  { %v7136_v25 = vxor.u32 2147483648, %v7135_v18 }
 0x374   :  { %v5198_v55 = vpop.f32.mrf.mxu1 }
 0x375   :  { %v7137_v50 = vsel %vm7054_vm3, %v7136_v25, %v7135_v18  ;;  %v5199_v18 = vadd.f32 %v5198_v55, %v5093_v52  ;;  %v5095_v25 = vadd.f32 %v5094_v21, %v4958_v24 }
 0x376   :  { %v7140_v39 = vsel %vm13208_vm1, %v13104_v20, %v7137_v50  ;;  %v5200_v45 = vpop.f32.mrf.mxu1 }
 0x377   :  { %8068 = vcosq.f32 %v7140_v39  ;;  %v5201_v50 = vadd.f32 %v5200_v45, %v5095_v25 }
 0x378   :  { %8070 = vsinq.f32 %v7140_v39 }
 0x37c   :  { %v8065_v37 = vpop.eup %8064 }
 0x37d   :  { %v8067_v17 = vpop.eup %8066  ;;  %v7048_v40 = vxor.u32 2147483648, %v8065_v37 }
 0x37e   :  { %v7045_v32 = vxor.u32 2147483648, %v8067_v17 }
 0x37f   :  { %v7049_v11 = vsel %vm7047_vm6, %v7048_v40, %v8067_v17 }
 0x380   :  { %v7046_v35 = vsel %vm7044_vm5, %v8065_v37, %v7045_v32 }
 0x381   :  { %v7050_v1 = vsel %vm7043_vm7, %v7046_v35, %v7049_v11 }
 0x382   :  { %v7051_v30 = vsel %vm7040_vm10, nan, %v7050_v1 }
 0x383   :  { %v7547_v60 = vsel %vm13230_vm9, %v13093_v26, %v7051_v30 }
 0x384   :  { %v8069_v59 = vpop.eup %8068 }
 0x385   :  { %v8071_v33 = vpop.eup %8070  ;;  %v7152_v31 = vxor.u32 2147483648, %v8069_v59 }
 0x386   :  { %v7149_v14 = vxor.u32 2147483648, %v8071_v33 }
 0x387   :  { %v7153_v15 = vsel %vm7151_vm8, %v7152_v31, %v8071_v33 }
 0x388   :  { %v7150_v29 = vsel %vm7148_vm11, %v8069_v59, %v7149_v14 }
 0x389   :  { %v7154_v48 = vsel %vm7147_vm13, %v7150_v29, %v7153_v15 }
 0x38a   :  { %v7155_v7 = vsel %vm7144_vm14, nan, %v7154_v48 }
 0x38b   :  { %v7548_v22 = vsel %vm7535_vm12, %v13104_v20, %v7155_v7 }
 0x38c   :  { %v7568_v47 = vcombine.low %v7547_v60, %v7548_v22 }
 0x38e   :  { %v5366_v5 = vpop.f32.mrf.mxu0  ;;  %7580 = vst [vmem:[#allocation10 + $0x20] sm:$0xff] %v7568_v47 }
 0x38f   :  { %v5367_v53 = vadd.f32 %v5366_v5, %v5199_v18 }
 0x390   :  { %v5368_v38 = vpop.f32.mrf.mxu0 }
 0x391   :  { %v5369_v57 = vadd.f32 %v5368_v38, %v5201_v50 }
 0x397   :  { %v5470_v10 = vpop.f32.mrf.mxu1 }
 0x398   :  { %v13240_v39 = vadd.f32 %v5470_v10, %v5367_v53 }
 0x399   :  { %v5472_v6 = vpop.f32.mrf.mxu1 }
 0x39a   :  { %v7156_v26 = vand.u32 2147483647, %v13240_v39  ;;  %v7159_v20 = vand.u32 2139095040, %v13240_v39  ;;  %v13244_v37 = vadd.f32 %v5472_v6, %v5369_v57  ;;  %vm7158_vm13 = vcmp.lt.s32.totalorder %v13240_v39, 0 }
 0x39c   :  { %v7160_v61 = vshrl.u32 %v7159_v20, 23  ;;  %v7163_v17 = vand.u32 8388607, %v7156_v26  ;;  %v7263_v41 = vand.u32 2139095040, %v13244_v37  ;;  %v7260_v32 = vand.u32 2147483647, %v13244_v37 }
 0x39d   :  { %vm13326_vm14 = vcmp.le.f32.partialorder %v7156_v26, 0.7853982 }
 0x39e   :  { %v7640_v27 = vadd.s32 4294967169, %v7160_v61  ;;  %v7264_v40 = vshrl.u32 %v7263_v41, 23  ;;  %v7164_v58 = vor.u32 8388608, %v7163_v17  ;;  %v7267_v35 = vand.u32 8388607, %v7260_v32 }
 0x3a0   :  { %v7166_v62 = vadd.s32 1, %v7640_v27  ;;  %v7644_v43 = vadd.s32 4294967169, %v7264_v40  ;;  %v13252_v59 = vshll.u32 %v7164_v58, 8  ;;  %v7268_v2 = vor.u32 8388608, %v7267_v35 }
 0x3a2   :  { %vm7167_vm15 = vcmp.gt.s32.totalorder %v7166_v62, 0  ;;  %v7270_v9 = vadd.s32 1, %v7644_v43  ;;  %v13272_v53 = vshll.u32 %v7268_v2, 8 }
 0x3a3   :  { %v7168_v11 = vsel %vm7167_vm15, %v7166_v62, 0  ;;  %vm7262_vm15 = vcmp.lt.s32.totalorder %v13244_v37, 0 }
 0x3a4   :  { %v7169_v42 = vshrl.u32 %v7168_v11, 5  ;;  %v7170_v3 = vand.u32 31, %v7168_v11  ;;  %vm7271_vm0 = vcmp.gt.s32.totalorder %v7270_v9, 0 }
 0x3a5   :  { %v7272_v19 = vsel %vm7271_vm0, %v7270_v9, 0  ;;  %vm7261_vm0 = vcmp.le.f32.partialorder %v7260_v32, 0.7853982  ;;  %v8087_v32 = vld [vmem:[#allocation7 + $0x8] sm:$0x1f] }
 0x3a6   :  { %v7171_v51 = vsub.s32 32, %v7170_v3  ;;  %v7173_v28 = vshll.u32 %v15243_v8, %v7170_v3  ;;  %v7176_v33 = vshll.u32 %v15245_v54, %v7170_v3  ;;  %v7179_v1 = vshll.u32 %v15246_v36, %v7170_v3 }
 0x3a7   :  { %v7182_v31 = vshll.u32 %v15247_v12, %v7170_v3  ;;  %v7185_v0 = vshll.u32 %v15248_v44, %v7170_v3  ;;  %vm7188_vm2 = vcmp.lt.s32.totalorder %v7169_v42, 1  ;;  %vm7190_vm3 = vcmp.lt.s32.totalorder %v7169_v42, 3 }
 0x3a8   :  { %v7174_v14 = vshrl.u32 %v15245_v54, %v7171_v51  ;;  %v7177_v56 = vshrl.u32 %v15246_v36, %v7171_v51  ;;  %v7180_v63 = vshrl.u32 %v15247_v12, %v7171_v51  ;;  %v7172_v4 = vshrl.u32 %v15243_v8, %v7171_v51 }
 0x3a9   :  { %v7183_v15 = vshrl.u32 %v15248_v44, %v7171_v51  ;;  %v7186_v30 = vshrl.u32 %v15249_v46, %v7171_v51  ;;  %vm7191_vm1 = vcmp.lt.s32.totalorder %v7169_v42, 4  ;;  %v7274_v21 = vand.u32 31, %v7272_v19 }
 0x3aa   :  { %v7175_v29 = vor.u32 %v7174_v14, %v7173_v28  ;;  %v7178_v16 = vor.u32 %v7177_v56, %v7176_v33  ;;  %v7181_v48 = vor.u32 %v7180_v63, %v7179_v1  ;;  %vm7189_vm4 = vcmp.lt.s32.totalorder %v7169_v42, 2 }
 0x3ab   :  { %v7184_v7 = vor.u32 %v7183_v15, %v7182_v31  ;;  %v7187_v13 = vor.u32 %v7186_v30, %v7185_v0  ;;  %v7275_v18 = vsub.s32 32, %v7274_v21  ;;  %v7273_v57 = vshrl.u32 %v7272_v19, 5 }
 0x3ac   :  { %v7192_v55 = vsel %vm7188_vm2, %v7172_v4, %v7175_v29  ;;  %v7193_v60 = vsel %vm7191_vm1, %v7181_v48, 2102212464  ;;  %v7196_v22 = vsel %vm7188_vm2, %v7175_v29, %v7178_v16  ;;  %v7200_v47 = vsel %vm7188_vm2, %v7178_v16, %v7181_v48 }
 0x3ad   :  { %v7194_v52 = vsel %vm7190_vm3, %v7178_v16, %v7193_v60  ;;  %v7197_v5 = vsel %vm7191_vm1, %v7184_v7, 920167782  ;;  %v7201_v24 = vsel %vm7191_vm1, %v7187_v13, 1326507024  ;;  %v7277_v41 = vshll.u32 %v15243_v8, %v7274_v21 }
 0x3ae   :  { %v7198_v45 = vsel %vm7190_vm3, %v7181_v48, %v7197_v5  ;;  %v7202_v25 = vsel %vm7190_vm3, %v7184_v7, %v7201_v24  ;;  %v7195_v38 = vsel %vm7189_vm4, %v7192_v55, %v7194_v52  ;;  %v7278_v27 = vshrl.u32 %v15245_v54, %v7275_v18 }
 0x3af   :  { %v7199_v50 = vsel %vm7189_vm4, %v7196_v22, %v7198_v45  ;;  %v7203_v10 = vsel %vm7189_vm4, %v7200_v47, %v7202_v25  ;;  %v7280_v40 = vshll.u32 %v15245_v54, %v7274_v21  ;;  %v7281_v62 = vshrl.u32 %v15246_v36, %v7275_v18 }
 0x3b0   :  { %v13275_v6 = vmul.u32.u64.low %v13252_v59, %v7203_v10  ;;  %v13276_v20 = vmul.u32.u64.high %v13252_v59, %v7203_v10, %v13275_v6  ;;  %v13279_v61 = vmul.u32.u64.low %v13252_v59, %v7199_v50  ;;  %v13280_v17 = vmul.u32.u64.high %v13252_v59, %v7199_v50, %v13279_v61 }
 0x3b1   :  { %v7283_v58 = vshll.u32 %v15246_v36, %v7274_v21  ;;  %v7284_v43 = vshrl.u32 %v15247_v12, %v7275_v18  ;;  %v7286_v35 = vshll.u32 %v15247_v12, %v7274_v21  ;;  %v7287_v11 = vshrl.u32 %v15248_v44, %v7275_v18 }
 0x3b2   :  { %v7279_v9 = vor.u32 %v7278_v27, %v7277_v41  ;;  %v7282_v42 = vor.u32 %v7281_v62, %v7280_v40  ;;  %v7289_v3 = vshll.u32 %v15248_v44, %v7274_v21  ;;  %v7290_v51 = vshrl.u32 %v15249_v46, %v7275_v18  ;;  %v13293_v28 = vpop.f32.mrf.mxu0 }
 0x3b3   :  { %v7211_v2 = vmul.u32 %v13252_v59, %v7195_v38  ;;  %vm7213_vm5 = vc.u32 %v13276_v20, %v13279_v61  ;;  %v7214_v33 = vadd.s32 1, %v13280_v17  ;;  %v7285_v1 = vor.u32 %v7284_v43, %v7283_v58 }
 0x3b4   :  { %v7276_v31 = vshrl.u32 %v15243_v8, %v7275_v18  ;;  %v7288_v0 = vor.u32 %v7287_v11, %v7286_v35  ;;  %v7291_v14 = vor.u32 %v7290_v51, %v7289_v3  ;;  %vm7292_vm6 = vcmp.lt.s32.totalorder %v7273_v57, 1  ;;  %v7788_v56 = vpop.f32.mrf.mxu0 }
 0x3b5   :  { %v7215_v63 = vsel %vm7213_vm5, %v7214_v33, %v13280_v17  ;;  %vm7294_vm7 = vcmp.lt.s32.totalorder %v7273_v57, 3  ;;  %vm7295_vm8 = vcmp.lt.s32.totalorder %v7273_v57, 4  ;;  %v7300_v4 = vsel %vm7292_vm6, %v7279_v9, %v7282_v42 }
 0x3b6   :  { %v7216_v15 = vadd.s32 %v7215_v63, %v7211_v2  ;;  %v7297_v30 = vsel %vm7295_vm8, %v7285_v1, 2102212464  ;;  %v7301_v59 = vsel %vm7295_vm8, %v7288_v0, 920167782  ;;  %v7304_v29 = vsel %vm7292_vm6, %v7282_v42, %v7285_v1 }
 0x3b7   :  { %vm7293_vm9 = vcmp.lt.s32.totalorder %v7273_v57, 2  ;;  %v7296_v16 = vsel %vm7292_vm6, %v7276_v31, %v7279_v9  ;;  %v7302_v48 = vsel %vm7294_vm7, %v7285_v1, %v7301_v59  ;;  %v7305_v19 = vsel %vm7295_vm8, %v7291_v14, 1326507024 }
 0x3b8   :  { %v7217_v7 = vadd.s32 536870912, %v7216_v15  ;;  %v7298_v13 = vsel %vm7294_vm7, %v7282_v42, %v7297_v30  ;;  %v7303_v21 = vsel %vm7293_vm9, %v7300_v4, %v7302_v48  ;;  %v7306_v55 = vsel %vm7294_vm7, %v7288_v0, %v7305_v19 }
 0x3b9   :  { %v7307_v60 = vsel %vm7293_vm9, %v7304_v29, %v7306_v55  ;;  %v13302_v22 = vmul.u32.u64.low %v13272_v53, %v7303_v21  ;;  %v13303_v47 = vmul.u32.u64.high %v13272_v53, %v7303_v21, %v13302_v22  ;;  %v7299_v45 = vsel %vm7293_vm9, %v7296_v16, %v7298_v13 }
 0x3ba   :  { %v13305_v52 = vshrl.u32 %v7217_v7, 30  ;;  %v13308_v5 = vmul.u32.u64.low %v13272_v53, %v7307_v60  ;;  %v13309_v24 = vmul.u32.u64.high %v13272_v53, %v7307_v60, %v13308_v5  ;;  %v7315_v57 = vmul.u32 %v13272_v53, %v7299_v45 }
 0x3bb   :  { %v7318_v50 = vadd.s32 1, %v13303_v47  ;;  %v7212_v42 = vadd.s32 %v13279_v61, %v13276_v20  ;;  %vm7248_vm6 = vweird.f32 %v13240_v39 }
 0x3bc   :  { %v7219_v25 = vshll.u32 %v13305_v52, 30  ;;  %vm7317_vm10 = vc.u32 %v13309_v24, %v13302_v22  ;;  %v7316_v20 = vadd.s32 %v13302_v22, %v13309_v24 }
 0x3bd   :  { %v13311_v18 = vpop.f32.mrf.mxu1  ;;  %v7319_v6 = vsel %vm7317_vm10, %v7318_v50, %v13303_v47  ;;  %vm7352_vm10 = vweird.f32 %v13244_v37 }
 0x3be   :  { %v7220_v10 = vsub.s32 %v7216_v15, %v7219_v25  ;;  %v7320_v41 = vadd.s32 %v7319_v6, %v7315_v57 }
 0x3bf   :  { %v7823_v38 = vpop.f32.mrf.mxu1 }
 0x3c0   :  { %v7222_v17 = vsub.s32 0, %v7220_v10  ;;  %v7321_v40 = vadd.s32 536870912, %v7320_v41  ;;  %v7242_v38 = vsub.s32 4, %v13305_v52 }
 0x3c2   :  { %v7641_v27 = vmin.u32 %v7222_v17, %v7220_v10  ;;  %v7322_v58 = vshrl.u32 %v7321_v40, 30  ;;  %v7243_v6 = vsel %vm7158_vm13, %v7242_v38, %v13305_v52 }
 0x3c3   :  { %v7245_v40 = vsel %vm13326_vm14, 0, %v7243_v6 }
 0x3c4   :  { %v7224_v62 = vclz %v7641_v27  ;;  %v7323_v35 = vshll.u32 %v7322_v58, 30 }
 0x3c6   :  { %v7642_v43 = vadd.s32 4294967294, %v7224_v62  ;;  %v7324_v9 = vsub.s32 %v7320_v41, %v7323_v35  ;;  %v7346_v41 = vsub.s32 4, %v7322_v58  ;;  %v7249_v35 = vadd.s32 3, %v7245_v40 }
 0x3c8   :  { %vm7643_vm11 = vcmp.lt.s32.totalorder %v7642_v43, 0  ;;  %v7326_v51 = vsub.s32 0, %v7324_v9 }
 0x3c9   :  { %v7227_v11 = vsel %vm7643_vm11, 0, %v7642_v43  ;;  %v7347_v43 = vsel %vm7262_vm15, %v7346_v41, %v7322_v58  ;;  %v7517_v58 = vrot.slane %v13220_v34, %v15304_v23 }
 0x3ca   :  { %v7228_v3 = vsub.s32 32, %v7227_v11  ;;  %v7232_v53 = vsub.s32 4294967266, %v7227_v11  ;;  %v7229_v2 = vshll.u32 %v7220_v10, %v7227_v11  ;;  %v7645_v31 = vmin.u32 %v7326_v51, %v7324_v9 }
 0x3cb   :  { %v7349_v52 = vsel %vm7261_vm0, 0, %v7347_v43  ;;  %vm13351_vm5 = vcmp.eq.s32.totalorder %v7517_v58, 1 }
 0x3cc   :  { %v7230_v33 = vshrl.u32 %v7212_v42, %v7228_v3  ;;  %v7233_v1 = vadd.s32 127, %v7232_v53  ;;  %v7328_v56 = vclz %v7645_v31  ;;  %v7250_v42 = vand.u32 3, %v7249_v35 }
 0x3cd   :  { %v7353_v51 = vadd.s32 3, %v7349_v52 }
 0x3ce   :  { %v7231_v0 = vor.u32 %v7230_v33, %v7229_v2  ;;  %v7234_v14 = vshll.u32 %v7233_v1, 23  ;;  %v7646_v4 = vadd.s32 4294967294, %v7328_v56  ;;  %vm7252_vm2 = vcmp.eq.s32.totalorder %v7250_v42, 0  ;;  %v15310_v2 = vld [vmem:[#allocation75_spill] sm:$0xff] }
 0x3cf   :  { %vm7255_vm3 = vcmp.eq.s32.totalorder %v7250_v42, 2  ;;  %v331_v33 = vrot.slane %v8087_v32, %v15310_v2  ;;  %v7521_v56 = vrot.slane %v13220_v34, %v15305_v49  ;;  %vm7251_vm1 = vcmp.lt.s32.totalorder %v7250_v42, 2 }
 0x3d0   :  { %v7235_v63 = vor.u32 4788187, %v7234_v14  ;;  %v7238_v30 = vcvt.s32.f32 %v7231_v0  ;;  %vm7647_vm12 = vcmp.lt.s32.totalorder %v7646_v4, 0  ;;  %v7354_v0 = vand.u32 3, %v7353_v51 }
 0x3d1   :  { %v7331_v16 = vsel %vm7647_vm12, 0, %v7646_v4  ;;  %vm7537_vm8 = vcmp.eq.s32.totalorder %v7521_v56, 1 }
 0x3d2   :  { %v7236_v15 = vand.u32 2147483647, %v7235_v63  ;;  %v7332_v61 = vsub.s32 32, %v7331_v16  ;;  %v7336_v48 = vsub.s32 4294967266, %v7331_v16  ;;  %v7333_v13 = vshll.u32 %v7324_v9, %v7331_v16 }
 0x3d3   :  { %vm7359_vm4 = vcmp.eq.s32.totalorder %v7354_v0, 2  ;;  %vm7356_vm7 = vcmp.eq.s32.totalorder %v7354_v0, 0  ;;  %vm7355_vm9 = vcmp.lt.s32.totalorder %v7354_v0, 2 }
 0x3d4   :  { %v7239_v29 = vmul.f32 %v7238_v30, %v7236_v15  ;;  %v7334_v21 = vshrl.u32 %v7316_v20, %v7332_v61  ;;  %v7337_v55 = vadd.s32 127, %v7336_v48  ;;  %v5563_v30 = vadd.f32 %v13293_v28, %v331_v33 }
 0x3d5   :  { %v13320_v59 = vpop.f32.mrf.mxu0 }
 0x3d6   :  { %v7240_v7 = vxor.u32 2147483648, %v7239_v29  ;;  %v7335_v5 = vor.u32 %v7334_v21, %v7333_v13  ;;  %v7338_v24 = vshll.u32 %v7337_v55, 23  ;;  %v5714_v28 = vadd.f32 %v13311_v18, %v5563_v30 }
 0x3d7   :  { %v7858_v19 = vpop.f32.mrf.mxu0 }
 0x3d8   :  { %v7241_v47 = vsel %vm7158_vm13, %v7240_v7, %v7239_v29  ;;  %v7339_v45 = vor.u32 4788187, %v7338_v24  ;;  %v7342_v26 = vcvt.s32.f32 %v7335_v5  ;;  %v5818_v55 = vadd.f32 %v13320_v59, %v5714_v28 }
 0x3d9   :  { %v7244_v22 = vsel %vm13326_vm14, %v13240_v39, %v7241_v47 }
 0x3da   :  { %8072 = vcosq.f32 %v7244_v22  ;;  %v7340_v50 = vand.u32 2147483647, %v7339_v45 }
 0x3db   :  { %8074 = vsinq.f32 %v7244_v22 }
 0x3dc   :  { %v7343_v57 = vmul.f32 %v7342_v26, %v7340_v50 }
 0x3de   :  { %v5906_v25 = vpop.f32.mrf.mxu1  ;;  %v7344_v17 = vxor.u32 2147483648, %v7343_v57 }
 0x3df   :  { %v5907_v47 = vadd.f32 %v5906_v25, %v5818_v55 }
 0x3e0   :  { %v7893_v10 = vpop.f32.mrf.mxu1  ;;  %v7345_v27 = vsel %vm7262_vm15, %v7344_v17, %v7343_v57 }
 0x3e1   :  { %v7348_v62 = vsel %vm7261_vm0, %v13244_v37, %v7345_v27 }
 0x3e2   :  { %8076 = vcosq.f32 %v7348_v62 }
 0x3e3   :  { %8078 = vsinq.f32 %v7348_v62 }
 0x3e7   :  { %v8073_v11 = vpop.eup %8072 }
 0x3e8   :  { %v8075_v9 = vpop.eup %8074  ;;  %v7256_v53 = vxor.u32 2147483648, %v8073_v11 }
 0x3e9   :  { %v7253_v3 = vxor.u32 2147483648, %v8075_v9 }
 0x3ea   :  { %v7257_v31 = vsel %vm7255_vm3, %v7256_v53, %v8075_v9 }
 0x3eb   :  { %v7254_v1 = vsel %vm7252_vm2, %v8073_v11, %v7253_v3 }
 0x3ec   :  { %v7258_v4 = vsel %vm7251_vm1, %v7254_v1, %v7257_v31 }
 0x3ed   :  { %v7259_v61 = vsel %vm7248_vm6, nan, %v7258_v4 }
 0x3ee   :  { %v7549_v13 = vsel %vm13351_vm5, %v13240_v39, %v7259_v61 }
 0x3ef   :  { %v8077_v14 = vpop.eup %8076 }
 0x3f0   :  { %v8079_v63 = vpop.eup %8078  ;;  %v7360_v15 = vxor.u32 2147483648, %v8077_v14 }
 0x3f1   :  { %v7357_v29 = vxor.u32 2147483648, %v8079_v63 }
 0x3f2   :  { %v7361_v23 = vsel %vm7359_vm4, %v7360_v15, %v8079_v63 }
 0x3f3   :  { %v7358_v49 = vsel %vm7356_vm7, %v8077_v14, %v7357_v29 }
 0x3f4   :  { %v7362_v48 = vsel %vm7355_vm9, %v7358_v49, %v7361_v23 }
 0x3f5   :  { %v7363_v7 = vsel %vm7352_vm10, nan, %v7362_v48 }
 0x3f6   :  { %v7550_v21 = vsel %vm7537_vm8, %v13244_v37, %v7363_v7 }
 0x3f7   :  { %v6025_v20 = vpop.f32.mrf.mxu0  ;;  %v7569_v60 = vcombine.low %v7549_v13, %v7550_v21 }
 0x3f8   :  { %v6026_v22 = vadd.f32 %v6025_v20, %v5907_v47 }
 0x3f9   :  { %v7928_v19 = vpop.f32.mrf.mxu0  ;;  %7581 = vst [vmem:[#allocation10 + $0x28] sm:$0xff] %v7569_v60 }
 0x3ff   :  { %v6112_v5 = vpop.f32.mrf.mxu1 }
 0x400   :  { %v13363_v24 = vadd.f32 %v6112_v5, %v6026_v22 }
 0x401   :  { %v7963_v45 = vpop.f32.mrf.mxu1 }
 0x402   :  { %v7367_v18 = vand.u32 2139095040, %v13363_v24  ;;  %v7364_v10 = vand.u32 2147483647, %v13363_v24  ;;  %vm7366_vm3 = vcmp.lt.s32.totalorder %v13363_v24, 0  ;;  %vm7456_vm8 = vweird.f32 %v13363_v24 }
 0x404   :  { %v7368_v38 = vshrl.u32 %v7367_v18, 23  ;;  %v7371_v59 = vand.u32 8388607, %v7364_v10  ;;  %vm7365_vm1 = vcmp.le.f32.partialorder %v7364_v10, 0.7853982 }
 0x406   :  { %v7648_v50 = vadd.s32 4294967169, %v7368_v38  ;;  %v7372_v52 = vor.u32 8388608, %v7371_v59 }
 0x408   :  { %v7374_v26 = vadd.s32 1, %v7648_v50 }
 0x40a   :  { %vm7375_vm11 = vcmp.gt.s32.totalorder %v7374_v26, 0 }
 0x40b   :  { %v7376_v39 = vsel %vm7375_vm11, %v7374_v26, 0 }
 0x40c   :  { %v7378_v37 = vand.u32 31, %v7376_v39  ;;  %v7377_v57 = vshrl.u32 %v7376_v39, 5 }
 0x40e   :  { %v7379_v25 = vsub.s32 32, %v7378_v37  ;;  %v7381_v6 = vshll.u32 %v15243_v8, %v7378_v37  ;;  %v7384_v17 = vshll.u32 %v15245_v54, %v7378_v37  ;;  %v7387_v40 = vshll.u32 %v15246_v36, %v7378_v37 }
 0x40f   :  { %v7390_v43 = vshll.u32 %v15247_v12, %v7378_v37  ;;  %v7393_v11 = vshll.u32 %v15248_v44, %v7378_v37  ;;  %vm7396_vm12 = vcmp.lt.s32.totalorder %v7377_v57, 1  ;;  %vm7399_vm13 = vcmp.lt.s32.totalorder %v7377_v57, 4 }
 0x410   :  { %v7382_v41 = vshrl.u32 %v15245_v54, %v7379_v25  ;;  %v7385_v27 = vshrl.u32 %v15246_v36, %v7379_v25  ;;  %v7388_v62 = vshrl.u32 %v15247_v12, %v7379_v25  ;;  %v7391_v35 = vshrl.u32 %v15248_v44, %v7379_v25 }
 0x411   :  { %v7394_v9 = vshrl.u32 %v15249_v46, %v7379_v25  ;;  %v7380_v1 = vshrl.u32 %v15243_v8, %v7379_v25  ;;  %vm7398_vm14 = vcmp.lt.s32.totalorder %v7377_v57, 3  ;;  %vm7397_vm15 = vcmp.lt.s32.totalorder %v7377_v57, 2 }
 0x412   :  { %v7383_v42 = vor.u32 %v7382_v41, %v7381_v6  ;;  %v7386_v3 = vor.u32 %v7385_v27, %v7384_v17  ;;  %v7389_v53 = vor.u32 %v7388_v62, %v7387_v40  ;;  %v7392_v51 = vor.u32 %v7391_v35, %v7390_v43 }
 0x413   :  { %v7395_v54 = vor.u32 %v7394_v9, %v7393_v11  ;;  %v7412_v46 = vshll.u32 %v7372_v52, 8  ;;  %v7525_v11 = vrot.slane %v13220_v34, %v15310_v2 }
 0x414   :  { %v7401_v32 = vsel %vm7399_vm13, %v7389_v53, 2102212464  ;;  %v7404_v36 = vsel %vm7396_vm12, %v7383_v42, %v7386_v3  ;;  %v7408_v33 = vsel %vm7396_vm12, %v7386_v3, %v7389_v53  ;;  %v7405_v12 = vsel %vm7399_vm13, %v7392_v51, 920167782 }
 0x415   :  { %v7409_v31 = vsel %vm7399_vm13, %v7395_v54, 1326507024  ;;  %v7406_v44 = vsel %vm7398_vm14, %v7389_v53, %v7405_v12  ;;  %v7400_v58 = vsel %vm7396_vm12, %v7380_v1, %v7383_v42  ;;  %v7402_v14 = vsel %vm7398_vm14, %v7386_v3, %v7401_v32 }
 0x416   :  { %v7410_v0 = vsel %vm7398_vm14, %v7392_v51, %v7409_v31  ;;  %v7407_v56 = vsel %vm7397_vm15, %v7404_v36, %v7406_v44  ;;  %v7403_v16 = vsel %vm7397_vm15, %v7400_v58, %v7402_v14  ;;  %vm7538_vm6 = vcmp.eq.s32.totalorder %v7525_v11, 1 }
 0x417   :  { %v7411_v63 = vsel %vm7397_vm15, %v7408_v33, %v7410_v0  ;;  %v13383_v30 = vmul.u32.u64.low %v7412_v46, %v7407_v56  ;;  %v13384_v29 = vmul.u32.u64.high %v7412_v46, %v7407_v56, %v13383_v30  ;;  %v7419_v23 = vmul.u32 %v7412_v46, %v7403_v16 }
 0x418   :  { %v13380_v4 = vmul.u32.u64.low %v7412_v46, %v7411_v63  ;;  %v13381_v15 = vmul.u32.u64.high %v7412_v46, %v7411_v63, %v13380_v4 }
 0x419   :  { %v7422_v8 = vadd.s32 1, %v13384_v29 }
 0x41a   :  { %vm7421_vm0 = vc.u32 %v13381_v15, %v13383_v30  ;;  %v7420_v47 = vadd.s32 %v13383_v30, %v13381_v15 }
 0x41b   :  { %v7423_v20 = vsel %vm7421_vm0, %v7422_v8, %v13384_v29 }
 0x41c   :  { %v7424_v61 = vadd.s32 %v7423_v20, %v7419_v23 }
 0x41e   :  { %v7425_v49 = vadd.s32 536870912, %v7424_v61 }
 0x420   :  { %v7426_v48 = vshrl.u32 %v7425_v49, 30 }
 0x422   :  { %v7427_v28 = vshll.u32 %v7426_v48, 30  ;;  %v7450_v6 = vsub.s32 4, %v7426_v48 }
 0x424   :  { %v7428_v19 = vsub.s32 %v7424_v61, %v7427_v28  ;;  %v7451_v27 = vsel %vm7366_vm3, %v7450_v6, %v7426_v48 }
 0x425   :  { %v7453_v40 = vsel %vm7365_vm1, 0, %v7451_v27 }
 0x426   :  { %v7430_v7 = vsub.s32 0, %v7428_v19  ;;  %v7457_v62 = vadd.s32 3, %v7453_v40 }
 0x428   :  { %v7649_v13 = vmin.u32 %v7430_v7, %v7428_v19  ;;  %v7458_v43 = vand.u32 3, %v7457_v62 }
 0x42a   :  { %v7432_v21 = vclz %v7649_v13  ;;  %vm7463_vm4 = vcmp.eq.s32.totalorder %v7458_v43, 2  ;;  %vm7460_vm5 = vcmp.eq.s32.totalorder %v7458_v43, 0  ;;  %vm7459_vm7 = vcmp.lt.s32.totalorder %v7458_v43, 2 }
 0x42c   :  { %v7650_v55 = vadd.s32 4294967294, %v7432_v21 }
 0x42e   :  { %vm7651_vm2 = vcmp.lt.s32.totalorder %v7650_v55, 0 }
 0x42f   :  { %v7435_v60 = vsel %vm7651_vm2, 0, %v7650_v55 }
 0x430   :  { %v7436_v22 = vsub.s32 32, %v7435_v60  ;;  %v7440_v5 = vsub.s32 4294967266, %v7435_v60  ;;  %v7437_v45 = vshll.u32 %v7428_v19, %v7435_v60 }
 0x432   :  { %v7438_v18 = vshrl.u32 %v7420_v47, %v7436_v22  ;;  %v7441_v38 = vadd.s32 127, %v7440_v5 }
 0x434   :  { %v7439_v50 = vor.u32 %v7438_v18, %v7437_v45  ;;  %v7442_v26 = vshll.u32 %v7441_v38, 23 }
 0x436   :  { %v7443_v39 = vor.u32 4788187, %v7442_v26  ;;  %v7446_v59 = vcvt.s32.f32 %v7439_v50 }
 0x438   :  { %v7444_v37 = vand.u32 2147483647, %v7443_v39 }
 0x43a   :  { %v7447_v25 = vmul.f32 %v7446_v59, %v7444_v37 }
 0x43c   :  { %v7448_v57 = vxor.u32 2147483648, %v7447_v25 }
 0x43e   :  { %v7449_v17 = vsel %vm7366_vm3, %v7448_v57, %v7447_v25 }
 0x43f   :  { %v7452_v41 = vsel %vm7365_vm1, %v13363_v24, %v7449_v17 }
 0x440   :  { %8080 = vcosq.f32 %v7452_v41 }
 0x441   :  { %8082 = vsinq.f32 %v7452_v41 }
 0x44d   :  { %v8081_v35 = vpop.eup %8080 }
 0x44e   :  { %v8083_v9 = vpop.eup %8082  ;;  %v7464_v52 = vxor.u32 2147483648, %v8081_v35 }
 0x44f   :  { %v7461_v42 = vxor.u32 2147483648, %v8083_v9 }
 0x450   :  { %v7465_v3 = vsel %vm7463_vm4, %v7464_v52, %v8083_v9 }
 0x451   :  { %v7462_v10 = vsel %vm7460_vm5, %v8081_v35, %v7461_v42 }
 0x452   :  { %v7466_v53 = vsel %vm7459_vm7, %v7462_v10, %v7465_v3 }
 0x453   :  { %v7467_v51 = vsel %vm7456_vm8, nan, %v7466_v53 }
 0x454   :  { %v7551_v54 = vsel %vm7538_vm6, %v13363_v24, %v7467_v51 }
 0x455   :  { %7582 = vst [vmem:[#allocation10 + $0x30] sm:$0xf] %v7551_v54 }
 0x456   :  { %8179 = shalt.err (!%p8176_p10)
}
 0x457   :  { %7592 = dma.vmem_to_hbm [thread:$0]  %s7590_s3, 832, %s13405_s4, [#allocation4]  }
 0x458   :  { %8194 = dma.done.wait [#allocation4], 832  }
 0x459   :  { %8195 = vsyncadd [#allocation4], 4294966464 }
 0x45a   :  { %7596 = vsyncpa [#allocation3], 1 }
 0x45b   :  { %7597 = vsyncpa [#allocation6], 1 }
 0x45c   :  { %7598 = vsyncpa [#allocation9], 1 }
 0x45d   :  { %7599 = vsyncpa [#allocation4], 1 }

</bundles_post_ra>
